<compile_context>
chip_gen: v5e
topology: v5e:2x2
jax: 0.10.0
libtpu: 0.0.40
codegen_flags: <defaults>
</compile_context>

<pallas_src>
import jax
import jax.numpy as jnp
from jax.experimental import pallas as pl
from jax.experimental.pallas import tpu as pltpu

CLASS_ATTR = [7, 3, 3, 4, 6, 3]
N_HEADS = len(CLASS_ATTR)
NUM_FTRS = 2048          # resnet50 fc.in_features
HIDDEN = 1024
OUT_PAD = 8              # pad tiny head widths only up to 8 (max class = 7)
B_TILE = 16              # bf16 sublane packing: pad batch to a multiple of 16


def _heads_kernel(x_ref, w1_ref, b1_ref, w2_ref, b2_ref, o_ref):
    """One grid step == one classification head.

    x_ref  : [Bp, F]                    bf16  (same block every step -> resident)
    w1_ref : [1, F, HIDDEN]             bf16  (head i's W1, streamed per step)
    b1_ref : [N_HEADS, HIDDEN]          f32   (full array, resident)
    w2_ref : [N_HEADS, HIDDEN, OUT_PAD] bf16  (full array, resident)
    b2_ref : [N_HEADS, OUT_PAD]         f32   (full array, resident)
    o_ref  : [1, Bp, OUT_PAD]           f32
    """
    i = pl.program_id(0)
    x = x_ref[...]                                                 # bf16 [Bp, F]
    # First layer: bf16 x bf16 -> f32 accumulation on the MXU.
    h = jnp.dot(x, w1_ref[0], preferred_element_type=jnp.float32)
    h = h + b1_ref[i][None, :]
    h = jnp.maximum(h, 0.0)                                        # ReLU (f32 epilogue)
    # Second layer: tiny; feed MXU in bf16, accumulate f32.
    out = jnp.dot(h.astype(jnp.bfloat16), w2_ref[i],
                  preferred_element_type=jnp.float32)
    out = out + b2_ref[i][None, :]
    o_ref[0] = out.astype(o_ref.dtype)


@jax.jit
def heads_forward(x_bf16, w1, b1, w2, b2):
    """x_bf16: [Bp, F] bf16 features (Bp multiple of 16).

    Returns padded head outputs [N_HEADS, Bp, OUT_PAD] f32.
    """
    Bp, F = x_bf16.shape
    return pl.pallas_call(
        _heads_kernel,
        out_shape=jax.ShapeDtypeStruct((N_HEADS, Bp, OUT_PAD), jnp.float32),
        grid_spec=pltpu.PrefetchScalarGridSpec(
            num_scalar_prefetch=0,
            grid=(N_HEADS,),
            in_specs=[
                # x: same block every step -> stays resident in VMEM.
                pl.BlockSpec((Bp, F), lambda i: (0, 0)),
                # W1_i: the only streamed tensor (4 MiB bf16, double-buffered).
                pl.BlockSpec((1, F, HIDDEN), lambda i: (i, 0, 0)),
                # Biases / W2: full-extent blocks (satisfy full-dim rule),
                # constant index_map -> loaded once, resident across the grid.
                pl.BlockSpec((N_HEADS, HIDDEN), lambda i: (0, 0)),
                pl.BlockSpec((N_HEADS, HIDDEN, OUT_PAD), lambda i: (0, 0, 0)),
                pl.BlockSpec((N_HEADS, OUT_PAD), lambda i: (0, 0)),
            ],
            out_specs=pl.BlockSpec((1, Bp, OUT_PAD), lambda i: (i, 0, 0)),
        ),
        compiler_params=pltpu.CompilerParams(
            dimension_semantics=("parallel",),   # 6 heads split 3/3 on v7x megacore
            vmem_limit_bytes=32 << 20,
        ),
    )(x_bf16, w1, b1, w2, b2)


def init_params(key):
    """Deterministic stand-in for the six nn.Linear pairs (torch-style init scale).

    Weights in bfloat16 (HBM bandwidth is the bottleneck); biases in f32.
    """
    keys = jax.random.split(key, 4 * N_HEADS)
    w1, b1, w2, b2 = [], [], [], []
    for i, n_cls in enumerate(CLASS_ATTR):
        k0, k1, k2, k3 = keys[4 * i: 4 * i + 4]
        lim1 = 1.0 / jnp.sqrt(NUM_FTRS)
        lim2 = 1.0 / jnp.sqrt(HIDDEN)
        w1.append(jax.random.uniform(k0, (NUM_FTRS, HIDDEN), jnp.float32, -lim1, lim1))
        b1.append(jax.random.uniform(k1, (HIDDEN,), jnp.float32, -lim1, lim1))
        w2_i = jax.random.uniform(k2, (HIDDEN, n_cls), jnp.float32, -lim2, lim2)
        b2_i = jax.random.uniform(k3, (n_cls,), jnp.float32, -lim2, lim2)
        # zero-pad tiny output dims up to OUT_PAD lanes (padded lanes stay exactly 0)
        w2.append(jnp.pad(w2_i, ((0, 0), (0, OUT_PAD - n_cls))))
        b2.append(jnp.pad(b2_i, ((0, OUT_PAD - n_cls),)))
    return (
        jnp.stack(w1).astype(jnp.bfloat16),   # [6, F, HIDDEN]    bf16
        jnp.stack(b1),                        # [6, HIDDEN]       f32
        jnp.stack(w2).astype(jnp.bfloat16),   # [6, HIDDEN, 8]    bf16
        jnp.stack(b2),                        # [6, 8]            f32
    )


def my_model_forward(x, params):
    """Equivalent of MyModel.forward on post-backbone features x: [B, NUM_FTRS] f32."""
    w1, b1, w2, b2 = params
    B = x.shape[0]
    # Pad batch to a multiple of 16 (bf16 sublane packing); weight traffic is
    # amortized over all Bp rows, so callers should batch as much as possible.
    Bp = max(B_TILE, ((B + B_TILE - 1) // B_TILE) * B_TILE)
    x_bf16 = x.astype(jnp.bfloat16)
    if Bp != B:
        x_bf16 = jnp.pad(x_bf16, ((0, Bp - B), (0, 0)))
    padded = heads_forward(x_bf16, w1, b1, w2, b2)     # [6, Bp, OUT_PAD] f32
    return [padded[i, :B, :n] for i, n in enumerate(CLASS_ATTR)]


def _reference(x, params):
    """Same math (bf16 weights/inputs, f32 accumulation) via plain XLA."""
    w1, b1, w2, b2 = params
    x_bf16 = x.astype(jnp.bfloat16)
    outs = []
    for i, n in enumerate(CLASS_ATTR):
        h = jnp.dot(x_bf16, w1[i], preferred_element_type=jnp.float32) + b1[i]
        h = jnp.maximum(h, 0.0)
        o = jnp.dot(h.astype(jnp.bfloat16), w2[i],
                    preferred_element_type=jnp.float32) + b2[i]
        outs.append(o[:, :n])
    return outs


if __name__ == "__main__":
    key = jax.random.PRNGKey(0)
    k_feat, k_param = jax.random.split(key)

    B = 2
    # x plays the role of the resnet50 feature vector (backbone output).
    x = jax.random.normal(k_feat, (B, NUM_FTRS), jnp.float32)
    params = init_params(k_param)

    outs = my_model_forward(x, params)
    outs = [jax.block_until_ready(o) for o in outs]

    refs = _reference(x, params)
    for o, r, n in zip(outs, refs, CLASS_ATTR):
        assert o.shape == (B, n), (o.shape, n)
        # bf16 inputs + f32 accumulation; only summation-order differences remain.
        assert jnp.allclose(o, r, atol=2e-3, rtol=2e-3), (
            float(jnp.max(jnp.abs(o - r))), n)

    print("KERNEL_OK")
</pallas_src>

<mosaic_0001>
module attributes {stable_mosaic.version = 11 : i64} {
  func.func @_heads_kernel(%arg0: i32, %arg1: memref<16x2048xbf16, #tpu.memory_space<vmem>>, %arg2: memref<1x2048x1024xbf16, #tpu.memory_space<vmem>>, %arg3: memref<6x1024xf32, #tpu.memory_space<vmem>>, %arg4: memref<6x1024x8xbf16, #tpu.memory_space<vmem>>, %arg5: memref<6x8xf32, #tpu.memory_space<vmem>>, %arg6: memref<1x16x8xf32, #tpu.memory_space<vmem>>) attributes {dimension_semantics = [#tpu.dimension_semantics<parallel>], iteration_bounds = array<i64: 6>, scalar_prefetch = 0 : i64, scratch_operands = 0 : i64, tpu.core_type = #tpu.core_type<tc>, window_params = [{pipeline_mode = #tpu.pipeline_mode<synchronous>, transform_indices = @transform_0, window_bounds = array<i64: 16, 2048>}, {transform_indices = @transform_1, window_bounds = array<i64: 1, 2048, 1024>}, {pipeline_mode = #tpu.pipeline_mode<synchronous>, transform_indices = @transform_2, window_bounds = array<i64: 6, 1024>}, {pipeline_mode = #tpu.pipeline_mode<synchronous>, transform_indices = @transform_3, window_bounds = array<i64: 6, 1024, 8>}, {pipeline_mode = #tpu.pipeline_mode<synchronous>, transform_indices = @transform_4, window_bounds = array<i64: 6, 8>}, {transform_indices = @transform_5, window_bounds = array<i64: 1, 16, 8>}]} {
    %c0 = arith.constant 0 : index
    %c0_0 = arith.constant 0 : index
    %0 = vector.load %arg1[%c0, %c0_0] : memref<16x2048xbf16, #tpu.memory_space<vmem>>, vector<16x2048xbf16>
    %c0_1 = arith.constant 0 : index
    %c0_2 = arith.constant 0 : index
    %c0_3 = arith.constant 0 : index
    %1 = vector.load %arg2[%c0_1, %c0_2, %c0_3] : memref<1x2048x1024xbf16, #tpu.memory_space<vmem>>, vector<1x2048x1024xbf16>
    %2 = vector.shape_cast %1 : vector<1x2048x1024xbf16> to vector<2048x1024xbf16>
    %cst = arith.constant dense<0.000000e+00> : vector<16x1024xf32>
    %3 = tpu.matmul %0, %2, %cst {dimension_numbers = #tpu.dot_dimension_numbers<[1], [0], [0], [1], [0, 0, 1, 1], [], []>} : vector<16x2048xbf16>, vector<2048x1024xbf16>, vector<16x1024xf32> -> vector<16x1024xf32>
    %4 = arith.index_cast %arg0 : i32 to index
    %c0_4 = arith.constant 0 : index
    %5 = vector.load %arg3[%4, %c0_4] : memref<6x1024xf32, #tpu.memory_space<vmem>>, vector<1x1024xf32>
    %6 = vector.shape_cast %5 : vector<1x1024xf32> to vector<1024xf32>
    %7 = vector.shape_cast %6 : vector<1024xf32> to vector<1x1024xf32>
    %8 = vector.broadcast %7 : vector<1x1024xf32> to vector<16x1024xf32>
    %9 = arith.addf %3, %8 : vector<16x1024xf32>
    %cst_5 = arith.constant 0.000000e+00 : f32
    %10 = vector.broadcast %cst_5 : f32 to vector<16x1024xf32>
    %11 = arith.maximumf %9, %10 : vector<16x1024xf32>
    %12 = arith.truncf %11 : vector<16x1024xf32> to vector<16x1024xbf16>
    %13 = arith.index_cast %arg0 : i32 to index
    %c0_6 = arith.constant 0 : index
    %c0_7 = arith.constant 0 : index
    %14 = vector.load %arg4[%13, %c0_6, %c0_7] : memref<6x1024x8xbf16, #tpu.memory_space<vmem>>, vector<1x1024x8xbf16>
    %15 = vector.shape_cast %14 : vector<1x1024x8xbf16> to vector<1024x8xbf16>
    %cst_8 = arith.constant dense<0.000000e+00> : vector<16x8xf32>
    %16 = tpu.matmul %12, %15, %cst_8 {dimension_numbers = #tpu.dot_dimension_numbers<[1], [0], [0], [1], [0, 0, 1, 1], [], []>} : vector<16x1024xbf16>, vector<1024x8xbf16>, vector<16x8xf32> -> vector<16x8xf32>
    %17 = arith.index_cast %arg0 : i32 to index
    %c0_9 = arith.constant 0 : index
    %18 = vector.load %arg5[%17, %c0_9] : memref<6x8xf32, #tpu.memory_space<vmem>>, vector<1x8xf32>
    %19 = vector.shape_cast %18 : vector<1x8xf32> to vector<8xf32>
    %20 = vector.shape_cast %19 : vector<8xf32> to vector<1x8xf32>
    %21 = vector.broadcast %20 : vector<1x8xf32> to vector<16x8xf32>
    %22 = arith.addf %16, %21 : vector<16x8xf32>
    %c0_10 = arith.constant 0 : index
    %c0_11 = arith.constant 0 : index
    %c0_12 = arith.constant 0 : index
    %23 = vector.load %arg6[%c0_10, %c0_11, %c0_12] : memref<1x16x8xf32, #tpu.memory_space<vmem>>, vector<1x16x8xf32>
    %24 = vector.shape_cast %23 : vector<1x16x8xf32> to vector<16x8xf32>
    %25 = vector.shape_cast %22 : vector<16x8xf32> to vector<1x16x8xf32>
    tpu.vector_store %arg6[%c0_10, %c0_11, %c0_12], %25 {strides = array<i32>} : memref<1x16x8xf32, #tpu.memory_space<vmem>>, vector<1x16x8xf32>,
    return
  }
  func.func @transform_0(%arg0: i32) -> (i32, i32) {
    %c0_i32 = arith.constant 0 : i32
    %c0_i32_0 = arith.constant 0 : i32
    %c0_i32_1 = arith.constant 0 : i32
    return %c0_i32, %c0_i32_0 : i32, i32
  }
  func.func @transform_1(%arg0: i32) -> (i32, i32, i32) {
    %c0_i32 = arith.constant 0 : i32
    %c0_i32_0 = arith.constant 0 : i32
    %c0_i32_1 = arith.constant 0 : i32
    return %arg0, %c0_i32, %c0_i32_0 : i32, i32, i32
  }
  func.func @transform_2(%arg0: i32) -> (i32, i32) {
    %c0_i32 = arith.constant 0 : i32
    %c0_i32_0 = arith.constant 0 : i32
    %c0_i32_1 = arith.constant 0 : i32
    return %c0_i32, %c0_i32_0 : i32, i32
  }
  func.func @transform_3(%arg0: i32) -> (i32, i32, i32) {
    %c0_i32 = arith.constant 0 : i32
    %c0_i32_0 = arith.constant 0 : i32
    %c0_i32_1 = arith.constant 0 : i32
    %c0_i32_2 = arith.constant 0 : i32
    return %c0_i32, %c0_i32_0, %c0_i32_1 : i32, i32, i32
  }
  func.func @transform_4(%arg0: i32) -> (i32, i32) {
    %c0_i32 = arith.constant 0 : i32
    %c0_i32_0 = arith.constant 0 : i32
    %c0_i32_1 = arith.constant 0 : i32
    return %c0_i32, %c0_i32_0 : i32, i32
  }
  func.func @transform_5(%arg0: i32) -> (i32, i32, i32) {
    %c0_i32 = arith.constant 0 : i32
    %c0_i32_0 = arith.constant 0 : i32
    %c0_i32_1 = arith.constant 0 : i32
    return %arg0, %c0_i32, %c0_i32_0 : i32, i32, i32
  }
}

</mosaic_0001>

<bundles_post_ra>
// kernel: heads_forward.1
= control target key start
LH: loop header
LB: loop body
LE: loop exit
PB: predicated region body
PF: predicated region fallthrough
CT: control target
= control target key end

     0   :  { %s17791_s0 = inlined_call_operand.hbm [shape: bf16[16,2048], index: 0, kind: input, shape index: {}]   ;;  %s17792_s1 = inlined_call_operand.hbm [shape: bf16[6,2048,1024], index: 1, kind: input, shape index: {}]   ;;  %s17793_s2 = inlined_call_operand.hbm [shape: f32[6,1024], index: 2, kind: input, shape index: {}]   ;;  %s17794_s3 = inlined_call_operand.vmem [shape: bf16[6,1024,8], index: 3, kind: input, shape index: {}]   ;;  %s17795_s4 = inlined_call_operand.hbm [shape: f32[6,8], index: 4, kind: input, shape index: {}]   ;;  %s17796_s5 = inlined_call_operand.vmem [shape: f32[6,16,8], index: 5, kind: output, shape index: {}]  }
   0x1   :  { %17803 = sst [smem:[#allocation82_spill]] %s17791_s0 }
   0x2   :  { %10 = vsyncpa [#allocation3], 0 }
   0x3   :  { %11 = vsyncpa [#allocation5], 0 }
   0x4   :  { %13 = vsyncpa [#allocation5 + $0x1], 0 }
   0x5   :  { %14 = vsyncpa [#allocation8], 0  ;;  %s14944_s18 = smov 0   ;;  %s14946_s19 = smov 0  }
   0x6   :  { %s14948_s20 = smov 0   ;;  %s14950_s21 = smov 0  }
   0x7 LB: > { %s14963_s22 = sadd.s32 4294967295, %s14905_s21   ;;  %s14966_s23 = sadd.s32 1, %s14905_s21   ;;  %s14905_s21 = sphi %s14950_s21, %s17957_s21   ;;  %s14901_s20 = sphi %s14948_s20, %s17956_s20   ;;  %s14897_s19 = sphi %s14946_s19, %s17955_s19   ;;  %s14893_s18 = sphi %s14944_s18, %s17954_s18  }
   0x8   : > { %s45_s24 = ssub.s32 %s14905_s21, %s14966_s23  ;;  %s48_s25 = sadd.s32 1, %s14901_s20 }
   0x9   : > { %p46_p0 = scmp.eq.s32.totalorder %s45_s24, 0  ;;  %p55_p1 = scmp.ne.s32.totalorder %s14901_s20, %s14897_s19 }
   0xa   : > { %p56_p2 = scmp.eq.s32.totalorder %s14905_s21, 0  ;;  %p61_p3 = scmp.ne.s32.totalorder %s14897_s19, %s14893_s18 }
   0xb   : > { %s14976_s26 = scalar_select %p46_p0, %s14901_s20, %s48_s25  }
   0xc   : > { %p14978_p4 = por %p56_p2, %p55_p1  ;;  %p62_p5 = scmp.eq.s32.totalorder %s14963_s22, 0 }
   0xd   : > { %p9115_p6 = scmp.ge.s32.totalorder %s14905_s21, 1  ;;  %p161_p7 = scmp.lt.s32.totalorder %s14905_s21, 7 }
   0xe   : > { %p14987_p8 = por %p62_p5, %p61_p3  ;;  %s187_s7 = sshll.u32 %s17793_s2, 4  ;;  %s188_s7 = int_to_ptr.hbm [resolvable:$true] %s187_s7 }
   0xf   : > { %p14991_p9 = pnand %p9115_p6, %p161_p7  ;;  %s14907_s8 = smov [#allocation6]  }
  0x10   : > { %s189_s9 = sshll.u32 %s14907_s8, 4  ;;  %p14695_p12 = scmp.lt.s32.totalorder %s14905_s21, 6  ;;  %s190_s9 = int_to_ptr.vmem [resolvable:$true] %s189_s9 }
  0x11   : > { %p14678_p10 = pneg %p14991_p9  ;;  %s17808_s0 = sld [smem:[#allocation82_spill]] }
  0x12   : > { %p15012_p13 = pnand %p14695_p12, %p14978_p4  ;;  %s14908_s15 = smov [#allocation2]  }
  0x13   : > { %p15002_p11 = pnand %p14678_p10, %p62_p5  ;;  %s174_s16 = sshll.u32 %s14908_s15, 4  ;;  %s175_s16 = int_to_ptr.vmem [resolvable:$true] %s174_s16 }
  0x14   : > { %s14909_s17 = smov 1024   ;;  %s14910_s18 = smov 64  }
  0x15   : > { %14684 = dma.hbm_to_vmem [thread:$0]  (!%p15002_p11), %s188_s7, 1024, %s190_s9, [#allocation5]  }
  0x16   : > { %s202_s27 = sshll.u32 %s17795_s4, 4  ;;  %s14911_s30 = smov [#allocation7]   ;;  %s203_s27 = int_to_ptr.hbm [resolvable:$true] %s202_s27 }
  0x17   : > { %s172_s13 = sshll.u32 %s17808_s0, 4  ;;  %s204_s6 = sshll.u32 %s14911_s30, 4  ;;  %s173_s13 = int_to_ptr.hbm [resolvable:$true] %s172_s13  ;;  %s205_s6 = int_to_ptr.vmem [resolvable:$true] %s204_s6 }
  0x18   : > { %14681 = dma.hbm_to_vmem [thread:$0]  (!%p15002_p11), %s173_s13, 2048, %s175_s16, [#allocation3], %s14909_s17, %s14909_s17, %s14910_s18  }
  0x19   : > { %s215_s8 = sand.u32 1, %s14905_s21   ;;  %s217_s7 = sand.u32 1, %s14901_s20  }
  0x1a   : > { %14687 = dma.hbm_to_vmem [thread:$0]  (!%p15002_p11), %s203_s27, 128, %s205_s6, [#allocation8]  }
  0x1b   : > { %s9120_s9 = sshll.u32 %s217_s7, 13  ;;  %s13553_s11 = sshll.u32 %s14905_s21, 13 }
  0x1c   : > { %s224_s0 = scalar_lea.hbm %s17792_s1, %s13553_s11  ;;  %s219_s16 = scalar_lea.vmem [#allocation4], %s9120_s9 }
  0x1d   : > { %s225_s13 = sshll.u32 %s224_s0, 4  ;;  %s227_s17 = sshll.u32 %s219_s16, 4  ;;  %s226_s13 = int_to_ptr.hbm [resolvable:$true] %s225_s13  ;;  %s228_s17 = int_to_ptr.vmem [resolvable:$true] %s227_s17 }
  0x1e   : > { %s216_s18 = scalar_lea.sflag [#allocation5], %s215_s8  ;;  %s14829_s24 = sshra.s32 %s226_s13, 4  ;;  %s14830_s24 = int_to_ptr.hbm [resolvable:$true] %s14829_s24 }
  0x1f   : > { %s14831_s25 = scalar_lea.hbm %s14830_s24, 8192  ;;  %p14833_p1 = pneg %p15012_p13 }
  0x20   : > { %p14832_p0 = scmp.ne.s32.totalorder %s14830_s24, %s14831_s25  ;;  %s14836_s30 = scalar_lea.hbm %s17792_s1, 49152 }
  0x21   : > { %p14837_p4 = scmp.lt.s32.totalorder %s14830_s24, %s17792_s1  ;;  %p14838_p6 = scmp.lt.s32.totalorder %s14836_s30, %s14831_s25 }
  0x22   : > { %p14834_p2 = pnand %p14833_p1, %p14832_p0 }
  0x23   : > { %p14839_p7 = por %p14838_p6, %p14837_p4 }
  0x24   : > { %p14835_p3 = pneg %p14834_p2 }
  0x26   : > { %p14840_p10 = pnand %p14839_p7, %p14835_p3 }
  0x28   : > { %14843 = shalt.err (!%p14840_p10)
}
  0x29   : > { %s14912_s0 = smov 512   ;;  %s14913_s8 = smov 32  }
  0x2a   : > { %14691 = dma.hbm_to_vmem [thread:$0]  (!%p15012_p13), %s226_s13, 131072, %s228_s17, %s216_s18, %s14912_s0, %s14912_s0, %s14913_s8  }
  0x2b   : > { %239 = sbr.rel (%p14991_p9) target bundleno = 2238 (0x8be), region = 40 }
  0x30   : > { %14876 = dma.done.wait (%p62_p5), [#allocation3], 2048  }
  0x31   : > { %14878 = vsyncadd (%p62_p5), [#allocation3], 4294965248  ;;  %s246_s9 = sand.u32 1, %s14963_s22   ;;  %s248_s11 = sand.u32 1, %s14897_s19  }
  0x32   : > { %s9125_s12 = sshll.u32 %s248_s11, 13  ;;  %s247_s15 = scalar_lea.sflag [#allocation5], %s246_s9 }
  0x33   : > { %s15049_s16 = scalar_lea.vmem [#allocation4], %s9125_s12 }
  0x34   : > { %14880 = dma.done.wait (%p14987_p8), %s247_s15, 131072  }
  0x35   : > { %14882 = vsyncadd (%p14987_p8), %s247_s15, 4294836224 }
  0x36   : > { %14884 = dma.done.wait (%p62_p5), [#allocation5], 1024  }
  0x37   : > { %14886 = vsyncadd (%p62_p5), [#allocation5], 4294966272 }
  0x38   : > { %14888 = dma.done.wait (%p62_p5), [#allocation8], 128  }
  0x39   : > { %14890 = vsyncadd (%p62_p5), [#allocation8], 4294967168  ;;  %v9422_v0 = vld [vmem:[%s15049_s16 + $0x1c0] sm:$0xf]  ;;  %s1333_s28 = sshra.s32 %s14963_s22, 3  ;;  %s1336_s29 = sand.u32 7, %s14963_s22 }
  0x3a   : > { %v13631_v1 = vld [vmem:[%s15049_s16 + $0x1dc] sm:$0xf0]  ;;  %s14595_s14 = sshll.u32 %s1333_s28, 6  ;;  %s14596_s18 = sshll.u32 %s14963_s22, 9  ;;  %vm9007_vm0 = vcmask 64512  }
  0x3b   : > { %v9678_v2 = vld [vmem:[%s15049_s16 + $0x3c0] sm:$0xf]  ;;  %v9423_v3 = vor.u32 %v13631_v1, %v9422_v0  ;;  %s15420_s13 = sadd.s32 %s14595_s14, %s1336_s29  ;;  %s17593_s10 = scalar_lea.vmem %s17794_s3, %s14596_s18 }
  0x3c   : > { %v13695_v4 = vld [vmem:[%s15049_s16 + $0x3dc] sm:$0xf0]  ;;  %s1340_s17 = scalar_lea.vmem [#allocation6], %s15420_s13  ;;  %s14661_s27 = scalar_lea.vmem [#allocation7], %s14905_s21 }
  0x3d   : > { %v9934_v5 = vld [vmem:[%s15049_s16 + $0x5c0] sm:$0xf]  ;;  %v9679_v7 = vor.u32 %v13695_v4, %v9678_v2  ;;  %6561 = vmatpush.bf16.msra.mxu0 %v9423_v3  ;;  %p288_p5 = scmp.lt.s32.totalorder %s14963_s22, 5 }
  0x3e   : > { %v13759_v6 = vld [vmem:[%s15049_s16 + $0x5dc] sm:$0xf0] }
  0x3f   : > { %v9935_v8 = vor.u32 %v13759_v6, %v9934_v5  ;;  %v10190_v9 = vld [vmem:[%s15049_s16 + $0x7c0] sm:$0xf]  ;;  %6575 = vmatpush.bf16.msra.mxu1 %v9679_v7  ;;  %s17959_s22 = smov (!%p288_p5, %s14963_s22), 5 }
  0x40   : > { %v13823_v10 = vld [vmem:[%s15049_s16 + $0x7dc] sm:$0xf0]  ;;  %s13554_s21 = sshll.u32 %s17959_s22, 4 }
  0x41   : > { %v9390_v11 = vld [vmem:[%s15049_s16 + $0x180] sm:$0xf]  ;;  %v10191_v12 = vor.u32 %v13823_v10, %v10190_v9  ;;  %6589 = vmatpush.bf16.msra.mxu2 %v9935_v8  ;;  %s292_s7 = scalar_lea.vmem %s17796_s5, %s13554_s21 }
  0x42   : > { %v13623_v13 = vld [vmem:[%s15049_s16 + $0x19c] sm:$0xf0] }
  0x43   : > { %v9646_v14 = vld [vmem:[%s15049_s16 + $0x380] sm:$0xf]  ;;  %v9391_v16 = vor.u32 %v13623_v13, %v9390_v11  ;;  %6603 = vmatpush.bf16.msra.mxu3 %v10191_v12 }
  0x44   : > { %v13687_v15 = vld [vmem:[%s15049_s16 + $0x39c] sm:$0xf0] }
  0x45   : > { %v9647_v17 = vor.u32 %v13687_v15, %v9646_v14  ;;  %v9902_v18 = vld [vmem:[%s15049_s16 + $0x580] sm:$0xf]  ;;  %6562 = vmatpush.bf16.msra.mxu0 %v9391_v16 }
  0x46   : > { %v13751_v19 = vld [vmem:[%s15049_s16 + $0x59c] sm:$0xf0] }
  0x47   : > { %v10158_v20 = vld [vmem:[%s15049_s16 + $0x780] sm:$0xf]  ;;  %v9903_v21 = vor.u32 %v13751_v19, %v9902_v18  ;;  %6576 = vmatpush.bf16.msra.mxu1 %v9647_v17 }
  0x48   : > { %v13815_v22 = vld [vmem:[%s15049_s16 + $0x79c] sm:$0xf0] }
  0x49   : > { %v9358_v23 = vld [vmem:[%s15049_s16 + $0x140] sm:$0xf]  ;;  %v10159_v25 = vor.u32 %v13815_v22, %v10158_v20  ;;  %6590 = vmatpush.bf16.msra.mxu2 %v9903_v21 }
  0x4a   : > { %v13615_v24 = vld [vmem:[%s15049_s16 + $0x15c] sm:$0xf0] }
  0x4b   : > { %v9614_v26 = vld [vmem:[%s15049_s16 + $0x340] sm:$0xf]  ;;  %v9359_v29 = vor.u32 %v13615_v24, %v9358_v23  ;;  %6604 = vmatpush.bf16.msra.mxu3 %v10159_v25 }
  0x4c   : > { %v13679_v27 = vld [vmem:[%s15049_s16 + $0x35c] sm:$0xf0] }
  0x4d   : > { %v9870_v28 = vld [vmem:[%s15049_s16 + $0x540] sm:$0xf]  ;;  %v9615_v33 = vor.u32 %v13679_v27, %v9614_v26  ;;  %6563 = vmatpush.bf16.msra.mxu0 %v9359_v29 }
  0x4e   : > { %v13743_v30 = vld [vmem:[%s15049_s16 + $0x55c] sm:$0xf0] }
  0x4f   : > { %v10126_v31 = vld [vmem:[%s15049_s16 + $0x740] sm:$0xf]  ;;  %v9871_v34 = vor.u32 %v13743_v30, %v9870_v28  ;;  %6577 = vmatpush.bf16.msra.mxu1 %v9615_v33 }
  0x50   : > { %v13807_v32 = vld [vmem:[%s15049_s16 + $0x75c] sm:$0xf0] }
  0x51   : > { %v9326_v35 = vld [vmem:[%s15049_s16 + $0x100] sm:$0xf]  ;;  %v10127_v38 = vor.u32 %v13807_v32, %v10126_v31  ;;  %6591 = vmatpush.bf16.msra.mxu2 %v9871_v34 }
  0x52   : > { %v13607_v36 = vld [vmem:[%s15049_s16 + $0x11c] sm:$0xf0] }
  0x53   : > { %v9582_v37 = vld [vmem:[%s15049_s16 + $0x300] sm:$0xf]  ;;  %v9327_v44 = vor.u32 %v13607_v36, %v9326_v35  ;;  %6605 = vmatpush.bf16.msra.mxu3 %v10127_v38 }
  0x54   : > { %v13671_v39 = vld [vmem:[%s15049_s16 + $0x31c] sm:$0xf0] }
  0x55   : > { %v9838_v40 = vld [vmem:[%s15049_s16 + $0x500] sm:$0xf]  ;;  %v9583_v45 = vor.u32 %v13671_v39, %v9582_v37  ;;  %6564 = vmatpush.bf16.msra.mxu0 %v9327_v44 }
  0x56   : > { %v13735_v41 = vld [vmem:[%s15049_s16 + $0x51c] sm:$0xf0] }
  0x57   : > { %v10094_v42 = vld [vmem:[%s15049_s16 + $0x700] sm:$0xf]  ;;  %v9839_v46 = vor.u32 %v13735_v41, %v9838_v40  ;;  %6578 = vmatpush.bf16.msra.mxu1 %v9583_v45 }
  0x58   : > { %v13799_v43 = vld [vmem:[%s15049_s16 + $0x71c] sm:$0xf0] }
  0x59   : > { %v9294_v47 = vld [vmem:[%s15049_s16 + $0xc0] sm:$0xf]  ;;  %v10095_v50 = vor.u32 %v13799_v43, %v10094_v42  ;;  %6592 = vmatpush.bf16.msra.mxu2 %v9839_v46 }
  0x5a   : > { %v13599_v48 = vld [vmem:[%s15049_s16 + $0xdc] sm:$0xf0] }
  0x5b   : > { %v9550_v49 = vld [vmem:[%s15049_s16 + $0x2c0] sm:$0xf]  ;;  %v9295_v56 = vor.u32 %v13599_v48, %v9294_v47  ;;  %6606 = vmatpush.bf16.msra.mxu3 %v10095_v50 }
  0x5c   : > { %v13663_v51 = vld [vmem:[%s15049_s16 + $0x2dc] sm:$0xf0] }
  0x5d   : > { %v9806_v52 = vld [vmem:[%s15049_s16 + $0x4c0] sm:$0xf]  ;;  %v9551_v57 = vor.u32 %v13663_v51, %v9550_v49  ;;  %6565 = vmatpush.bf16.msra.mxu0 %v9295_v56 }
  0x5e   : > { %v13727_v53 = vld [vmem:[%s15049_s16 + $0x4dc] sm:$0xf0] }
  0x5f   : > { %v10062_v54 = vld [vmem:[%s15049_s16 + $0x6c0] sm:$0xf]  ;;  %v9807_v58 = vor.u32 %v13727_v53, %v9806_v52  ;;  %6579 = vmatpush.bf16.msra.mxu1 %v9551_v57 }
  0x60   : > { %v13791_v55 = vld [vmem:[%s15049_s16 + $0x6dc] sm:$0xf0] }
  0x61   : > { %v9262_v59 = vld [vmem:[%s15049_s16 + $0x80] sm:$0xf]  ;;  %v10063_v62 = vor.u32 %v13791_v55, %v10062_v54  ;;  %6593 = vmatpush.bf16.msra.mxu2 %v9807_v58  ;;  %v9142_v54 = vld [vmem:[#allocation2 + $0x8] sm:$0xf] }
  0x62   : > { %v13591_v60 = vld [vmem:[%s15049_s16 + $0x9c] sm:$0xf0] }
  0x63   : > { %v9518_v61 = vld [vmem:[%s15049_s16 + $0x280] sm:$0xf]  ;;  %v9263_v4 = vor.u32 %v13591_v60, %v9262_v59  ;;  %6607 = vmatpush.bf16.msra.mxu3 %v10063_v62  ;;  %v13564_v59 = vld [vmem:[#allocation2 + $0x44] sm:$0xf0] }
  0x64   : > { %v13655_v63 = vld [vmem:[%s15049_s16 + $0x29c] sm:$0xf0] }
  0x65   : > { %v9774_v0 = vld [vmem:[%s15049_s16 + $0x480] sm:$0xf]  ;;  %v9519_v5 = vor.u32 %v13655_v63, %v9518_v61  ;;  %6566 = vmatpush.bf16.msra.mxu0 %v9263_v4 }
  0x66   : > { %v13719_v1 = vld [vmem:[%s15049_s16 + $0x49c] sm:$0xf0] }
  0x67   : > { %v10030_v2 = vld [vmem:[%s15049_s16 + $0x680] sm:$0xf]  ;;  %v9775_v6 = vor.u32 %v13719_v1, %v9774_v0  ;;  %6580 = vmatpush.bf16.msra.mxu1 %v9519_v5  ;;  %v15150_v1 = vor.u32 %v13564_v59, %v9142_v54 }
  0x68   : > { %v13783_v3 = vld [vmem:[%s15049_s16 + $0x69c] sm:$0xf0] }
  0x69   : > { %v9230_v7 = vld [vmem:[%s15049_s16 + $0x40] sm:$0xf]  ;;  %v10031_v10 = vor.u32 %v13783_v3, %v10030_v2  ;;  %6594 = vmatpush.bf16.msra.mxu2 %v9775_v6  ;;  %v13555_v6 = vld [vmem:[#allocation2 + $0x4] sm:$0xf] }
  0x6a   : > { %v13583_v8 = vld [vmem:[%s15049_s16 + $0x5c] sm:$0xf0] }
  0x6b   : > { %v9486_v9 = vld [vmem:[%s15049_s16 + $0x240] sm:$0xf]  ;;  %v9231_v16 = vor.u32 %v13583_v8, %v9230_v7  ;;  %6608 = vmatpush.bf16.msra.mxu3 %v10031_v10  ;;  %v9136_v7 = vld [vmem:[#allocation2 + $0x40] sm:$0xf0]  ;;  %v13556_v8 = vld [vmem:[#allocation2 + $0xc] sm:$0xf] }
  0x6c   : > { %v13647_v11 = vld [vmem:[%s15049_s16 + $0x25c] sm:$0xf0]  ;;  %v15157_v10 = vor.u32 %v13555_v6, %v9136_v7 }
  0x6d   : > { %v9742_v12 = vld [vmem:[%s15049_s16 + $0x440] sm:$0xf]  ;;  %v9487_v19 = vor.u32 %v13647_v11, %v9486_v9  ;;  %6567 = vmatpush.bf16.msra.mxu0 %v9231_v16  ;;  %v9144_v11 = vld [vmem:[#allocation2 + $0x48] sm:$0xf0] }
  0x6e   : > { %v13711_v13 = vld [vmem:[%s15049_s16 + $0x45c] sm:$0xf0] }
  0x6f   : > { %v9998_v14 = vld [vmem:[%s15049_s16 + $0x640] sm:$0xf]  ;;  %v9743_v20 = vor.u32 %v13711_v13, %v9742_v12  ;;  %6581 = vmatpush.bf16.msra.mxu1 %v9487_v19 }
  0x70   : > { %v13775_v15 = vld [vmem:[%s15049_s16 + $0x65c] sm:$0xf0] }
  0x71   : > { %v9198_v17 = vld [vmem:[%s15049_s16] sm:$0xf]  ;;  %v9999_v24 = vor.u32 %v13775_v15, %v9998_v14  ;;  %6595 = vmatpush.bf16.msra.mxu2 %v9743_v20 }
  0x72   : > { %v13575_v18 = vld [vmem:[%s15049_s16 + $0x1c] sm:$0xf0] }
  0x73   : > { %v9454_v21 = vld [vmem:[%s15049_s16 + $0x200] sm:$0xf]  ;;  %v9199_v31 = vor.u32 %v13575_v18, %v9198_v17  ;;  %6609 = vmatpush.bf16.msra.mxu3 %v9999_v24  ;;  %v15162_v17 = vor.u32 %v13556_v8, %v9144_v11 }
  0x74   : > { %v13639_v22 = vld [vmem:[%s15049_s16 + $0x21c] sm:$0xf0] }
  0x75   : > { %v9710_v23 = vld [vmem:[%s15049_s16 + $0x400] sm:$0xf]  ;;  %v9455_v35 = vor.u32 %v13639_v22, %v9454_v21  ;;  %6568 = vmatpush.bf16.msra.mxu0 %v9199_v31 }
  0x76   : > { %v13703_v25 = vld [vmem:[%s15049_s16 + $0x41c] sm:$0xf0] }
  0x77   : > { %v9966_v26 = vld [vmem:[%s15049_s16 + $0x600] sm:$0xf]  ;;  %v9711_v36 = vor.u32 %v13703_v25, %v9710_v23  ;;  %6582 = vmatpush.bf16.msra.mxu1 %v9455_v35 }
  0x78   : > { %v13767_v27 = vld [vmem:[%s15049_s16 + $0x61c] sm:$0xf0] }
  0x79   : > { %v10446_v28 = vld [vmem:[%s15049_s16 + $0x9c0] sm:$0xf]  ;;  %v9967_v39 = vor.u32 %v13767_v27, %v9966_v26  ;;  %6596 = vmatpush.bf16.msra.mxu2 %v9711_v36 }
  0x7a   : > { %v13887_v29 = vld [vmem:[%s15049_s16 + $0x9dc] sm:$0xf0]  ;;  %6583 = vmatmul.bf16.vlgmr.msra.gmra.mxu1 %v15157_v10 }
  0x7b   : > { %v10702_v30 = vld [vmem:[%s15049_s16 + $0xbc0] sm:$0xf]  ;;  %v10447_v40 = vor.u32 %v13887_v29, %v10446_v28  ;;  %6610 = vmatpush.bf16.msra.mxu3 %v9967_v39 }
  0x7c   : > { %v13951_v32 = vld [vmem:[%s15049_s16 + $0xbdc] sm:$0xf0]  ;;  %6597 = vmatmul.bf16.vlgmr.msra.gmra.mxu2 %v15150_v1 }
  0x7d   : > { %v10958_v33 = vld [vmem:[%s15049_s16 + $0xdc0] sm:$0xf]  ;;  %v10703_v43 = vor.u32 %v13951_v32, %v10702_v30  ;;  %6617 = vmatpush.bf16.msrb.mxu0 %v10447_v40 }
  0x7e   : > { %v14015_v34 = vld [vmem:[%s15049_s16 + $0xddc] sm:$0xf0]  ;;  %6611 = vmatmul.bf16.vlgmr.msra.gmra.mxu3 %v15162_v17 }
  0x7f   : > { %v11214_v37 = vld [vmem:[%s15049_s16 + $0xfc0] sm:$0xf]  ;;  %v10959_v44 = vor.u32 %v14015_v34, %v10958_v33  ;;  %6631 = vmatpush.bf16.msrb.mxu1 %v10703_v43 }
  0x80   : > { %v14079_v38 = vld [vmem:[%s15049_s16 + $0xfdc] sm:$0xf0] }
  0x81   : > { %v10414_v41 = vld [vmem:[%s15049_s16 + $0x980] sm:$0xf]  ;;  %v11215_v48 = vor.u32 %v14079_v38, %v11214_v37  ;;  %6645 = vmatpush.bf16.msrb.mxu2 %v10959_v44 }
  0x82   : > { %v13879_v42 = vld [vmem:[%s15049_s16 + $0x99c] sm:$0xf0] }
  0x83   : > { %v10670_v45 = vld [vmem:[%s15049_s16 + $0xb80] sm:$0xf]  ;;  %v10415_v55 = vor.u32 %v13879_v42, %v10414_v41  ;;  %6659 = vmatpush.bf16.msrb.mxu3 %v11215_v48 }
  0x84   : > { %v13943_v46 = vld [vmem:[%s15049_s16 + $0xb9c] sm:$0xf0] }
  0x85   : > { %v10926_v47 = vld [vmem:[%s15049_s16 + $0xd80] sm:$0xf]  ;;  %v10671_v60 = vor.u32 %v13943_v46, %v10670_v45  ;;  %6618 = vmatpush.bf16.msrb.mxu0 %v10415_v55 }
  0x86   : > { %v14007_v49 = vld [vmem:[%s15049_s16 + $0xd9c] sm:$0xf0] }
  0x87   : > { %v11182_v50 = vld [vmem:[%s15049_s16 + $0xf80] sm:$0xf]  ;;  %v10927_v61 = vor.u32 %v14007_v49, %v10926_v47  ;;  %6632 = vmatpush.bf16.msrb.mxu1 %v10671_v60 }
  0x88   : > { %v14071_v51 = vld [vmem:[%s15049_s16 + $0xf9c] sm:$0xf0] }
  0x89   : > { %v9134_v52 = vld [vmem:[#allocation2] sm:$0xf]  ;;  %v11183_v2 = vor.u32 %v14071_v51, %v11182_v50  ;;  %6646 = vmatpush.bf16.msrb.mxu2 %v10927_v61 }
  0x8a   : > { %v13563_v53 = vld [vmem:[#allocation2 + $0x3c] sm:$0xf0] }
  0x8b   : > { %v10382_v56 = vld [vmem:[%s15049_s16 + $0x940] sm:$0xf]  ;;  %v15145_v58 = vor.u32 %v13563_v53, %v9134_v52  ;;  %6660 = vmatpush.bf16.msrb.mxu3 %v11183_v2 }
  0x8c   : > { %v13871_v57 = vld [vmem:[%s15049_s16 + $0x95c] sm:$0xf0] }
  0x8d   : > { %v10638_v62 = vld [vmem:[%s15049_s16 + $0xb40] sm:$0xf]  ;;  %6569 = vmatmul.bf16.vlgmr.msra.gmra.mxu0 %v15145_v58  ;;  %v10383_v9 = vor.u32 %v13871_v57, %v10382_v56 }
  0x8e   : > { %v13935_v63 = vld [vmem:[%s15049_s16 + $0xb5c] sm:$0xf0] }
  0x8f   : > { %v10894_v0 = vld [vmem:[%s15049_s16 + $0xd40] sm:$0xf]  ;;  %v10639_v12 = vor.u32 %v13935_v63, %v10638_v62  ;;  %6619 = vmatpush.bf16.msrb.mxu0 %v10383_v9 }
  0x90   : > { %v13999_v3 = vld [vmem:[%s15049_s16 + $0xd5c] sm:$0xf0] }
  0x91   : > { %v11150_v4 = vld [vmem:[%s15049_s16 + $0xf40] sm:$0xf]  ;;  %v10895_v13 = vor.u32 %v13999_v3, %v10894_v0  ;;  %6633 = vmatpush.bf16.msrb.mxu1 %v10639_v12 }
  0x92   : > { %v14063_v5 = vld [vmem:[%s15049_s16 + $0xf5c] sm:$0xf0] }
  0x93   : > { %v10350_v14 = vld [vmem:[%s15049_s16 + $0x900] sm:$0xf]  ;;  %v11151_v18 = vor.u32 %v14063_v5, %v11150_v4  ;;  %6647 = vmatpush.bf16.msrb.mxu2 %v10895_v13 }
  0x94   : > { %v13863_v15 = vld [vmem:[%s15049_s16 + $0x91c] sm:$0xf0] }
  0x95   : > { %v10606_v16 = vld [vmem:[%s15049_s16 + $0xb00] sm:$0xf]  ;;  %v10351_v24 = vor.u32 %v13863_v15, %v10350_v14  ;;  %6661 = vmatpush.bf16.msrb.mxu3 %v11151_v18 }
  0x96   : > { %v13927_v19 = vld [vmem:[%s15049_s16 + $0xb1c] sm:$0xf0] }
  0x97   : > { %v10862_v20 = vld [vmem:[%s15049_s16 + $0xd00] sm:$0xf]  ;;  %v10607_v25 = vor.u32 %v13927_v19, %v10606_v16  ;;  %6620 = vmatpush.bf16.msrb.mxu0 %v10351_v24 }
  0x98   : > { %v13991_v21 = vld [vmem:[%s15049_s16 + $0xd1c] sm:$0xf0] }
  0x99   : > { %v11118_v22 = vld [vmem:[%s15049_s16 + $0xf00] sm:$0xf]  ;;  %v10863_v26 = vor.u32 %v13991_v21, %v10862_v20  ;;  %6634 = vmatpush.bf16.msrb.mxu1 %v10607_v25  ;;  %v9150_v21 = vld [vmem:[#allocation2 + $0x10] sm:$0xf]  ;;  %v9158_v25 = vld [vmem:[#allocation2 + $0x18] sm:$0xf] }
  0x9a   : > { %v14055_v23 = vld [vmem:[%s15049_s16 + $0xf1c] sm:$0xf0] }
  0x9b   : > { %v10318_v27 = vld [vmem:[%s15049_s16 + $0x8c0] sm:$0xf]  ;;  %v11119_v30 = vor.u32 %v14055_v23, %v11118_v22  ;;  %6648 = vmatpush.bf16.msrb.mxu2 %v10863_v26  ;;  %v13565_v22 = vld [vmem:[#allocation2 + $0x4c] sm:$0xf0]  ;;  %v13566_v26 = vld [vmem:[#allocation2 + $0x54] sm:$0xf0] }
  0x9c   : > { %v13855_v28 = vld [vmem:[%s15049_s16 + $0x8dc] sm:$0xf0] }
  0x9d   : > { %v10574_v29 = vld [vmem:[%s15049_s16 + $0xac0] sm:$0xf]  ;;  %v10319_v36 = vor.u32 %v13855_v28, %v10318_v27  ;;  %6662 = vmatpush.bf16.msrb.mxu3 %v11119_v30  ;;  %v13557_v27 = vld [vmem:[#allocation2 + $0x14] sm:$0xf] }
  0x9e   : > { %v13919_v31 = vld [vmem:[%s15049_s16 + $0xadc] sm:$0xf0]  ;;  %v9152_v30 = vld [vmem:[#allocation2 + $0x50] sm:$0xf0] }
  0x9f   : > { %v10830_v32 = vld [vmem:[%s15049_s16 + $0xcc0] sm:$0xf]  ;;  %v10575_v37 = vor.u32 %v13919_v31, %v10574_v29  ;;  %6621 = vmatpush.bf16.msrb.mxu0 %v10319_v36  ;;  %v13558_v31 = vld [vmem:[#allocation2 + $0x1c] sm:$0xf] }
  0xa0   : > { %v13983_v33 = vld [vmem:[%s15049_s16 + $0xcdc] sm:$0xf0] }
  0xa1   : > { %v11086_v34 = vld [vmem:[%s15049_s16 + $0xec0] sm:$0xf]  ;;  %v10831_v38 = vor.u32 %v13983_v33, %v10830_v32  ;;  %6635 = vmatpush.bf16.msrb.mxu1 %v10575_v37  ;;  %v9160_v32 = vld [vmem:[#allocation2 + $0x58] sm:$0xf0] }
  0xa2   : > { %v14047_v35 = vld [vmem:[%s15049_s16 + $0xedc] sm:$0xf0] }
  0xa3   : > { %v10286_v39 = vld [vmem:[%s15049_s16 + $0x880] sm:$0xf]  ;;  %v11087_v42 = vor.u32 %v14047_v35, %v11086_v34  ;;  %6649 = vmatpush.bf16.msrb.mxu2 %v10831_v38 }
  0xa4   : > { %v13847_v40 = vld [vmem:[%s15049_s16 + $0x89c] sm:$0xf0] }
  0xa5   : > { %v10542_v41 = vld [vmem:[%s15049_s16 + $0xa80] sm:$0xf]  ;;  %v10287_v48 = vor.u32 %v13847_v40, %v10286_v39  ;;  %6663 = vmatpush.bf16.msrb.mxu3 %v11087_v42  ;;  %v15214_v39 = vor.u32 %v13565_v22, %v9150_v21 }
  0xa6   : > { %v13911_v43 = vld [vmem:[%s15049_s16 + $0xa9c] sm:$0xf0] }
  0xa7   : > { %v10798_v44 = vld [vmem:[%s15049_s16 + $0xc80] sm:$0xf]  ;;  %v10543_v50 = vor.u32 %v13911_v43, %v10542_v41  ;;  %6622 = vmatpush.bf16.msrb.mxu0 %v10287_v48  ;;  %v15219_v43 = vor.u32 %v13566_v26, %v9158_v25 }
  0xa8   : > { %v13975_v45 = vld [vmem:[%s15049_s16 + $0xc9c] sm:$0xf0] }
  0xa9   : > { %v11054_v46 = vld [vmem:[%s15049_s16 + $0xe80] sm:$0xf]  ;;  %v10799_v51 = vor.u32 %v13975_v45, %v10798_v44  ;;  %6636 = vmatpush.bf16.msrb.mxu1 %v10543_v50  ;;  %v15221_v44 = vor.u32 %v13557_v27, %v9152_v30 }
  0xaa   : > { %v14039_v47 = vld [vmem:[%s15049_s16 + $0xe9c] sm:$0xf0] }
  0xab   : > { %v10254_v49 = vld [vmem:[%s15049_s16 + $0x840] sm:$0xf]  ;;  %v11055_v55 = vor.u32 %v14039_v47, %v11054_v46  ;;  %6650 = vmatpush.bf16.msrb.mxu2 %v10799_v51  ;;  %v15225_v47 = vor.u32 %v13558_v31, %v9160_v32 }
  0xac   : > { %v13839_v52 = vld [vmem:[%s15049_s16 + $0x85c] sm:$0xf0] }
  0xad   : > { %v10510_v53 = vld [vmem:[%s15049_s16 + $0xa40] sm:$0xf]  ;;  %v10255_v63 = vor.u32 %v13839_v52, %v10254_v49  ;;  %6664 = vmatpush.bf16.msrb.mxu3 %v11055_v55 }
  0xae   : > { %v13903_v54 = vld [vmem:[%s15049_s16 + $0xa5c] sm:$0xf0] }
  0xaf   : > { %v10766_v56 = vld [vmem:[%s15049_s16 + $0xc40] sm:$0xf]  ;;  %v10511_v5 = vor.u32 %v13903_v54, %v10510_v53  ;;  %6623 = vmatpush.bf16.msrb.mxu0 %v10255_v63 }
  0xb0   : > { %v13967_v57 = vld [vmem:[%s15049_s16 + $0xc5c] sm:$0xf0] }
  0xb1   : > { %v11022_v59 = vld [vmem:[%s15049_s16 + $0xe40] sm:$0xf]  ;;  %v10767_v6 = vor.u32 %v13967_v57, %v10766_v56  ;;  %6637 = vmatpush.bf16.msrb.mxu1 %v10511_v5 }
  0xb2   : > { %v14031_v60 = vld [vmem:[%s15049_s16 + $0xe5c] sm:$0xf0] }
  0xb3   : > { %v10222_v61 = vld [vmem:[%s15049_s16 + $0x800] sm:$0xf]  ;;  %v11023_v11 = vor.u32 %v14031_v60, %v11022_v59  ;;  %6651 = vmatpush.bf16.msrb.mxu2 %v10767_v6 }
  0xb4   : > { %v13831_v62 = vld [vmem:[%s15049_s16 + $0x81c] sm:$0xf0] }
  0xb5   : > { %v10478_v0 = vld [vmem:[%s15049_s16 + $0xa00] sm:$0xf]  ;;  %v10223_v19 = vor.u32 %v13831_v62, %v10222_v61  ;;  %6665 = vmatpush.bf16.msrb.mxu3 %v11023_v11 }
  0xb6   : > { %v13895_v2 = vld [vmem:[%s15049_s16 + $0xa1c] sm:$0xf0] }
  0xb7   : > { %v10734_v3 = vld [vmem:[%s15049_s16 + $0xc00] sm:$0xf]  ;;  %v10479_v23 = vor.u32 %v13895_v2, %v10478_v0  ;;  %6624 = vmatpush.bf16.msrb.mxu0 %v10223_v19 }
  0xb8   : > { %v13959_v4 = vld [vmem:[%s15049_s16 + $0xc1c] sm:$0xf0] }
  0xb9   : > { %v10990_v7 = vld [vmem:[%s15049_s16 + $0xe00] sm:$0xf]  ;;  %v10735_v24 = vor.u32 %v13959_v4, %v10734_v3  ;;  %6638 = vmatpush.bf16.msrb.mxu1 %v10479_v23 }
  0xba   : > { %v14023_v8 = vld [vmem:[%s15049_s16 + $0xe1c] sm:$0xf0]  ;;  %6625 = vmatmul.bf16.vlgmr.msrb.gmra.mxu0 %v15214_v39 }
  0xbb   : > { %v11470_v9 = vld [vmem:[%s15049_s16 + $0x11c0] sm:$0xf]  ;;  %v10991_v28 = vor.u32 %v14023_v8, %v10990_v7  ;;  %6652 = vmatpush.bf16.msrb.mxu2 %v10735_v24 }
  0xbc   : > { %v14143_v12 = vld [vmem:[%s15049_s16 + $0x11dc] sm:$0xf0]  ;;  %6639 = vmatmul.bf16.vlgmr.msrb.gmra.mxu1 %v15221_v44 }
  0xbd   : > { %v11726_v13 = vld [vmem:[%s15049_s16 + $0x13c0] sm:$0xf]  ;;  %v11471_v29 = vor.u32 %v14143_v12, %v11470_v9  ;;  %6666 = vmatpush.bf16.msrb.mxu3 %v10991_v28 }
  0xbe   : > { %v14207_v14 = vld [vmem:[%s15049_s16 + $0x13dc] sm:$0xf0]  ;;  %6653 = vmatmul.bf16.vlgmr.msrb.gmra.mxu2 %v15219_v43 }
  0xbf   : > { %v11982_v15 = vld [vmem:[%s15049_s16 + $0x15c0] sm:$0xf]  ;;  %v11727_v33 = vor.u32 %v14207_v14, %v11726_v13  ;;  %6673 = vmatpush.bf16.msra.mxu0 %v11471_v29 }
  0xc0   : > { %v14271_v16 = vld [vmem:[%s15049_s16 + $0x15dc] sm:$0xf0]  ;;  %6667 = vmatmul.bf16.vlgmr.msrb.gmra.mxu3 %v15225_v47 }
  0xc1   : > { %v12238_v18 = vld [vmem:[%s15049_s16 + $0x17c0] sm:$0xf]  ;;  %v11983_v34 = vor.u32 %v14271_v16, %v11982_v15  ;;  %6687 = vmatpush.bf16.msra.mxu1 %v11727_v33 }
  0xc2   : > { %v14335_v20 = vld [vmem:[%s15049_s16 + $0x17dc] sm:$0xf0] }
  0xc3   : > { %v11438_v35 = vld [vmem:[%s15049_s16 + $0x1180] sm:$0xf]  ;;  %v12239_v38 = vor.u32 %v14335_v20, %v12238_v18  ;;  %6701 = vmatpush.bf16.msra.mxu2 %v11983_v34 }
  0xc4   : > { %v14135_v36 = vld [vmem:[%s15049_s16 + $0x119c] sm:$0xf0] }
  0xc5   : > { %v11694_v37 = vld [vmem:[%s15049_s16 + $0x1380] sm:$0xf]  ;;  %v11439_v48 = vor.u32 %v14135_v36, %v11438_v35  ;;  %6715 = vmatpush.bf16.msra.mxu3 %v12239_v38 }
  0xc6   : > { %v14199_v40 = vld [vmem:[%s15049_s16 + $0x139c] sm:$0xf0] }
  0xc7   : > { %v11950_v41 = vld [vmem:[%s15049_s16 + $0x1580] sm:$0xf]  ;;  %v11695_v49 = vor.u32 %v14199_v40, %v11694_v37  ;;  %6674 = vmatpush.bf16.msra.mxu0 %v11439_v48 }
  0xc8   : > { %v14263_v42 = vld [vmem:[%s15049_s16 + $0x159c] sm:$0xf0] }
  0xc9   : > { %v12206_v45 = vld [vmem:[%s15049_s16 + $0x1780] sm:$0xf]  ;;  %v11951_v50 = vor.u32 %v14263_v42, %v11950_v41  ;;  %6688 = vmatpush.bf16.msra.mxu1 %v11695_v49 }
  0xca   : > { %v14327_v46 = vld [vmem:[%s15049_s16 + $0x179c] sm:$0xf0] }
  0xcb   : > { %v11406_v51 = vld [vmem:[%s15049_s16 + $0x1140] sm:$0xf]  ;;  %v12207_v54 = vor.u32 %v14327_v46, %v12206_v45  ;;  %6702 = vmatpush.bf16.msra.mxu2 %v11951_v50 }
  0xcc   : > { %v14127_v52 = vld [vmem:[%s15049_s16 + $0x115c] sm:$0xf0] }
  0xcd   : > { %v11662_v53 = vld [vmem:[%s15049_s16 + $0x1340] sm:$0xf]  ;;  %v11407_v61 = vor.u32 %v14127_v52, %v11406_v51  ;;  %6716 = vmatpush.bf16.msra.mxu3 %v12207_v54 }
  0xce   : > { %v14191_v55 = vld [vmem:[%s15049_s16 + $0x135c] sm:$0xf0] }
  0xcf   : > { %v11918_v56 = vld [vmem:[%s15049_s16 + $0x1540] sm:$0xf]  ;;  %v11663_v62 = vor.u32 %v14191_v55, %v11662_v53  ;;  %6675 = vmatpush.bf16.msra.mxu0 %v11407_v61 }
  0xd0   : > { %v14255_v57 = vld [vmem:[%s15049_s16 + $0x155c] sm:$0xf0] }
  0xd1   : > { %v12174_v59 = vld [vmem:[%s15049_s16 + $0x1740] sm:$0xf]  ;;  %v11919_v63 = vor.u32 %v14255_v57, %v11918_v56  ;;  %6689 = vmatpush.bf16.msra.mxu1 %v11663_v62 }
  0xd2   : > { %v14319_v60 = vld [vmem:[%s15049_s16 + $0x175c] sm:$0xf0] }
  0xd3   : > { %v11374_v0 = vld [vmem:[%s15049_s16 + $0x1100] sm:$0xf]  ;;  %v12175_v4 = vor.u32 %v14319_v60, %v12174_v59  ;;  %6703 = vmatpush.bf16.msra.mxu2 %v11919_v63 }
  0xd4   : > { %v14119_v2 = vld [vmem:[%s15049_s16 + $0x111c] sm:$0xf0] }
  0xd5   : > { %v11630_v3 = vld [vmem:[%s15049_s16 + $0x1300] sm:$0xf]  ;;  %v11375_v11 = vor.u32 %v14119_v2, %v11374_v0  ;;  %6717 = vmatpush.bf16.msra.mxu3 %v12175_v4 }
  0xd6   : > { %v14183_v5 = vld [vmem:[%s15049_s16 + $0x131c] sm:$0xf0] }
  0xd7   : > { %v11886_v6 = vld [vmem:[%s15049_s16 + $0x1500] sm:$0xf]  ;;  %v11631_v12 = vor.u32 %v14183_v5, %v11630_v3  ;;  %6676 = vmatpush.bf16.msra.mxu0 %v11375_v11 }
  0xd8   : > { %v14247_v7 = vld [vmem:[%s15049_s16 + $0x151c] sm:$0xf0] }
  0xd9   : > { %v12142_v8 = vld [vmem:[%s15049_s16 + $0x1700] sm:$0xf]  ;;  %v11887_v13 = vor.u32 %v14247_v7, %v11886_v6  ;;  %6690 = vmatpush.bf16.msra.mxu1 %v11631_v12 }
  0xda   : > { %v14311_v9 = vld [vmem:[%s15049_s16 + $0x171c] sm:$0xf0] }
  0xdb   : > { %v11342_v14 = vld [vmem:[%s15049_s16 + $0x10c0] sm:$0xf]  ;;  %v12143_v18 = vor.u32 %v14311_v9, %v12142_v8  ;;  %6704 = vmatpush.bf16.msra.mxu2 %v11887_v13 }
  0xdc   : > { %v14111_v15 = vld [vmem:[%s15049_s16 + $0x10dc] sm:$0xf0] }
  0xdd   : > { %v11598_v16 = vld [vmem:[%s15049_s16 + $0x12c0] sm:$0xf]  ;;  %v11343_v24 = vor.u32 %v14111_v15, %v11342_v14  ;;  %6718 = vmatpush.bf16.msra.mxu3 %v12143_v18  ;;  %v13568_v18 = vld [vmem:[#allocation2 + $0x64] sm:$0xf0] }
  0xde   : > { %v14175_v19 = vld [vmem:[%s15049_s16 + $0x12dc] sm:$0xf0] }
  0xdf   : > { %v11854_v20 = vld [vmem:[%s15049_s16 + $0x14c0] sm:$0xf]  ;;  %v11599_v25 = vor.u32 %v14175_v19, %v11598_v16  ;;  %6677 = vmatpush.bf16.msra.mxu0 %v11343_v24  ;;  %v9174_v16 = vld [vmem:[#allocation2 + $0x28] sm:$0xf]  ;;  %v13559_v19 = vld [vmem:[#allocation2 + $0x24] sm:$0xf] }
  0xe0   : > { %v14239_v21 = vld [vmem:[%s15049_s16 + $0x14dc] sm:$0xf0]  ;;  %v9176_v24 = vld [vmem:[#allocation2 + $0x68] sm:$0xf0] }
  0xe1   : > { %v12110_v22 = vld [vmem:[%s15049_s16 + $0x16c0] sm:$0xf]  ;;  %v11855_v26 = vor.u32 %v14239_v21, %v11854_v20  ;;  %6691 = vmatpush.bf16.msra.mxu1 %v11599_v25 }
  0xe2   : > { %v14303_v23 = vld [vmem:[%s15049_s16 + $0x16dc] sm:$0xf0] }
  0xe3   : > { %v11310_v27 = vld [vmem:[%s15049_s16 + $0x1080] sm:$0xf]  ;;  %v12111_v30 = vor.u32 %v14303_v23, %v12110_v22  ;;  %6705 = vmatpush.bf16.msra.mxu2 %v11855_v26  ;;  %v9168_v22 = vld [vmem:[#allocation2 + $0x60] sm:$0xf0]  ;;  %v13560_v23 = vld [vmem:[#allocation2 + $0x2c] sm:$0xf] }
  0xe4   : > { %v14103_v28 = vld [vmem:[%s15049_s16 + $0x109c] sm:$0xf0] }
  0xe5   : > { %v11566_v29 = vld [vmem:[%s15049_s16 + $0x1280] sm:$0xf]  ;;  %v11311_v36 = vor.u32 %v14103_v28, %v11310_v27  ;;  %6719 = vmatpush.bf16.msra.mxu3 %v12111_v30 }
  0xe6   : > { %v14167_v31 = vld [vmem:[%s15049_s16 + $0x129c] sm:$0xf0] }
  0xe7   : > { %v11822_v32 = vld [vmem:[%s15049_s16 + $0x1480] sm:$0xf]  ;;  %v11567_v38 = vor.u32 %v14167_v31, %v11566_v29  ;;  %6678 = vmatpush.bf16.msra.mxu0 %v11311_v36  ;;  %v15297_v36 = vor.u32 %v13559_v19, %v9168_v22 }
  0xe8   : > { %v14231_v33 = vld [vmem:[%s15049_s16 + $0x149c] sm:$0xf0] }
  0xe9   : > { %v12078_v34 = vld [vmem:[%s15049_s16 + $0x1680] sm:$0xf]  ;;  %v11823_v40 = vor.u32 %v14231_v33, %v11822_v32  ;;  %6692 = vmatpush.bf16.msra.mxu1 %v11567_v38 }
  0xea   : > { %v14295_v35 = vld [vmem:[%s15049_s16 + $0x169c] sm:$0xf0] }
  0xeb   : > { %v11278_v37 = vld [vmem:[%s15049_s16 + $0x1040] sm:$0xf]  ;;  %v12079_v46 = vor.u32 %v14295_v35, %v12078_v34  ;;  %6706 = vmatpush.bf16.msra.mxu2 %v11823_v40  ;;  %v15295_v35 = vor.u32 %v13568_v18, %v9174_v16  ;;  %v15301_v40 = vor.u32 %v13560_v23, %v9176_v24 }
  0xec   : > { %v14095_v41 = vld [vmem:[%s15049_s16 + $0x105c] sm:$0xf0] }
  0xed   : > { %v11534_v42 = vld [vmem:[%s15049_s16 + $0x1240] sm:$0xf]  ;;  %v11279_v54 = vor.u32 %v14095_v41, %v11278_v37  ;;  %6720 = vmatpush.bf16.msra.mxu3 %v12079_v46 }
  0xee   : > { %v14159_v45 = vld [vmem:[%s15049_s16 + $0x125c] sm:$0xf0] }
  0xef   : > { %v11790_v48 = vld [vmem:[%s15049_s16 + $0x1440] sm:$0xf]  ;;  %v11535_v60 = vor.u32 %v14159_v45, %v11534_v42  ;;  %6679 = vmatpush.bf16.msra.mxu0 %v11279_v54 }
  0xf0   : > { %v14223_v49 = vld [vmem:[%s15049_s16 + $0x145c] sm:$0xf0] }
  0xf1   : > { %v12046_v50 = vld [vmem:[%s15049_s16 + $0x1640] sm:$0xf]  ;;  %v11791_v61 = vor.u32 %v14223_v49, %v11790_v48  ;;  %6693 = vmatpush.bf16.msra.mxu1 %v11535_v60 }
  0xf2   : > { %v14287_v51 = vld [vmem:[%s15049_s16 + $0x165c] sm:$0xf0] }
  0xf3   : > { %v11246_v52 = vld [vmem:[%s15049_s16 + $0x1000] sm:$0xf]  ;;  %v12047_v2 = vor.u32 %v14287_v51, %v12046_v50  ;;  %6707 = vmatpush.bf16.msra.mxu2 %v11791_v61 }
  0xf4   : > { %v14087_v53 = vld [vmem:[%s15049_s16 + $0x101c] sm:$0xf0] }
  0xf5   : > { %v11502_v55 = vld [vmem:[%s15049_s16 + $0x1200] sm:$0xf]  ;;  %v11247_v9 = vor.u32 %v14087_v53, %v11246_v52  ;;  %6721 = vmatpush.bf16.msra.mxu3 %v12047_v2 }
  0xf6   : > { %v14151_v56 = vld [vmem:[%s15049_s16 + $0x121c] sm:$0xf0] }
  0xf7   : > { %v11758_v57 = vld [vmem:[%s15049_s16 + $0x1400] sm:$0xf]  ;;  %v11503_v14 = vor.u32 %v14151_v56, %v11502_v55  ;;  %6680 = vmatpush.bf16.msra.mxu0 %v11247_v9 }
  0xf8   : > { %v14215_v59 = vld [vmem:[%s15049_s16 + $0x141c] sm:$0xf0] }
  0xf9   : > { %v12014_v62 = vld [vmem:[%s15049_s16 + $0x1600] sm:$0xf]  ;;  %v11759_v15 = vor.u32 %v14215_v59, %v11758_v57  ;;  %6694 = vmatpush.bf16.msra.mxu1 %v11503_v14 }
  0xfa   : > { %v14279_v63 = vld [vmem:[%s15049_s16 + $0x161c] sm:$0xf0] }
  0xfb   : > { %v12494_v0 = vld [vmem:[%s15049_s16 + $0x19c0] sm:$0xf]  ;;  %v12015_v20 = vor.u32 %v14279_v63, %v12014_v62  ;;  %6708 = vmatpush.bf16.msra.mxu2 %v11759_v15 }
  0xfc   : > { %v14399_v3 = vld [vmem:[%s15049_s16 + $0x19dc] sm:$0xf0]  ;;  %6695 = vmatmul.bf16.vlgmr.msra.gmra.mxu1 %v15297_v36 }
  0xfd   : > { %v12750_v4 = vld [vmem:[%s15049_s16 + $0x1bc0] sm:$0xf]  ;;  %v12495_v21 = vor.u32 %v14399_v3, %v12494_v0  ;;  %6722 = vmatpush.bf16.msra.mxu3 %v12015_v20 }
  0xfe   : > { %v14463_v5 = vld [vmem:[%s15049_s16 + $0x1bdc] sm:$0xf0]  ;;  %6709 = vmatmul.bf16.vlgmr.msra.gmra.mxu2 %v15295_v35 }
  0xff   : > { %v13006_v6 = vld [vmem:[%s15049_s16 + $0x1dc0] sm:$0xf]  ;;  %v12751_v25 = vor.u32 %v14463_v5, %v12750_v4  ;;  %6729 = vmatpush.bf16.msrb.mxu0 %v12495_v21 }
 0x100   : > { %v14527_v7 = vld [vmem:[%s15049_s16 + $0x1ddc] sm:$0xf0]  ;;  %6723 = vmatmul.bf16.vlgmr.msra.gmra.mxu3 %v15301_v40 }
 0x101   : > { %v13262_v8 = vld [vmem:[%s15049_s16 + $0x1fc0] sm:$0xf]  ;;  %v13007_v26 = vor.u32 %v14527_v7, %v13006_v6  ;;  %6743 = vmatpush.bf16.msrb.mxu1 %v12751_v25 }
 0x102   : > { %v14591_v11 = vld [vmem:[%s15049_s16 + $0x1fdc] sm:$0xf0] }
 0x103   : > { %v9166_v12 = vld [vmem:[#allocation2 + $0x20] sm:$0xf]  ;;  %v13263_v30 = vor.u32 %v14591_v11, %v13262_v8  ;;  %6757 = vmatpush.bf16.msrb.mxu2 %v13007_v26 }
 0x104   : > { %v13567_v13 = vld [vmem:[#allocation2 + $0x5c] sm:$0xf0] }
 0x105   : > { %v12462_v27 = vld [vmem:[%s15049_s16 + $0x1980] sm:$0xf]  ;;  %v15290_v31 = vor.u32 %v13567_v13, %v9166_v12  ;;  %6771 = vmatpush.bf16.msrb.mxu3 %v13263_v30 }
 0x106   : > { %v14391_v28 = vld [vmem:[%s15049_s16 + $0x199c] sm:$0xf0] }
 0x107   : > { %v12718_v29 = vld [vmem:[%s15049_s16 + $0x1b80] sm:$0xf]  ;;  %v12463_v41 = vor.u32 %v14391_v28, %v12462_v27  ;;  %6681 = vmatmul.bf16.vlgmr.msra.gmra.mxu0 %v15290_v31 }
 0x108   : > { %v14455_v32 = vld [vmem:[%s15049_s16 + $0x1b9c] sm:$0xf0] }
 0x109   : > { %v12974_v33 = vld [vmem:[%s15049_s16 + $0x1d80] sm:$0xf]  ;;  %v12719_v42 = vor.u32 %v14455_v32, %v12718_v29  ;;  %6730 = vmatpush.bf16.msrb.mxu0 %v12463_v41 }
 0x10a   : > { %v14519_v34 = vld [vmem:[%s15049_s16 + $0x1d9c] sm:$0xf0] }
 0x10b   : > { %v13230_v37 = vld [vmem:[%s15049_s16 + $0x1f80] sm:$0xf]  ;;  %v12975_v45 = vor.u32 %v14519_v34, %v12974_v33  ;;  %6744 = vmatpush.bf16.msrb.mxu1 %v12719_v42 }
 0x10c   : > { %v14583_v38 = vld [vmem:[%s15049_s16 + $0x1f9c] sm:$0xf0] }
 0x10d   : > { %v12430_v46 = vld [vmem:[%s15049_s16 + $0x1940] sm:$0xf]  ;;  %v13231_v50 = vor.u32 %v14583_v38, %v13230_v37  ;;  %6758 = vmatpush.bf16.msrb.mxu2 %v12975_v45 }
 0x10e   : > { %v14383_v48 = vld [vmem:[%s15049_s16 + $0x195c] sm:$0xf0] }
 0x10f   : > { %v12686_v49 = vld [vmem:[%s15049_s16 + $0x1b40] sm:$0xf]  ;;  %v12431_v56 = vor.u32 %v14383_v48, %v12430_v46  ;;  %6772 = vmatpush.bf16.msrb.mxu3 %v13231_v50 }
 0x110   : > { %v14447_v51 = vld [vmem:[%s15049_s16 + $0x1b5c] sm:$0xf0] }
 0x111   : > { %v12942_v52 = vld [vmem:[%s15049_s16 + $0x1d40] sm:$0xf]  ;;  %v12687_v57 = vor.u32 %v14447_v51, %v12686_v49  ;;  %6731 = vmatpush.bf16.msrb.mxu0 %v12431_v56 }
 0x112   : > { %v14511_v53 = vld [vmem:[%s15049_s16 + $0x1d5c] sm:$0xf0] }
 0x113   : > { %v13198_v54 = vld [vmem:[%s15049_s16 + $0x1f40] sm:$0xf]  ;;  %v12943_v59 = vor.u32 %v14511_v53, %v12942_v52  ;;  %6745 = vmatpush.bf16.msrb.mxu1 %v12687_v57 }
 0x114   : > { %v14575_v55 = vld [vmem:[%s15049_s16 + $0x1f5c] sm:$0xf0] }
 0x115   : > { %v12398_v60 = vld [vmem:[%s15049_s16 + $0x1900] sm:$0xf]  ;;  %v13199_v63 = vor.u32 %v14575_v55, %v13198_v54  ;;  %6759 = vmatpush.bf16.msrb.mxu2 %v12943_v59 }
 0x116   : > { %v14375_v61 = vld [vmem:[%s15049_s16 + $0x191c] sm:$0xf0] }
 0x117   : > { %v12654_v62 = vld [vmem:[%s15049_s16 + $0x1b00] sm:$0xf]  ;;  %v12399_v6 = vor.u32 %v14375_v61, %v12398_v60  ;;  %6773 = vmatpush.bf16.msrb.mxu3 %v13199_v63 }
 0x118   : > { %v14439_v0 = vld [vmem:[%s15049_s16 + $0x1b1c] sm:$0xf0] }
 0x119   : > { %v12910_v2 = vld [vmem:[%s15049_s16 + $0x1d00] sm:$0xf]  ;;  %v12655_v7 = vor.u32 %v14439_v0, %v12654_v62  ;;  %6732 = vmatpush.bf16.msrb.mxu0 %v12399_v6  ;;  %v13627_v0 = vld [vmem:[%s15049_s16 + $0x1c4] sm:$0xf] }
 0x11a   : > { %v14503_v3 = vld [vmem:[%s15049_s16 + $0x1d1c] sm:$0xf0]  ;;  %v13755_v6 = vld [vmem:[%s15049_s16 + $0x5c4] sm:$0xf] }
 0x11b   : > { %v13166_v4 = vld [vmem:[%s15049_s16 + $0x1f00] sm:$0xf]  ;;  %v12911_v8 = vor.u32 %v14503_v3, %v12910_v2  ;;  %6746 = vmatpush.bf16.msrb.mxu1 %v12655_v7  ;;  %v9424_v3 = vld [vmem:[%s15049_s16 + $0x1e0] sm:$0xf0] }
 0x11c   : > { %v14567_v5 = vld [vmem:[%s15049_s16 + $0x1f1c] sm:$0xf0]  ;;  %v9936_v7 = vld [vmem:[%s15049_s16 + $0x5e0] sm:$0xf0] }
 0x11d   : > { %v12366_v9 = vld [vmem:[%s15049_s16 + $0x18c0] sm:$0xf]  ;;  %v13167_v13 = vor.u32 %v14567_v5, %v13166_v4  ;;  %6760 = vmatpush.bf16.msrb.mxu2 %v12911_v8  ;;  %v13691_v4 = vld [vmem:[%s15049_s16 + $0x3c4] sm:$0xf] }
 0x11e   : > { %v14367_v11 = vld [vmem:[%s15049_s16 + $0x18dc] sm:$0xf0]  ;;  %v9680_v5 = vld [vmem:[%s15049_s16 + $0x3e0] sm:$0xf0] }
 0x11f   : > { %v12622_v12 = vld [vmem:[%s15049_s16 + $0x1ac0] sm:$0xf]  ;;  %v12367_v20 = vor.u32 %v14367_v11, %v12366_v9  ;;  %6774 = vmatpush.bf16.msrb.mxu3 %v13167_v13  ;;  %v13819_v8 = vld [vmem:[%s15049_s16 + $0x7c4] sm:$0xf]  ;;  %v13569_v13 = vld [vmem:[#allocation2 + $0x6c] sm:$0xf0] }
 0x120   : > { %v14431_v14 = vld [vmem:[%s15049_s16 + $0x1adc] sm:$0xf0]  ;;  %v10192_v11 = vld [vmem:[%s15049_s16 + $0x7e0] sm:$0xf0] }
 0x121   : > { %v12878_v15 = vld [vmem:[%s15049_s16 + $0x1cc0] sm:$0xf]  ;;  %v12623_v21 = vor.u32 %v14431_v14, %v12622_v12  ;;  %6733 = vmatpush.bf16.msrb.mxu0 %v12367_v20  ;;  %v9182_v12 = vld [vmem:[#allocation2 + $0x30] sm:$0xf] }
 0x122   : > { %v14495_v16 = vld [vmem:[%s15049_s16 + $0x1cdc] sm:$0xf0] }
 0x123   : > { %v13134_v18 = vld [vmem:[%s15049_s16 + $0x1ec0] sm:$0xf]  ;;  %v12879_v22 = vor.u32 %v14495_v16, %v12878_v15  ;;  %6747 = vmatpush.bf16.msrb.mxu1 %v12623_v21  ;;  %v9190_v16 = vld [vmem:[#allocation2 + $0x38] sm:$0xf]  ;;  %v9427_v21 = vor.u32 %v13627_v0, %v9424_v3  ;;  %v13603_v0 = vld [vmem:[%s15049_s16 + $0x104] sm:$0xf] }
 0x124   : > { %v14559_v19 = vld [vmem:[%s15049_s16 + $0x1edc] sm:$0xf0]  ;;  %v13667_v3 = vld [vmem:[%s15049_s16 + $0x304] sm:$0xf] }
 0x125   : > { %v12334_v23 = vld [vmem:[%s15049_s16 + $0x1880] sm:$0xf]  ;;  %v13135_v26 = vor.u32 %v14559_v19, %v13134_v18  ;;  %6761 = vmatpush.bf16.msrb.mxu2 %v12879_v22  ;;  %v13570_v18 = vld [vmem:[#allocation2 + $0x74] sm:$0xf0]  ;;  %v13561_v19 = vld [vmem:[#allocation2 + $0x34] sm:$0xf] }
 0x126   : > { %v14359_v24 = vld [vmem:[%s15049_s16 + $0x189c] sm:$0xf0]  ;;  %v9184_v22 = vld [vmem:[#allocation2 + $0x70] sm:$0xf0] }
 0x127   : > { %v12590_v25 = vld [vmem:[%s15049_s16 + $0x1a80] sm:$0xf]  ;;  %v12335_v33 = vor.u32 %v14359_v24, %v12334_v23  ;;  %6775 = vmatpush.bf16.msrb.mxu3 %v13135_v26  ;;  %v13562_v23 = vld [vmem:[#allocation2 + $0x3c] sm:$0xf]  ;;  %v9939_v26 = vor.u32 %v13755_v6, %v9936_v7  ;;  %v13731_v6 = vld [vmem:[%s15049_s16 + $0x504] sm:$0xf] }
 0x128   : > { %v14423_v27 = vld [vmem:[%s15049_s16 + $0x1a9c] sm:$0xf0]  ;;  %v9192_v24 = vld [vmem:[#allocation2 + $0x78] sm:$0xf0]  ;;  %v9840_v7 = vld [vmem:[%s15049_s16 + $0x520] sm:$0xf0] }
 0x129   : > { %v12846_v28 = vld [vmem:[%s15049_s16 + $0x1c80] sm:$0xf]  ;;  %v12591_v37 = vor.u32 %v14423_v27, %v12590_v25  ;;  %6734 = vmatpush.bf16.msrb.mxu0 %v12335_v33  ;;  %v9683_v25 = vor.u32 %v13691_v4, %v9680_v5  ;;  %v13619_v27 = vld [vmem:[%s15049_s16 + $0x184] sm:$0xf] }
 0x12a   : > { %v14487_v29 = vld [vmem:[%s15049_s16 + $0x1c9c] sm:$0xf0]  ;;  %v9648_v33 = vld [vmem:[%s15049_s16 + $0x3a0] sm:$0xf0] }
 0x12b   : > { %v13102_v30 = vld [vmem:[%s15049_s16 + $0x1e80] sm:$0xf]  ;;  %v12847_v38 = vor.u32 %v14487_v29, %v12846_v28  ;;  %6748 = vmatpush.bf16.msrb.mxu1 %v12591_v37  ;;  %v9392_v28 = vld [vmem:[%s15049_s16 + $0x1a0] sm:$0xf0] }
 0x12c   : > { %v14551_v32 = vld [vmem:[%s15049_s16 + $0x1e9c] sm:$0xf0]  ;;  %v13683_v29 = vld [vmem:[%s15049_s16 + $0x384] sm:$0xf] }
 0x12d   : > { %v12302_v34 = vld [vmem:[%s15049_s16 + $0x1840] sm:$0xf]  ;;  %v13103_v46 = vor.u32 %v14551_v32, %v13102_v30  ;;  %6762 = vmatpush.bf16.msrb.mxu2 %v12847_v38  ;;  %v10195_v30 = vor.u32 %v13819_v8, %v10192_v11  ;;  %v15366_v32 = vor.u32 %v13569_v13, %v9182_v12  ;;  %v9904_v37 = vld [vmem:[%s15049_s16 + $0x5a0] sm:$0xf0]  ;;  %v15371_v38 = vor.u32 %v13570_v18, %v9190_v16 }
 0x12e   : > { %v14351_v41 = vld [vmem:[%s15049_s16 + $0x185c] sm:$0xf0]  ;;  %v9584_v5 = vld [vmem:[%s15049_s16 + $0x320] sm:$0xf0]  ;;  %v9843_v13 = vor.u32 %v13731_v6, %v9840_v7 }
 0x12f   : > { %v12558_v42 = vld [vmem:[%s15049_s16 + $0x1a40] sm:$0xf]  ;;  %v12303_v54 = vor.u32 %v14351_v41, %v12302_v34  ;;  %6776 = vmatpush.bf16.msrb.mxu3 %v13103_v46  ;;  %v13747_v34 = vld [vmem:[%s15049_s16 + $0x584] sm:$0xf]  ;;  %v15373_v41 = vor.u32 %v13561_v19, %v9184_v22  ;;  %v15377_v46 = vor.u32 %v13562_v23, %v9192_v24  ;;  %v9587_v12 = vor.u32 %v13667_v3, %v9584_v5 }
 0x130   : > { %v14415_v45 = vld [vmem:[%s15049_s16 + $0x1a5c] sm:$0xf0]  ;;  %v13795_v8 = vld [vmem:[%s15049_s16 + $0x704] sm:$0xf] }
 0x131   : > { %v12814_v48 = vld [vmem:[%s15049_s16 + $0x1c40] sm:$0xf]  ;;  %v12559_v60 = vor.u32 %v14415_v45, %v12558_v42  ;;  %6735 = vmatpush.bf16.msrb.mxu0 %v12303_v54  ;;  %v13811_v42 = vld [vmem:[%s15049_s16 + $0x784] sm:$0xf] }
 0x132   : > { %v14479_v49 = vld [vmem:[%s15049_s16 + $0x1c5c] sm:$0xf0]  ;;  %v10160_v45 = vld [vmem:[%s15049_s16 + $0x7a0] sm:$0xf0] }
 0x133   : > { %v13070_v50 = vld [vmem:[%s15049_s16 + $0x1e40] sm:$0xf]  ;;  %v12815_v61 = vor.u32 %v14479_v49, %v12814_v48  ;;  %6749 = vmatpush.bf16.msrb.mxu1 %v12559_v60  ;;  %v9395_v48 = vor.u32 %v13619_v27, %v9392_v28  ;;  %v9651_v49 = vor.u32 %v13683_v29, %v9648_v33  ;;  %v10163_v54 = vor.u32 %v13811_v42, %v10160_v45  ;;  %v10128_v60 = vld [vmem:[%s15049_s16 + $0x760] sm:$0xf0] }
 0x134   : > { %v14543_v51 = vld [vmem:[%s15049_s16 + $0x1e5c] sm:$0xf0]  ;;  %v13659_v16 = vld [vmem:[%s15049_s16 + $0x2c4] sm:$0xf] }
 0x135   : > { %v12270_v52 = vld [vmem:[%s15049_s16 + $0x1800] sm:$0xf]  ;;  %v13071_v2 = vor.u32 %v14543_v51, %v13070_v50  ;;  %6763 = vmatpush.bf16.msrb.mxu2 %v12815_v61  ;;  %v9907_v50 = vor.u32 %v13747_v34, %v9904_v37  ;;  %v13611_v51 = vld [vmem:[%s15049_s16 + $0x144] sm:$0xf] }
 0x136   : > { %v14343_v53 = vld [vmem:[%s15049_s16 + $0x181c] sm:$0xf0]  ;;  %v9552_v19 = vld [vmem:[%s15049_s16 + $0x2e0] sm:$0xf0] }
 0x137   : > { %v12526_v55 = vld [vmem:[%s15049_s16 + $0x1a00] sm:$0xf]  ;;  %v12271_v9 = vor.u32 %v14343_v53, %v12270_v52  ;;  %6777 = vmatpush.bf16.msrb.mxu3 %v13071_v2  ;;  %v9360_v52 = vld [vmem:[%s15049_s16 + $0x160] sm:$0xf0] }
 0x138   : > { %v14407_v56 = vld [vmem:[%s15049_s16 + $0x1a1c] sm:$0xf0]  ;;  %v13675_v53 = vld [vmem:[%s15049_s16 + $0x344] sm:$0xf]  ;;  %v9363_v61 = vor.u32 %v13611_v51, %v9360_v52 }
 0x139   : > { %v12782_v57 = vld [vmem:[%s15049_s16 + $0x1c00] sm:$0xf]  ;;  %v12527_v14 = vor.u32 %v14407_v56, %v12526_v55  ;;  %6736 = vmatpush.bf16.msrb.mxu0 %v12271_v9  ;;  %v9616_v55 = vld [vmem:[%s15049_s16 + $0x360] sm:$0xf0] }
 0x13a   : > { %v14471_v59 = vld [vmem:[%s15049_s16 + $0x1c1c] sm:$0xf0]  ;;  %v13739_v56 = vld [vmem:[%s15049_s16 + $0x544] sm:$0xf] }
 0x13b   : > { %v13038_v62 = vld [vmem:[%s15049_s16 + $0x1e00] sm:$0xf]  ;;  %v12783_v15 = vor.u32 %v14471_v59, %v12782_v57  ;;  %6750 = vmatpush.bf16.msrb.mxu1 %v12527_v14  ;;  %v9872_v57 = vld [vmem:[%s15049_s16 + $0x560] sm:$0xf0] }
 0x13c   : > { %v14535_v63 = vld [vmem:[%s15049_s16 + $0x1e1c] sm:$0xf0]  ;;  %6737 = vmatmul.bf16.vlgmr.msrb.gmra.mxu0 %v15366_v32  ;;  %v13803_v59 = vld [vmem:[%s15049_s16 + $0x744] sm:$0xf] }
 0x13d   : > { %v13039_v20 = vor.u32 %v14535_v63, %v13038_v62  ;;  %6764 = vmatpush.bf16.msrb.mxu2 %v12783_v15  ;;  %6785 = vmatpush.bf16.msra.mxu0 %v9427_v21  ;;  %v9619_v62 = vor.u32 %v13675_v53, %v9616_v55  ;;  %v9875_v63 = vor.u32 %v13739_v56, %v9872_v57  ;;  %v9328_v2 = vld [vmem:[%s15049_s16 + $0x120] sm:$0xf0] }
 0x13e   : > { %6751 = vmatmul.bf16.vlgmr.msrb.gmra.mxu1 %v15373_v41  ;;  %v10131_v4 = vor.u32 %v13803_v59, %v10128_v60  ;;  %v10096_v9 = vld [vmem:[%s15049_s16 + $0x720] sm:$0xf0]  ;;  %v9331_v11 = vor.u32 %v13603_v0, %v9328_v2 }
 0x13f   : > { %6778 = vmatpush.bf16.msrb.mxu3 %v13039_v20  ;;  %6799 = vmatpush.bf16.msra.mxu1 %v9683_v25  ;;  %v13595_v14 = vld [vmem:[%s15049_s16 + $0xc4] sm:$0xf]  ;;  %v10099_v18 = vor.u32 %v13795_v8, %v10096_v9 }
 0x140   : > { %6765 = vmatmul.bf16.vlgmr.msrb.gmra.mxu2 %v15371_v38  ;;  %v9296_v15 = vld [vmem:[%s15049_s16 + $0xe0] sm:$0xf0] }
 0x141   : > { %6813 = vmatpush.bf16.msra.mxu2 %v9939_v26  ;;  %6786 = vmatpush.bf16.msra.mxu0 %v9395_v48  ;;  %v13723_v20 = vld [vmem:[%s15049_s16 + $0x4c4] sm:$0xf]  ;;  %v9299_v24 = vor.u32 %v13595_v14, %v9296_v15  ;;  %v9555_v26 = vor.u32 %v13659_v16, %v9552_v19 }
 0x142   : > { %6779 = vmatmul.bf16.vlgmr.msrb.gmra.mxu3 %v15377_v46  ;;  %v9808_v21 = vld [vmem:[%s15049_s16 + $0x4e0] sm:$0xf0] }
 0x143   : > { %6827 = vmatpush.bf16.msra.mxu3 %v10195_v30  ;;  %6800 = vmatpush.bf16.msra.mxu1 %v9651_v49  ;;  %v13787_v22 = vld [vmem:[%s15049_s16 + $0x6c4] sm:$0xf]  ;;  %v9811_v27 = vor.u32 %v13723_v20, %v9808_v21 }
 0x144   : > { %v10064_v23 = vld [vmem:[%s15049_s16 + $0x6e0] sm:$0xf0] }
 0x145   : > { %6814 = vmatpush.bf16.msra.mxu2 %v9907_v50  ;;  %6787 = vmatpush.bf16.msra.mxu0 %v9363_v61  ;;  %v13587_v25 = vld [vmem:[%s15049_s16 + $0x84] sm:$0xf]  ;;  %v10067_v33 = vor.u32 %v13787_v22, %v10064_v23 }
 0x146   : > { %v9264_v28 = vld [vmem:[%s15049_s16 + $0xa0] sm:$0xf0] }
 0x147   : > { %6828 = vmatpush.bf16.msra.mxu3 %v10163_v54  ;;  %6801 = vmatpush.bf16.msra.mxu1 %v9619_v62  ;;  %v13651_v29 = vld [vmem:[%s15049_s16 + $0x284] sm:$0xf]  ;;  %v9267_v48 = vor.u32 %v13587_v25, %v9264_v28 }
 0x148   : > { %v9520_v30 = vld [vmem:[%s15049_s16 + $0x2a0] sm:$0xf0] }
 0x149   : > { %6815 = vmatpush.bf16.msra.mxu2 %v9875_v63  ;;  %6788 = vmatpush.bf16.msra.mxu0 %v9331_v11  ;;  %v13715_v34 = vld [vmem:[%s15049_s16 + $0x484] sm:$0xf]  ;;  %v9523_v49 = vor.u32 %v13651_v29, %v9520_v30  ;;  %v1341_v30 = vld [vmem:[%s1340_s17] ss:$8 sm:$0xf] }
 0x14a   : > { %v9776_v37 = vld [vmem:[%s15049_s16 + $0x4a0] sm:$0xf0] }
 0x14b   : > { %6829 = vmatpush.bf16.msra.mxu3 %v10131_v4  ;;  %6802 = vmatpush.bf16.msra.mxu1 %v9587_v12  ;;  %v13779_v42 = vld [vmem:[%s15049_s16 + $0x684] sm:$0xf]  ;;  %v9779_v50 = vor.u32 %v13715_v34, %v9776_v37 }
 0x14c   : > { %v10032_v45 = vld [vmem:[%s15049_s16 + $0x6a0] sm:$0xf0] }
 0x14d   : > { %6816 = vmatpush.bf16.msra.mxu2 %v9843_v13  ;;  %6789 = vmatpush.bf16.msra.mxu0 %v9299_v24  ;;  %v13579_v51 = vld [vmem:[%s15049_s16 + $0x44] sm:$0xf]  ;;  %v10035_v54 = vor.u32 %v13779_v42, %v10032_v45 }
 0x14e   : > { %v9232_v52 = vld [vmem:[%s15049_s16 + $0x60] sm:$0xf0] }
 0x14f   : > { %6830 = vmatpush.bf16.msra.mxu3 %v10099_v18  ;;  %6803 = vmatpush.bf16.msra.mxu1 %v9555_v26  ;;  %v13643_v53 = vld [vmem:[%s15049_s16 + $0x244] sm:$0xf]  ;;  %v9235_v61 = vor.u32 %v13579_v51, %v9232_v52 }
 0x150   : > { %v9488_v55 = vld [vmem:[%s15049_s16 + $0x260] sm:$0xf0] }
 0x151   : > { %6817 = vmatpush.bf16.msra.mxu2 %v9811_v27  ;;  %v13707_v56 = vld [vmem:[%s15049_s16 + $0x444] sm:$0xf]  ;;  %6790 = vmatpush.bf16.msra.mxu0 %v9267_v48  ;;  %v9491_v0 = vor.u32 %v13643_v53, %v9488_v55 }
 0x152   : > { %v9744_v57 = vld [vmem:[%s15049_s16 + $0x460] sm:$0xf0] }
 0x153   : > { %6831 = vmatpush.bf16.msra.mxu3 %v10067_v33  ;;  %v13771_v59 = vld [vmem:[%s15049_s16 + $0x644] sm:$0xf]  ;;  %6804 = vmatpush.bf16.msra.mxu1 %v9523_v49  ;;  %v9747_v2 = vor.u32 %v13707_v56, %v9744_v57  ;;  %v1342_v33 = vld [vmem:[%s1340_s17] ss:$8 sm:$0xf0] }
 0x154   : > { %v10000_v60 = vld [vmem:[%s15049_s16 + $0x660] sm:$0xf0]  ;;  %v15452_v51 = vor.u32 %v1342_v33, %v1341_v30  ;;  %v6584_v30 = vpop.f32.mrf.mxu1 }
 0x155   : > { %v13571_v62 = vld [vmem:[%s15049_s16 + $0x4] sm:$0xf]  ;;  %6818 = vmatpush.bf16.msra.mxu2 %v9779_v50  ;;  %v10003_v6 = vor.u32 %v13771_v59, %v10000_v60  ;;  %6791 = vmatpush.bf16.msra.mxu0 %v9235_v61 }
 0x156   : > { %v9200_v63 = vld [vmem:[%s15049_s16 + $0x20] sm:$0xf0] }
 0x157   : > { %v13635_v3 = vld [vmem:[%s15049_s16 + $0x204] sm:$0xf]  ;;  %6832 = vmatpush.bf16.msra.mxu3 %v10035_v54  ;;  %v9203_v14 = vor.u32 %v13571_v62, %v9200_v63  ;;  %6805 = vmatpush.bf16.msra.mxu1 %v9491_v0 }
 0x158   : > { %v9456_v4 = vld [vmem:[%s15049_s16 + $0x220] sm:$0xf0] }
 0x159   : > { %v13699_v5 = vld [vmem:[%s15049_s16 + $0x404] sm:$0xf]  ;;  %6819 = vmatpush.bf16.msra.mxu2 %v9747_v2  ;;  %v9459_v19 = vor.u32 %v13635_v3, %v9456_v4  ;;  %6792 = vmatpush.bf16.msra.mxu0 %v9203_v14  ;;  %v17798_v2 = vperm.slane %v15452_v51, 0 }
 0x15a   : > { %v9712_v7 = vld [vmem:[%s15049_s16 + $0x420] sm:$0xf0] }
 0x15b   : > { %v13763_v8 = vld [vmem:[%s15049_s16 + $0x604] sm:$0xf]  ;;  %v9715_v20 = vor.u32 %v13699_v5, %v9712_v7  ;;  %6833 = vmatpush.bf16.msra.mxu3 %v10003_v6  ;;  %6806 = vmatpush.bf16.msra.mxu1 %v9459_v19 }
 0x15c   : > { %v9968_v9 = vld [vmem:[%s15049_s16 + $0x620] sm:$0xf0]  ;;  %6793 = vmatmul.bf16.vlgmr.msra.gmra.mxu0 %v15145_v58 }
 0x15d   : > { %v13883_v11 = vld [vmem:[%s15049_s16 + $0x9c4] sm:$0xf]  ;;  %v9971_v23 = vor.u32 %v13763_v8, %v9968_v9  ;;  %6820 = vmatpush.bf16.msra.mxu2 %v9715_v20 }
 0x15e   : > { %v10448_v12 = vld [vmem:[%s15049_s16 + $0x9e0] sm:$0xf0]  ;;  %6807 = vmatmul.bf16.vlgmr.msra.gmra.mxu1 %v15157_v10 }
 0x15f   : > { %v13947_v13 = vld [vmem:[%s15049_s16 + $0xbc4] sm:$0xf]  ;;  %v10451_v24 = vor.u32 %v13883_v11, %v10448_v12  ;;  %6834 = vmatpush.bf16.msra.mxu3 %v9971_v23 }
 0x160   : > { %v10704_v15 = vld [vmem:[%s15049_s16 + $0xbe0] sm:$0xf0]  ;;  %6821 = vmatmul.bf16.vlgmr.msra.gmra.mxu2 %v15150_v1 }
 0x161   : > { %v14011_v16 = vld [vmem:[%s15049_s16 + $0xdc4] sm:$0xf]  ;;  %v10707_v28 = vor.u32 %v13947_v13, %v10704_v15  ;;  %6841 = vmatpush.bf16.msrb.mxu0 %v10451_v24  ;;  %v6570_v15 = vpop.f32.mrf.mxu0 }
 0x162   : > { %v10960_v18 = vld [vmem:[%s15049_s16 + $0xde0] sm:$0xf0]  ;;  %6835 = vmatmul.bf16.vlgmr.msra.gmra.mxu3 %v15162_v17 }
 0x163   : > { %v14075_v21 = vld [vmem:[%s15049_s16 + $0xfc4] sm:$0xf]  ;;  %v10963_v29 = vor.u32 %v14011_v16, %v10960_v18  ;;  %6855 = vmatpush.bf16.msrb.mxu1 %v10707_v28  ;;  %v6571_v18 = vadd.f32 %v6570_v15, %v17798_v2  ;;  %v12470_v2 = vld [vmem:[%s15049_s16 + $0x1988] sm:$0xf] }
 0x164   : > { %v11216_v22 = vld [vmem:[%s15049_s16 + $0xfe0] sm:$0xf0] }
 0x165   : > { %v13875_v25 = vld [vmem:[%s15049_s16 + $0x984] sm:$0xf]  ;;  %v11219_v34 = vor.u32 %v14075_v21, %v11216_v22  ;;  %6869 = vmatpush.bf16.msrb.mxu2 %v10963_v29 }
 0x166   : > { %v10416_v26 = vld [vmem:[%s15049_s16 + $0x9a0] sm:$0xf0] }
 0x167   : > { %v13939_v27 = vld [vmem:[%s15049_s16 + $0xb84] sm:$0xf]  ;;  %v10419_v50 = vor.u32 %v13875_v25, %v10416_v26  ;;  %6883 = vmatpush.bf16.msrb.mxu3 %v11219_v34  ;;  %v6585_v34 = vadd.f32 %v6584_v30, %v6571_v18 }
 0x168   : > { %v10672_v37 = vld [vmem:[%s15049_s16 + $0xba0] sm:$0xf0] }
 0x169   : > { %v14003_v42 = vld [vmem:[%s15049_s16 + $0xd84] sm:$0xf]  ;;  %v10675_v52 = vor.u32 %v13939_v27, %v10672_v37  ;;  %6842 = vmatpush.bf16.msrb.mxu0 %v10419_v50 }
 0x16a   : > { %v10928_v45 = vld [vmem:[%s15049_s16 + $0xda0] sm:$0xf0] }
 0x16b   : > { %v14067_v48 = vld [vmem:[%s15049_s16 + $0xf84] sm:$0xf]  ;;  %v10931_v53 = vor.u32 %v14003_v42, %v10928_v45  ;;  %6856 = vmatpush.bf16.msrb.mxu1 %v10675_v52 }
 0x16c   : > { %v11184_v49 = vld [vmem:[%s15049_s16 + $0xfa0] sm:$0xf0] }
 0x16d   : > { %v13867_v54 = vld [vmem:[%s15049_s16 + $0x944] sm:$0xf]  ;;  %v11187_v57 = vor.u32 %v14067_v48, %v11184_v49  ;;  %6870 = vmatpush.bf16.msrb.mxu2 %v10931_v53 }
 0x16e   : > { %v10384_v55 = vld [vmem:[%s15049_s16 + $0x960] sm:$0xf0] }
 0x16f   : > { %v13931_v56 = vld [vmem:[%s15049_s16 + $0xb44] sm:$0xf]  ;;  %v10387_v0 = vor.u32 %v13867_v54, %v10384_v55  ;;  %6884 = vmatpush.bf16.msrb.mxu3 %v11187_v57  ;;  %v6598_v55 = vpop.f32.mrf.mxu2 }
 0x170   : > { %v10640_v59 = vld [vmem:[%s15049_s16 + $0xb60] sm:$0xf0] }
 0x171   : > { %v13995_v60 = vld [vmem:[%s15049_s16 + $0xd44] sm:$0xf]  ;;  %v10643_v3 = vor.u32 %v13931_v56, %v10640_v59  ;;  %6843 = vmatpush.bf16.msrb.mxu0 %v10387_v0  ;;  %v6599_v59 = vadd.f32 %v6598_v55, %v6585_v34 }
 0x172   : > { %v10896_v61 = vld [vmem:[%s15049_s16 + $0xd60] sm:$0xf0] }
 0x173   : > { %v14059_v62 = vld [vmem:[%s15049_s16 + $0xf44] sm:$0xf]  ;;  %v10899_v4 = vor.u32 %v13995_v60, %v10896_v61  ;;  %6857 = vmatpush.bf16.msrb.mxu1 %v10643_v3 }
 0x174   : > { %v11152_v63 = vld [vmem:[%s15049_s16 + $0xf60] sm:$0xf0] }
 0x175   : > { %v13859_v5 = vld [vmem:[%s15049_s16 + $0x904] sm:$0xf]  ;;  %v11155_v8 = vor.u32 %v14059_v62, %v11152_v63  ;;  %6871 = vmatpush.bf16.msrb.mxu2 %v10899_v4 }
 0x176   : > { %v10352_v6 = vld [vmem:[%s15049_s16 + $0x920] sm:$0xf0] }
 0x177   : > { %v13923_v7 = vld [vmem:[%s15049_s16 + $0xb04] sm:$0xf]  ;;  %v10355_v16 = vor.u32 %v13859_v5, %v10352_v6  ;;  %6885 = vmatpush.bf16.msrb.mxu3 %v11155_v8  ;;  %v6612_v8 = vpop.f32.mrf.mxu3 }
 0x178   : > { %v10608_v9 = vld [vmem:[%s15049_s16 + $0xb20] sm:$0xf0] }
 0x179   : > { %v13987_v11 = vld [vmem:[%s15049_s16 + $0xd04] sm:$0xf]  ;;  %v10611_v19 = vor.u32 %v13923_v7, %v10608_v9  ;;  %6844 = vmatpush.bf16.msrb.mxu0 %v10355_v16 }
 0x17a   : > { %v10864_v12 = vld [vmem:[%s15049_s16 + $0xd20] sm:$0xf0] }
 0x17b   : > { %v14051_v13 = vld [vmem:[%s15049_s16 + $0xf04] sm:$0xf]  ;;  %v10867_v20 = vor.u32 %v13987_v11, %v10864_v12  ;;  %6858 = vmatpush.bf16.msrb.mxu1 %v10611_v19  ;;  %v15501_v12 = vadd.f32 %v6612_v8, %v6599_v59 }
 0x17c   : > { %v11120_v14 = vld [vmem:[%s15049_s16 + $0xf20] sm:$0xf0] }
 0x17d   : > { %v13851_v21 = vld [vmem:[%s15049_s16 + $0x8c4] sm:$0xf]  ;;  %v11123_v24 = vor.u32 %v14051_v13, %v11120_v14  ;;  %6872 = vmatpush.bf16.msrb.mxu2 %v10867_v20 }
 0x17e   : > { %v10320_v22 = vld [vmem:[%s15049_s16 + $0x8e0] sm:$0xf0] }
 0x17f   : > { %v13915_v23 = vld [vmem:[%s15049_s16 + $0xac4] sm:$0xf]  ;;  %v10323_v33 = vor.u32 %v13851_v21, %v10320_v22  ;;  %6886 = vmatpush.bf16.msrb.mxu3 %v11123_v24 }
 0x180   : > { %v10576_v25 = vld [vmem:[%s15049_s16 + $0xae0] sm:$0xf0] }
 0x181   : > { %v13979_v26 = vld [vmem:[%s15049_s16 + $0xcc4] sm:$0xf]  ;;  %v10579_v37 = vor.u32 %v13915_v23, %v10576_v25  ;;  %6845 = vmatpush.bf16.msrb.mxu0 %v10323_v33 }
 0x182   : > { %v10832_v27 = vld [vmem:[%s15049_s16 + $0xce0] sm:$0xf0] }
 0x183   : > { %v14043_v28 = vld [vmem:[%s15049_s16 + $0xec4] sm:$0xf]  ;;  %v10835_v42 = vor.u32 %v13979_v26, %v10832_v27  ;;  %6859 = vmatpush.bf16.msrb.mxu1 %v10579_v37 }
 0x184   : > { %v11088_v29 = vld [vmem:[%s15049_s16 + $0xee0] sm:$0xf0] }
 0x185   : > { %v13843_v45 = vld [vmem:[%s15049_s16 + $0x884] sm:$0xf]  ;;  %v11091_v50 = vor.u32 %v14043_v28, %v11088_v29  ;;  %6873 = vmatpush.bf16.msrb.mxu2 %v10835_v42 }
 0x186   : > { %v10288_v48 = vld [vmem:[%s15049_s16 + $0x8a0] sm:$0xf0] }
 0x187   : > { %v13907_v49 = vld [vmem:[%s15049_s16 + $0xa84] sm:$0xf]  ;;  %v10291_v60 = vor.u32 %v13843_v45, %v10288_v48  ;;  %6887 = vmatpush.bf16.msrb.mxu3 %v11091_v50 }
 0x188   : > { %v10544_v52 = vld [vmem:[%s15049_s16 + $0xaa0] sm:$0xf0] }
 0x189   : > { %v13971_v53 = vld [vmem:[%s15049_s16 + $0xc84] sm:$0xf]  ;;  %v10547_v61 = vor.u32 %v13907_v49, %v10544_v52  ;;  %6846 = vmatpush.bf16.msrb.mxu0 %v10291_v60 }
 0x18a   : > { %v10800_v54 = vld [vmem:[%s15049_s16 + $0xca0] sm:$0xf0] }
 0x18b   : > { %v14035_v56 = vld [vmem:[%s15049_s16 + $0xe84] sm:$0xf]  ;;  %v10803_v62 = vor.u32 %v13971_v53, %v10800_v54  ;;  %6860 = vmatpush.bf16.msrb.mxu1 %v10547_v61  ;;  %v15519_v54 = vpop.f32.mrf.mxu0 }
 0x18c   : > { %v11056_v57 = vld [vmem:[%s15049_s16 + $0xea0] sm:$0xf0] }
 0x18d   : > { %v13835_v63 = vld [vmem:[%s15049_s16 + $0x844] sm:$0xf]  ;;  %v11059_v4 = vor.u32 %v14035_v56, %v11056_v57  ;;  %6874 = vmatpush.bf16.msrb.mxu2 %v10803_v62 }
 0x18e   : > { %v10256_v0 = vld [vmem:[%s15049_s16 + $0x860] sm:$0xf0] }
 0x18f   : > { %v13899_v3 = vld [vmem:[%s15049_s16 + $0xa44] sm:$0xf]  ;;  %v10259_v13 = vor.u32 %v13835_v63, %v10256_v0  ;;  %6888 = vmatpush.bf16.msrb.mxu3 %v11059_v4 }
 0x190   : > { %v10512_v5 = vld [vmem:[%s15049_s16 + $0xa60] sm:$0xf0] }
 0x191   : > { %v13963_v6 = vld [vmem:[%s15049_s16 + $0xc44] sm:$0xf]  ;;  %v10515_v16 = vor.u32 %v13899_v3, %v10512_v5  ;;  %6847 = vmatpush.bf16.msrb.mxu0 %v10259_v13  ;;  %v15529_v3 = vpop.f32.mrf.mxu1 }
 0x192   : > { %v10768_v7 = vld [vmem:[%s15049_s16 + $0xc60] sm:$0xf0] }
 0x193   : > { %v14027_v9 = vld [vmem:[%s15049_s16 + $0xe44] sm:$0xf]  ;;  %v10771_v18 = vor.u32 %v13963_v6, %v10768_v7  ;;  %6861 = vmatpush.bf16.msrb.mxu1 %v10515_v16 }
 0x194   : > { %v11024_v11 = vld [vmem:[%s15049_s16 + $0xe60] sm:$0xf0] }
 0x195   : > { %v13827_v14 = vld [vmem:[%s15049_s16 + $0x804] sm:$0xf]  ;;  %v11027_v22 = vor.u32 %v14027_v9, %v11024_v11  ;;  %6875 = vmatpush.bf16.msrb.mxu2 %v10771_v18 }
 0x196   : > { %v10224_v15 = vld [vmem:[%s15049_s16 + $0x820] sm:$0xf0] }
 0x197   : > { %v13891_v19 = vld [vmem:[%s15049_s16 + $0xa04] sm:$0xf]  ;;  %v10227_v29 = vor.u32 %v13827_v14, %v10224_v15  ;;  %6889 = vmatpush.bf16.msrb.mxu3 %v11027_v22 }
 0x198   : > { %v10480_v20 = vld [vmem:[%s15049_s16 + $0xa20] sm:$0xf0] }
 0x199   : > { %v13955_v21 = vld [vmem:[%s15049_s16 + $0xc04] sm:$0xf]  ;;  %v10483_v37 = vor.u32 %v13891_v19, %v10480_v20  ;;  %6848 = vmatpush.bf16.msrb.mxu0 %v10227_v29  ;;  %v15543_v20 = vpop.f32.mrf.mxu2 }
 0x19a   : > { %v10736_v23 = vld [vmem:[%s15049_s16 + $0xc20] sm:$0xf0] }
 0x19b   : > { %v14019_v24 = vld [vmem:[%s15049_s16 + $0xe04] sm:$0xf]  ;;  %v10739_v42 = vor.u32 %v13955_v21, %v10736_v23  ;;  %6862 = vmatpush.bf16.msrb.mxu1 %v10483_v37 }
 0x19c   : > { %v10992_v25 = vld [vmem:[%s15049_s16 + $0xe20] sm:$0xf0]  ;;  %6849 = vmatmul.bf16.vlgmr.msrb.gmra.mxu0 %v15214_v39 }
 0x19d   : > { %v14139_v26 = vld [vmem:[%s15049_s16 + $0x11c4] sm:$0xf]  ;;  %v10995_v49 = vor.u32 %v14019_v24, %v10992_v25  ;;  %6876 = vmatpush.bf16.msrb.mxu2 %v10739_v42 }
 0x19e   : > { %v11472_v27 = vld [vmem:[%s15049_s16 + $0x11e0] sm:$0xf0]  ;;  %6863 = vmatmul.bf16.vlgmr.msrb.gmra.mxu1 %v15221_v44 }
 0x19f   : > { %v14203_v28 = vld [vmem:[%s15049_s16 + $0x13c4] sm:$0xf]  ;;  %v11475_v50 = vor.u32 %v14139_v26, %v11472_v27  ;;  %6890 = vmatpush.bf16.msrb.mxu3 %v10995_v49  ;;  %v15548_v27 = vpop.f32.mrf.mxu3 }
 0x1a0   : > { %v11728_v30 = vld [vmem:[%s15049_s16 + $0x13e0] sm:$0xf0]  ;;  %6877 = vmatmul.bf16.vlgmr.msrb.gmra.mxu2 %v15219_v43 }
 0x1a1   : > { %v14267_v33 = vld [vmem:[%s15049_s16 + $0x15c4] sm:$0xf]  ;;  %v11731_v52 = vor.u32 %v14203_v28, %v11728_v30  ;;  %6897 = vmatpush.bf16.msra.mxu0 %v11475_v50  ;;  %v6640_v50 = vpop.f32.mrf.mxu1 }
 0x1a2   : > { %v11984_v34 = vld [vmem:[%s15049_s16 + $0x15e0] sm:$0xf0]  ;;  %6891 = vmatmul.bf16.vlgmr.msrb.gmra.mxu3 %v15225_v47 }
 0x1a3   : > { %v14331_v45 = vld [vmem:[%s15049_s16 + $0x17c4] sm:$0xf]  ;;  %v11987_v53 = vor.u32 %v14267_v33, %v11984_v34  ;;  %6911 = vmatpush.bf16.msra.mxu1 %v11731_v52  ;;  %v6626_v33 = vpop.f32.mrf.mxu0 }
 0x1a4   : > { %v12240_v48 = vld [vmem:[%s15049_s16 + $0x17e0] sm:$0xf0]  ;;  %v6627_v42 = vadd.f32 %v6626_v33, %v15501_v12 }
 0x1a5   : > { %v14131_v55 = vld [vmem:[%s15049_s16 + $0x1184] sm:$0xf]  ;;  %v12243_v59 = vor.u32 %v14331_v45, %v12240_v48  ;;  %6925 = vmatpush.bf16.msra.mxu2 %v11987_v53 }
 0x1a6   : > { %v11440_v56 = vld [vmem:[%s15049_s16 + $0x11a0] sm:$0xf0] }
 0x1a7   : > { %v14195_v57 = vld [vmem:[%s15049_s16 + $0x1384] sm:$0xf]  ;;  %v11443_v4 = vor.u32 %v14131_v55, %v11440_v56  ;;  %6939 = vmatpush.bf16.msra.mxu3 %v12243_v59 }
 0x1a8   : > { %v11696_v60 = vld [vmem:[%s15049_s16 + $0x13a0] sm:$0xf0] }
 0x1a9   : > { %v14259_v61 = vld [vmem:[%s15049_s16 + $0x1584] sm:$0xf]  ;;  %v11699_v5 = vor.u32 %v14195_v57, %v11696_v60  ;;  %6898 = vmatpush.bf16.msra.mxu0 %v11443_v4  ;;  %v6641_v57 = vadd.f32 %v6640_v50, %v6627_v42 }
 0x1aa   : > { %v11952_v62 = vld [vmem:[%s15049_s16 + $0x15a0] sm:$0xf0] }
 0x1ab   : > { %v14323_v63 = vld [vmem:[%s15049_s16 + $0x1784] sm:$0xf]  ;;  %v11955_v6 = vor.u32 %v14259_v61, %v11952_v62  ;;  %6912 = vmatpush.bf16.msra.mxu1 %v11699_v5 }
 0x1ac   : > { %v12208_v0 = vld [vmem:[%s15049_s16 + $0x17a0] sm:$0xf0] }
 0x1ad   : > { %v14123_v7 = vld [vmem:[%s15049_s16 + $0x1144] sm:$0xf]  ;;  %v12211_v11 = vor.u32 %v14323_v63, %v12208_v0  ;;  %6926 = vmatpush.bf16.msra.mxu2 %v11955_v6 }
 0x1ae   : > { %v11408_v8 = vld [vmem:[%s15049_s16 + $0x1160] sm:$0xf0] }
 0x1af   : > { %v14187_v9 = vld [vmem:[%s15049_s16 + $0x1344] sm:$0xf]  ;;  %v11411_v19 = vor.u32 %v14123_v7, %v11408_v8  ;;  %6940 = vmatpush.bf16.msra.mxu3 %v12211_v11 }
 0x1b0   : > { %v11664_v13 = vld [vmem:[%s15049_s16 + $0x1360] sm:$0xf0] }
 0x1b1   : > { %v14251_v14 = vld [vmem:[%s15049_s16 + $0x1544] sm:$0xf]  ;;  %v11667_v21 = vor.u32 %v14187_v9, %v11664_v13  ;;  %6899 = vmatpush.bf16.msra.mxu0 %v11411_v19  ;;  %v6654_v9 = vpop.f32.mrf.mxu2  ;;  %v6668_v19 = vpop.f32.mrf.mxu3 }
 0x1b2   : > { %v11920_v15 = vld [vmem:[%s15049_s16 + $0x1560] sm:$0xf0] }
 0x1b3   : > { %v14315_v16 = vld [vmem:[%s15049_s16 + $0x1744] sm:$0xf]  ;;  %v11923_v22 = vor.u32 %v14251_v14, %v11920_v15  ;;  %6913 = vmatpush.bf16.msra.mxu1 %v11667_v21  ;;  %v6655_v15 = vadd.f32 %v6654_v9, %v6641_v57 }
 0x1b4   : > { %v12176_v18 = vld [vmem:[%s15049_s16 + $0x1760] sm:$0xf0] }
 0x1b5   : > { %v14115_v23 = vld [vmem:[%s15049_s16 + $0x1104] sm:$0xf]  ;;  %v12179_v26 = vor.u32 %v14315_v16, %v12176_v18  ;;  %6927 = vmatpush.bf16.msra.mxu2 %v11923_v22  ;;  %v15572_v22 = vadd.f32 %v6668_v19, %v6655_v15 }
 0x1b6   : > { %v11376_v24 = vld [vmem:[%s15049_s16 + $0x1120] sm:$0xf0] }
 0x1b7   : > { %v14179_v25 = vld [vmem:[%s15049_s16 + $0x1304] sm:$0xf]  ;;  %v11379_v45 = vor.u32 %v14115_v23, %v11376_v24  ;;  %6941 = vmatpush.bf16.msra.mxu3 %v12179_v26 }
 0x1b8   : > { %v11632_v28 = vld [vmem:[%s15049_s16 + $0x1320] sm:$0xf0] }
 0x1b9   : > { %v14243_v29 = vld [vmem:[%s15049_s16 + $0x1504] sm:$0xf]  ;;  %v11635_v48 = vor.u32 %v14179_v25, %v11632_v28  ;;  %6900 = vmatpush.bf16.msra.mxu0 %v11379_v45 }
 0x1ba   : > { %v11888_v30 = vld [vmem:[%s15049_s16 + $0x1520] sm:$0xf0] }
 0x1bb   : > { %v14307_v34 = vld [vmem:[%s15049_s16 + $0x1704] sm:$0xf]  ;;  %v11891_v49 = vor.u32 %v14243_v29, %v11888_v30  ;;  %6914 = vmatpush.bf16.msra.mxu1 %v11635_v48 }
 0x1bc   : > { %v12144_v37 = vld [vmem:[%s15049_s16 + $0x1720] sm:$0xf0] }
 0x1bd   : > { %v14107_v52 = vld [vmem:[%s15049_s16 + $0x10c4] sm:$0xf]  ;;  %v12147_v56 = vor.u32 %v14307_v34, %v12144_v37  ;;  %6928 = vmatpush.bf16.msra.mxu2 %v11891_v49 }
 0x1be   : > { %v11344_v53 = vld [vmem:[%s15049_s16 + $0x10e0] sm:$0xf0] }
 0x1bf   : > { %v14171_v55 = vld [vmem:[%s15049_s16 + $0x12c4] sm:$0xf]  ;;  %v11347_v63 = vor.u32 %v14107_v52, %v11344_v53  ;;  %6942 = vmatpush.bf16.msra.mxu3 %v12147_v56 }
 0x1c0   : > { %v11600_v59 = vld [vmem:[%s15049_s16 + $0x12e0] sm:$0xf0] }
 0x1c1   : > { %v14235_v60 = vld [vmem:[%s15049_s16 + $0x14c4] sm:$0xf]  ;;  %v11603_v0 = vor.u32 %v14171_v55, %v11600_v59  ;;  %6901 = vmatpush.bf16.msra.mxu0 %v11347_v63 }
 0x1c2   : > { %v11856_v12 = vld [vmem:[%s15049_s16 + $0x14e0] sm:$0xf0] }
 0x1c3   : > { %v14299_v61 = vld [vmem:[%s15049_s16 + $0x16c4] sm:$0xf]  ;;  %v11859_v4 = vor.u32 %v14235_v60, %v11856_v12  ;;  %6915 = vmatpush.bf16.msra.mxu1 %v11603_v0 }
 0x1c4   : > { %v12112_v62 = vld [vmem:[%s15049_s16 + $0x16e0] sm:$0xf0] }
 0x1c5   : > { %v14099_v5 = vld [vmem:[%s15049_s16 + $0x1084] sm:$0xf]  ;;  %v12115_v8 = vor.u32 %v14299_v61, %v12112_v62  ;;  %6929 = vmatpush.bf16.msra.mxu2 %v11859_v4 }
 0x1c6   : > { %v11312_v6 = vld [vmem:[%s15049_s16 + $0x10a0] sm:$0xf0] }
 0x1c7   : > { %v14163_v7 = vld [vmem:[%s15049_s16 + $0x1284] sm:$0xf]  ;;  %v11315_v21 = vor.u32 %v14099_v5, %v11312_v6  ;;  %6943 = vmatpush.bf16.msra.mxu3 %v12115_v8 }
 0x1c8   : > { %v11568_v11 = vld [vmem:[%s15049_s16 + $0x12a0] sm:$0xf0] }
 0x1c9   : > { %v14227_v13 = vld [vmem:[%s15049_s16 + $0x1484] sm:$0xf]  ;;  %v11571_v23 = vor.u32 %v14163_v7, %v11568_v11  ;;  %6902 = vmatpush.bf16.msra.mxu0 %v11315_v21 }
 0x1ca   : > { %v11824_v14 = vld [vmem:[%s15049_s16 + $0x14a0] sm:$0xf0] }
 0x1cb   : > { %v14291_v16 = vld [vmem:[%s15049_s16 + $0x1684] sm:$0xf]  ;;  %v11827_v24 = vor.u32 %v14227_v13, %v11824_v14  ;;  %6916 = vmatpush.bf16.msra.mxu1 %v11571_v23 }
 0x1cc   : > { %v12080_v18 = vld [vmem:[%s15049_s16 + $0x16a0] sm:$0xf0] }
 0x1cd   : > { %v14091_v25 = vld [vmem:[%s15049_s16 + $0x1044] sm:$0xf]  ;;  %v12083_v29 = vor.u32 %v14291_v16, %v12080_v18  ;;  %6930 = vmatpush.bf16.msra.mxu2 %v11827_v24 }
 0x1ce   : > { %v11280_v26 = vld [vmem:[%s15049_s16 + $0x1060] sm:$0xf0] }
 0x1cf   : > { %v14155_v28 = vld [vmem:[%s15049_s16 + $0x1244] sm:$0xf]  ;;  %v11283_v45 = vor.u32 %v14091_v25, %v11280_v26  ;;  %6944 = vmatpush.bf16.msra.mxu3 %v12083_v29 }
 0x1d0   : > { %v11536_v30 = vld [vmem:[%s15049_s16 + $0x1260] sm:$0xf0] }
 0x1d1   : > { %v14219_v33 = vld [vmem:[%s15049_s16 + $0x1444] sm:$0xf]  ;;  %v11539_v50 = vor.u32 %v14155_v28, %v11536_v30  ;;  %6903 = vmatpush.bf16.msra.mxu0 %v11283_v45  ;;  %v15604_v28 = vpop.f32.mrf.mxu0 }
 0x1d2   : > { %v11792_v34 = vld [vmem:[%s15049_s16 + $0x1460] sm:$0xf0]  ;;  %17810 = vst [vmem:[#allocation13_spill] sm:$0xff] %v15604_v28  ;;  %v14394_v28 = vld [vmem:[%s15049_s16 + $0x19b4] sm:$0xf0] }
 0x1d3   : > { %v14283_v37 = vld [vmem:[%s15049_s16 + $0x1644] sm:$0xf]  ;;  %v11795_v52 = vor.u32 %v14219_v33, %v11792_v34  ;;  %6917 = vmatpush.bf16.msra.mxu1 %v11539_v50  ;;  %v15608_v33 = vpop.f32.mrf.mxu1 }
 0x1d4   : > { %v12048_v42 = vld [vmem:[%s15049_s16 + $0x1660] sm:$0xf0]  ;;  %17811 = vst [vmem:[#allocation14_spill] sm:$0xff] %v15608_v33  ;;  %v12734_v33 = vld [vmem:[%s15049_s16 + $0x1b90] sm:$0xf] }
 0x1d5   : > { %v14083_v48 = vld [vmem:[%s15049_s16 + $0x1004] sm:$0xf]  ;;  %v12051_v57 = vor.u32 %v14283_v37, %v12048_v42  ;;  %6931 = vmatpush.bf16.msra.mxu2 %v11795_v52 }
 0x1d6   : > { %v11248_v49 = vld [vmem:[%s15049_s16 + $0x1020] sm:$0xf0] }
 0x1d7   : > { %v14147_v53 = vld [vmem:[%s15049_s16 + $0x1204] sm:$0xf]  ;;  %v11251_v0 = vor.u32 %v14083_v48, %v11248_v49  ;;  %6945 = vmatpush.bf16.msra.mxu3 %v12051_v57 }
 0x1d8   : > { %v11504_v55 = vld [vmem:[%s15049_s16 + $0x1220] sm:$0xf0] }
 0x1d9   : > { %v14211_v56 = vld [vmem:[%s15049_s16 + $0x1404] sm:$0xf]  ;;  %v11507_v7 = vor.u32 %v14147_v53, %v11504_v55  ;;  %6904 = vmatpush.bf16.msra.mxu0 %v11251_v0  ;;  %v15625_v0 = vpop.f32.mrf.mxu2 }
 0x1da   : > { %v11760_v59 = vld [vmem:[%s15049_s16 + $0x1420] sm:$0xf0]  ;;  %17812 = vst [vmem:[#allocation15_spill] sm:$0xff] %v15625_v0  ;;  %v14393_v0 = vld [vmem:[%s15049_s16 + $0x19ac] sm:$0xf0] }
 0x1db   : > { %v14275_v60 = vld [vmem:[%s15049_s16 + $0x1604] sm:$0xf]  ;;  %v11763_v8 = vor.u32 %v14211_v56, %v11760_v59  ;;  %6918 = vmatpush.bf16.msra.mxu1 %v11507_v7 }
 0x1dc   : > { %v12016_v12 = vld [vmem:[%s15049_s16 + $0x1620] sm:$0xf0]  ;;  %6905 = vmatmul.bf16.vlgmr.msra.gmra.mxu0 %v15290_v31 }
 0x1dd   : > { %v14395_v61 = vld [vmem:[%s15049_s16 + $0x19c4] sm:$0xf]  ;;  %v12019_v13 = vor.u32 %v14275_v60, %v12016_v12  ;;  %6932 = vmatpush.bf16.msra.mxu2 %v11763_v8  ;;  %v15630_v8 = vpop.f32.mrf.mxu3 }
 0x1de   : > { %v12496_v62 = vld [vmem:[%s15049_s16 + $0x19e0] sm:$0xf0]  ;;  %6919 = vmatmul.bf16.vlgmr.msra.gmra.mxu1 %v15297_v36  ;;  %17813 = vst [vmem:[#allocation16_spill] sm:$0xff] %v15630_v8  ;;  %v12728_v8 = vld [vmem:[%s15049_s16 + $0x1ba8] sm:$0xf0] }
 0x1df   : > { %v14459_v63 = vld [vmem:[%s15049_s16 + $0x1bc4] sm:$0xf]  ;;  %v12499_v14 = vor.u32 %v14395_v61, %v12496_v62  ;;  %6946 = vmatpush.bf16.msra.mxu3 %v12019_v13 }
 0x1e0   : > { %v12752_v4 = vld [vmem:[%s15049_s16 + $0x1be0] sm:$0xf0]  ;;  %6933 = vmatmul.bf16.vlgmr.msra.gmra.mxu2 %v15295_v35 }
 0x1e1   : > { %v14523_v5 = vld [vmem:[%s15049_s16 + $0x1dc4] sm:$0xf]  ;;  %v12755_v15 = vor.u32 %v14459_v63, %v12752_v4  ;;  %6953 = vmatpush.bf16.msrb.mxu0 %v12499_v14 }
 0x1e2   : > { %v13008_v6 = vld [vmem:[%s15049_s16 + $0x1de0] sm:$0xf0]  ;;  %6947 = vmatmul.bf16.vlgmr.msra.gmra.mxu3 %v15301_v40 }
 0x1e3   : > { %v14587_v9 = vld [vmem:[%s15049_s16 + $0x1fc4] sm:$0xf]  ;;  %v13011_v16 = vor.u32 %v14523_v5, %v13008_v6  ;;  %6967 = vmatpush.bf16.msrb.mxu1 %v12755_v15 }
 0x1e4   : > { %v13264_v11 = vld [vmem:[%s15049_s16 + $0x1fe0] sm:$0xf0] }
 0x1e5   : > { %v14387_v18 = vld [vmem:[%s15049_s16 + $0x1984] sm:$0xf]  ;;  %v13267_v23 = vor.u32 %v14587_v9, %v13264_v11  ;;  %6981 = vmatpush.bf16.msrb.mxu2 %v13011_v16  ;;  %v6682_v9 = vpop.f32.mrf.mxu0  ;;  %v6696_v16 = vpop.f32.mrf.mxu1 }
 0x1e6   : > { %v12464_v19 = vld [vmem:[%s15049_s16 + $0x19a0] sm:$0xf0]  ;;  %v6683_v14 = vadd.f32 %v6682_v9, %v15572_v22 }
 0x1e7   : > { %v14451_v21 = vld [vmem:[%s15049_s16 + $0x1b84] sm:$0xf]  ;;  %v12467_v34 = vor.u32 %v14387_v18, %v12464_v19  ;;  %6995 = vmatpush.bf16.msrb.mxu3 %v13267_v23 }
 0x1e8   : > { %v12720_v24 = vld [vmem:[%s15049_s16 + $0x1ba0] sm:$0xf0] }
 0x1e9   : > { %v14515_v25 = vld [vmem:[%s15049_s16 + $0x1d84] sm:$0xf]  ;;  %v12723_v37 = vor.u32 %v14451_v21, %v12720_v24  ;;  %6954 = vmatpush.bf16.msrb.mxu0 %v12467_v34 }
 0x1ea   : > { %v12976_v26 = vld [vmem:[%s15049_s16 + $0x1da0] sm:$0xf0] }
 0x1eb   : > { %v14579_v29 = vld [vmem:[%s15049_s16 + $0x1f84] sm:$0xf]  ;;  %v12979_v42 = vor.u32 %v14515_v25, %v12976_v26  ;;  %6968 = vmatpush.bf16.msrb.mxu1 %v12723_v37  ;;  %v6697_v26 = vadd.f32 %v6696_v16, %v6683_v14 }
 0x1ec   : > { %v13232_v30 = vld [vmem:[%s15049_s16 + $0x1fa0] sm:$0xf0] }
 0x1ed   : > { %v14379_v45 = vld [vmem:[%s15049_s16 + $0x1944] sm:$0xf]  ;;  %v13235_v50 = vor.u32 %v14579_v29, %v13232_v30  ;;  %6982 = vmatpush.bf16.msrb.mxu2 %v12979_v42 }
 0x1ee   : > { %v12432_v48 = vld [vmem:[%s15049_s16 + $0x1960] sm:$0xf0] }
 0x1ef   : > { %v14443_v49 = vld [vmem:[%s15049_s16 + $0x1b44] sm:$0xf]  ;;  %v12435_v59 = vor.u32 %v14379_v45, %v12432_v48  ;;  %6996 = vmatpush.bf16.msrb.mxu3 %v13235_v50 }
 0x1f0   : > { %v12688_v52 = vld [vmem:[%s15049_s16 + $0x1b60] sm:$0xf0] }
 0x1f1   : > { %v14507_v53 = vld [vmem:[%s15049_s16 + $0x1d44] sm:$0xf]  ;;  %v12691_v60 = vor.u32 %v14443_v49, %v12688_v52  ;;  %6955 = vmatpush.bf16.msrb.mxu0 %v12435_v59 }
 0x1f2   : > { %v12944_v55 = vld [vmem:[%s15049_s16 + $0x1d60] sm:$0xf0] }
 0x1f3   : > { %v14571_v56 = vld [vmem:[%s15049_s16 + $0x1f44] sm:$0xf]  ;;  %v12947_v12 = vor.u32 %v14507_v53, %v12944_v55  ;;  %6969 = vmatpush.bf16.msrb.mxu1 %v12691_v60  ;;  %v6710_v55 = vpop.f32.mrf.mxu2 }
 0x1f4   : > { %v13200_v57 = vld [vmem:[%s15049_s16 + $0x1f60] sm:$0xf0]  ;;  %v6711_v60 = vadd.f32 %v6710_v55, %v6697_v26  ;;  %v9942_v55 = vld [vmem:[%s15049_s16 + $0x5c8] sm:$0xf] }
 0x1f5   : > { %v14371_v61 = vld [vmem:[%s15049_s16 + $0x1904] sm:$0xf]  ;;  %v13203_v4 = vor.u32 %v14571_v56, %v13200_v57  ;;  %6983 = vmatpush.bf16.msrb.mxu2 %v12947_v12  ;;  %v6724_v12 = vpop.f32.mrf.mxu3 }
 0x1f6   : > { %v12400_v62 = vld [vmem:[%s15049_s16 + $0x1920] sm:$0xf0] }
 0x1f7   : > { %v14435_v63 = vld [vmem:[%s15049_s16 + $0x1b04] sm:$0xf]  ;;  %v12403_v15 = vor.u32 %v14371_v61, %v12400_v62  ;;  %6997 = vmatpush.bf16.msrb.mxu3 %v13203_v4  ;;  %v15651_v4 = vadd.f32 %v6724_v12, %v6711_v60  ;;  %v10198_v60 = vld [vmem:[%s15049_s16 + $0x7c8] sm:$0xf] }
 0x1f8   : > { %v12656_v5 = vld [vmem:[%s15049_s16 + $0x1b20] sm:$0xf0]  ;;  %v13824_v12 = vld [vmem:[%s15049_s16 + $0x7e4] sm:$0xf0] }
 0x1f9   : > { %v14499_v6 = vld [vmem:[%s15049_s16 + $0x1d04] sm:$0xf]  ;;  %v12659_v18 = vor.u32 %v14435_v63, %v12656_v5  ;;  %6956 = vmatpush.bf16.msrb.mxu0 %v12403_v15 }
 0x1fa   : > { %v12912_v7 = vld [vmem:[%s15049_s16 + $0x1d20] sm:$0xf0] }
 0x1fb   : > { %v14563_v11 = vld [vmem:[%s15049_s16 + $0x1f04] sm:$0xf]  ;;  %v12915_v19 = vor.u32 %v14499_v6, %v12912_v7  ;;  %6970 = vmatpush.bf16.msrb.mxu1 %v12659_v18 }
 0x1fc   : > { %v13168_v13 = vld [vmem:[%s15049_s16 + $0x1f20] sm:$0xf0] }
 0x1fd   : > { %v14363_v21 = vld [vmem:[%s15049_s16 + $0x18c4] sm:$0xf]  ;;  %v13171_v25 = vor.u32 %v14563_v11, %v13168_v13  ;;  %6984 = vmatpush.bf16.msrb.mxu2 %v12915_v19 }
 0x1fe   : > { %v12368_v23 = vld [vmem:[%s15049_s16 + $0x18e0] sm:$0xf0] }
 0x1ff   : > { %v14427_v24 = vld [vmem:[%s15049_s16 + $0x1ac4] sm:$0xf]  ;;  %v12371_v42 = vor.u32 %v14363_v21, %v12368_v23  ;;  %6998 = vmatpush.bf16.msrb.mxu3 %v13171_v25 }
 0x200   : > { %v12624_v29 = vld [vmem:[%s15049_s16 + $0x1ae0] sm:$0xf0] }
 0x201   : > { %v14491_v30 = vld [vmem:[%s15049_s16 + $0x1cc4] sm:$0xf]  ;;  %v12627_v45 = vor.u32 %v14427_v24, %v12624_v29  ;;  %6957 = vmatpush.bf16.msrb.mxu0 %v12371_v42 }
 0x202   : > { %v12880_v22 = vld [vmem:[%s15049_s16 + $0x1ce0] sm:$0xf0] }
 0x203   : > { %v14555_v34 = vld [vmem:[%s15049_s16 + $0x1ec4] sm:$0xf]  ;;  %v12883_v48 = vor.u32 %v14491_v30, %v12880_v22  ;;  %6971 = vmatpush.bf16.msrb.mxu1 %v12627_v45 }
 0x204   : > { %v13136_v37 = vld [vmem:[%s15049_s16 + $0x1ee0] sm:$0xf0] }
 0x205   : > { %v14355_v49 = vld [vmem:[%s15049_s16 + $0x1884] sm:$0xf]  ;;  %v13139_v53 = vor.u32 %v14555_v34, %v13136_v37  ;;  %6985 = vmatpush.bf16.msrb.mxu2 %v12883_v48  ;;  %v9430_v48 = vld [vmem:[%s15049_s16 + $0x1c8] sm:$0xf] }
 0x206   : > { %v12336_v50 = vld [vmem:[%s15049_s16 + $0x18a0] sm:$0xf0] }
 0x207   : > { %v14419_v52 = vld [vmem:[%s15049_s16 + $0x1a84] sm:$0xf]  ;;  %v12339_v63 = vor.u32 %v14355_v49, %v12336_v50  ;;  %6999 = vmatpush.bf16.msrb.mxu3 %v13139_v53  ;;  %v13632_v49 = vld [vmem:[%s15049_s16 + $0x1e4] sm:$0xf0] }
 0x208   : > { %v12592_v56 = vld [vmem:[%s15049_s16 + $0x1aa0] sm:$0xf0]  ;;  %v9686_v50 = vld [vmem:[%s15049_s16 + $0x3c8] sm:$0xf] }
 0x209   : > { %v14483_v57 = vld [vmem:[%s15049_s16 + $0x1c84] sm:$0xf]  ;;  %v12595_v5 = vor.u32 %v14419_v52, %v12592_v56  ;;  %6958 = vmatpush.bf16.msrb.mxu0 %v12339_v63  ;;  %v13696_v53 = vld [vmem:[%s15049_s16 + $0x3e4] sm:$0xf0] }
 0x20a   : > { %v12848_v59 = vld [vmem:[%s15049_s16 + $0x1ca0] sm:$0xf0]  ;;  %v13760_v56 = vld [vmem:[%s15049_s16 + $0x5e4] sm:$0xf0]  ;;  %v9687_v63 = vor.u32 %v13696_v53, %v9686_v50 }
 0x20b   : > { %v14547_v61 = vld [vmem:[%s15049_s16 + $0x1e84] sm:$0xf]  ;;  %v12851_v6 = vor.u32 %v14483_v57, %v12848_v59  ;;  %6972 = vmatpush.bf16.msrb.mxu1 %v12595_v5  ;;  %v9943_v5 = vor.u32 %v13760_v56, %v9942_v55  ;;  %v9334_v53 = vld [vmem:[%s15049_s16 + $0x108] sm:$0xf] }
 0x20c   : > { %v13104_v62 = vld [vmem:[%s15049_s16 + $0x1ea0] sm:$0xf0]  ;;  %v13608_v55 = vld [vmem:[%s15049_s16 + $0x124] sm:$0xf0] }
 0x20d   : > { %v14347_v7 = vld [vmem:[%s15049_s16 + $0x1844] sm:$0xf]  ;;  %v13107_v13 = vor.u32 %v14547_v61, %v13104_v62  ;;  %6986 = vmatpush.bf16.msrb.mxu2 %v12851_v6  ;;  %v9431_v62 = vor.u32 %v13632_v49, %v9430_v48  ;;  %v9398_v6 = vld [vmem:[%s15049_s16 + $0x188] sm:$0xf] }
 0x20e   : > { %v12304_v9 = vld [vmem:[%s15049_s16 + $0x1860] sm:$0xf0]  ;;  %v13808_v48 = vld [vmem:[%s15049_s16 + $0x764] sm:$0xf0] }
 0x20f   : > { %v14411_v11 = vld [vmem:[%s15049_s16 + $0x1a44] sm:$0xf]  ;;  %v12307_v21 = vor.u32 %v14347_v7, %v12304_v9  ;;  %7000 = vmatpush.bf16.msrb.mxu3 %v13107_v13  ;;  %v13624_v7 = vld [vmem:[%s15049_s16 + $0x1a4] sm:$0xf0] }
 0x210   : > { %v12560_v14 = vld [vmem:[%s15049_s16 + $0x1a60] sm:$0xf0]  ;;  %v9654_v9 = vld [vmem:[%s15049_s16 + $0x388] sm:$0xf] }
 0x211   : > { %v14475_v15 = vld [vmem:[%s15049_s16 + $0x1c44] sm:$0xf]  ;;  %v12563_v25 = vor.u32 %v14411_v11, %v12560_v14  ;;  %6959 = vmatpush.bf16.msrb.mxu0 %v12307_v21  ;;  %v10199_v11 = vor.u32 %v13824_v12, %v10198_v60  ;;  %v13688_v13 = vld [vmem:[%s15049_s16 + $0x3a4] sm:$0xf0]  ;;  %v15687_v21 = vpop.f32.mrf.mxu1 }
 0x212   : > { %v12816_v16 = vld [vmem:[%s15049_s16 + $0x1c60] sm:$0xf0]  ;;  %v9910_v14 = vld [vmem:[%s15049_s16 + $0x588] sm:$0xf]  ;;  %17815 = vst [vmem:[#allocation18_spill] sm:$0xff] %v15687_v21 }
 0x213   : > { %v14539_v18 = vld [vmem:[%s15049_s16 + $0x1e44] sm:$0xf]  ;;  %v12819_v26 = vor.u32 %v14475_v15, %v12816_v16  ;;  %6973 = vmatpush.bf16.msrb.mxu1 %v12563_v25  ;;  %v13752_v15 = vld [vmem:[%s15049_s16 + $0x5a4] sm:$0xf0]  ;;  %v15683_v16 = vpop.f32.mrf.mxu0  ;;  %v14236_v21 = vld [vmem:[%s15049_s16 + $0x14cc] sm:$0xf] }
 0x214   : > { %v13072_v19 = vld [vmem:[%s15049_s16 + $0x1e60] sm:$0xf0]  ;;  %17814 = vst [vmem:[#allocation17_spill] sm:$0xff] %v15683_v16  ;;  %v9911_v25 = vor.u32 %v13752_v15, %v9910_v14  ;;  %v9590_v56 = vld [vmem:[%s15049_s16 + $0x308] sm:$0xf] }
 0x215   : > { %v14339_v23 = vld [vmem:[%s15049_s16 + $0x1804] sm:$0xf]  ;;  %v13075_v34 = vor.u32 %v14539_v18, %v13072_v19  ;;  %6987 = vmatpush.bf16.msrb.mxu2 %v12819_v26  ;;  %v10166_v18 = vld [vmem:[%s15049_s16 + $0x788] sm:$0xf]  ;;  %v14452_v16 = vld [vmem:[%s15049_s16 + $0x1b8c] sm:$0xf] }
 0x216   : > { %v12272_v24 = vld [vmem:[%s15049_s16 + $0x1820] sm:$0xf0]  ;;  %v13816_v19 = vld [vmem:[%s15049_s16 + $0x7a4] sm:$0xf0] }
 0x217   : > { %v14403_v29 = vld [vmem:[%s15049_s16 + $0x1a04] sm:$0xf]  ;;  %v12275_v52 = vor.u32 %v14339_v23, %v12272_v24  ;;  %7001 = vmatpush.bf16.msrb.mxu3 %v13075_v34  ;;  %v9399_v23 = vor.u32 %v13624_v7, %v9398_v6  ;;  %v9655_v24 = vor.u32 %v13688_v13, %v9654_v9  ;;  %v9366_v26 = vld [vmem:[%s15049_s16 + $0x148] sm:$0xf]  ;;  %v9335_v9 = vor.u32 %v13608_v55, %v9334_v53 }
 0x218   : > { %v12528_v30 = vld [vmem:[%s15049_s16 + $0x1a20] sm:$0xf0]  ;;  %v13680_v34 = vld [vmem:[%s15049_s16 + $0x364] sm:$0xf0] }
 0x219   : > { %v14467_v22 = vld [vmem:[%s15049_s16 + $0x1c04] sm:$0xf]  ;;  %v12531_v57 = vor.u32 %v14403_v29, %v12528_v30  ;;  %6960 = vmatpush.bf16.msrb.mxu0 %v12275_v52  ;;  %v13616_v29 = vld [vmem:[%s15049_s16 + $0x164] sm:$0xf0] }
 0x21a   : > { %v12784_v37 = vld [vmem:[%s15049_s16 + $0x1c20] sm:$0xf0]  ;;  %v9622_v30 = vld [vmem:[%s15049_s16 + $0x348] sm:$0xf]  ;;  %v9367_v49 = vor.u32 %v13616_v29, %v9366_v26 }
 0x21b   : > { %v14531_v42 = vld [vmem:[%s15049_s16 + $0x1e04] sm:$0xf]  ;;  %v12787_v59 = vor.u32 %v14467_v22, %v12784_v37  ;;  %6974 = vmatpush.bf16.msrb.mxu1 %v12531_v57  ;;  %v10167_v22 = vor.u32 %v13816_v19, %v10166_v18  ;;  %v9878_v37 = vld [vmem:[%s15049_s16 + $0x548] sm:$0xf]  ;;  %v9623_v50 = vor.u32 %v13680_v34, %v9622_v30  ;;  %v15704_v57 = vpop.f32.mrf.mxu2 }
 0x21c   : > { %v13040_v45 = vld [vmem:[%s15049_s16 + $0x1e20] sm:$0xf0]  ;;  %6961 = vmatmul.bf16.vlgmr.msrb.gmra.mxu0 %v15366_v32  ;;  %17816 = vst [vmem:[#allocation19_spill] sm:$0xff] %v15704_v57  ;;  %v13672_v60 = vld [vmem:[%s15049_s16 + $0x324] sm:$0xf0] }
 0x21d   : > { %v13043_v61 = vor.u32 %v14531_v42, %v13040_v45  ;;  %6988 = vmatpush.bf16.msrb.mxu2 %v12787_v59  ;;  %7009 = vmatpush.bf16.msra.mxu0 %v9431_v62  ;;  %v13744_v42 = vld [vmem:[%s15049_s16 + $0x564] sm:$0xf0]  ;;  %v15709_v62 = vpop.f32.mrf.mxu3  ;;  %v9591_v13 = vor.u32 %v13672_v60, %v9590_v56  ;;  %v9656_v57 = vld [vmem:[%s15049_s16 + $0x3a8] sm:$0xf0] }
 0x21e   : > { %6975 = vmatmul.bf16.vlgmr.msrb.gmra.mxu1 %v15373_v41  ;;  %v10134_v45 = vld [vmem:[%s15049_s16 + $0x748] sm:$0xf]  ;;  %v9879_v52 = vor.u32 %v13744_v42, %v9878_v37  ;;  %17817 = vst [vmem:[#allocation20_spill] sm:$0xff] %v15709_v62  ;;  %v13684_v62 = vld [vmem:[%s15049_s16 + $0x38c] sm:$0xf] }
 0x21f   : > { %7002 = vmatpush.bf16.msrb.mxu3 %v13043_v61  ;;  %7023 = vmatpush.bf16.msra.mxu1 %v9687_v63  ;;  %v10135_v59 = vor.u32 %v13808_v48, %v10134_v45  ;;  %v9846_v12 = vld [vmem:[%s15049_s16 + $0x508] sm:$0xf]  ;;  %v6738_v63 = vpop.f32.mrf.mxu0 }
 0x220   : > { %6989 = vmatmul.bf16.vlgmr.msrb.gmra.mxu2 %v15371_v38  ;;  %v13736_v61 = vld [vmem:[%s15049_s16 + $0x524] sm:$0xf0]  ;;  %v6739_v7 = vadd.f32 %v6738_v63, %v15651_v4 }
 0x221   : > { %7037 = vmatpush.bf16.msra.mxu2 %v9943_v5  ;;  %7010 = vmatpush.bf16.msra.mxu0 %v9399_v23  ;;  %v10102_v5 = vld [vmem:[%s15049_s16 + $0x708] sm:$0xf]  ;;  %v9847_v14 = vor.u32 %v13736_v61, %v9846_v12 }
 0x222   : > { %7003 = vmatmul.bf16.vlgmr.msrb.gmra.mxu3 %v15377_v46  ;;  %v13800_v6 = vld [vmem:[%s15049_s16 + $0x724] sm:$0xf0] }
 0x223   : > { %7051 = vmatpush.bf16.msra.mxu3 %v10199_v11  ;;  %7024 = vmatpush.bf16.msra.mxu1 %v9655_v24  ;;  %v6752_v11 = vpop.f32.mrf.mxu1  ;;  %v9302_v15 = vld [vmem:[%s15049_s16 + $0xc8] sm:$0xf]  ;;  %v10103_v23 = vor.u32 %v13800_v6, %v10102_v5 }
 0x224   : > { %v13600_v18 = vld [vmem:[%s15049_s16 + $0xe4] sm:$0xf0]  ;;  %v6753_v24 = vadd.f32 %v6752_v11, %v6739_v7 }
 0x225   : > { %7038 = vmatpush.bf16.msra.mxu2 %v9911_v25  ;;  %7011 = vmatpush.bf16.msra.mxu0 %v9367_v49  ;;  %v9558_v19 = vld [vmem:[%s15049_s16 + $0x2c8] sm:$0xf] }
 0x226   : > { %v13664_v25 = vld [vmem:[%s15049_s16 + $0x2e4] sm:$0xf0] }
 0x227   : > { %7052 = vmatpush.bf16.msra.mxu3 %v10167_v22  ;;  %7025 = vmatpush.bf16.msra.mxu1 %v9623_v50  ;;  %v9814_v26 = vld [vmem:[%s15049_s16 + $0x4c8] sm:$0xf]  ;;  %v9303_v22 = vor.u32 %v13600_v18, %v9302_v15  ;;  %v9559_v34 = vor.u32 %v13664_v25, %v9558_v19  ;;  %v6766_v50 = vpop.f32.mrf.mxu2 }
 0x228   : > { %v13728_v4 = vld [vmem:[%s15049_s16 + $0x4e4] sm:$0xf0]  ;;  %v6767_v56 = vadd.f32 %v6766_v50, %v6753_v24 }
 0x229   : > { %7039 = vmatpush.bf16.msra.mxu2 %v9879_v52  ;;  %v10070_v29 = vld [vmem:[%s15049_s16 + $0x6c8] sm:$0xf]  ;;  %7012 = vmatpush.bf16.msra.mxu0 %v9335_v9  ;;  %v9815_v37 = vor.u32 %v13728_v4, %v9814_v26 }
 0x22a   : > { %v13792_v30 = vld [vmem:[%s15049_s16 + $0x6e4] sm:$0xf0] }
 0x22b   : > { %7053 = vmatpush.bf16.msra.mxu3 %v10135_v59  ;;  %7026 = vmatpush.bf16.msra.mxu1 %v9591_v13  ;;  %v9270_v42 = vld [vmem:[%s15049_s16 + $0x88] sm:$0xf]  ;;  %v10071_v49 = vor.u32 %v13792_v30, %v10070_v29  ;;  %v6780_v59 = vpop.f32.mrf.mxu3 }
 0x22c   : > { %v13592_v45 = vld [vmem:[%s15049_s16 + $0xa4] sm:$0xf0]  ;;  %v15730_v63 = vadd.f32 %v6780_v59, %v6767_v56 }
 0x22d   : > { %7040 = vmatpush.bf16.msra.mxu2 %v9847_v14  ;;  %v9526_v48 = vld [vmem:[%s15049_s16 + $0x288] sm:$0xf]  ;;  %7013 = vmatpush.bf16.msra.mxu0 %v9303_v22  ;;  %v9271_v61 = vor.u32 %v13592_v45, %v9270_v42 }
 0x22e   : > { %v13656_v52 = vld [vmem:[%s15049_s16 + $0x2a4] sm:$0xf0]  ;;  %17818 = vst [vmem:[#allocation21_spill] sm:$0xff] %v15730_v63 }
 0x22f   : > { %7054 = vmatpush.bf16.msra.mxu3 %v10103_v23  ;;  %v9782_v53 = vld [vmem:[%s15049_s16 + $0x488] sm:$0xf]  ;;  %7027 = vmatpush.bf16.msra.mxu1 %v9559_v34  ;;  %v9527_v5 = vor.u32 %v13656_v52, %v9526_v48 }
 0x230   : > { %v13720_v55 = vld [vmem:[%s15049_s16 + $0x4a4] sm:$0xf0] }
 0x231   : > { %v10038_v60 = vld [vmem:[%s15049_s16 + $0x688] sm:$0xf]  ;;  %7041 = vmatpush.bf16.msra.mxu2 %v9815_v37  ;;  %v9783_v6 = vor.u32 %v13720_v55, %v9782_v53  ;;  %7014 = vmatpush.bf16.msra.mxu0 %v9271_v61 }
 0x232   : > { %v13784_v12 = vld [vmem:[%s15049_s16 + $0x6a4] sm:$0xf0] }
 0x233   : > { %v9238_v7 = vld [vmem:[%s15049_s16 + $0x48] sm:$0xf]  ;;  %7055 = vmatpush.bf16.msra.mxu3 %v10071_v49  ;;  %v10039_v13 = vor.u32 %v13784_v12, %v10038_v60  ;;  %7028 = vmatpush.bf16.msra.mxu1 %v9527_v5 }
 0x234   : > { %v13584_v9 = vld [vmem:[%s15049_s16 + $0x64] sm:$0xf0] }
 0x235   : > { %v9494_v11 = vld [vmem:[%s15049_s16 + $0x248] sm:$0xf]  ;;  %v9239_v24 = vor.u32 %v13584_v9, %v9238_v7  ;;  %7042 = vmatpush.bf16.msra.mxu2 %v9783_v6 }
 0x236   : > { %v13648_v14 = vld [vmem:[%s15049_s16 + $0x264] sm:$0xf0] }
 0x237   : > { %v9750_v15 = vld [vmem:[%s15049_s16 + $0x448] sm:$0xf]  ;;  %v9495_v4 = vor.u32 %v13648_v14, %v9494_v11  ;;  %7056 = vmatpush.bf16.msra.mxu3 %v10039_v13  ;;  %7015 = vmatpush.bf16.msra.mxu0 %v9239_v24 }
 0x238   : > { %v13712_v18 = vld [vmem:[%s15049_s16 + $0x464] sm:$0xf0] }
 0x239   : > { %v10006_v19 = vld [vmem:[%s15049_s16 + $0x648] sm:$0xf]  ;;  %v9751_v29 = vor.u32 %v13712_v18, %v9750_v15  ;;  %7029 = vmatpush.bf16.msra.mxu1 %v9495_v4 }
 0x23a   : > { %v13776_v23 = vld [vmem:[%s15049_s16 + $0x664] sm:$0xf0] }
 0x23b   : > { %v9206_v25 = vld [vmem:[%s15049_s16 + $0x8] sm:$0xf]  ;;  %v10007_v37 = vor.u32 %v13776_v23, %v10006_v19  ;;  %7043 = vmatpush.bf16.msra.mxu2 %v9751_v29 }
 0x23c   : > { %v13576_v26 = vld [vmem:[%s15049_s16 + $0x24] sm:$0xf0] }
 0x23d   : > { %v9462_v30 = vld [vmem:[%s15049_s16 + $0x208] sm:$0xf]  ;;  %v9207_v53 = vor.u32 %v13576_v26, %v9206_v25  ;;  %7057 = vmatpush.bf16.msra.mxu3 %v10007_v37  ;;  %v15762_v25 = vpop.f32.mrf.mxu0 }
 0x23e   : > { %v13640_v22 = vld [vmem:[%s15049_s16 + $0x224] sm:$0xf0]  ;;  %17819 = vst [vmem:[#allocation22_spill] sm:$0xff] %v15762_v25  ;;  %v9400_v25 = vld [vmem:[%s15049_s16 + $0x1a8] sm:$0xf0] }
 0x23f   : > { %v9718_v34 = vld [vmem:[%s15049_s16 + $0x408] sm:$0xf]  ;;  %v9463_v60 = vor.u32 %v13640_v22, %v9462_v30  ;;  %7016 = vmatpush.bf16.msra.mxu0 %v9207_v53  ;;  %v15766_v30 = vpop.f32.mrf.mxu1 }
 0x240   : > { %v13704_v42 = vld [vmem:[%s15049_s16 + $0x424] sm:$0xf0]  ;;  %17820 = vst [vmem:[#allocation23_spill] sm:$0xff] %v15766_v30  ;;  %v13620_v30 = vld [vmem:[%s15049_s16 + $0x18c] sm:$0xf] }
 0x241   : > { %v9974_v45 = vld [vmem:[%s15049_s16 + $0x608] sm:$0xf]  ;;  %v9719_v12 = vor.u32 %v13704_v42, %v9718_v34  ;;  %7030 = vmatpush.bf16.msra.mxu1 %v9463_v60 }
 0x242   : > { %v13768_v48 = vld [vmem:[%s15049_s16 + $0x624] sm:$0xf0]  ;;  %7017 = vmatmul.bf16.vlgmr.msra.gmra.mxu0 %v15145_v58 }
 0x243   : > { %v10454_v49 = vld [vmem:[%s15049_s16 + $0x9c8] sm:$0xf]  ;;  %v9975_v6 = vor.u32 %v13768_v48, %v9974_v45  ;;  %7044 = vmatpush.bf16.msra.mxu2 %v9719_v12 }
 0x244   : > { %v13888_v50 = vld [vmem:[%s15049_s16 + $0x9e4] sm:$0xf0]  ;;  %7031 = vmatmul.bf16.vlgmr.msra.gmra.mxu1 %v15157_v10 }
 0x245   : > { %v10710_v52 = vld [vmem:[%s15049_s16 + $0xbc8] sm:$0xf]  ;;  %v10455_v7 = vor.u32 %v13888_v50, %v10454_v49  ;;  %7058 = vmatpush.bf16.msra.mxu3 %v9975_v6 }
 0x246   : > { %v13952_v55 = vld [vmem:[%s15049_s16 + $0xbe4] sm:$0xf0]  ;;  %7045 = vmatmul.bf16.vlgmr.msra.gmra.mxu2 %v15150_v1 }
 0x247   : > { %v10966_v56 = vld [vmem:[%s15049_s16 + $0xdc8] sm:$0xf]  ;;  %v10711_v9 = vor.u32 %v13952_v55, %v10710_v52  ;;  %7065 = vmatpush.bf16.msrb.mxu0 %v10455_v7  ;;  %v15784_v7 = vpop.f32.mrf.mxu2 }
 0x248   : > { %v14016_v59 = vld [vmem:[%s15049_s16 + $0xde4] sm:$0xf0]  ;;  %7059 = vmatmul.bf16.vlgmr.msra.gmra.mxu3 %v15162_v17  ;;  %17821 = vst [vmem:[#allocation24_spill] sm:$0xff] %v15784_v7 }
 0x249   : > { %v11222_v61 = vld [vmem:[%s15049_s16 + $0xfc8] sm:$0xf]  ;;  %v10967_v11 = vor.u32 %v14016_v59, %v10966_v56  ;;  %7079 = vmatpush.bf16.msrb.mxu1 %v10711_v9  ;;  %v17797_v59 = vperm.slane %v15452_v51, 1 }
 0x24a   : > { %v14080_v5 = vld [vmem:[%s15049_s16 + $0xfe4] sm:$0xf0] }
 0x24b   : > { %v10422_v13 = vld [vmem:[%s15049_s16 + $0x988] sm:$0xf]  ;;  %v11223_v18 = vor.u32 %v14080_v5, %v11222_v61  ;;  %7093 = vmatpush.bf16.msrb.mxu2 %v10967_v11 }
 0x24c   : > { %v13880_v14 = vld [vmem:[%s15049_s16 + $0x9a4] sm:$0xf0] }
 0x24d   : > { %v10678_v15 = vld [vmem:[%s15049_s16 + $0xb88] sm:$0xf]  ;;  %v10423_v29 = vor.u32 %v13880_v14, %v10422_v13  ;;  %7107 = vmatpush.bf16.msrb.mxu3 %v11223_v18 }
 0x24e   : > { %v13944_v19 = vld [vmem:[%s15049_s16 + $0xba4] sm:$0xf0] }
 0x24f   : > { %v10934_v23 = vld [vmem:[%s15049_s16 + $0xd88] sm:$0xf]  ;;  %v10679_v22 = vor.u32 %v13944_v19, %v10678_v15  ;;  %7066 = vmatpush.bf16.msrb.mxu0 %v10423_v29  ;;  %v6794_v19 = vpop.f32.mrf.mxu0 }
 0x250   : > { %v14008_v24 = vld [vmem:[%s15049_s16 + $0xda4] sm:$0xf0] }
 0x251   : > { %v11190_v26 = vld [vmem:[%s15049_s16 + $0xf88] sm:$0xf]  ;;  %v10935_v34 = vor.u32 %v14008_v24, %v10934_v23  ;;  %7080 = vmatpush.bf16.msrb.mxu1 %v10679_v22  ;;  %v15791_v23 = vpop.f32.mrf.mxu3 }
 0x252   : > { %v14072_v4 = vld [vmem:[%s15049_s16 + $0xfa4] sm:$0xf0]  ;;  %17822 = vst [vmem:[#allocation25_spill] sm:$0xff] %v15791_v23 }
 0x253   : > { %v10390_v37 = vld [vmem:[%s15049_s16 + $0x948] sm:$0xf]  ;;  %v11191_v48 = vor.u32 %v14072_v4, %v11190_v26  ;;  %7094 = vmatpush.bf16.msrb.mxu2 %v10935_v34  ;;  %v6795_v26 = vadd.f32 %v6794_v19, %v17797_v59 }
 0x254   : > { %v13872_v42 = vld [vmem:[%s15049_s16 + $0x964] sm:$0xf0] }
 0x255   : > { %v10646_v45 = vld [vmem:[%s15049_s16 + $0xb48] sm:$0xf]  ;;  %v10391_v56 = vor.u32 %v13872_v42, %v10390_v37  ;;  %7108 = vmatpush.bf16.msrb.mxu3 %v11191_v48  ;;  %v6808_v42 = vpop.f32.mrf.mxu1 }
 0x256   : > { %v13936_v49 = vld [vmem:[%s15049_s16 + $0xb64] sm:$0xf0] }
 0x257   : > { %v10902_v50 = vld [vmem:[%s15049_s16 + $0xd48] sm:$0xf]  ;;  %v10647_v60 = vor.u32 %v13936_v49, %v10646_v45  ;;  %7067 = vmatpush.bf16.msrb.mxu0 %v10391_v56 }
 0x258   : > { %v14000_v52 = vld [vmem:[%s15049_s16 + $0xd64] sm:$0xf0] }
 0x259   : > { %v11158_v53 = vld [vmem:[%s15049_s16 + $0xf48] sm:$0xf]  ;;  %v10903_v12 = vor.u32 %v14000_v52, %v10902_v50  ;;  %7081 = vmatpush.bf16.msrb.mxu1 %v10647_v60  ;;  %v6809_v52 = vadd.f32 %v6808_v42, %v6795_v26 }
 0x25a   : > { %v14064_v55 = vld [vmem:[%s15049_s16 + $0xf64] sm:$0xf0] }
 0x25b   : > { %v10358_v61 = vld [vmem:[%s15049_s16 + $0x908] sm:$0xf]  ;;  %v11159_v9 = vor.u32 %v14064_v55, %v11158_v53  ;;  %7095 = vmatpush.bf16.msrb.mxu2 %v10903_v12 }
 0x25c   : > { %v13864_v5 = vld [vmem:[%s15049_s16 + $0x924] sm:$0xf0] }
 0x25d   : > { %v10614_v6 = vld [vmem:[%s15049_s16 + $0xb08] sm:$0xf]  ;;  %v10359_v24 = vor.u32 %v13864_v5, %v10358_v61  ;;  %7109 = vmatpush.bf16.msrb.mxu3 %v11159_v9 }
 0x25e   : > { %v13928_v11 = vld [vmem:[%s15049_s16 + $0xb24] sm:$0xf0] }
 0x25f   : > { %v10870_v13 = vld [vmem:[%s15049_s16 + $0xd08] sm:$0xf]  ;;  %v10615_v4 = vor.u32 %v13928_v11, %v10614_v6  ;;  %7068 = vmatpush.bf16.msrb.mxu0 %v10359_v24 }
 0x260   : > { %v13992_v14 = vld [vmem:[%s15049_s16 + $0xd24] sm:$0xf0] }
 0x261   : > { %v11126_v15 = vld [vmem:[%s15049_s16 + $0xf08] sm:$0xf]  ;;  %v10871_v29 = vor.u32 %v13992_v14, %v10870_v13  ;;  %7082 = vmatpush.bf16.msrb.mxu1 %v10615_v4  ;;  %v6836_v4 = vpop.f32.mrf.mxu3 }
 0x262   : > { %v14056_v18 = vld [vmem:[%s15049_s16 + $0xf24] sm:$0xf0] }
 0x263   : > { %v10326_v22 = vld [vmem:[%s15049_s16 + $0x8c8] sm:$0xf]  ;;  %v11127_v45 = vor.u32 %v14056_v18, %v11126_v15  ;;  %7096 = vmatpush.bf16.msrb.mxu2 %v10871_v29  ;;  %v6822_v15 = vpop.f32.mrf.mxu2 }
 0x264   : > { %v13856_v34 = vld [vmem:[%s15049_s16 + $0x8e4] sm:$0xf0]  ;;  %v6823_v24 = vadd.f32 %v6822_v15, %v6809_v52 }
 0x265   : > { %v10582_v37 = vld [vmem:[%s15049_s16 + $0xac8] sm:$0xf]  ;;  %v10327_v56 = vor.u32 %v13856_v34, %v10326_v22  ;;  %7110 = vmatpush.bf16.msrb.mxu3 %v11127_v45 }
 0x266   : > { %v13920_v48 = vld [vmem:[%s15049_s16 + $0xae4] sm:$0xf0]  ;;  %v15814_v45 = vadd.f32 %v6836_v4, %v6823_v24 }
 0x267   : > { %v10838_v49 = vld [vmem:[%s15049_s16 + $0xcc8] sm:$0xf]  ;;  %v10583_v60 = vor.u32 %v13920_v48, %v10582_v37  ;;  %7069 = vmatpush.bf16.msrb.mxu0 %v10327_v56 }
 0x268   : > { %v13984_v50 = vld [vmem:[%s15049_s16 + $0xce4] sm:$0xf0] }
 0x269   : > { %v11094_v53 = vld [vmem:[%s15049_s16 + $0xec8] sm:$0xf]  ;;  %v10839_v12 = vor.u32 %v13984_v50, %v10838_v49  ;;  %7083 = vmatpush.bf16.msrb.mxu1 %v10583_v60 }
 0x26a   : > { %v14048_v55 = vld [vmem:[%s15049_s16 + $0xee4] sm:$0xf0] }
 0x26b   : > { %v10294_v61 = vld [vmem:[%s15049_s16 + $0x888] sm:$0xf]  ;;  %v11095_v9 = vor.u32 %v14048_v55, %v11094_v53  ;;  %7097 = vmatpush.bf16.msrb.mxu2 %v10839_v12 }
 0x26c   : > { %v13848_v5 = vld [vmem:[%s15049_s16 + $0x8a4] sm:$0xf0] }
 0x26d   : > { %v10550_v6 = vld [vmem:[%s15049_s16 + $0xa88] sm:$0xf]  ;;  %v10295_v26 = vor.u32 %v13848_v5, %v10294_v61  ;;  %7111 = vmatpush.bf16.msrb.mxu3 %v11095_v9 }
 0x26e   : > { %v13912_v11 = vld [vmem:[%s15049_s16 + $0xaa4] sm:$0xf0] }
 0x26f   : > { %v10806_v13 = vld [vmem:[%s15049_s16 + $0xc88] sm:$0xf]  ;;  %v10551_v29 = vor.u32 %v13912_v11, %v10550_v6  ;;  %7070 = vmatpush.bf16.msrb.mxu0 %v10295_v26 }
 0x270   : > { %v13976_v14 = vld [vmem:[%s15049_s16 + $0xca4] sm:$0xf0] }
 0x271   : > { %v11062_v18 = vld [vmem:[%s15049_s16 + $0xe88] sm:$0xf]  ;;  %v10807_v22 = vor.u32 %v13976_v14, %v10806_v13  ;;  %7084 = vmatpush.bf16.msrb.mxu1 %v10551_v29 }
 0x272   : > { %v14040_v19 = vld [vmem:[%s15049_s16 + $0xea4] sm:$0xf0] }
 0x273   : > { %v10262_v34 = vld [vmem:[%s15049_s16 + $0x848] sm:$0xf]  ;;  %v11063_v48 = vor.u32 %v14040_v19, %v11062_v18  ;;  %7098 = vmatpush.bf16.msrb.mxu2 %v10807_v22 }
 0x274   : > { %v13840_v37 = vld [vmem:[%s15049_s16 + $0x864] sm:$0xf0] }
 0x275   : > { %v10518_v42 = vld [vmem:[%s15049_s16 + $0xa48] sm:$0xf]  ;;  %v10263_v56 = vor.u32 %v13840_v37, %v10262_v34  ;;  %7112 = vmatpush.bf16.msrb.mxu3 %v11063_v48 }
 0x276   : > { %v13904_v49 = vld [vmem:[%s15049_s16 + $0xa64] sm:$0xf0] }
 0x277   : > { %v10774_v50 = vld [vmem:[%s15049_s16 + $0xc48] sm:$0xf]  ;;  %v10519_v61 = vor.u32 %v13904_v49, %v10518_v42  ;;  %7071 = vmatpush.bf16.msrb.mxu0 %v10263_v56  ;;  %v15837_v56 = vpop.f32.mrf.mxu0 }
 0x278   : > { %v13968_v52 = vld [vmem:[%s15049_s16 + $0xc64] sm:$0xf0] }
 0x279   : > { %v11030_v53 = vld [vmem:[%s15049_s16 + $0xe48] sm:$0xf]  ;;  %v10775_v5 = vor.u32 %v13968_v52, %v10774_v50  ;;  %7085 = vmatpush.bf16.msrb.mxu1 %v10519_v61 }
 0x27a   : > { %v14032_v55 = vld [vmem:[%s15049_s16 + $0xe64] sm:$0xf0] }
 0x27b   : > { %v10230_v60 = vld [vmem:[%s15049_s16 + $0x808] sm:$0xf]  ;;  %v11031_v13 = vor.u32 %v14032_v55, %v11030_v53  ;;  %7099 = vmatpush.bf16.msrb.mxu2 %v10775_v5 }
 0x27c   : > { %v13832_v12 = vld [vmem:[%s15049_s16 + $0x824] sm:$0xf0] }
 0x27d   : > { %v10486_v6 = vld [vmem:[%s15049_s16 + $0xa08] sm:$0xf]  ;;  %v10231_v4 = vor.u32 %v13832_v12, %v10230_v60  ;;  %7113 = vmatpush.bf16.msrb.mxu3 %v11031_v13 }
 0x27e   : > { %v13896_v9 = vld [vmem:[%s15049_s16 + $0xa24] sm:$0xf0] }
 0x27f   : > { %v10742_v11 = vld [vmem:[%s15049_s16 + $0xc08] sm:$0xf]  ;;  %v10487_v37 = vor.u32 %v13896_v9, %v10486_v6  ;;  %7072 = vmatpush.bf16.msrb.mxu0 %v10231_v4 }
 0x280   : > { %v13960_v14 = vld [vmem:[%s15049_s16 + $0xc24] sm:$0xf0] }
 0x281   : > { %v10998_v15 = vld [vmem:[%s15049_s16 + $0xe08] sm:$0xf]  ;;  %v10743_v42 = vor.u32 %v13960_v14, %v10742_v11  ;;  %7086 = vmatpush.bf16.msrb.mxu1 %v10487_v37 }
 0x282   : > { %v14024_v18 = vld [vmem:[%s15049_s16 + $0xe24] sm:$0xf0]  ;;  %7073 = vmatmul.bf16.vlgmr.msrb.gmra.mxu0 %v15214_v39 }
 0x283   : > { %v11478_v19 = vld [vmem:[%s15049_s16 + $0x11c8] sm:$0xf]  ;;  %v10999_v50 = vor.u32 %v14024_v18, %v10998_v15  ;;  %7100 = vmatpush.bf16.msrb.mxu2 %v10743_v42  ;;  %v15847_v15 = vpop.f32.mrf.mxu1 }
 0x284   : > { %v14144_v24 = vld [vmem:[%s15049_s16 + $0x11e4] sm:$0xf0]  ;;  %7087 = vmatmul.bf16.vlgmr.msrb.gmra.mxu1 %v15221_v44 }
 0x285   : > { %v11734_v26 = vld [vmem:[%s15049_s16 + $0x13c8] sm:$0xf]  ;;  %v11479_v52 = vor.u32 %v14144_v24, %v11478_v19  ;;  %7114 = vmatpush.bf16.msrb.mxu3 %v10999_v50 }
 0x286   : > { %v14208_v29 = vld [vmem:[%s15049_s16 + $0x13e4] sm:$0xf0]  ;;  %7101 = vmatmul.bf16.vlgmr.msrb.gmra.mxu2 %v15219_v43 }
 0x287   : > { %v11990_v22 = vld [vmem:[%s15049_s16 + $0x15c8] sm:$0xf]  ;;  %v11735_v53 = vor.u32 %v14208_v29, %v11734_v26  ;;  %7121 = vmatpush.bf16.msra.mxu0 %v11479_v52  ;;  %v15861_v52 = vpop.f32.mrf.mxu2 }
 0x288   : > { %v14272_v34 = vld [vmem:[%s15049_s16 + $0x15e4] sm:$0xf0]  ;;  %7115 = vmatmul.bf16.vlgmr.msrb.gmra.mxu3 %v15225_v47 }
 0x289   : > { %v12246_v48 = vld [vmem:[%s15049_s16 + $0x17c8] sm:$0xf]  ;;  %v11991_v55 = vor.u32 %v14272_v34, %v11990_v22  ;;  %7135 = vmatpush.bf16.msra.mxu1 %v11735_v53 }
 0x28a   : > { %v14336_v49 = vld [vmem:[%s15049_s16 + $0x17e4] sm:$0xf0] }
 0x28b   : > { %v11446_v60 = vld [vmem:[%s15049_s16 + $0x1188] sm:$0xf]  ;;  %v12247_v5 = vor.u32 %v14336_v49, %v12246_v48  ;;  %7149 = vmatpush.bf16.msra.mxu2 %v11991_v55 }
 0x28c   : > { %v14136_v12 = vld [vmem:[%s15049_s16 + $0x11a4] sm:$0xf0] }
 0x28d   : > { %v11702_v61 = vld [vmem:[%s15049_s16 + $0x1388] sm:$0xf]  ;;  %v11447_v18 = vor.u32 %v14136_v12, %v11446_v60  ;;  %7163 = vmatpush.bf16.msra.mxu3 %v12247_v5 }
 0x28e   : > { %v14200_v6 = vld [vmem:[%s15049_s16 + $0x13a4] sm:$0xf0] }
 0x28f   : > { %v11958_v9 = vld [vmem:[%s15049_s16 + $0x1588] sm:$0xf]  ;;  %v11703_v19 = vor.u32 %v14200_v6, %v11702_v61  ;;  %7122 = vmatpush.bf16.msra.mxu0 %v11447_v18  ;;  %v15866_v6 = vpop.f32.mrf.mxu3 }
 0x290   : > { %v14264_v11 = vld [vmem:[%s15049_s16 + $0x15a4] sm:$0xf0] }
 0x291   : > { %v12214_v13 = vld [vmem:[%s15049_s16 + $0x1788] sm:$0xf]  ;;  %v11959_v24 = vor.u32 %v14264_v11, %v11958_v9  ;;  %7136 = vmatpush.bf16.msra.mxu1 %v11703_v19 }
 0x292   : > { %v14328_v14 = vld [vmem:[%s15049_s16 + $0x17a4] sm:$0xf0] }
 0x293   : > { %v11414_v26 = vld [vmem:[%s15049_s16 + $0x1148] sm:$0xf]  ;;  %v12215_v22 = vor.u32 %v14328_v14, %v12214_v13  ;;  %7150 = vmatpush.bf16.msra.mxu2 %v11959_v24  ;;  %v6850_v14 = vpop.f32.mrf.mxu0 }
 0x294   : > { %v14128_v4 = vld [vmem:[%s15049_s16 + $0x1164] sm:$0xf0]  ;;  %v6851_v24 = vadd.f32 %v6850_v14, %v15814_v45  ;;  %v6878_v14 = vpop.f32.mrf.mxu2 }
 0x295   : > { %v11670_v29 = vld [vmem:[%s15049_s16 + $0x1348] sm:$0xf]  ;;  %v11415_v50 = vor.u32 %v14128_v4, %v11414_v26  ;;  %7164 = vmatpush.bf16.msra.mxu3 %v12215_v22  ;;  %v6864_v22 = vpop.f32.mrf.mxu1 }
 0x296   : > { %v14192_v34 = vld [vmem:[%s15049_s16 + $0x1364] sm:$0xf0] }
 0x297   : > { %v11926_v37 = vld [vmem:[%s15049_s16 + $0x1548] sm:$0xf]  ;;  %v11671_v53 = vor.u32 %v14192_v34, %v11670_v29  ;;  %7123 = vmatpush.bf16.msra.mxu0 %v11415_v50 }
 0x298   : > { %v14256_v42 = vld [vmem:[%s15049_s16 + $0x1564] sm:$0xf0] }
 0x299   : > { %v12182_v48 = vld [vmem:[%s15049_s16 + $0x1748] sm:$0xf]  ;;  %v11927_v55 = vor.u32 %v14256_v42, %v11926_v37  ;;  %7137 = vmatpush.bf16.msra.mxu1 %v11671_v53 }
 0x29a   : > { %v14320_v49 = vld [vmem:[%s15049_s16 + $0x1764] sm:$0xf0] }
 0x29b   : > { %v11382_v60 = vld [vmem:[%s15049_s16 + $0x1108] sm:$0xf]  ;;  %v12183_v5 = vor.u32 %v14320_v49, %v12182_v48  ;;  %7151 = vmatpush.bf16.msra.mxu2 %v11927_v55  ;;  %v6865_v49 = vadd.f32 %v6864_v22, %v6851_v24 }
 0x29c   : > { %v14120_v12 = vld [vmem:[%s15049_s16 + $0x1124] sm:$0xf0] }
 0x29d   : > { %v11638_v61 = vld [vmem:[%s15049_s16 + $0x1308] sm:$0xf]  ;;  %v11383_v26 = vor.u32 %v14120_v12, %v11382_v60  ;;  %7165 = vmatpush.bf16.msra.mxu3 %v12183_v5 }
 0x29e   : > { %v14184_v9 = vld [vmem:[%s15049_s16 + $0x1324] sm:$0xf0] }
 0x29f   : > { %v11894_v11 = vld [vmem:[%s15049_s16 + $0x1508] sm:$0xf]  ;;  %v11639_v4 = vor.u32 %v14184_v9, %v11638_v61  ;;  %7124 = vmatpush.bf16.msra.mxu0 %v11383_v26  ;;  %v6879_v26 = vadd.f32 %v6878_v14, %v6865_v49 }
 0x2a0   : > { %v14248_v13 = vld [vmem:[%s15049_s16 + $0x1524] sm:$0xf0] }
 0x2a1   : > { %v12150_v18 = vld [vmem:[%s15049_s16 + $0x1708] sm:$0xf]  ;;  %v11895_v29 = vor.u32 %v14248_v13, %v11894_v11  ;;  %7138 = vmatpush.bf16.msra.mxu1 %v11639_v4 }
 0x2a2   : > { %v14312_v19 = vld [vmem:[%s15049_s16 + $0x1724] sm:$0xf0] }
 0x2a3   : > { %v11350_v34 = vld [vmem:[%s15049_s16 + $0x10c8] sm:$0xf]  ;;  %v12151_v48 = vor.u32 %v14312_v19, %v12150_v18  ;;  %7152 = vmatpush.bf16.msra.mxu2 %v11895_v29 }
 0x2a4   : > { %v14112_v37 = vld [vmem:[%s15049_s16 + $0x10e4] sm:$0xf0] }
 0x2a5   : > { %v11606_v42 = vld [vmem:[%s15049_s16 + $0x12c8] sm:$0xf]  ;;  %v11351_v55 = vor.u32 %v14112_v37, %v11350_v34  ;;  %7166 = vmatpush.bf16.msra.mxu3 %v12151_v48 }
 0x2a6   : > { %v14176_v50 = vld [vmem:[%s15049_s16 + $0x12e4] sm:$0xf0] }
 0x2a7   : > { %v11862_v59 = vld [vmem:[%s15049_s16 + $0x14c8] sm:$0xf]  ;;  %v11607_v12 = vor.u32 %v14176_v50, %v11606_v42  ;;  %7125 = vmatpush.bf16.msra.mxu0 %v11351_v55 }
 0x2a8   : > { %v14240_v45 = vld [vmem:[%s15049_s16 + $0x14e4] sm:$0xf0] }
 0x2a9   : > { %v12118_v60 = vld [vmem:[%s15049_s16 + $0x16c8] sm:$0xf]  ;;  %v11863_v61 = vor.u32 %v14240_v45, %v11862_v59  ;;  %v6892_v59 = vpop.f32.mrf.mxu3  ;;  %7139 = vmatpush.bf16.msra.mxu1 %v11607_v12 }
 0x2aa   : > { %v14304_v53 = vld [vmem:[%s15049_s16 + $0x16e4] sm:$0xf0]  ;;  %v15890_v34 = vadd.f32 %v6892_v59, %v6879_v26 }
 0x2ab   : > { %v11318_v5 = vld [vmem:[%s15049_s16 + $0x1088] sm:$0xf]  ;;  %v12119_v13 = vor.u32 %v14304_v53, %v12118_v60  ;;  %7153 = vmatpush.bf16.msra.mxu2 %v11863_v61 }
 0x2ac   : > { %v14104_v9 = vld [vmem:[%s15049_s16 + $0x10a4] sm:$0xf0] }
 0x2ad   : > { %v11574_v11 = vld [vmem:[%s15049_s16 + $0x1288] sm:$0xf]  ;;  %v11319_v29 = vor.u32 %v14104_v9, %v11318_v5  ;;  %7167 = vmatpush.bf16.msra.mxu3 %v12119_v13 }
 0x2ae   : > { %v14168_v18 = vld [vmem:[%s15049_s16 + $0x12a4] sm:$0xf0] }
 0x2af   : > { %v11830_v19 = vld [vmem:[%s15049_s16 + $0x1488] sm:$0xf]  ;;  %v11575_v37 = vor.u32 %v14168_v18, %v11574_v11  ;;  %7126 = vmatpush.bf16.msra.mxu0 %v11319_v29 }
 0x2b0   : > { %v14232_v24 = vld [vmem:[%s15049_s16 + $0x14a4] sm:$0xf0] }
 0x2b1   : > { %v12086_v22 = vld [vmem:[%s15049_s16 + $0x1688] sm:$0xf]  ;;  %v11831_v42 = vor.u32 %v14232_v24, %v11830_v19  ;;  %7140 = vmatpush.bf16.msra.mxu1 %v11575_v37 }
 0x2b2   : > { %v14296_v4 = vld [vmem:[%s15049_s16 + $0x16a4] sm:$0xf0] }
 0x2b3   : > { %v11286_v48 = vld [vmem:[%s15049_s16 + $0x1048] sm:$0xf]  ;;  %v12087_v45 = vor.u32 %v14296_v4, %v12086_v22  ;;  %7154 = vmatpush.bf16.msra.mxu2 %v11831_v42 }
 0x2b4   : > { %v14096_v49 = vld [vmem:[%s15049_s16 + $0x1064] sm:$0xf0] }
 0x2b5   : > { %v11542_v50 = vld [vmem:[%s15049_s16 + $0x1248] sm:$0xf]  ;;  %v11287_v5 = vor.u32 %v14096_v49, %v11286_v48  ;;  %7168 = vmatpush.bf16.msra.mxu3 %v12087_v45 }
 0x2b6   : > { %v14160_v60 = vld [vmem:[%s15049_s16 + $0x1264] sm:$0xf0] }
 0x2b7   : > { %v11798_v53 = vld [vmem:[%s15049_s16 + $0x1448] sm:$0xf]  ;;  %v11543_v13 = vor.u32 %v14160_v60, %v11542_v50  ;;  %7127 = vmatpush.bf16.msra.mxu0 %v11287_v5 }
 0x2b8   : > { %v14224_v55 = vld [vmem:[%s15049_s16 + $0x1464] sm:$0xf0] }
 0x2b9   : > { %v12054_v12 = vld [vmem:[%s15049_s16 + $0x1648] sm:$0xf]  ;;  %v11799_v14 = vor.u32 %v14224_v55, %v11798_v53  ;;  %7141 = vmatpush.bf16.msra.mxu1 %v11543_v13 }
 0x2ba   : > { %v14288_v61 = vld [vmem:[%s15049_s16 + $0x1664] sm:$0xf0] }
 0x2bb   : > { %v11254_v9 = vld [vmem:[%s15049_s16 + $0x1008] sm:$0xf]  ;;  %v12055_v26 = vor.u32 %v14288_v61, %v12054_v12  ;;  %7155 = vmatpush.bf16.msra.mxu2 %v11799_v14 }
 0x2bc   : > { %v14088_v11 = vld [vmem:[%s15049_s16 + $0x1024] sm:$0xf0] }
 0x2bd   : > { %v11510_v18 = vld [vmem:[%s15049_s16 + $0x1208] sm:$0xf]  ;;  %v11255_v37 = vor.u32 %v14088_v11, %v11254_v9  ;;  %7169 = vmatpush.bf16.msra.mxu3 %v12055_v26 }
 0x2be   : > { %v14152_v19 = vld [vmem:[%s15049_s16 + $0x1224] sm:$0xf0] }
 0x2bf   : > { %v11766_v24 = vld [vmem:[%s15049_s16 + $0x1408] sm:$0xf]  ;;  %v11511_v45 = vor.u32 %v14152_v19, %v11510_v18  ;;  %7128 = vmatpush.bf16.msra.mxu0 %v11255_v37  ;;  %v15922_v19 = vpop.f32.mrf.mxu0 }
 0x2c0   : > { %v14216_v22 = vld [vmem:[%s15049_s16 + $0x1424] sm:$0xf0]  ;;  %17823 = vst [vmem:[#allocation26_spill] sm:$0xff] %v15922_v19  ;;  %v12486_v19 = vld [vmem:[%s15049_s16 + $0x1998] sm:$0xf] }
 0x2c1   : > { %v12022_v4 = vld [vmem:[%s15049_s16 + $0x1608] sm:$0xf]  ;;  %v11767_v53 = vor.u32 %v14216_v22, %v11766_v24  ;;  %7142 = vmatpush.bf16.msra.mxu1 %v11511_v45  ;;  %v15926_v22 = vpop.f32.mrf.mxu1 }
 0x2c2   : > { %v14280_v59 = vld [vmem:[%s15049_s16 + $0x1624] sm:$0xf0]  ;;  %17824 = vst [vmem:[#allocation27_spill] sm:$0xff] %v15926_v22  ;;  %7129 = vmatmul.bf16.vlgmr.msra.gmra.mxu0 %v15290_v31  ;;  %v12478_v22 = vld [vmem:[%s15049_s16 + $0x1990] sm:$0xf] }
 0x2c3   : > { %v12502_v29 = vld [vmem:[%s15049_s16 + $0x19c8] sm:$0xf]  ;;  %v12023_v61 = vor.u32 %v14280_v59, %v12022_v4  ;;  %7156 = vmatpush.bf16.msra.mxu2 %v11767_v53 }
 0x2c4   : > { %v14400_v48 = vld [vmem:[%s15049_s16 + $0x19e4] sm:$0xf0]  ;;  %7143 = vmatmul.bf16.vlgmr.msra.gmra.mxu1 %v15297_v36 }
 0x2c5   : > { %v12758_v49 = vld [vmem:[%s15049_s16 + $0x1bc8] sm:$0xf]  ;;  %v12503_v5 = vor.u32 %v14400_v48, %v12502_v29  ;;  %7170 = vmatpush.bf16.msra.mxu3 %v12023_v61 }
 0x2c6   : > { %v14464_v42 = vld [vmem:[%s15049_s16 + $0x1be4] sm:$0xf0]  ;;  %7157 = vmatmul.bf16.vlgmr.msra.gmra.mxu2 %v15295_v35 }
 0x2c7   : > { %v13014_v50 = vld [vmem:[%s15049_s16 + $0x1dc8] sm:$0xf]  ;;  %v12759_v9 = vor.u32 %v14464_v42, %v12758_v49  ;;  %7177 = vmatpush.bf16.msrb.mxu0 %v12503_v5  ;;  %v15943_v5 = vpop.f32.mrf.mxu2 }
 0x2c8   : > { %v14528_v60 = vld [vmem:[%s15049_s16 + $0x1de4] sm:$0xf0]  ;;  %7171 = vmatmul.bf16.vlgmr.msra.gmra.mxu3 %v15301_v40  ;;  %17825 = vst [vmem:[#allocation28_spill] sm:$0xff] %v15943_v5  ;;  %v9662_v5 = vld [vmem:[%s15049_s16 + $0x390] sm:$0xf] }
 0x2c9   : > { %v13270_v55 = vld [vmem:[%s15049_s16 + $0x1fc8] sm:$0xf]  ;;  %v13015_v11 = vor.u32 %v14528_v60, %v13014_v50  ;;  %7191 = vmatpush.bf16.msrb.mxu1 %v12759_v9 }
 0x2ca   : > { %v14592_v12 = vld [vmem:[%s15049_s16 + $0x1fe4] sm:$0xf0] }
 0x2cb   : > { %v14392_v63 = vld [vmem:[%s15049_s16 + $0x19a4] sm:$0xf0]  ;;  %v13271_v13 = vor.u32 %v14592_v12, %v13270_v55  ;;  %7205 = vmatpush.bf16.msrb.mxu2 %v13015_v11 }
 0x2cc   : > { %v12726_v23 = vld [vmem:[%s15049_s16 + $0x1b88] sm:$0xf]  ;;  %v12471_v4 = vor.u32 %v14392_v63, %v12470_v2 }
 0x2cd   : > { %v14456_v7 = vld [vmem:[%s15049_s16 + $0x1ba4] sm:$0xf0]  ;;  %7219 = vmatpush.bf16.msrb.mxu3 %v13271_v13 }
 0x2ce   : > { %v12982_v14 = vld [vmem:[%s15049_s16 + $0x1d88] sm:$0xf]  ;;  %v12727_v59 = vor.u32 %v14456_v7, %v12726_v23  ;;  %7178 = vmatpush.bf16.msrb.mxu0 %v12471_v4 }
 0x2cf   : > { %v14520_v18 = vld [vmem:[%s15049_s16 + $0x1da4] sm:$0xf0] }
 0x2d0   : > { %v13238_v24 = vld [vmem:[%s15049_s16 + $0x1f88] sm:$0xf]  ;;  %v12983_v29 = vor.u32 %v14520_v18, %v12982_v14  ;;  %7192 = vmatpush.bf16.msrb.mxu1 %v12727_v59  ;;  %v15948_v18 = vpop.f32.mrf.mxu3 }
 0x2d1   : > { %v14584_v26 = vld [vmem:[%s15049_s16 + $0x1fa4] sm:$0xf0]  ;;  %17826 = vst [vmem:[#allocation29_spill] sm:$0xff] %v15948_v18  ;;  %v12472_v18 = vld [vmem:[%s15049_s16 + $0x19a8] sm:$0xf0] }
 0x2d2   : > { %v12438_v48 = vld [vmem:[%s15049_s16 + $0x1948] sm:$0xf]  ;;  %v13239_v42 = vor.u32 %v14584_v26, %v13238_v24  ;;  %7206 = vmatpush.bf16.msrb.mxu2 %v12983_v29  ;;  %v6906_v24 = vpop.f32.mrf.mxu0 }
 0x2d3   : > { %v14384_v49 = vld [vmem:[%s15049_s16 + $0x1964] sm:$0xf0]  ;;  %v6907_v59 = vadd.f32 %v6906_v24, %v15890_v34  ;;  %v6934_v24 = vpop.f32.mrf.mxu2 }
 0x2d4   : > { %v12694_v37 = vld [vmem:[%s15049_s16 + $0x1b48] sm:$0xf]  ;;  %v12439_v7 = vor.u32 %v14384_v49, %v12438_v48  ;;  %7220 = vmatpush.bf16.msrb.mxu3 %v13239_v42  ;;  %v6920_v48 = vpop.f32.mrf.mxu1 }
 0x2d5   : > { %v14448_v50 = vld [vmem:[%s15049_s16 + $0x1b64] sm:$0xf0] }
 0x2d6   : > { %v12950_v60 = vld [vmem:[%s15049_s16 + $0x1d48] sm:$0xf]  ;;  %v12695_v23 = vor.u32 %v14448_v50, %v12694_v37  ;;  %7179 = vmatpush.bf16.msrb.mxu0 %v12439_v7 }
 0x2d7   : > { %v14512_v45 = vld [vmem:[%s15049_s16 + $0x1d64] sm:$0xf0] }
 0x2d8   : > { %v13206_v2 = vld [vmem:[%s15049_s16 + $0x1f48] sm:$0xf]  ;;  %v12951_v53 = vor.u32 %v14512_v45, %v12950_v60  ;;  %7193 = vmatpush.bf16.msrb.mxu1 %v12695_v23 }
 0x2d9   : > { %v14576_v63 = vld [vmem:[%s15049_s16 + $0x1f64] sm:$0xf0] }
 0x2da   : > { %v12406_v55 = vld [vmem:[%s15049_s16 + $0x1908] sm:$0xf]  ;;  %v13207_v9 = vor.u32 %v14576_v63, %v13206_v2  ;;  %7207 = vmatpush.bf16.msrb.mxu2 %v12951_v53  ;;  %v6921_v2 = vadd.f32 %v6920_v48, %v6907_v59  ;;  %v6948_v48 = vpop.f32.mrf.mxu3 }
 0x2db   : > { %v14376_v12 = vld [vmem:[%s15049_s16 + $0x1924] sm:$0xf0] }
 0x2dc   : > { %v12662_v61 = vld [vmem:[%s15049_s16 + $0x1b08] sm:$0xf]  ;;  %v12407_v29 = vor.u32 %v14376_v12, %v12406_v55  ;;  %7221 = vmatpush.bf16.msrb.mxu3 %v13207_v9 }
 0x2dd   : > { %v14440_v11 = vld [vmem:[%s15049_s16 + $0x1b24] sm:$0xf0] }
 0x2de   : > { %v12918_v13 = vld [vmem:[%s15049_s16 + $0x1d08] sm:$0xf]  ;;  %v12663_v49 = vor.u32 %v14440_v11, %v12662_v61  ;;  %7180 = vmatpush.bf16.msrb.mxu0 %v12407_v29  ;;  %v6935_v29 = vadd.f32 %v6934_v24, %v6921_v2 }
 0x2df   : > { %v14504_v14 = vld [vmem:[%s15049_s16 + $0x1d24] sm:$0xf0] }
 0x2e0   : > { %v13174_v26 = vld [vmem:[%s15049_s16 + $0x1f08] sm:$0xf]  ;;  %v12919_v37 = vor.u32 %v14504_v14, %v12918_v13  ;;  %7194 = vmatpush.bf16.msrb.mxu1 %v12663_v49 }
 0x2e1   : > { %v14568_v4 = vld [vmem:[%s15049_s16 + $0x1f24] sm:$0xf0] }
 0x2e2   : > { %v12374_v42 = vld [vmem:[%s15049_s16 + $0x18c8] sm:$0xf]  ;;  %v13175_v45 = vor.u32 %v14568_v4, %v13174_v26  ;;  %7208 = vmatpush.bf16.msrb.mxu2 %v12919_v37 }
 0x2e3   : > { %v14368_v50 = vld [vmem:[%s15049_s16 + $0x18e4] sm:$0xf0] }
 0x2e4   : > { %v12630_v60 = vld [vmem:[%s15049_s16 + $0x1ac8] sm:$0xf]  ;;  %v12375_v53 = vor.u32 %v14368_v50, %v12374_v42  ;;  %7222 = vmatpush.bf16.msrb.mxu3 %v13175_v45  ;;  %v15969_v50 = vadd.f32 %v6948_v48, %v6935_v29 }
 0x2e5   : > { %v14432_v63 = vld [vmem:[%s15049_s16 + $0x1ae4] sm:$0xf0] }
 0x2e6   : > { %v12886_v7 = vld [vmem:[%s15049_s16 + $0x1cc8] sm:$0xf]  ;;  %v12631_v12 = vor.u32 %v14432_v63, %v12630_v60  ;;  %7181 = vmatpush.bf16.msrb.mxu0 %v12375_v53 }
 0x2e7   : > { %v14496_v34 = vld [vmem:[%s15049_s16 + $0x1ce4] sm:$0xf0] }
 0x2e8   : > { %v13142_v55 = vld [vmem:[%s15049_s16 + $0x1ec8] sm:$0xf]  ;;  %v12887_v61 = vor.u32 %v14496_v34, %v12886_v7  ;;  %7195 = vmatpush.bf16.msrb.mxu1 %v12631_v12 }
 0x2e9   : > { %v14560_v23 = vld [vmem:[%s15049_s16 + $0x1ee4] sm:$0xf0] }
 0x2ea   : > { %v12342_v9 = vld [vmem:[%s15049_s16 + $0x1888] sm:$0xf]  ;;  %v13143_v14 = vor.u32 %v14560_v23, %v13142_v55  ;;  %7209 = vmatpush.bf16.msrb.mxu2 %v12887_v61 }
 0x2eb   : > { %v14360_v11 = vld [vmem:[%s15049_s16 + $0x18a4] sm:$0xf0] }
 0x2ec   : > { %v12598_v13 = vld [vmem:[%s15049_s16 + $0x1a88] sm:$0xf]  ;;  %v12343_v42 = vor.u32 %v14360_v11, %v12342_v9  ;;  %7223 = vmatpush.bf16.msrb.mxu3 %v13143_v14 }
 0x2ed   : > { %v14424_v26 = vld [vmem:[%s15049_s16 + $0x1aa4] sm:$0xf0] }
 0x2ee   : > { %v12854_v4 = vld [vmem:[%s15049_s16 + $0x1c88] sm:$0xf]  ;;  %v12599_v60 = vor.u32 %v14424_v26, %v12598_v13  ;;  %7182 = vmatpush.bf16.msrb.mxu0 %v12343_v42  ;;  %v13628_v42 = vld [vmem:[%s15049_s16 + $0x1cc] sm:$0xf] }
 0x2ef   : > { %v14488_v59 = vld [vmem:[%s15049_s16 + $0x1ca4] sm:$0xf0] }
 0x2f0   : > { %v13110_v49 = vld [vmem:[%s15049_s16 + $0x1e88] sm:$0xf]  ;;  %v12855_v45 = vor.u32 %v14488_v59, %v12854_v4  ;;  %7196 = vmatpush.bf16.msrb.mxu1 %v12599_v60 }
 0x2f1   : > { %v14552_v37 = vld [vmem:[%s15049_s16 + $0x1ea4] sm:$0xf0] }
 0x2f2   : > { %v12310_v63 = vld [vmem:[%s15049_s16 + $0x1848] sm:$0xf]  ;;  %v13111_v34 = vor.u32 %v14552_v37, %v13110_v49  ;;  %7210 = vmatpush.bf16.msrb.mxu2 %v12855_v45  ;;  %v9688_v45 = vld [vmem:[%s15049_s16 + $0x3e8] sm:$0xf0] }
 0x2f3   : > { %v14352_v2 = vld [vmem:[%s15049_s16 + $0x1864] sm:$0xf0] }
 0x2f4   : > { %v12566_v7 = vld [vmem:[%s15049_s16 + $0x1a48] sm:$0xf]  ;;  %v12311_v9 = vor.u32 %v14352_v2, %v12310_v63  ;;  %7224 = vmatpush.bf16.msrb.mxu3 %v13111_v34  ;;  %v9432_v63 = vld [vmem:[%s15049_s16 + $0x1e8] sm:$0xf0] }
 0x2f5   : > { %v14416_v55 = vld [vmem:[%s15049_s16 + $0x1a64] sm:$0xf0]  ;;  %v13692_v2 = vld [vmem:[%s15049_s16 + $0x3cc] sm:$0xf] }
 0x2f6   : > { %v12822_v23 = vld [vmem:[%s15049_s16 + $0x1c48] sm:$0xf]  ;;  %v12567_v14 = vor.u32 %v14416_v55, %v12566_v7  ;;  %7183 = vmatpush.bf16.msrb.mxu0 %v12311_v9  ;;  %v13756_v7 = vld [vmem:[%s15049_s16 + $0x5cc] sm:$0xf]  ;;  %v9435_v9 = vor.u32 %v13628_v42, %v9432_v63 }
 0x2f7   : > { %v14480_v53 = vld [vmem:[%s15049_s16 + $0x1c64] sm:$0xf0]  ;;  %v9944_v55 = vld [vmem:[%s15049_s16 + $0x5e8] sm:$0xf0] }
 0x2f8   : > { %v13078_v12 = vld [vmem:[%s15049_s16 + $0x1e48] sm:$0xf]  ;;  %v12823_v24 = vor.u32 %v14480_v53, %v12822_v23  ;;  %7197 = vmatpush.bf16.msrb.mxu1 %v12567_v14  ;;  %v13820_v53 = vld [vmem:[%s15049_s16 + $0x7cc] sm:$0xf] }
 0x2f9   : > { %v14544_v61 = vld [vmem:[%s15049_s16 + $0x1e64] sm:$0xf0]  ;;  %v13612_v63 = vld [vmem:[%s15049_s16 + $0x14c] sm:$0xf] }
 0x2fa   : > { %v12278_v11 = vld [vmem:[%s15049_s16 + $0x1808] sm:$0xf]  ;;  %v13079_v29 = vor.u32 %v14544_v61, %v13078_v12  ;;  %7211 = vmatpush.bf16.msrb.mxu2 %v12823_v24  ;;  %v10200_v12 = vld [vmem:[%s15049_s16 + $0x7e8] sm:$0xf0] }
 0x2fb   : > { %v14344_v13 = vld [vmem:[%s15049_s16 + $0x1824] sm:$0xf0]  ;;  %v10203_v14 = vor.u32 %v13820_v53, %v10200_v12  ;;  %v13748_v24 = vld [vmem:[%s15049_s16 + $0x58c] sm:$0xf] }
 0x2fc   : > { %v12534_v26 = vld [vmem:[%s15049_s16 + $0x1a08] sm:$0xf]  ;;  %v12279_v60 = vor.u32 %v14344_v13, %v12278_v11  ;;  %7225 = vmatpush.bf16.msrb.mxu3 %v13079_v29  ;;  %v9691_v11 = vor.u32 %v13692_v2, %v9688_v45  ;;  %v9947_v13 = vor.u32 %v13756_v7, %v9944_v55  ;;  %v10168_v29 = vld [vmem:[%s15049_s16 + $0x7a8] sm:$0xf0] }
 0x2fd   : > { %v14408_v4 = vld [vmem:[%s15049_s16 + $0x1a24] sm:$0xf0]  ;;  %v9368_v2 = vld [vmem:[%s15049_s16 + $0x168] sm:$0xf0] }
 0x2fe   : > { %v12790_v59 = vld [vmem:[%s15049_s16 + $0x1c08] sm:$0xf]  ;;  %v12535_v34 = vor.u32 %v14408_v4, %v12534_v26  ;;  %7184 = vmatpush.bf16.msrb.mxu0 %v12279_v60  ;;  %v9912_v26 = vld [vmem:[%s15049_s16 + $0x5a8] sm:$0xf0]  ;;  %v16001_v4 = vpop.f32.mrf.mxu0 }
 0x2ff   : > { %v14472_v48 = vld [vmem:[%s15049_s16 + $0x1c24] sm:$0xf0]  ;;  %17827 = vst [vmem:[#allocation30_spill] sm:$0xff] %v16001_v4  ;;  %v9915_v42 = vor.u32 %v13748_v24, %v9912_v26  ;;  %v13676_v60 = vld [vmem:[%s15049_s16 + $0x34c] sm:$0xf]  ;;  %v16027_v26 = vpop.f32.mrf.mxu3 }
 0x300   : > { %v13046_v49 = vld [vmem:[%s15049_s16 + $0x1e08] sm:$0xf]  ;;  %v12791_v23 = vor.u32 %v14472_v48, %v12790_v59  ;;  %7198 = vmatpush.bf16.msrb.mxu1 %v12535_v34  ;;  %v13812_v59 = vld [vmem:[%s15049_s16 + $0x78c] sm:$0xf]  ;;  %v16005_v48 = vpop.f32.mrf.mxu1  ;;  %17830 = vst [vmem:[#allocation33_spill] sm:$0xff] %v16027_v26 }
 0x301   : > { %v14536_v37 = vld [vmem:[%s15049_s16 + $0x1e24] sm:$0xf0]  ;;  %17828 = vst [vmem:[#allocation31_spill] sm:$0xff] %v16005_v48  ;;  %7185 = vmatmul.bf16.vlgmr.msrb.gmra.mxu0 %v15366_v32  ;;  %v10171_v45 = vor.u32 %v13812_v59, %v10168_v29  ;;  %v9624_v7 = vld [vmem:[%s15049_s16 + $0x368] sm:$0xf0] }
 0x302   : > { %v13047_v61 = vor.u32 %v14536_v37, %v13046_v49  ;;  %7212 = vmatpush.bf16.msrb.mxu2 %v12791_v23  ;;  %7233 = vmatpush.bf16.msra.mxu0 %v9435_v9  ;;  %v9403_v49 = vor.u32 %v13620_v30, %v9400_v25  ;;  %v9659_v37 = vor.u32 %v13684_v62, %v9656_v57  ;;  %v13740_v55 = vld [vmem:[%s15049_s16 + $0x54c] sm:$0xf]  ;;  %v16022_v9 = vpop.f32.mrf.mxu2 }
 0x303   : > { %v9880_v34 = vld [vmem:[%s15049_s16 + $0x568] sm:$0xf0]  ;;  %7199 = vmatmul.bf16.vlgmr.msrb.gmra.mxu1 %v15373_v41  ;;  %v9371_v25 = vor.u32 %v13612_v63, %v9368_v2  ;;  %v9627_v30 = vor.u32 %v13676_v60, %v9624_v7  ;;  %17829 = vst [vmem:[#allocation32_spill] sm:$0xff] %v16022_v9 }
 0x304   : > { %7226 = vmatpush.bf16.msrb.mxu3 %v13047_v61  ;;  %7247 = vmatpush.bf16.msra.mxu1 %v9691_v11  ;;  %v13804_v57 = vld [vmem:[%s15049_s16 + $0x74c] sm:$0xf]  ;;  %v9883_v23 = vor.u32 %v13740_v55, %v9880_v34 }
 0x305   : > { %7213 = vmatmul.bf16.vlgmr.msrb.gmra.mxu2 %v15371_v38  ;;  %v10136_v62 = vld [vmem:[%s15049_s16 + $0x768] sm:$0xf0] }
 0x306   : > { %7261 = vmatpush.bf16.msra.mxu2 %v9947_v13  ;;  %7234 = vmatpush.bf16.msra.mxu0 %v9403_v49  ;;  %v13604_v53 = vld [vmem:[%s15049_s16 + $0x10c] sm:$0xf]  ;;  %v10139_v11 = vor.u32 %v13804_v57, %v10136_v62  ;;  %v6962_v59 = vpop.f32.mrf.mxu0 }
 0x307   : > { %7227 = vmatmul.bf16.vlgmr.msrb.gmra.mxu3 %v15377_v46  ;;  %v9336_v12 = vld [vmem:[%s15049_s16 + $0x128] sm:$0xf0] }
 0x308   : > { %7275 = vmatpush.bf16.msra.mxu3 %v10203_v14  ;;  %7248 = vmatpush.bf16.msra.mxu1 %v9659_v37  ;;  %v13668_v61 = vld [vmem:[%s15049_s16 + $0x30c] sm:$0xf]  ;;  %v6963_v37 = vadd.f32 %v6962_v59, %v15969_v50  ;;  %v6976_v63 = vpop.f32.mrf.mxu1 }
 0x309   : > { %v9592_v13 = vld [vmem:[%s15049_s16 + $0x328] sm:$0xf0] }
 0x30a   : > { %7262 = vmatpush.bf16.msra.mxu2 %v9915_v42  ;;  %v13732_v14 = vld [vmem:[%s15049_s16 + $0x50c] sm:$0xf]  ;;  %7235 = vmatpush.bf16.msra.mxu0 %v9371_v25  ;;  %v9339_v42 = vor.u32 %v13604_v53, %v9336_v12  ;;  %v9595_v2 = vor.u32 %v13668_v61, %v9592_v13  ;;  %v6977_v57 = vadd.f32 %v6976_v63, %v6963_v37  ;;  %v6990_v59 = vpop.f32.mrf.mxu2  ;;  %v7004_v63 = vpop.f32.mrf.mxu3 }
 0x30b   : > { %v9848_v24 = vld [vmem:[%s15049_s16 + $0x528] sm:$0xf0] }
 0x30c   : > { %7276 = vmatpush.bf16.msra.mxu3 %v10171_v45  ;;  %v13796_v29 = vld [vmem:[%s15049_s16 + $0x70c] sm:$0xf]  ;;  %7249 = vmatpush.bf16.msra.mxu1 %v9627_v30  ;;  %v9851_v60 = vor.u32 %v13732_v14, %v9848_v24 }
 0x30d   : > { %v10104_v49 = vld [vmem:[%s15049_s16 + $0x728] sm:$0xf0] }
 0x30e   : > { %7263 = vmatpush.bf16.msra.mxu2 %v9883_v23  ;;  %v13596_v45 = vld [vmem:[%s15049_s16 + $0xcc] sm:$0xf]  ;;  %v10107_v34 = vor.u32 %v13796_v29, %v10104_v49  ;;  %7236 = vmatpush.bf16.msra.mxu0 %v9339_v42  ;;  %v6991_v42 = vadd.f32 %v6990_v59, %v6977_v57 }
 0x30f   : > { %v9304_v7 = vld [vmem:[%s15049_s16 + $0xe8] sm:$0xf0] }
 0x310   : > { %v13660_v55 = vld [vmem:[%s15049_s16 + $0x2cc] sm:$0xf]  ;;  %7277 = vmatpush.bf16.msra.mxu3 %v10139_v11  ;;  %v9307_v23 = vor.u32 %v13596_v45, %v9304_v7  ;;  %7250 = vmatpush.bf16.msra.mxu1 %v9595_v2  ;;  %v16048_v7 = vadd.f32 %v7004_v63, %v6991_v42 }
 0x311   : > { %v9560_v62 = vld [vmem:[%s15049_s16 + $0x2e8] sm:$0xf0] }
 0x312   : > { %v13724_v25 = vld [vmem:[%s15049_s16 + $0x4cc] sm:$0xf]  ;;  %7264 = vmatpush.bf16.msra.mxu2 %v9851_v60  ;;  %v9563_v12 = vor.u32 %v13660_v55, %v9560_v62  ;;  %7237 = vmatpush.bf16.msra.mxu0 %v9307_v23  ;;  %17831 = vst [vmem:[#allocation34_spill] sm:$0xff] %v16048_v7 }
 0x313   : > { %v9816_v50 = vld [vmem:[%s15049_s16 + $0x4e8] sm:$0xf0] }
 0x314   : > { %v13788_v53 = vld [vmem:[%s15049_s16 + $0x6cc] sm:$0xf]  ;;  %v9819_v61 = vor.u32 %v13724_v25, %v9816_v50  ;;  %7278 = vmatpush.bf16.msra.mxu3 %v10107_v34  ;;  %7251 = vmatpush.bf16.msra.mxu1 %v9563_v12 }
 0x315   : > { %v10072_v30 = vld [vmem:[%s15049_s16 + $0x6e8] sm:$0xf0] }
 0x316   : > { %v13588_v11 = vld [vmem:[%s15049_s16 + $0x8c] sm:$0xf]  ;;  %v10075_v24 = vor.u32 %v13788_v53, %v10072_v30  ;;  %7265 = vmatpush.bf16.msra.mxu2 %v9819_v61 }
 0x317   : > { %v9272_v13 = vld [vmem:[%s15049_s16 + $0xa8] sm:$0xf0] }
 0x318   : > { %v13652_v14 = vld [vmem:[%s15049_s16 + $0x28c] sm:$0xf]  ;;  %v9275_v45 = vor.u32 %v13588_v11, %v9272_v13  ;;  %7279 = vmatpush.bf16.msra.mxu3 %v10075_v24 }
 0x319   : > { %v9528_v29 = vld [vmem:[%s15049_s16 + $0x2a8] sm:$0xf0] }
 0x31a   : > { %v13716_v49 = vld [vmem:[%s15049_s16 + $0x48c] sm:$0xf]  ;;  %v9531_v55 = vor.u32 %v13652_v14, %v9528_v29  ;;  %7238 = vmatpush.bf16.msra.mxu0 %v9275_v45 }
 0x31b   : > { %v9784_v37 = vld [vmem:[%s15049_s16 + $0x4a8] sm:$0xf0] }
 0x31c   : > { %v13780_v2 = vld [vmem:[%s15049_s16 + $0x68c] sm:$0xf]  ;;  %v9787_v34 = vor.u32 %v13716_v49, %v9784_v37  ;;  %7252 = vmatpush.bf16.msra.mxu1 %v9531_v55 }
 0x31d   : > { %v10040_v60 = vld [vmem:[%s15049_s16 + $0x6a8] sm:$0xf0] }
 0x31e   : > { %v13580_v62 = vld [vmem:[%s15049_s16 + $0x4c] sm:$0xf]  ;;  %v10043_v50 = vor.u32 %v13780_v2, %v10040_v60  ;;  %7266 = vmatpush.bf16.msra.mxu2 %v9787_v34 }
 0x31f   : > { %v9240_v57 = vld [vmem:[%s15049_s16 + $0x68] sm:$0xf0] }
 0x320   : > { %v13644_v25 = vld [vmem:[%s15049_s16 + $0x24c] sm:$0xf]  ;;  %v9243_v11 = vor.u32 %v13580_v62, %v9240_v57  ;;  %7280 = vmatpush.bf16.msra.mxu3 %v10043_v50 }
 0x321   : > { %v9496_v53 = vld [vmem:[%s15049_s16 + $0x268] sm:$0xf0] }
 0x322   : > { %v13708_v30 = vld [vmem:[%s15049_s16 + $0x44c] sm:$0xf]  ;;  %v9499_v24 = vor.u32 %v13644_v25, %v9496_v53  ;;  %7239 = vmatpush.bf16.msra.mxu0 %v9243_v11 }
 0x323   : > { %v9752_v23 = vld [vmem:[%s15049_s16 + $0x468] sm:$0xf0] }
 0x324   : > { %v13772_v12 = vld [vmem:[%s15049_s16 + $0x64c] sm:$0xf]  ;;  %v9755_v59 = vor.u32 %v13708_v30, %v9752_v23  ;;  %7253 = vmatpush.bf16.msra.mxu1 %v9499_v24 }
 0x325   : > { %v10008_v61 = vld [vmem:[%s15049_s16 + $0x668] sm:$0xf0] }
 0x326   : > { %v13572_v13 = vld [vmem:[%s15049_s16 + $0xc] sm:$0xf]  ;;  %v10011_v42 = vor.u32 %v13772_v12, %v10008_v61  ;;  %7267 = vmatpush.bf16.msra.mxu2 %v9755_v59 }
 0x327   : > { %v9208_v14 = vld [vmem:[%s15049_s16 + $0x28] sm:$0xf0] }
 0x328   : > { %v13636_v29 = vld [vmem:[%s15049_s16 + $0x20c] sm:$0xf]  ;;  %v9211_v55 = vor.u32 %v13572_v13, %v9208_v14  ;;  %7281 = vmatpush.bf16.msra.mxu3 %v10011_v42 }
 0x329   : > { %v9464_v49 = vld [vmem:[%s15049_s16 + $0x228] sm:$0xf0] }
 0x32a   : > { %v13700_v37 = vld [vmem:[%s15049_s16 + $0x40c] sm:$0xf]  ;;  %v9467_v50 = vor.u32 %v13636_v29, %v9464_v49  ;;  %7240 = vmatpush.bf16.msra.mxu0 %v9211_v55  ;;  %v16080_v49 = vpop.f32.mrf.mxu0 }
 0x32b   : > { %v9720_v63 = vld [vmem:[%s15049_s16 + $0x428] sm:$0xf0]  ;;  %17832 = vst [vmem:[#allocation35_spill] sm:$0xff] %v16080_v49 }
 0x32c   : > { %v13764_v2 = vld [vmem:[%s15049_s16 + $0x60c] sm:$0xf]  ;;  %v9723_v30 = vor.u32 %v13700_v37, %v9720_v63  ;;  %7254 = vmatpush.bf16.msra.mxu1 %v9467_v50 }
 0x32d   : > { %v9976_v60 = vld [vmem:[%s15049_s16 + $0x628] sm:$0xf0]  ;;  %7241 = vmatmul.bf16.vlgmr.msra.gmra.mxu0 %v15145_v58 }
 0x32e   : > { %v13884_v45 = vld [vmem:[%s15049_s16 + $0x9cc] sm:$0xf]  ;;  %v9979_v61 = vor.u32 %v13764_v2, %v9976_v60  ;;  %7268 = vmatpush.bf16.msra.mxu2 %v9723_v30  ;;  %v16084_v2 = vpop.f32.mrf.mxu1 }
 0x32f   : > { %v10456_v62 = vld [vmem:[%s15049_s16 + $0x9e8] sm:$0xf0]  ;;  %17833 = vst [vmem:[#allocation36_spill] sm:$0xff] %v16084_v2  ;;  %7255 = vmatmul.bf16.vlgmr.msra.gmra.mxu1 %v15157_v10 }
 0x330   : > { %v13948_v57 = vld [vmem:[%s15049_s16 + $0xbcc] sm:$0xf]  ;;  %v10459_v11 = vor.u32 %v13884_v45, %v10456_v62  ;;  %7282 = vmatpush.bf16.msra.mxu3 %v9979_v61 }
 0x331   : > { %v10712_v34 = vld [vmem:[%s15049_s16 + $0xbe8] sm:$0xf0]  ;;  %7269 = vmatmul.bf16.vlgmr.msra.gmra.mxu2 %v15150_v1 }
 0x332   : > { %v14012_v25 = vld [vmem:[%s15049_s16 + $0xdcc] sm:$0xf]  ;;  %v10715_v13 = vor.u32 %v13948_v57, %v10712_v34  ;;  %7289 = vmatpush.bf16.msrb.mxu0 %v10459_v11 }
 0x333   : > { %v10968_v53 = vld [vmem:[%s15049_s16 + $0xde8] sm:$0xf0]  ;;  %7283 = vmatmul.bf16.vlgmr.msra.gmra.mxu3 %v15162_v17 }
 0x334   : > { %v14076_v23 = vld [vmem:[%s15049_s16 + $0xfcc] sm:$0xf]  ;;  %v10971_v14 = vor.u32 %v14012_v25, %v10968_v53  ;;  %7303 = vmatpush.bf16.msrb.mxu1 %v10715_v13  ;;  %v16102_v13 = vpop.f32.mrf.mxu2 }
 0x335   : > { %v11224_v12 = vld [vmem:[%s15049_s16 + $0xfe8] sm:$0xf0]  ;;  %17834 = vst [vmem:[#allocation37_spill] sm:$0xff] %v16102_v13 }
 0x336   : > { %v13876_v7 = vld [vmem:[%s15049_s16 + $0x98c] sm:$0xf]  ;;  %v11227_v24 = vor.u32 %v14076_v23, %v11224_v12  ;;  %7317 = vmatpush.bf16.msrb.mxu2 %v10971_v14 }
 0x337   : > { %v10424_v26 = vld [vmem:[%s15049_s16 + $0x9a8] sm:$0xf0] }
 0x338   : > { %v13940_v9 = vld [vmem:[%s15049_s16 + $0xb8c] sm:$0xf]  ;;  %v10427_v63 = vor.u32 %v13876_v7, %v10424_v26  ;;  %7331 = vmatpush.bf16.msrb.mxu3 %v11227_v24 }
 0x339   : > { %v10680_v48 = vld [vmem:[%s15049_s16 + $0xba8] sm:$0xf0] }
 0x33a   : > { %v14004_v59 = vld [vmem:[%s15049_s16 + $0xd8c] sm:$0xf]  ;;  %v10683_v60 = vor.u32 %v13940_v9, %v10680_v48  ;;  %7290 = vmatpush.bf16.msrb.mxu0 %v10427_v63  ;;  %v17799_v9 = vperm.slane %v15452_v51, 2  ;;  %v7018_v63 = vpop.f32.mrf.mxu0 }
 0x33b   : > { %v10936_v29 = vld [vmem:[%s15049_s16 + $0xda8] sm:$0xf0] }
 0x33c   : > { %v14068_v37 = vld [vmem:[%s15049_s16 + $0xf8c] sm:$0xf]  ;;  %v10939_v45 = vor.u32 %v14004_v59, %v10936_v29  ;;  %7304 = vmatpush.bf16.msrb.mxu1 %v10683_v60  ;;  %v16109_v60 = vpop.f32.mrf.mxu3 }
 0x33d   : > { %v11192_v42 = vld [vmem:[%s15049_s16 + $0xfa8] sm:$0xf0]  ;;  %17835 = vst [vmem:[#allocation38_spill] sm:$0xff] %v16109_v60 }
 0x33e   : > { %v13868_v62 = vld [vmem:[%s15049_s16 + $0x94c] sm:$0xf]  ;;  %v11195_v34 = vor.u32 %v14068_v37, %v11192_v42  ;;  %7318 = vmatpush.bf16.msrb.mxu2 %v10939_v45 }
 0x33f   : > { %v10392_v57 = vld [vmem:[%s15049_s16 + $0x968] sm:$0xf0] }
 0x340   : > { %v13932_v55 = vld [vmem:[%s15049_s16 + $0xb4c] sm:$0xf]  ;;  %v10395_v48 = vor.u32 %v13868_v62, %v10392_v57  ;;  %7332 = vmatpush.bf16.msrb.mxu3 %v11195_v34  ;;  %v7019_v62 = vadd.f32 %v7018_v63, %v17799_v9  ;;  %v7046_v9 = vpop.f32.mrf.mxu2 }
 0x341   : > { %v10648_v25 = vld [vmem:[%s15049_s16 + $0xb68] sm:$0xf0] }
 0x342   : > { %v13996_v53 = vld [vmem:[%s15049_s16 + $0xd4c] sm:$0xf]  ;;  %v10651_v30 = vor.u32 %v13932_v55, %v10648_v25  ;;  %7291 = vmatpush.bf16.msrb.mxu0 %v10395_v48  ;;  %v16155_v13 = vpop.f32.mrf.mxu0 }
 0x343   : > { %v10904_v50 = vld [vmem:[%s15049_s16 + $0xd68] sm:$0xf0] }
 0x344   : > { %v14060_v26 = vld [vmem:[%s15049_s16 + $0xf4c] sm:$0xf]  ;;  %v10907_v23 = vor.u32 %v13996_v53, %v10904_v50  ;;  %7305 = vmatpush.bf16.msrb.mxu1 %v10651_v30  ;;  %v7032_v50 = vpop.f32.mrf.mxu1 }
 0x345   : > { %v11160_v7 = vld [vmem:[%s15049_s16 + $0xf68] sm:$0xf0] }
 0x346   : > { %v13860_v12 = vld [vmem:[%s15049_s16 + $0x90c] sm:$0xf]  ;;  %v11163_v14 = vor.u32 %v14060_v26, %v11160_v7  ;;  %7319 = vmatpush.bf16.msrb.mxu2 %v10907_v23 }
 0x347   : > { %v10360_v61 = vld [vmem:[%s15049_s16 + $0x928] sm:$0xf0] }
 0x348   : > { %v13924_v11 = vld [vmem:[%s15049_s16 + $0xb0c] sm:$0xf]  ;;  %v10363_v45 = vor.u32 %v13860_v12, %v10360_v61  ;;  %7333 = vmatpush.bf16.msrb.mxu3 %v11163_v14  ;;  %v7033_v61 = vadd.f32 %v7032_v50, %v7019_v62 }
 0x349   : > { %v10616_v24 = vld [vmem:[%s15049_s16 + $0xb28] sm:$0xf0] }
 0x34a   : > { %v13988_v59 = vld [vmem:[%s15049_s16 + $0xd0c] sm:$0xf]  ;;  %v10619_v57 = vor.u32 %v13924_v11, %v10616_v24  ;;  %7292 = vmatpush.bf16.msrb.mxu0 %v10363_v45 }
 0x34b   : > { %v10872_v29 = vld [vmem:[%s15049_s16 + $0xd28] sm:$0xf0] }
 0x34c   : > { %v14052_v37 = vld [vmem:[%s15049_s16 + $0xf0c] sm:$0xf]  ;;  %v10875_v55 = vor.u32 %v13988_v59, %v10872_v29  ;;  %7306 = vmatpush.bf16.msrb.mxu1 %v10619_v57  ;;  %v7047_v57 = vadd.f32 %v7046_v9, %v7033_v61 }
 0x34d   : > { %v11128_v42 = vld [vmem:[%s15049_s16 + $0xf28] sm:$0xf0] }
 0x34e   : > { %v13852_v34 = vld [vmem:[%s15049_s16 + $0x8cc] sm:$0xf]  ;;  %v11131_v26 = vor.u32 %v14052_v37, %v11128_v42  ;;  %7320 = vmatpush.bf16.msrb.mxu2 %v10875_v55 }
 0x34f   : > { %v10328_v25 = vld [vmem:[%s15049_s16 + $0x8e8] sm:$0xf0] }
 0x350   : > { %v13916_v53 = vld [vmem:[%s15049_s16 + $0xacc] sm:$0xf]  ;;  %v10331_v11 = vor.u32 %v13852_v34, %v10328_v25  ;;  %7334 = vmatpush.bf16.msrb.mxu3 %v11131_v26  ;;  %v7060_v34 = vpop.f32.mrf.mxu3 }
 0x351   : > { %v10584_v7 = vld [vmem:[%s15049_s16 + $0xae8] sm:$0xf0] }
 0x352   : > { %v13980_v48 = vld [vmem:[%s15049_s16 + $0xccc] sm:$0xf]  ;;  %v10587_v24 = vor.u32 %v13916_v53, %v10584_v7  ;;  %7293 = vmatpush.bf16.msrb.mxu0 %v10331_v11 }
 0x353   : > { %v10840_v12 = vld [vmem:[%s15049_s16 + $0xce8] sm:$0xf0] }
 0x354   : > { %v14044_v30 = vld [vmem:[%s15049_s16 + $0xecc] sm:$0xf]  ;;  %v10843_v59 = vor.u32 %v13980_v48, %v10840_v12  ;;  %7307 = vmatpush.bf16.msrb.mxu1 %v10587_v24  ;;  %v16132_v12 = vadd.f32 %v7060_v34, %v7047_v57 }
 0x355   : > { %v11096_v23 = vld [vmem:[%s15049_s16 + $0xee8] sm:$0xf0] }
 0x356   : > { %v13844_v14 = vld [vmem:[%s15049_s16 + $0x88c] sm:$0xf]  ;;  %v11099_v42 = vor.u32 %v14044_v30, %v11096_v23  ;;  %7321 = vmatpush.bf16.msrb.mxu2 %v10843_v59 }
 0x357   : > { %v10296_v29 = vld [vmem:[%s15049_s16 + $0x8a8] sm:$0xf0] }
 0x358   : > { %v13908_v37 = vld [vmem:[%s15049_s16 + $0xa8c] sm:$0xf]  ;;  %v10299_v55 = vor.u32 %v13844_v14, %v10296_v29  ;;  %7335 = vmatpush.bf16.msrb.mxu3 %v11099_v42 }
 0x359   : > { %v10552_v63 = vld [vmem:[%s15049_s16 + $0xaa8] sm:$0xf0] }
 0x35a   : > { %v13972_v62 = vld [vmem:[%s15049_s16 + $0xc8c] sm:$0xf]  ;;  %v10555_v25 = vor.u32 %v13908_v37, %v10552_v63  ;;  %7294 = vmatpush.bf16.msrb.mxu0 %v10299_v55 }
 0x35b   : > { %v10808_v50 = vld [vmem:[%s15049_s16 + $0xca8] sm:$0xf0] }
 0x35c   : > { %v14036_v60 = vld [vmem:[%s15049_s16 + $0xe8c] sm:$0xf]  ;;  %v10811_v53 = vor.u32 %v13972_v62, %v10808_v50  ;;  %7308 = vmatpush.bf16.msrb.mxu1 %v10555_v25 }
 0x35d   : > { %v11064_v45 = vld [vmem:[%s15049_s16 + $0xea8] sm:$0xf0] }
 0x35e   : > { %v13836_v26 = vld [vmem:[%s15049_s16 + $0x84c] sm:$0xf]  ;;  %v11067_v9 = vor.u32 %v14036_v60, %v11064_v45  ;;  %7322 = vmatpush.bf16.msrb.mxu2 %v10811_v53 }
 0x35f   : > { %v10264_v7 = vld [vmem:[%s15049_s16 + $0x868] sm:$0xf0] }
 0x360   : > { %v13900_v48 = vld [vmem:[%s15049_s16 + $0xa4c] sm:$0xf]  ;;  %v10267_v59 = vor.u32 %v13836_v26, %v10264_v7  ;;  %7336 = vmatpush.bf16.msrb.mxu3 %v11067_v9 }
 0x361   : > { %v10520_v61 = vld [vmem:[%s15049_s16 + $0xa68] sm:$0xf0] }
 0x362   : > { %v13964_v30 = vld [vmem:[%s15049_s16 + $0xc4c] sm:$0xf]  ;;  %v10523_v60 = vor.u32 %v13900_v48, %v10520_v61  ;;  %7295 = vmatpush.bf16.msrb.mxu0 %v10267_v59 }
 0x363   : > { %v10776_v23 = vld [vmem:[%s15049_s16 + $0xc68] sm:$0xf0] }
 0x364   : > { %v14028_v11 = vld [vmem:[%s15049_s16 + $0xe4c] sm:$0xf]  ;;  %v10779_v37 = vor.u32 %v13964_v30, %v10776_v23  ;;  %7309 = vmatpush.bf16.msrb.mxu1 %v10523_v60 }
 0x365   : > { %v11032_v24 = vld [vmem:[%s15049_s16 + $0xe68] sm:$0xf0] }
 0x366   : > { %v13828_v14 = vld [vmem:[%s15049_s16 + $0x80c] sm:$0xf]  ;;  %v11035_v50 = vor.u32 %v14028_v11, %v11032_v24  ;;  %7323 = vmatpush.bf16.msrb.mxu2 %v10779_v37 }
 0x367   : > { %v10232_v29 = vld [vmem:[%s15049_s16 + $0x828] sm:$0xf0] }
 0x368   : > { %v13892_v42 = vld [vmem:[%s15049_s16 + $0xa0c] sm:$0xf]  ;;  %v10235_v25 = vor.u32 %v13828_v14, %v10232_v29  ;;  %7337 = vmatpush.bf16.msrb.mxu3 %v11035_v50 }
 0x369   : > { %v10488_v63 = vld [vmem:[%s15049_s16 + $0xa28] sm:$0xf0] }
 0x36a   : > { %v13956_v62 = vld [vmem:[%s15049_s16 + $0xc0c] sm:$0xf]  ;;  %v10491_v9 = vor.u32 %v13892_v42, %v10488_v63  ;;  %7296 = vmatpush.bf16.msrb.mxu0 %v10235_v25 }
 0x36b   : > { %v10744_v45 = vld [vmem:[%s15049_s16 + $0xc28] sm:$0xf0] }
 0x36c   : > { %v14020_v57 = vld [vmem:[%s15049_s16 + $0xe0c] sm:$0xf]  ;;  %v10747_v30 = vor.u32 %v13956_v62, %v10744_v45  ;;  %7310 = vmatpush.bf16.msrb.mxu1 %v10491_v9 }
 0x36d   : > { %v11000_v55 = vld [vmem:[%s15049_s16 + $0xe28] sm:$0xf0]  ;;  %7297 = vmatmul.bf16.vlgmr.msrb.gmra.mxu0 %v15214_v39 }
 0x36e   : > { %v14140_v34 = vld [vmem:[%s15049_s16 + $0x11cc] sm:$0xf]  ;;  %v11003_v24 = vor.u32 %v14020_v57, %v11000_v55  ;;  %7324 = vmatpush.bf16.msrb.mxu2 %v10747_v30  ;;  %v16165_v57 = vpop.f32.mrf.mxu1 }
 0x36f   : > { %v11480_v26 = vld [vmem:[%s15049_s16 + $0x11e8] sm:$0xf0]  ;;  %7311 = vmatmul.bf16.vlgmr.msrb.gmra.mxu1 %v15221_v44 }
 0x370   : > { %v14204_v7 = vld [vmem:[%s15049_s16 + $0x13cc] sm:$0xf]  ;;  %v11483_v59 = vor.u32 %v14140_v34, %v11480_v26  ;;  %7338 = vmatpush.bf16.msrb.mxu3 %v11003_v24 }
 0x371   : > { %v11736_v53 = vld [vmem:[%s15049_s16 + $0x13e8] sm:$0xf0]  ;;  %7325 = vmatmul.bf16.vlgmr.msrb.gmra.mxu2 %v15219_v43 }
 0x372   : > { %v14268_v48 = vld [vmem:[%s15049_s16 + $0x15cc] sm:$0xf]  ;;  %v11739_v14 = vor.u32 %v14204_v7, %v11736_v53  ;;  %7345 = vmatpush.bf16.msra.mxu0 %v11483_v59 }
 0x373   : > { %v11992_v61 = vld [vmem:[%s15049_s16 + $0x15e8] sm:$0xf0]  ;;  %7339 = vmatmul.bf16.vlgmr.msrb.gmra.mxu3 %v15225_v47 }
 0x374   : > { %v14332_v23 = vld [vmem:[%s15049_s16 + $0x17cc] sm:$0xf]  ;;  %v11995_v29 = vor.u32 %v14268_v48, %v11992_v61  ;;  %7359 = vmatpush.bf16.msra.mxu1 %v11739_v14 }
 0x375   : > { %v12248_v11 = vld [vmem:[%s15049_s16 + $0x17e8] sm:$0xf0] }
 0x376   : > { %v14132_v2 = vld [vmem:[%s15049_s16 + $0x118c] sm:$0xf]  ;;  %v12251_v37 = vor.u32 %v14332_v23, %v12248_v11  ;;  %7373 = vmatpush.bf16.msra.mxu2 %v11995_v29  ;;  %v16179_v11 = vpop.f32.mrf.mxu2 }
 0x377   : > { %v11448_v49 = vld [vmem:[%s15049_s16 + $0x11a8] sm:$0xf0] }
 0x378   : > { %v14196_v60 = vld [vmem:[%s15049_s16 + $0x138c] sm:$0xf]  ;;  %v11451_v55 = vor.u32 %v14132_v2, %v11448_v49  ;;  %7387 = vmatpush.bf16.msra.mxu3 %v12251_v37 }
 0x379   : > { %v11704_v42 = vld [vmem:[%s15049_s16 + $0x13a8] sm:$0xf0] }
 0x37a   : > { %v14260_v63 = vld [vmem:[%s15049_s16 + $0x158c] sm:$0xf]  ;;  %v11707_v34 = vor.u32 %v14196_v60, %v11704_v42  ;;  %7346 = vmatpush.bf16.msra.mxu0 %v11451_v55  ;;  %v16184_v42 = vpop.f32.mrf.mxu3 }
 0x37b   : > { %v11960_v62 = vld [vmem:[%s15049_s16 + $0x15a8] sm:$0xf0] }
 0x37c   : > { %v14324_v50 = vld [vmem:[%s15049_s16 + $0x178c] sm:$0xf]  ;;  %v11963_v26 = vor.u32 %v14260_v63, %v11960_v62  ;;  %7360 = vmatpush.bf16.msra.mxu1 %v11707_v34 }
 0x37d   : > { %v12216_v45 = vld [vmem:[%s15049_s16 + $0x17a8] sm:$0xf0] }
 0x37e   : > { %v14124_v7 = vld [vmem:[%s15049_s16 + $0x114c] sm:$0xf]  ;;  %v12219_v48 = vor.u32 %v14324_v50, %v12216_v45  ;;  %7374 = vmatpush.bf16.msra.mxu2 %v11963_v26  ;;  %v7074_v45 = vpop.f32.mrf.mxu0 }
 0x37f   : > { %v11416_v25 = vld [vmem:[%s15049_s16 + $0x1168] sm:$0xf0]  ;;  %v7075_v26 = vadd.f32 %v7074_v45, %v16132_v12  ;;  %v7102_v45 = vpop.f32.mrf.mxu2 }
 0x380   : > { %v14188_v53 = vld [vmem:[%s15049_s16 + $0x134c] sm:$0xf]  ;;  %v11419_v23 = vor.u32 %v14124_v7, %v11416_v25  ;;  %7388 = vmatpush.bf16.msra.mxu3 %v12219_v48  ;;  %v7088_v48 = vpop.f32.mrf.mxu1 }
 0x381   : > { %v11672_v61 = vld [vmem:[%s15049_s16 + $0x1368] sm:$0xf0] }
 0x382   : > { %v14252_v9 = vld [vmem:[%s15049_s16 + $0x154c] sm:$0xf]  ;;  %v11675_v24 = vor.u32 %v14188_v53, %v11672_v61  ;;  %7347 = vmatpush.bf16.msra.mxu0 %v11419_v23 }
 0x383   : > { %v11928_v30 = vld [vmem:[%s15049_s16 + $0x1568] sm:$0xf0] }
 0x384   : > { %v14316_v49 = vld [vmem:[%s15049_s16 + $0x174c] sm:$0xf]  ;;  %v11931_v59 = vor.u32 %v14252_v9, %v11928_v30  ;;  %7361 = vmatpush.bf16.msra.mxu1 %v11675_v24 }
 0x385   : > { %v12184_v2 = vld [vmem:[%s15049_s16 + $0x1768] sm:$0xf0] }
 0x386   : > { %v14116_v14 = vld [vmem:[%s15049_s16 + $0x110c] sm:$0xf]  ;;  %v12187_v37 = vor.u32 %v14316_v49, %v12184_v2  ;;  %7375 = vmatpush.bf16.msra.mxu2 %v11931_v59  ;;  %v7089_v2 = vadd.f32 %v7088_v48, %v7075_v26 }
 0x387   : > { %v11384_v29 = vld [vmem:[%s15049_s16 + $0x1128] sm:$0xf0] }
 0x388   : > { %v14180_v60 = vld [vmem:[%s15049_s16 + $0x130c] sm:$0xf]  ;;  %v11387_v7 = vor.u32 %v14116_v14, %v11384_v29  ;;  %7389 = vmatpush.bf16.msra.mxu3 %v12187_v37 }
 0x389   : > { %v11640_v63 = vld [vmem:[%s15049_s16 + $0x1328] sm:$0xf0] }
 0x38a   : > { %v14244_v62 = vld [vmem:[%s15049_s16 + $0x150c] sm:$0xf]  ;;  %v11643_v25 = vor.u32 %v14180_v60, %v11640_v63  ;;  %7348 = vmatpush.bf16.msra.mxu0 %v11387_v7  ;;  %v7103_v7 = vadd.f32 %v7102_v45, %v7089_v2 }
 0x38b   : > { %v11896_v50 = vld [vmem:[%s15049_s16 + $0x1528] sm:$0xf0] }
 0x38c   : > { %v14308_v55 = vld [vmem:[%s15049_s16 + $0x170c] sm:$0xf]  ;;  %v11899_v53 = vor.u32 %v14244_v62, %v11896_v50  ;;  %7362 = vmatpush.bf16.msra.mxu1 %v11643_v25 }
 0x38d   : > { %v12152_v34 = vld [vmem:[%s15049_s16 + $0x1728] sm:$0xf0] }
 0x38e   : > { %v14108_v61 = vld [vmem:[%s15049_s16 + $0x10cc] sm:$0xf]  ;;  %v12155_v49 = vor.u32 %v14308_v55, %v12152_v34  ;;  %7376 = vmatpush.bf16.msra.mxu2 %v11899_v53 }
 0x38f   : > { %v11352_v9 = vld [vmem:[%s15049_s16 + $0x10e8] sm:$0xf0] }
 0x390   : > { %v14172_v30 = vld [vmem:[%s15049_s16 + $0x12cc] sm:$0xf]  ;;  %v11355_v59 = vor.u32 %v14108_v61, %v11352_v9  ;;  %7390 = vmatpush.bf16.msra.mxu3 %v12155_v49 }
 0x391   : > { %v11608_v23 = vld [vmem:[%s15049_s16 + $0x12e8] sm:$0xf0] }
 0x392   : > { %v11864_v12 = vld [vmem:[%s15049_s16 + $0x14e8] sm:$0xf0]  ;;  %v11611_v29 = vor.u32 %v14172_v30, %v11608_v23  ;;  %7349 = vmatpush.bf16.msra.mxu0 %v11355_v59 }
 0x393   : > { %v14300_v14 = vld [vmem:[%s15049_s16 + $0x16cc] sm:$0xf]  ;;  %v11867_v60 = vor.u32 %v14236_v21, %v11864_v12  ;;  %v7116_v21 = vpop.f32.mrf.mxu3 }
 0x394   : > { %v12120_v24 = vld [vmem:[%s15049_s16 + $0x16e8] sm:$0xf0]  ;;  %7363 = vmatpush.bf16.msra.mxu1 %v11611_v29  ;;  %v16208_v61 = vadd.f32 %v7116_v21, %v7103_v7 }
 0x395   : > { %v14100_v37 = vld [vmem:[%s15049_s16 + $0x108c] sm:$0xf]  ;;  %v12123_v50 = vor.u32 %v14300_v14, %v12120_v24  ;;  %7377 = vmatpush.bf16.msra.mxu2 %v11867_v60 }
 0x396   : > { %v11320_v63 = vld [vmem:[%s15049_s16 + $0x10a8] sm:$0xf0] }
 0x397   : > { %v14164_v62 = vld [vmem:[%s15049_s16 + $0x128c] sm:$0xf]  ;;  %v11323_v53 = vor.u32 %v14100_v37, %v11320_v63  ;;  %7391 = vmatpush.bf16.msra.mxu3 %v12123_v50 }
 0x398   : > { %v11576_v55 = vld [vmem:[%s15049_s16 + $0x12a8] sm:$0xf0] }
 0x399   : > { %v14228_v34 = vld [vmem:[%s15049_s16 + $0x148c] sm:$0xf]  ;;  %v11579_v9 = vor.u32 %v14164_v62, %v11576_v55  ;;  %7350 = vmatpush.bf16.msra.mxu0 %v11323_v53 }
 0x39a   : > { %v11832_v26 = vld [vmem:[%s15049_s16 + $0x14a8] sm:$0xf0] }
 0x39b   : > { %v14292_v48 = vld [vmem:[%s15049_s16 + $0x168c] sm:$0xf]  ;;  %v11835_v30 = vor.u32 %v14228_v34, %v11832_v26  ;;  %7364 = vmatpush.bf16.msra.mxu1 %v11579_v9 }
 0x39c   : > { %v12088_v25 = vld [vmem:[%s15049_s16 + $0x16a8] sm:$0xf0] }
 0x39d   : > { %v14092_v49 = vld [vmem:[%s15049_s16 + $0x104c] sm:$0xf]  ;;  %v12091_v12 = vor.u32 %v14292_v48, %v12088_v25  ;;  %7378 = vmatpush.bf16.msra.mxu2 %v11835_v30 }
 0x39e   : > { %v11288_v2 = vld [vmem:[%s15049_s16 + $0x1068] sm:$0xf0] }
 0x39f   : > { %v14156_v23 = vld [vmem:[%s15049_s16 + $0x124c] sm:$0xf]  ;;  %v11291_v37 = vor.u32 %v14092_v49, %v11288_v2  ;;  %7392 = vmatpush.bf16.msra.mxu3 %v12091_v12 }
 0x3a0   : > { %v11544_v14 = vld [vmem:[%s15049_s16 + $0x1268] sm:$0xf0] }
 0x3a1   : > { %v14220_v24 = vld [vmem:[%s15049_s16 + $0x144c] sm:$0xf]  ;;  %v11547_v50 = vor.u32 %v14156_v23, %v11544_v14  ;;  %7351 = vmatpush.bf16.msra.mxu0 %v11291_v37 }
 0x3a2   : > { %v11800_v59 = vld [vmem:[%s15049_s16 + $0x1468] sm:$0xf0] }
 0x3a3   : > { %v14284_v29 = vld [vmem:[%s15049_s16 + $0x164c] sm:$0xf]  ;;  %v11803_v45 = vor.u32 %v14220_v24, %v11800_v59  ;;  %7365 = vmatpush.bf16.msra.mxu1 %v11547_v50 }
 0x3a4   : > { %v12056_v60 = vld [vmem:[%s15049_s16 + $0x1668] sm:$0xf0] }
 0x3a5   : > { %v14084_v63 = vld [vmem:[%s15049_s16 + $0x100c] sm:$0xf]  ;;  %v12059_v7 = vor.u32 %v14284_v29, %v12056_v60  ;;  %7379 = vmatpush.bf16.msra.mxu2 %v11803_v45 }
 0x3a6   : > { %v11256_v62 = vld [vmem:[%s15049_s16 + $0x1028] sm:$0xf0] }
 0x3a7   : > { %v14148_v55 = vld [vmem:[%s15049_s16 + $0x120c] sm:$0xf]  ;;  %v11259_v9 = vor.u32 %v14084_v63, %v11256_v62  ;;  %7393 = vmatpush.bf16.msra.mxu3 %v12059_v7 }
 0x3a8   : > { %v11512_v34 = vld [vmem:[%s15049_s16 + $0x1228] sm:$0xf0] }
 0x3a9   : > { %v14212_v26 = vld [vmem:[%s15049_s16 + $0x140c] sm:$0xf]  ;;  %v11515_v12 = vor.u32 %v14148_v55, %v11512_v34  ;;  %7352 = vmatpush.bf16.msra.mxu0 %v11259_v9  ;;  %v16240_v34 = vpop.f32.mrf.mxu0 }
 0x3aa   : > { %v11768_v48 = vld [vmem:[%s15049_s16 + $0x1428] sm:$0xf0]  ;;  %17836 = vst [vmem:[#allocation39_spill] sm:$0xff] %v16240_v34  ;;  %v14457_v34 = vld [vmem:[%s15049_s16 + $0x1bac] sm:$0xf0] }
 0x3ab   : > { %v14276_v25 = vld [vmem:[%s15049_s16 + $0x160c] sm:$0xf]  ;;  %v11771_v24 = vor.u32 %v14212_v26, %v11768_v48  ;;  %7366 = vmatpush.bf16.msra.mxu1 %v11515_v12  ;;  %v16244_v48 = vpop.f32.mrf.mxu1 }
 0x3ac   : > { %v12024_v21 = vld [vmem:[%s15049_s16 + $0x1628] sm:$0xf0]  ;;  %17837 = vst [vmem:[#allocation40_spill] sm:$0xff] %v16244_v48  ;;  %7353 = vmatmul.bf16.vlgmr.msra.gmra.mxu0 %v15290_v31  ;;  %v13689_v48 = vld [vmem:[%s15049_s16 + $0x3ac] sm:$0xf0] }
 0x3ad   : > { %v14396_v53 = vld [vmem:[%s15049_s16 + $0x19cc] sm:$0xf]  ;;  %v12027_v60 = vor.u32 %v14276_v25, %v12024_v21  ;;  %7380 = vmatpush.bf16.msra.mxu2 %v11771_v24  ;;  %v12731_v21 = vor.u32 %v14452_v16, %v12728_v8 }
 0x3ae   : > { %v12504_v49 = vld [vmem:[%s15049_s16 + $0x19e8] sm:$0xf0]  ;;  %7367 = vmatmul.bf16.vlgmr.msra.gmra.mxu1 %v15297_v36 }
 0x3af   : > { %v14460_v2 = vld [vmem:[%s15049_s16 + $0x1bcc] sm:$0xf]  ;;  %v12507_v37 = vor.u32 %v14396_v53, %v12504_v49  ;;  %7394 = vmatpush.bf16.msra.mxu3 %v12027_v60 }
 0x3b0   : > { %v12760_v30 = vld [vmem:[%s15049_s16 + $0x1be8] sm:$0xf0]  ;;  %7381 = vmatmul.bf16.vlgmr.msra.gmra.mxu2 %v15295_v35 }
 0x3b1   : > { %v14524_v23 = vld [vmem:[%s15049_s16 + $0x1dcc] sm:$0xf]  ;;  %v12763_v63 = vor.u32 %v14460_v2, %v12760_v30  ;;  %7401 = vmatpush.bf16.msrb.mxu0 %v12507_v37  ;;  %v16261_v37 = vpop.f32.mrf.mxu2 }
 0x3b2   : > { %v13016_v14 = vld [vmem:[%s15049_s16 + $0x1de8] sm:$0xf0]  ;;  %7395 = vmatmul.bf16.vlgmr.msra.gmra.mxu3 %v15301_v40  ;;  %17838 = vst [vmem:[#allocation41_spill] sm:$0xff] %v16261_v37  ;;  %v13625_v37 = vld [vmem:[%s15049_s16 + $0x1ac] sm:$0xf0] }
 0x3b3   : > { %v14588_v59 = vld [vmem:[%s15049_s16 + $0x1fcc] sm:$0xf]  ;;  %v13019_v62 = vor.u32 %v14524_v23, %v13016_v14  ;;  %7415 = vmatpush.bf16.msrb.mxu1 %v12763_v63 }
 0x3b4   : > { %v13272_v29 = vld [vmem:[%s15049_s16 + $0x1fe8] sm:$0xf0] }
 0x3b5   : > { %v14388_v4 = vld [vmem:[%s15049_s16 + $0x198c] sm:$0xf]  ;;  %v13275_v50 = vor.u32 %v14588_v59, %v13272_v29  ;;  %7429 = vmatpush.bf16.msrb.mxu2 %v13019_v62 }
 0x3b6   : > { %v14516_v45 = vld [vmem:[%s15049_s16 + $0x1d8c] sm:$0xf]  ;;  %v12475_v25 = vor.u32 %v14388_v4, %v12472_v18 }
 0x3b7   : > { %v12984_v55 = vld [vmem:[%s15049_s16 + $0x1da8] sm:$0xf0]  ;;  %7443 = vmatpush.bf16.msrb.mxu3 %v13275_v50  ;;  %7416 = vmatpush.bf16.msrb.mxu1 %v12731_v21 }
 0x3b8   : > { %v14580_v26 = vld [vmem:[%s15049_s16 + $0x1f8c] sm:$0xf]  ;;  %v12987_v53 = vor.u32 %v14516_v45, %v12984_v55  ;;  %7402 = vmatpush.bf16.msrb.mxu0 %v12475_v25  ;;  %v16266_v55 = vpop.f32.mrf.mxu3 }
 0x3b9   : > { %v13240_v7 = vld [vmem:[%s15049_s16 + $0x1fa8] sm:$0xf0]  ;;  %17839 = vst [vmem:[#allocation42_spill] sm:$0xff] %v16266_v55  ;;  %v9406_v55 = vld [vmem:[%s15049_s16 + $0x190] sm:$0xf] }
 0x3ba   : > { %v14380_v49 = vld [vmem:[%s15049_s16 + $0x194c] sm:$0xf]  ;;  %v13243_v30 = vor.u32 %v14580_v26, %v13240_v7  ;;  %7430 = vmatpush.bf16.msrb.mxu2 %v12987_v53  ;;  %v7130_v26 = vpop.f32.mrf.mxu0 }
 0x3bb   : > { %v12440_v2 = vld [vmem:[%s15049_s16 + $0x1968] sm:$0xf0]  ;;  %v7131_v21 = vadd.f32 %v7130_v26, %v16208_v61  ;;  %v7158_v26 = vpop.f32.mrf.mxu2 }
 0x3bc   : > { %v14444_v9 = vld [vmem:[%s15049_s16 + $0x1b4c] sm:$0xf]  ;;  %v12443_v18 = vor.u32 %v14380_v49, %v12440_v2  ;;  %7444 = vmatpush.bf16.msrb.mxu3 %v13243_v30  ;;  %v7144_v49 = vpop.f32.mrf.mxu1 }
 0x3bd   : > { %v12696_v23 = vld [vmem:[%s15049_s16 + $0x1b68] sm:$0xf0] }
 0x3be   : > { %v14508_v14 = vld [vmem:[%s15049_s16 + $0x1d4c] sm:$0xf]  ;;  %v12699_v4 = vor.u32 %v14444_v9, %v12696_v23  ;;  %7403 = vmatpush.bf16.msrb.mxu0 %v12443_v18 }
 0x3bf   : > { %v12952_v12 = vld [vmem:[%s15049_s16 + $0x1d68] sm:$0xf0] }
 0x3c0   : > { %v14572_v8 = vld [vmem:[%s15049_s16 + $0x1f4c] sm:$0xf]  ;;  %v12955_v24 = vor.u32 %v14508_v14, %v12952_v12  ;;  %7417 = vmatpush.bf16.msrb.mxu1 %v12699_v4 }
 0x3c1   : > { %v13208_v16 = vld [vmem:[%s15049_s16 + $0x1f68] sm:$0xf0] }
 0x3c2   : > { %v14372_v59 = vld [vmem:[%s15049_s16 + $0x190c] sm:$0xf]  ;;  %v13211_v63 = vor.u32 %v14572_v8, %v13208_v16  ;;  %7431 = vmatpush.bf16.msrb.mxu2 %v12955_v24  ;;  %v7145_v8 = vadd.f32 %v7144_v49, %v7131_v21  ;;  %v7172_v49 = vpop.f32.mrf.mxu3 }
 0x3c3   : > { %v12408_v29 = vld [vmem:[%s15049_s16 + $0x1928] sm:$0xf0] }
 0x3c4   : > { %v14436_v60 = vld [vmem:[%s15049_s16 + $0x1b0c] sm:$0xf]  ;;  %v12411_v53 = vor.u32 %v14372_v59, %v12408_v29  ;;  %7445 = vmatpush.bf16.msrb.mxu3 %v13211_v63 }
 0x3c5   : > { %v12664_v62 = vld [vmem:[%s15049_s16 + $0x1b28] sm:$0xf0] }
 0x3c6   : > { %v14500_v50 = vld [vmem:[%s15049_s16 + $0x1d0c] sm:$0xf]  ;;  %v12667_v2 = vor.u32 %v14436_v60, %v12664_v62  ;;  %7404 = vmatpush.bf16.msrb.mxu0 %v12411_v53  ;;  %v7159_v53 = vadd.f32 %v7158_v26, %v7145_v8 }
 0x3c7   : > { %v12920_v45 = vld [vmem:[%s15049_s16 + $0x1d28] sm:$0xf0] }
 0x3c8   : > { %v14564_v7 = vld [vmem:[%s15049_s16 + $0x1f0c] sm:$0xf]  ;;  %v12923_v9 = vor.u32 %v14500_v50, %v12920_v45  ;;  %7418 = vmatpush.bf16.msrb.mxu1 %v12667_v2 }
 0x3c9   : > { %v13176_v25 = vld [vmem:[%s15049_s16 + $0x1f28] sm:$0xf0] }
 0x3ca   : > { %v14364_v30 = vld [vmem:[%s15049_s16 + $0x18cc] sm:$0xf]  ;;  %v13179_v12 = vor.u32 %v14564_v7, %v13176_v25  ;;  %7432 = vmatpush.bf16.msrb.mxu2 %v12923_v9 }
 0x3cb   : > { %v12376_v23 = vld [vmem:[%s15049_s16 + $0x18e8] sm:$0xf0] }
 0x3cc   : > { %v14428_v14 = vld [vmem:[%s15049_s16 + $0x1acc] sm:$0xf]  ;;  %v12379_v24 = vor.u32 %v14364_v30, %v12376_v23  ;;  %7446 = vmatpush.bf16.msrb.mxu3 %v13179_v12  ;;  %v16287_v23 = vadd.f32 %v7172_v49, %v7159_v53 }
 0x3cd   : > { %v12632_v16 = vld [vmem:[%s15049_s16 + $0x1ae8] sm:$0xf0] }
 0x3ce   : > { %v14492_v18 = vld [vmem:[%s15049_s16 + $0x1ccc] sm:$0xf]  ;;  %v12635_v29 = vor.u32 %v14428_v14, %v12632_v16  ;;  %7405 = vmatpush.bf16.msrb.mxu0 %v12379_v24 }
 0x3cf   : > { %v12888_v61 = vld [vmem:[%s15049_s16 + $0x1ce8] sm:$0xf0] }
 0x3d0   : > { %v14556_v59 = vld [vmem:[%s15049_s16 + $0x1ecc] sm:$0xf]  ;;  %v12891_v60 = vor.u32 %v14492_v18, %v12888_v61  ;;  %7419 = vmatpush.bf16.msrb.mxu1 %v12635_v29 }
 0x3d1   : > { %v13144_v4 = vld [vmem:[%s15049_s16 + $0x1ee8] sm:$0xf0] }
 0x3d2   : > { %v14356_v63 = vld [vmem:[%s15049_s16 + $0x188c] sm:$0xf]  ;;  %v13147_v45 = vor.u32 %v14556_v59, %v13144_v4  ;;  %7433 = vmatpush.bf16.msrb.mxu2 %v12891_v60 }
 0x3d3   : > { %v12344_v62 = vld [vmem:[%s15049_s16 + $0x18a8] sm:$0xf0] }
 0x3d4   : > { %v14420_v50 = vld [vmem:[%s15049_s16 + $0x1a8c] sm:$0xf]  ;;  %v12347_v30 = vor.u32 %v14356_v63, %v12344_v62  ;;  %7447 = vmatpush.bf16.msrb.mxu3 %v13147_v45 }
 0x3d5   : > { %v12600_v7 = vld [vmem:[%s15049_s16 + $0x1aa8] sm:$0xf0] }
 0x3d6   : > { %v14484_v25 = vld [vmem:[%s15049_s16 + $0x1c8c] sm:$0xf]  ;;  %v12603_v14 = vor.u32 %v14420_v50, %v12600_v7  ;;  %7406 = vmatpush.bf16.msrb.mxu0 %v12347_v30  ;;  %v9438_v30 = vld [vmem:[%s15049_s16 + $0x1d0] sm:$0xf] }
 0x3d7   : > { %v12856_v21 = vld [vmem:[%s15049_s16 + $0x1ca8] sm:$0xf0] }
 0x3d8   : > { %v14548_v2 = vld [vmem:[%s15049_s16 + $0x1e8c] sm:$0xf]  ;;  %v12859_v12 = vor.u32 %v14484_v25, %v12856_v21  ;;  %7420 = vmatpush.bf16.msrb.mxu1 %v12603_v14 }
 0x3d9   : > { %v13112_v9 = vld [vmem:[%s15049_s16 + $0x1ea8] sm:$0xf0] }
 0x3da   : > { %v14348_v16 = vld [vmem:[%s15049_s16 + $0x184c] sm:$0xf]  ;;  %v13115_v61 = vor.u32 %v14548_v2, %v13112_v9  ;;  %7434 = vmatpush.bf16.msrb.mxu2 %v12859_v12  ;;  %v13697_v12 = vld [vmem:[%s15049_s16 + $0x3ec] sm:$0xf0] }
 0x3db   : > { %v12312_v8 = vld [vmem:[%s15049_s16 + $0x1868] sm:$0xf0] }
 0x3dc   : > { %v14412_v18 = vld [vmem:[%s15049_s16 + $0x1a4c] sm:$0xf]  ;;  %v12315_v63 = vor.u32 %v14348_v16, %v12312_v8  ;;  %7448 = vmatpush.bf16.msrb.mxu3 %v13115_v61  ;;  %v13633_v16 = vld [vmem:[%s15049_s16 + $0x1ec] sm:$0xf0] }
 0x3dd   : > { %v12568_v59 = vld [vmem:[%s15049_s16 + $0x1a68] sm:$0xf0]  ;;  %v9694_v8 = vld [vmem:[%s15049_s16 + $0x3d0] sm:$0xf] }
 0x3de   : > { %v14476_v4 = vld [vmem:[%s15049_s16 + $0x1c4c] sm:$0xf]  ;;  %v12571_v45 = vor.u32 %v14412_v18, %v12568_v59  ;;  %7407 = vmatpush.bf16.msrb.mxu0 %v12315_v63  ;;  %v9950_v18 = vld [vmem:[%s15049_s16 + $0x5d0] sm:$0xf]  ;;  %v9439_v63 = vor.u32 %v13633_v16, %v9438_v30 }
 0x3df   : > { %v12824_v24 = vld [vmem:[%s15049_s16 + $0x1c68] sm:$0xf0]  ;;  %v13761_v59 = vld [vmem:[%s15049_s16 + $0x5ec] sm:$0xf0] }
 0x3e0   : > { %v14540_v29 = vld [vmem:[%s15049_s16 + $0x1e4c] sm:$0xf]  ;;  %v12827_v26 = vor.u32 %v14476_v4, %v12824_v24  ;;  %7421 = vmatpush.bf16.msrb.mxu1 %v12571_v45  ;;  %v10206_v24 = vld [vmem:[%s15049_s16 + $0x7d0] sm:$0xf] }
 0x3e1   : > { %v13080_v60 = vld [vmem:[%s15049_s16 + $0x1e68] sm:$0xf0]  ;;  %v9374_v16 = vld [vmem:[%s15049_s16 + $0x150] sm:$0xf] }
 0x3e2   : > { %v14340_v62 = vld [vmem:[%s15049_s16 + $0x180c] sm:$0xf]  ;;  %v13083_v53 = vor.u32 %v14540_v29, %v13080_v60  ;;  %7435 = vmatpush.bf16.msrb.mxu2 %v12827_v26  ;;  %v13825_v29 = vld [vmem:[%s15049_s16 + $0x7ec] sm:$0xf0] }
 0x3e3   : > { %v12280_v50 = vld [vmem:[%s15049_s16 + $0x1828] sm:$0xf0]  ;;  %v10207_v45 = vor.u32 %v13825_v29, %v10206_v24  ;;  %v9918_v26 = vld [vmem:[%s15049_s16 + $0x590] sm:$0xf] }
 0x3e4   : > { %v14404_v7 = vld [vmem:[%s15049_s16 + $0x1a0c] sm:$0xf]  ;;  %v12283_v14 = vor.u32 %v14340_v62, %v12280_v50  ;;  %7449 = vmatpush.bf16.msrb.mxu3 %v13083_v53  ;;  %v9695_v62 = vor.u32 %v13697_v12, %v9694_v8  ;;  %v9951_v50 = vor.u32 %v13761_v59, %v9950_v18  ;;  %v13817_v53 = vld [vmem:[%s15049_s16 + $0x7ac] sm:$0xf0] }
 0x3e5   : > { %v12536_v25 = vld [vmem:[%s15049_s16 + $0x1a28] sm:$0xf0]  ;;  %v13617_v8 = vld [vmem:[%s15049_s16 + $0x16c] sm:$0xf0] }
 0x3e6   : > { %v14468_v21 = vld [vmem:[%s15049_s16 + $0x1c0c] sm:$0xf]  ;;  %v12539_v61 = vor.u32 %v14404_v7, %v12536_v25  ;;  %7408 = vmatpush.bf16.msrb.mxu0 %v12283_v14  ;;  %v13753_v7 = vld [vmem:[%s15049_s16 + $0x5ac] sm:$0xf0]  ;;  %v16319_v25 = vpop.f32.mrf.mxu0 }
 0x3e7   : > { %v12792_v49 = vld [vmem:[%s15049_s16 + $0x1c28] sm:$0xf0]  ;;  %17840 = vst [vmem:[#allocation43_spill] sm:$0xff] %v16319_v25  ;;  %v9919_v30 = vor.u32 %v13753_v7, %v9918_v26  ;;  %v9630_v14 = vld [vmem:[%s15049_s16 + $0x350] sm:$0xf]  ;;  %v16345_v7 = vpop.f32.mrf.mxu3 }
 0x3e8   : > { %v14532_v2 = vld [vmem:[%s15049_s16 + $0x1e0c] sm:$0xf]  ;;  %v12795_v4 = vor.u32 %v14468_v21, %v12792_v49  ;;  %7422 = vmatpush.bf16.msrb.mxu1 %v12539_v61  ;;  %v10174_v21 = vld [vmem:[%s15049_s16 + $0x790] sm:$0xf]  ;;  %v16323_v49 = vpop.f32.mrf.mxu1  ;;  %17843 = vst [vmem:[#allocation46_spill] sm:$0xff] %v16345_v7 }
 0x3e9   : > { %v13048_v9 = vld [vmem:[%s15049_s16 + $0x1e28] sm:$0xf0]  ;;  %17841 = vst [vmem:[#allocation44_spill] sm:$0xff] %v16323_v49  ;;  %7409 = vmatmul.bf16.vlgmr.msrb.gmra.mxu0 %v15366_v32  ;;  %v10175_v12 = vor.u32 %v13817_v53, %v10174_v21  ;;  %v13681_v18 = vld [vmem:[%s15049_s16 + $0x36c] sm:$0xf0] }
 0x3ea   : > { %v13051_v60 = vor.u32 %v14532_v2, %v13048_v9  ;;  %7436 = vmatpush.bf16.msrb.mxu2 %v12795_v4  ;;  %7457 = vmatpush.bf16.msra.mxu0 %v9439_v63  ;;  %v9407_v2 = vor.u32 %v13625_v37, %v9406_v55  ;;  %v9663_v9 = vor.u32 %v13689_v48, %v9662_v5  ;;  %v9886_v59 = vld [vmem:[%s15049_s16 + $0x550] sm:$0xf]  ;;  %v16340_v63 = vpop.f32.mrf.mxu2 }
 0x3eb   : > { %v13745_v61 = vld [vmem:[%s15049_s16 + $0x56c] sm:$0xf0]  ;;  %7423 = vmatmul.bf16.vlgmr.msrb.gmra.mxu1 %v15373_v41  ;;  %v9375_v37 = vor.u32 %v13617_v8, %v9374_v16  ;;  %v9631_v55 = vor.u32 %v13681_v18, %v9630_v14  ;;  %17842 = vst [vmem:[#allocation45_spill] sm:$0xff] %v16340_v63 }
 0x3ec   : > { %7450 = vmatpush.bf16.msrb.mxu3 %v13051_v60  ;;  %7471 = vmatpush.bf16.msra.mxu1 %v9695_v62  ;;  %v10142_v5 = vld [vmem:[%s15049_s16 + $0x750] sm:$0xf]  ;;  %v9887_v4 = vor.u32 %v13745_v61, %v9886_v59 }
 0x3ed   : > { %7437 = vmatmul.bf16.vlgmr.msrb.gmra.mxu2 %v15371_v38  ;;  %v13809_v48 = vld [vmem:[%s15049_s16 + $0x76c] sm:$0xf0] }
 0x3ee   : > { %7485 = vmatpush.bf16.msra.mxu2 %v9951_v50  ;;  %7458 = vmatpush.bf16.msra.mxu0 %v9407_v2  ;;  %v9342_v24 = vld [vmem:[%s15049_s16 + $0x110] sm:$0xf]  ;;  %v10143_v62 = vor.u32 %v13809_v48, %v10142_v5  ;;  %v7186_v21 = vpop.f32.mrf.mxu0 }
 0x3ef   : > { %7451 = vmatmul.bf16.vlgmr.msrb.gmra.mxu3 %v15377_v46  ;;  %v13609_v29 = vld [vmem:[%s15049_s16 + $0x12c] sm:$0xf0] }
 0x3f0   : > { %7499 = vmatpush.bf16.msra.mxu3 %v10207_v45  ;;  %7472 = vmatpush.bf16.msra.mxu1 %v9663_v9  ;;  %v9598_v60 = vld [vmem:[%s15049_s16 + $0x310] sm:$0xf]  ;;  %v7187_v9 = vadd.f32 %v7186_v21, %v16287_v23  ;;  %v7200_v16 = vpop.f32.mrf.mxu1 }
 0x3f1   : > { %v13673_v50 = vld [vmem:[%s15049_s16 + $0x32c] sm:$0xf0] }
 0x3f2   : > { %7486 = vmatpush.bf16.msra.mxu2 %v9919_v30  ;;  %v9854_v45 = vld [vmem:[%s15049_s16 + $0x510] sm:$0xf]  ;;  %7459 = vmatpush.bf16.msra.mxu0 %v9375_v37  ;;  %v9343_v30 = vor.u32 %v13609_v29, %v9342_v24  ;;  %v9599_v8 = vor.u32 %v13673_v50, %v9598_v60  ;;  %v7201_v5 = vadd.f32 %v7200_v16, %v7187_v9  ;;  %v7214_v21 = vpop.f32.mrf.mxu2  ;;  %v7228_v16 = vpop.f32.mrf.mxu3 }
 0x3f3   : > { %v13737_v26 = vld [vmem:[%s15049_s16 + $0x52c] sm:$0xf0] }
 0x3f4   : > { %7500 = vmatpush.bf16.msra.mxu3 %v10175_v12  ;;  %v10110_v53 = vld [vmem:[%s15049_s16 + $0x710] sm:$0xf]  ;;  %7473 = vmatpush.bf16.msra.mxu1 %v9631_v55  ;;  %v9855_v14 = vor.u32 %v13737_v26, %v9854_v45 }
 0x3f5   : > { %v13801_v2 = vld [vmem:[%s15049_s16 + $0x72c] sm:$0xf0] }
 0x3f6   : > { %7487 = vmatpush.bf16.msra.mxu2 %v9887_v4  ;;  %v9310_v12 = vld [vmem:[%s15049_s16 + $0xd0] sm:$0xf]  ;;  %v10111_v61 = vor.u32 %v13801_v2, %v10110_v53  ;;  %7460 = vmatpush.bf16.msra.mxu0 %v9343_v30  ;;  %v7215_v30 = vadd.f32 %v7214_v21, %v7201_v5 }
 0x3f7   : > { %v13601_v18 = vld [vmem:[%s15049_s16 + $0xec] sm:$0xf0] }
 0x3f8   : > { %v9566_v59 = vld [vmem:[%s15049_s16 + $0x2d0] sm:$0xf]  ;;  %7501 = vmatpush.bf16.msra.mxu3 %v10143_v62  ;;  %v9311_v4 = vor.u32 %v13601_v18, %v9310_v12  ;;  %7474 = vmatpush.bf16.msra.mxu1 %v9599_v8  ;;  %v16366_v18 = vadd.f32 %v7228_v16, %v7215_v30 }
 0x3f9   : > { %v13665_v48 = vld [vmem:[%s15049_s16 + $0x2ec] sm:$0xf0] }
 0x3fa   : > { %v9822_v37 = vld [vmem:[%s15049_s16 + $0x4d0] sm:$0xf]  ;;  %7488 = vmatpush.bf16.msra.mxu2 %v9855_v14  ;;  %v9567_v29 = vor.u32 %v13665_v48, %v9566_v59  ;;  %7461 = vmatpush.bf16.msra.mxu0 %v9311_v4  ;;  %17844 = vst [vmem:[#allocation47_spill] sm:$0xff] %v16366_v18 }
 0x3fb   : > { %v13729_v23 = vld [vmem:[%s15049_s16 + $0x4ec] sm:$0xf0] }
 0x3fc   : > { %v10078_v24 = vld [vmem:[%s15049_s16 + $0x6d0] sm:$0xf]  ;;  %v9823_v60 = vor.u32 %v13729_v23, %v9822_v37  ;;  %7502 = vmatpush.bf16.msra.mxu3 %v10111_v61  ;;  %7475 = vmatpush.bf16.msra.mxu1 %v9567_v29 }
 0x3fd   : > { %v13793_v55 = vld [vmem:[%s15049_s16 + $0x6ec] sm:$0xf0] }
 0x3fe   : > { %v9278_v62 = vld [vmem:[%s15049_s16 + $0x90] sm:$0xf]  ;;  %v10079_v26 = vor.u32 %v13793_v55, %v10078_v24  ;;  %7489 = vmatpush.bf16.msra.mxu2 %v9823_v60 }
 0x3ff   : > { %v13593_v50 = vld [vmem:[%s15049_s16 + $0xac] sm:$0xf0] }
 0x400   : > { %v9534_v45 = vld [vmem:[%s15049_s16 + $0x290] sm:$0xf]  ;;  %v9279_v12 = vor.u32 %v13593_v50, %v9278_v62  ;;  %7503 = vmatpush.bf16.msra.mxu3 %v10079_v26 }
 0x401   : > { %v13657_v53 = vld [vmem:[%s15049_s16 + $0x2ac] sm:$0xf0] }
 0x402   : > { %v9790_v2 = vld [vmem:[%s15049_s16 + $0x490] sm:$0xf]  ;;  %v9535_v59 = vor.u32 %v13657_v53, %v9534_v45  ;;  %7462 = vmatpush.bf16.msra.mxu0 %v9279_v12 }
 0x403   : > { %v13721_v9 = vld [vmem:[%s15049_s16 + $0x4ac] sm:$0xf0] }
 0x404   : > { %v10046_v8 = vld [vmem:[%s15049_s16 + $0x690] sm:$0xf]  ;;  %v9791_v61 = vor.u32 %v13721_v9, %v9790_v2  ;;  %7476 = vmatpush.bf16.msra.mxu1 %v9535_v59 }
 0x405   : > { %v13785_v14 = vld [vmem:[%s15049_s16 + $0x6ac] sm:$0xf0] }
 0x406   : > { %v9246_v48 = vld [vmem:[%s15049_s16 + $0x50] sm:$0xf]  ;;  %v10047_v23 = vor.u32 %v13785_v14, %v10046_v8  ;;  %7490 = vmatpush.bf16.msra.mxu2 %v9791_v61 }
 0x407   : > { %v13585_v5 = vld [vmem:[%s15049_s16 + $0x6c] sm:$0xf0] }
 0x408   : > { %v9502_v37 = vld [vmem:[%s15049_s16 + $0x250] sm:$0xf]  ;;  %v9247_v62 = vor.u32 %v13585_v5, %v9246_v48  ;;  %7504 = vmatpush.bf16.msra.mxu3 %v10047_v23 }
 0x409   : > { %v13649_v24 = vld [vmem:[%s15049_s16 + $0x26c] sm:$0xf0] }
 0x40a   : > { %v9758_v55 = vld [vmem:[%s15049_s16 + $0x450] sm:$0xf]  ;;  %v9503_v26 = vor.u32 %v13649_v24, %v9502_v37  ;;  %7463 = vmatpush.bf16.msra.mxu0 %v9247_v62 }
 0x40b   : > { %v13713_v4 = vld [vmem:[%s15049_s16 + $0x46c] sm:$0xf0] }
 0x40c   : > { %v10014_v29 = vld [vmem:[%s15049_s16 + $0x650] sm:$0xf]  ;;  %v9759_v21 = vor.u32 %v13713_v4, %v9758_v55  ;;  %7477 = vmatpush.bf16.msra.mxu1 %v9503_v26 }
 0x40d   : > { %v13777_v60 = vld [vmem:[%s15049_s16 + $0x66c] sm:$0xf0] }
 0x40e   : > { %v9214_v50 = vld [vmem:[%s15049_s16 + $0x10] sm:$0xf]  ;;  %v10015_v30 = vor.u32 %v13777_v60, %v10014_v29  ;;  %7491 = vmatpush.bf16.msra.mxu2 %v9759_v21 }
 0x40f   : > { %v13577_v45 = vld [vmem:[%s15049_s16 + $0x2c] sm:$0xf0] }
 0x410   : > { %v9470_v53 = vld [vmem:[%s15049_s16 + $0x210] sm:$0xf]  ;;  %v9215_v59 = vor.u32 %v13577_v45, %v9214_v50  ;;  %7505 = vmatpush.bf16.msra.mxu3 %v10015_v30 }
 0x411   : > { %v13641_v2 = vld [vmem:[%s15049_s16 + $0x22c] sm:$0xf0] }
 0x412   : > { %v9726_v9 = vld [vmem:[%s15049_s16 + $0x410] sm:$0xf]  ;;  %v9471_v23 = vor.u32 %v13641_v2, %v9470_v53  ;;  %7464 = vmatpush.bf16.msra.mxu0 %v9215_v59  ;;  %v16398_v2 = vpop.f32.mrf.mxu0 }
 0x413   : > { %v13705_v16 = vld [vmem:[%s15049_s16 + $0x42c] sm:$0xf0]  ;;  %17845 = vst [vmem:[#allocation48_spill] sm:$0xff] %v16398_v2 }
 0x414   : > { %v9982_v8 = vld [vmem:[%s15049_s16 + $0x610] sm:$0xf]  ;;  %v9727_v55 = vor.u32 %v13705_v16, %v9726_v9  ;;  %7478 = vmatpush.bf16.msra.mxu1 %v9471_v23 }
 0x415   : > { %v13769_v14 = vld [vmem:[%s15049_s16 + $0x62c] sm:$0xf0]  ;;  %7465 = vmatmul.bf16.vlgmr.msra.gmra.mxu0 %v15145_v58 }
 0x416   : > { %v10462_v12 = vld [vmem:[%s15049_s16 + $0x9d0] sm:$0xf]  ;;  %v9983_v60 = vor.u32 %v13769_v14, %v9982_v8  ;;  %7492 = vmatpush.bf16.msra.mxu2 %v9727_v55  ;;  %v16402_v8 = vpop.f32.mrf.mxu1 }
 0x417   : > { %v13889_v48 = vld [vmem:[%s15049_s16 + $0x9ec] sm:$0xf0]  ;;  %17846 = vst [vmem:[#allocation49_spill] sm:$0xff] %v16402_v8  ;;  %7479 = vmatmul.bf16.vlgmr.msra.gmra.mxu1 %v15157_v10 }
 0x418   : > { %v10718_v5 = vld [vmem:[%s15049_s16 + $0xbd0] sm:$0xf]  ;;  %v10463_v62 = vor.u32 %v13889_v48, %v10462_v12  ;;  %7506 = vmatpush.bf16.msra.mxu3 %v9983_v60 }
 0x419   : > { %v13953_v61 = vld [vmem:[%s15049_s16 + $0xbec] sm:$0xf0]  ;;  %7493 = vmatmul.bf16.vlgmr.msra.gmra.mxu2 %v15150_v1 }
 0x41a   : > { %v10974_v37 = vld [vmem:[%s15049_s16 + $0xdd0] sm:$0xf]  ;;  %v10719_v50 = vor.u32 %v13953_v61, %v10718_v5  ;;  %7513 = vmatpush.bf16.msrb.mxu0 %v10463_v62 }
 0x41b   : > { %v14017_v24 = vld [vmem:[%s15049_s16 + $0xdec] sm:$0xf0]  ;;  %7507 = vmatmul.bf16.vlgmr.msra.gmra.mxu3 %v15162_v17 }
 0x41c   : > { %v11230_v4 = vld [vmem:[%s15049_s16 + $0xfd0] sm:$0xf]  ;;  %v10975_v45 = vor.u32 %v14017_v24, %v10974_v37  ;;  %7527 = vmatpush.bf16.msrb.mxu1 %v10719_v50  ;;  %v16420_v50 = vpop.f32.mrf.mxu2 }
 0x41d   : > { %v14081_v29 = vld [vmem:[%s15049_s16 + $0xfec] sm:$0xf0]  ;;  %17847 = vst [vmem:[#allocation50_spill] sm:$0xff] %v16420_v50 }
 0x41e   : > { %v10430_v18 = vld [vmem:[%s15049_s16 + $0x990] sm:$0xf]  ;;  %v11231_v26 = vor.u32 %v14081_v29, %v11230_v4  ;;  %7541 = vmatpush.bf16.msrb.mxu2 %v10975_v45 }
 0x41f   : > { %v13881_v7 = vld [vmem:[%s15049_s16 + $0x9ac] sm:$0xf0] }
 0x420   : > { %v10686_v63 = vld [vmem:[%s15049_s16 + $0xb90] sm:$0xf]  ;;  %v10431_v16 = vor.u32 %v13881_v7, %v10430_v18  ;;  %7555 = vmatpush.bf16.msrb.mxu3 %v11231_v26 }
 0x421   : > { %v13945_v49 = vld [vmem:[%s15049_s16 + $0xbac] sm:$0xf0] }
 0x422   : > { %v10942_v21 = vld [vmem:[%s15049_s16 + $0xd90] sm:$0xf]  ;;  %v10687_v14 = vor.u32 %v13945_v49, %v10686_v63  ;;  %7514 = vmatpush.bf16.msrb.mxu0 %v10431_v16  ;;  %v17800_v63 = vperm.slane %v15452_v51, 3  ;;  %v7242_v16 = vpop.f32.mrf.mxu0 }
 0x423   : > { %v14009_v53 = vld [vmem:[%s15049_s16 + $0xdac] sm:$0xf0] }
 0x424   : > { %v11198_v9 = vld [vmem:[%s15049_s16 + $0xf90] sm:$0xf]  ;;  %v10943_v12 = vor.u32 %v14009_v53, %v10942_v21  ;;  %7528 = vmatpush.bf16.msrb.mxu1 %v10687_v14  ;;  %v16427_v14 = vpop.f32.mrf.mxu3 }
 0x425   : > { %v14073_v30 = vld [vmem:[%s15049_s16 + $0xfac] sm:$0xf0]  ;;  %17848 = vst [vmem:[#allocation51_spill] sm:$0xff] %v16427_v14 }
 0x426   : > { %v10398_v48 = vld [vmem:[%s15049_s16 + $0x950] sm:$0xf]  ;;  %v11199_v61 = vor.u32 %v14073_v30, %v11198_v9  ;;  %7542 = vmatpush.bf16.msrb.mxu2 %v10943_v12 }
 0x427   : > { %v13873_v5 = vld [vmem:[%s15049_s16 + $0x96c] sm:$0xf0] }
 0x428   : > { %v10654_v59 = vld [vmem:[%s15049_s16 + $0xb50] sm:$0xf]  ;;  %v10399_v49 = vor.u32 %v13873_v5, %v10398_v48  ;;  %7556 = vmatpush.bf16.msrb.mxu3 %v11199_v61  ;;  %v7243_v48 = vadd.f32 %v7242_v16, %v17800_v63  ;;  %v7270_v63 = vpop.f32.mrf.mxu2 }
 0x429   : > { %v13937_v37 = vld [vmem:[%s15049_s16 + $0xb6c] sm:$0xf0] }
 0x42a   : > { %v10910_v24 = vld [vmem:[%s15049_s16 + $0xd50] sm:$0xf]  ;;  %v10655_v55 = vor.u32 %v13937_v37, %v10654_v59  ;;  %7515 = vmatpush.bf16.msrb.mxu0 %v10399_v49  ;;  %v16473_v50 = vpop.f32.mrf.mxu0 }
 0x42b   : > { %v14001_v23 = vld [vmem:[%s15049_s16 + $0xd6c] sm:$0xf0] }
 0x42c   : > { %v11166_v7 = vld [vmem:[%s15049_s16 + $0xf50] sm:$0xf]  ;;  %v10911_v4 = vor.u32 %v14001_v23, %v10910_v24  ;;  %7529 = vmatpush.bf16.msrb.mxu1 %v10655_v55  ;;  %v7256_v23 = vpop.f32.mrf.mxu1 }
 0x42d   : > { %v14065_v18 = vld [vmem:[%s15049_s16 + $0xf6c] sm:$0xf0] }
 0x42e   : > { %v10366_v29 = vld [vmem:[%s15049_s16 + $0x910] sm:$0xf]  ;;  %v11167_v45 = vor.u32 %v14065_v18, %v11166_v7  ;;  %7543 = vmatpush.bf16.msrb.mxu2 %v10911_v4 }
 0x42f   : > { %v13865_v60 = vld [vmem:[%s15049_s16 + $0x92c] sm:$0xf0] }
 0x430   : > { %v10622_v62 = vld [vmem:[%s15049_s16 + $0xb10] sm:$0xf]  ;;  %v10367_v12 = vor.u32 %v13865_v60, %v10366_v29  ;;  %7557 = vmatpush.bf16.msrb.mxu3 %v11167_v45  ;;  %v7257_v60 = vadd.f32 %v7256_v23, %v7243_v48 }
 0x431   : > { %v13929_v26 = vld [vmem:[%s15049_s16 + $0xb2c] sm:$0xf0] }
 0x432   : > { %v10878_v21 = vld [vmem:[%s15049_s16 + $0xd10] sm:$0xf]  ;;  %v10623_v5 = vor.u32 %v13929_v26, %v10622_v62  ;;  %7516 = vmatpush.bf16.msrb.mxu0 %v10367_v12 }
 0x433   : > { %v13993_v53 = vld [vmem:[%s15049_s16 + $0xd2c] sm:$0xf0] }
 0x434   : > { %v11134_v9 = vld [vmem:[%s15049_s16 + $0xf10] sm:$0xf]  ;;  %v10879_v59 = vor.u32 %v13993_v53, %v10878_v21  ;;  %7530 = vmatpush.bf16.msrb.mxu1 %v10623_v5  ;;  %v7271_v5 = vadd.f32 %v7270_v63, %v7257_v60 }
 0x435   : > { %v14057_v30 = vld [vmem:[%s15049_s16 + $0xf2c] sm:$0xf0] }
 0x436   : > { %v10334_v61 = vld [vmem:[%s15049_s16 + $0x8d0] sm:$0xf]  ;;  %v11135_v7 = vor.u32 %v14057_v30, %v11134_v9  ;;  %7544 = vmatpush.bf16.msrb.mxu2 %v10879_v59 }
 0x437   : > { %v13857_v37 = vld [vmem:[%s15049_s16 + $0x8ec] sm:$0xf0] }
 0x438   : > { %v10590_v24 = vld [vmem:[%s15049_s16 + $0xad0] sm:$0xf]  ;;  %v10335_v62 = vor.u32 %v13857_v37, %v10334_v61  ;;  %7558 = vmatpush.bf16.msrb.mxu3 %v11135_v7  ;;  %v7284_v61 = vpop.f32.mrf.mxu3 }
 0x439   : > { %v13921_v18 = vld [vmem:[%s15049_s16 + $0xaec] sm:$0xf0] }
 0x43a   : > { %v10846_v49 = vld [vmem:[%s15049_s16 + $0xcd0] sm:$0xf]  ;;  %v10591_v26 = vor.u32 %v13921_v18, %v10590_v24  ;;  %7517 = vmatpush.bf16.msrb.mxu0 %v10335_v62 }
 0x43b   : > { %v13985_v29 = vld [vmem:[%s15049_s16 + $0xcec] sm:$0xf0] }
 0x43c   : > { %v11102_v55 = vld [vmem:[%s15049_s16 + $0xed0] sm:$0xf]  ;;  %v10847_v21 = vor.u32 %v13985_v29, %v10846_v49  ;;  %7531 = vmatpush.bf16.msrb.mxu1 %v10591_v26  ;;  %v16450_v29 = vadd.f32 %v7284_v61, %v7271_v5 }
 0x43d   : > { %v14049_v4 = vld [vmem:[%s15049_s16 + $0xeec] sm:$0xf0] }
 0x43e   : > { %v10302_v45 = vld [vmem:[%s15049_s16 + $0x890] sm:$0xf]  ;;  %v11103_v30 = vor.u32 %v14049_v4, %v11102_v55  ;;  %7545 = vmatpush.bf16.msrb.mxu2 %v10847_v21 }
 0x43f   : > { %v13849_v53 = vld [vmem:[%s15049_s16 + $0x8ac] sm:$0xf0] }
 0x440   : > { %v10558_v9 = vld [vmem:[%s15049_s16 + $0xa90] sm:$0xf]  ;;  %v10303_v59 = vor.u32 %v13849_v53, %v10302_v45  ;;  %7559 = vmatpush.bf16.msrb.mxu3 %v11103_v30 }
 0x441   : > { %v13913_v16 = vld [vmem:[%s15049_s16 + $0xaac] sm:$0xf0] }
 0x442   : > { %v10814_v48 = vld [vmem:[%s15049_s16 + $0xc90] sm:$0xf]  ;;  %v10559_v37 = vor.u32 %v13913_v16, %v10558_v9  ;;  %7518 = vmatpush.bf16.msrb.mxu0 %v10303_v59 }
 0x443   : > { %v13977_v23 = vld [vmem:[%s15049_s16 + $0xcac] sm:$0xf0] }
 0x444   : > { %v11070_v14 = vld [vmem:[%s15049_s16 + $0xe90] sm:$0xf]  ;;  %v10815_v24 = vor.u32 %v13977_v23, %v10814_v48  ;;  %7532 = vmatpush.bf16.msrb.mxu1 %v10559_v37 }
 0x445   : > { %v14041_v12 = vld [vmem:[%s15049_s16 + $0xeac] sm:$0xf0] }
 0x446   : > { %v10270_v7 = vld [vmem:[%s15049_s16 + $0x850] sm:$0xf]  ;;  %v11071_v63 = vor.u32 %v14041_v12, %v11070_v14  ;;  %7546 = vmatpush.bf16.msrb.mxu2 %v10815_v24 }
 0x447   : > { %v13841_v18 = vld [vmem:[%s15049_s16 + $0x86c] sm:$0xf0] }
 0x448   : > { %v10526_v49 = vld [vmem:[%s15049_s16 + $0xa50] sm:$0xf]  ;;  %v10271_v21 = vor.u32 %v13841_v18, %v10270_v7  ;;  %7560 = vmatpush.bf16.msrb.mxu3 %v11071_v63 }
 0x449   : > { %v13905_v60 = vld [vmem:[%s15049_s16 + $0xa6c] sm:$0xf0] }
 0x44a   : > { %v10782_v55 = vld [vmem:[%s15049_s16 + $0xc50] sm:$0xf]  ;;  %v10527_v14 = vor.u32 %v13905_v60, %v10526_v49  ;;  %7519 = vmatpush.bf16.msrb.mxu0 %v10271_v21 }
 0x44b   : > { %v13969_v4 = vld [vmem:[%s15049_s16 + $0xc6c] sm:$0xf0] }
 0x44c   : > { %v11038_v62 = vld [vmem:[%s15049_s16 + $0xe50] sm:$0xf]  ;;  %v10783_v9 = vor.u32 %v13969_v4, %v10782_v55  ;;  %7533 = vmatpush.bf16.msrb.mxu1 %v10527_v14 }
 0x44d   : > { %v14033_v26 = vld [vmem:[%s15049_s16 + $0xe6c] sm:$0xf0] }
 0x44e   : > { %v10238_v45 = vld [vmem:[%s15049_s16 + $0x810] sm:$0xf]  ;;  %v11039_v23 = vor.u32 %v14033_v26, %v11038_v62  ;;  %7547 = vmatpush.bf16.msrb.mxu2 %v10783_v9 }
 0x44f   : > { %v13833_v53 = vld [vmem:[%s15049_s16 + $0x82c] sm:$0xf0] }
 0x450   : > { %v10494_v30 = vld [vmem:[%s15049_s16 + $0xa10] sm:$0xf]  ;;  %v10239_v37 = vor.u32 %v13833_v53, %v10238_v45  ;;  %7561 = vmatpush.bf16.msrb.mxu3 %v11039_v23 }
 0x451   : > { %v13897_v16 = vld [vmem:[%s15049_s16 + $0xa2c] sm:$0xf0] }
 0x452   : > { %v10750_v48 = vld [vmem:[%s15049_s16 + $0xc10] sm:$0xf]  ;;  %v10495_v63 = vor.u32 %v13897_v16, %v10494_v30  ;;  %7520 = vmatpush.bf16.msrb.mxu0 %v10239_v37 }
 0x453   : > { %v13961_v12 = vld [vmem:[%s15049_s16 + $0xc2c] sm:$0xf0] }
 0x454   : > { %v11006_v5 = vld [vmem:[%s15049_s16 + $0xe10] sm:$0xf]  ;;  %v10751_v55 = vor.u32 %v13961_v12, %v10750_v48  ;;  %7534 = vmatpush.bf16.msrb.mxu1 %v10495_v63 }
 0x455   : > { %v14025_v59 = vld [vmem:[%s15049_s16 + $0xe2c] sm:$0xf0]  ;;  %7521 = vmatmul.bf16.vlgmr.msrb.gmra.mxu0 %v15214_v39 }
 0x456   : > { %v11486_v61 = vld [vmem:[%s15049_s16 + $0x11d0] sm:$0xf]  ;;  %v11007_v26 = vor.u32 %v14025_v59, %v11006_v5  ;;  %7548 = vmatpush.bf16.msrb.mxu2 %v10751_v55  ;;  %v16483_v5 = vpop.f32.mrf.mxu1 }
 0x457   : > { %v14145_v7 = vld [vmem:[%s15049_s16 + $0x11ec] sm:$0xf0]  ;;  %7535 = vmatmul.bf16.vlgmr.msrb.gmra.mxu1 %v15221_v44 }
 0x458   : > { %v11742_v18 = vld [vmem:[%s15049_s16 + $0x13d0] sm:$0xf]  ;;  %v11487_v21 = vor.u32 %v14145_v7, %v11486_v61  ;;  %7562 = vmatpush.bf16.msrb.mxu3 %v11007_v26 }
 0x459   : > { %v14209_v24 = vld [vmem:[%s15049_s16 + $0x13ec] sm:$0xf0]  ;;  %7549 = vmatmul.bf16.vlgmr.msrb.gmra.mxu2 %v15219_v43 }
 0x45a   : > { %v11998_v49 = vld [vmem:[%s15049_s16 + $0x15d0] sm:$0xf]  ;;  %v11743_v45 = vor.u32 %v14209_v24, %v11742_v18  ;;  %7569 = vmatpush.bf16.msra.mxu0 %v11487_v21 }
 0x45b   : > { %v14273_v60 = vld [vmem:[%s15049_s16 + $0x15ec] sm:$0xf0]  ;;  %7563 = vmatmul.bf16.vlgmr.msrb.gmra.mxu3 %v15225_v47 }
 0x45c   : > { %v12254_v4 = vld [vmem:[%s15049_s16 + $0x17d0] sm:$0xf]  ;;  %v11999_v53 = vor.u32 %v14273_v60, %v11998_v49  ;;  %7583 = vmatpush.bf16.msra.mxu1 %v11743_v45 }
 0x45d   : > { %v14337_v62 = vld [vmem:[%s15049_s16 + $0x17ec] sm:$0xf0] }
 0x45e   : > { %v11454_v8 = vld [vmem:[%s15049_s16 + $0x1190] sm:$0xf]  ;;  %v12255_v9 = vor.u32 %v14337_v62, %v12254_v4  ;;  %7597 = vmatpush.bf16.msra.mxu2 %v11999_v53  ;;  %v16497_v62 = vpop.f32.mrf.mxu2 }
 0x45f   : > { %v14137_v2 = vld [vmem:[%s15049_s16 + $0x11ac] sm:$0xf0] }
 0x460   : > { %v11710_v14 = vld [vmem:[%s15049_s16 + $0x1390] sm:$0xf]  ;;  %v11455_v59 = vor.u32 %v14137_v2, %v11454_v8  ;;  %7611 = vmatpush.bf16.msra.mxu3 %v12255_v9 }
 0x461   : > { %v14201_v30 = vld [vmem:[%s15049_s16 + $0x13ac] sm:$0xf0] }
 0x462   : > { %v11966_v16 = vld [vmem:[%s15049_s16 + $0x1590] sm:$0xf]  ;;  %v11711_v61 = vor.u32 %v14201_v30, %v11710_v14  ;;  %7570 = vmatpush.bf16.msra.mxu0 %v11455_v59  ;;  %v16502_v30 = vpop.f32.mrf.mxu3 }
 0x463   : > { %v14265_v48 = vld [vmem:[%s15049_s16 + $0x15ac] sm:$0xf0] }
 0x464   : > { %v12222_v23 = vld [vmem:[%s15049_s16 + $0x1790] sm:$0xf]  ;;  %v11967_v7 = vor.u32 %v14265_v48, %v11966_v16  ;;  %7584 = vmatpush.bf16.msra.mxu1 %v11711_v61 }
 0x465   : > { %v14329_v12 = vld [vmem:[%s15049_s16 + $0x17ac] sm:$0xf0] }
 0x466   : > { %v11422_v18 = vld [vmem:[%s15049_s16 + $0x1150] sm:$0xf]  ;;  %v12223_v49 = vor.u32 %v14329_v12, %v12222_v23  ;;  %7598 = vmatpush.bf16.msra.mxu2 %v11967_v7  ;;  %v7298_v12 = vpop.f32.mrf.mxu0 }
 0x467   : > { %v14129_v37 = vld [vmem:[%s15049_s16 + $0x116c] sm:$0xf0]  ;;  %v7299_v7 = vadd.f32 %v7298_v12, %v16450_v29  ;;  %v7326_v12 = vpop.f32.mrf.mxu2 }
 0x468   : > { %v11678_v24 = vld [vmem:[%s15049_s16 + $0x1350] sm:$0xf]  ;;  %v11423_v4 = vor.u32 %v14129_v37, %v11422_v18  ;;  %7612 = vmatpush.bf16.msra.mxu3 %v12223_v49  ;;  %v7312_v49 = vpop.f32.mrf.mxu1 }
 0x469   : > { %v14193_v60 = vld [vmem:[%s15049_s16 + $0x136c] sm:$0xf0] }
 0x46a   : > { %v11934_v63 = vld [vmem:[%s15049_s16 + $0x1550] sm:$0xf]  ;;  %v11679_v26 = vor.u32 %v14193_v60, %v11678_v24  ;;  %7571 = vmatpush.bf16.msra.mxu0 %v11423_v4 }
 0x46b   : > { %v14257_v55 = vld [vmem:[%s15049_s16 + $0x156c] sm:$0xf0] }
 0x46c   : > { %v12190_v2 = vld [vmem:[%s15049_s16 + $0x1750] sm:$0xf]  ;;  %v11935_v21 = vor.u32 %v14257_v55, %v11934_v63  ;;  %7585 = vmatpush.bf16.msra.mxu1 %v11679_v26 }
 0x46d   : > { %v14321_v8 = vld [vmem:[%s15049_s16 + $0x176c] sm:$0xf0] }
 0x46e   : > { %v11390_v45 = vld [vmem:[%s15049_s16 + $0x1110] sm:$0xf]  ;;  %v12191_v9 = vor.u32 %v14321_v8, %v12190_v2  ;;  %7599 = vmatpush.bf16.msra.mxu2 %v11935_v21  ;;  %v7313_v8 = vadd.f32 %v7312_v49, %v7299_v7 }
 0x46f   : > { %v14121_v53 = vld [vmem:[%s15049_s16 + $0x112c] sm:$0xf0] }
 0x470   : > { %v11646_v14 = vld [vmem:[%s15049_s16 + $0x1310] sm:$0xf]  ;;  %v11391_v18 = vor.u32 %v14121_v53, %v11390_v45  ;;  %7613 = vmatpush.bf16.msra.mxu3 %v12191_v9 }
 0x471   : > { %v14185_v16 = vld [vmem:[%s15049_s16 + $0x132c] sm:$0xf0] }
 0x472   : > { %v11902_v48 = vld [vmem:[%s15049_s16 + $0x1510] sm:$0xf]  ;;  %v11647_v37 = vor.u32 %v14185_v16, %v11646_v14  ;;  %7572 = vmatpush.bf16.msra.mxu0 %v11391_v18  ;;  %v7327_v18 = vadd.f32 %v7326_v12, %v7313_v8 }
 0x473   : > { %v14249_v23 = vld [vmem:[%s15049_s16 + $0x152c] sm:$0xf0] }
 0x474   : > { %v12158_v59 = vld [vmem:[%s15049_s16 + $0x1710] sm:$0xf]  ;;  %v11903_v24 = vor.u32 %v14249_v23, %v11902_v48  ;;  %7586 = vmatpush.bf16.msra.mxu1 %v11647_v37 }
 0x475   : > { %v14313_v61 = vld [vmem:[%s15049_s16 + $0x172c] sm:$0xf0] }
 0x476   : > { %v11358_v60 = vld [vmem:[%s15049_s16 + $0x10d0] sm:$0xf]  ;;  %v12159_v2 = vor.u32 %v14313_v61, %v12158_v59  ;;  %7600 = vmatpush.bf16.msra.mxu2 %v11903_v24 }
 0x477   : > { %v14113_v63 = vld [vmem:[%s15049_s16 + $0x10ec] sm:$0xf0] }
 0x478   : > { %v11614_v55 = vld [vmem:[%s15049_s16 + $0x12d0] sm:$0xf]  ;;  %v11359_v21 = vor.u32 %v14113_v63, %v11358_v60  ;;  %7614 = vmatpush.bf16.msra.mxu3 %v12159_v2 }
 0x479   : > { %v14177_v4 = vld [vmem:[%s15049_s16 + $0x12ec] sm:$0xf0] }
 0x47a   : > { %v11870_v25 = vld [vmem:[%s15049_s16 + $0x14d0] sm:$0xf]  ;;  %v11615_v53 = vor.u32 %v14177_v4, %v11614_v55  ;;  %7573 = vmatpush.bf16.msra.mxu0 %v11359_v21 }
 0x47b   : > { %v14241_v29 = vld [vmem:[%s15049_s16 + $0x14ec] sm:$0xf0] }
 0x47c   : > { %v12126_v45 = vld [vmem:[%s15049_s16 + $0x16d0] sm:$0xf]  ;;  %v11871_v14 = vor.u32 %v14241_v29, %v11870_v25  ;;  %v7340_v25 = vpop.f32.mrf.mxu3  ;;  %7587 = vmatpush.bf16.msra.mxu1 %v11615_v53 }
 0x47d   : > { %v14305_v26 = vld [vmem:[%s15049_s16 + $0x16ec] sm:$0xf0]  ;;  %v16526_v60 = vadd.f32 %v7340_v25, %v7327_v18 }
 0x47e   : > { %v11326_v9 = vld [vmem:[%s15049_s16 + $0x1090] sm:$0xf]  ;;  %v12127_v23 = vor.u32 %v14305_v26, %v12126_v45  ;;  %7601 = vmatpush.bf16.msra.mxu2 %v11871_v14 }
 0x47f   : > { %v14105_v16 = vld [vmem:[%s15049_s16 + $0x10ac] sm:$0xf0] }
 0x480   : > { %v11582_v48 = vld [vmem:[%s15049_s16 + $0x1290] sm:$0xf]  ;;  %v11327_v24 = vor.u32 %v14105_v16, %v11326_v9  ;;  %7615 = vmatpush.bf16.msra.mxu3 %v12127_v23 }
 0x481   : > { %v14169_v59 = vld [vmem:[%s15049_s16 + $0x12ac] sm:$0xf0] }
 0x482   : > { %v11838_v61 = vld [vmem:[%s15049_s16 + $0x1490] sm:$0xf]  ;;  %v11583_v63 = vor.u32 %v14169_v59, %v11582_v48  ;;  %7574 = vmatpush.bf16.msra.mxu0 %v11327_v24 }
 0x483   : > { %v14233_v7 = vld [vmem:[%s15049_s16 + $0x14ac] sm:$0xf0] }
 0x484   : > { %v12094_v49 = vld [vmem:[%s15049_s16 + $0x1690] sm:$0xf]  ;;  %v11839_v55 = vor.u32 %v14233_v7, %v11838_v61  ;;  %7588 = vmatpush.bf16.msra.mxu1 %v11583_v63 }
 0x485   : > { %v14297_v37 = vld [vmem:[%s15049_s16 + $0x16ac] sm:$0xf0] }
 0x486   : > { %v11294_v2 = vld [vmem:[%s15049_s16 + $0x1050] sm:$0xf]  ;;  %v12095_v29 = vor.u32 %v14297_v37, %v12094_v49  ;;  %7602 = vmatpush.bf16.msra.mxu2 %v11839_v55 }
 0x487   : > { %v14097_v8 = vld [vmem:[%s15049_s16 + $0x106c] sm:$0xf0] }
 0x488   : > { %v11550_v4 = vld [vmem:[%s15049_s16 + $0x1250] sm:$0xf]  ;;  %v11295_v9 = vor.u32 %v14097_v8, %v11294_v2  ;;  %7616 = vmatpush.bf16.msra.mxu3 %v12095_v29 }
 0x489   : > { %v14161_v45 = vld [vmem:[%s15049_s16 + $0x126c] sm:$0xf0] }
 0x48a   : > { %v11806_v26 = vld [vmem:[%s15049_s16 + $0x1450] sm:$0xf]  ;;  %v11551_v23 = vor.u32 %v14161_v45, %v11550_v4  ;;  %7575 = vmatpush.bf16.msra.mxu0 %v11295_v9 }
 0x48b   : > { %v14225_v21 = vld [vmem:[%s15049_s16 + $0x146c] sm:$0xf0] }
 0x48c   : > { %v12062_v53 = vld [vmem:[%s15049_s16 + $0x1650] sm:$0xf]  ;;  %v11807_v12 = vor.u32 %v14225_v21, %v11806_v26  ;;  %7589 = vmatpush.bf16.msra.mxu1 %v11551_v23 }
 0x48d   : > { %v14289_v14 = vld [vmem:[%s15049_s16 + $0x166c] sm:$0xf0] }
 0x48e   : > { %v11262_v16 = vld [vmem:[%s15049_s16 + $0x1010] sm:$0xf]  ;;  %v12063_v18 = vor.u32 %v14289_v14, %v12062_v53  ;;  %7603 = vmatpush.bf16.msra.mxu2 %v11807_v12 }
 0x48f   : > { %v14089_v48 = vld [vmem:[%s15049_s16 + $0x102c] sm:$0xf0] }
 0x490   : > { %v11518_v59 = vld [vmem:[%s15049_s16 + $0x1210] sm:$0xf]  ;;  %v11263_v63 = vor.u32 %v14089_v48, %v11262_v16  ;;  %7617 = vmatpush.bf16.msra.mxu3 %v12063_v18 }
 0x491   : > { %v14153_v61 = vld [vmem:[%s15049_s16 + $0x122c] sm:$0xf0] }
 0x492   : > { %v11774_v7 = vld [vmem:[%s15049_s16 + $0x1410] sm:$0xf]  ;;  %v11519_v29 = vor.u32 %v14153_v61, %v11518_v59  ;;  %7576 = vmatpush.bf16.msra.mxu0 %v11263_v63  ;;  %v16558_v61 = vpop.f32.mrf.mxu0 }
 0x493   : > { %v14217_v49 = vld [vmem:[%s15049_s16 + $0x142c] sm:$0xf0]  ;;  %17849 = vst [vmem:[#allocation52_spill] sm:$0xff] %v16558_v61  ;;  %v9664_v61 = vld [vmem:[%s15049_s16 + $0x3b0] sm:$0xf0] }
 0x494   : > { %v12030_v37 = vld [vmem:[%s15049_s16 + $0x1610] sm:$0xf]  ;;  %v11775_v26 = vor.u32 %v14217_v49, %v11774_v7  ;;  %7590 = vmatpush.bf16.msra.mxu1 %v11519_v29  ;;  %v16562_v49 = vpop.f32.mrf.mxu1 }
 0x495   : > { %v14281_v25 = vld [vmem:[%s15049_s16 + $0x162c] sm:$0xf0]  ;;  %17850 = vst [vmem:[#allocation53_spill] sm:$0xff] %v16562_v49  ;;  %7577 = vmatmul.bf16.vlgmr.msra.gmra.mxu0 %v15290_v31  ;;  %v13685_v49 = vld [vmem:[%s15049_s16 + $0x394] sm:$0xf] }
 0x496   : > { %v12510_v24 = vld [vmem:[%s15049_s16 + $0x19d0] sm:$0xf]  ;;  %v12031_v14 = vor.u32 %v14281_v25, %v12030_v37  ;;  %7604 = vmatpush.bf16.msra.mxu2 %v11775_v26  ;;  %v12479_v37 = vor.u32 %v14393_v0, %v12478_v22  ;;  %v12735_v25 = vor.u32 %v14457_v34, %v12734_v33 }
 0x497   : > { %v14401_v2 = vld [vmem:[%s15049_s16 + $0x19ec] sm:$0xf0]  ;;  %7591 = vmatmul.bf16.vlgmr.msra.gmra.mxu1 %v15297_v36 }
 0x498   : > { %v12766_v8 = vld [vmem:[%s15049_s16 + $0x1bd0] sm:$0xf]  ;;  %v12511_v9 = vor.u32 %v14401_v2, %v12510_v24  ;;  %7618 = vmatpush.bf16.msra.mxu3 %v12031_v14 }
 0x499   : > { %v14465_v55 = vld [vmem:[%s15049_s16 + $0x1bec] sm:$0xf0]  ;;  %7605 = vmatmul.bf16.vlgmr.msra.gmra.mxu2 %v15295_v35 }
 0x49a   : > { %v13022_v4 = vld [vmem:[%s15049_s16 + $0x1dd0] sm:$0xf]  ;;  %v12767_v16 = vor.u32 %v14465_v55, %v12766_v8  ;;  %7625 = vmatpush.bf16.msrb.mxu0 %v12511_v9  ;;  %v16579_v9 = vpop.f32.mrf.mxu2 }
 0x49b   : > { %v14529_v45 = vld [vmem:[%s15049_s16 + $0x1dec] sm:$0xf0]  ;;  %7619 = vmatmul.bf16.vlgmr.msra.gmra.mxu3 %v15301_v40  ;;  %17851 = vst [vmem:[#allocation54_spill] sm:$0xff] %v16579_v9  ;;  %v9408_v9 = vld [vmem:[%s15049_s16 + $0x1b0] sm:$0xf0] }
 0x49c   : > { %v13278_v21 = vld [vmem:[%s15049_s16 + $0x1fd0] sm:$0xf]  ;;  %v13023_v48 = vor.u32 %v14529_v45, %v13022_v4  ;;  %7639 = vmatpush.bf16.msrb.mxu1 %v12767_v16 }
 0x49d   : > { %v14593_v53 = vld [vmem:[%s15049_s16 + $0x1fec] sm:$0xf0] }
 0x49e   : > { %v13279_v23 = vor.u32 %v14593_v53, %v13278_v21  ;;  %v12990_v12 = vld [vmem:[%s15049_s16 + $0x1d90] sm:$0xf]  ;;  %7653 = vmatpush.bf16.msrb.mxu2 %v13023_v48  ;;  %7626 = vmatpush.bf16.msrb.mxu0 %v12479_v37 }
 0x49f   : > { %v14521_v59 = vld [vmem:[%s15049_s16 + $0x1dac] sm:$0xf0] }
 0x4a0   : > { %v13246_v7 = vld [vmem:[%s15049_s16 + $0x1f90] sm:$0xf]  ;;  %v12991_v24 = vor.u32 %v14521_v59, %v12990_v12  ;;  %7667 = vmatpush.bf16.msrb.mxu3 %v13279_v23  ;;  %7640 = vmatpush.bf16.msrb.mxu1 %v12735_v25  ;;  %v16584_v59 = vpop.f32.mrf.mxu3 }
 0x4a1   : > { %v14585_v18 = vld [vmem:[%s15049_s16 + $0x1fac] sm:$0xf0]  ;;  %17852 = vst [vmem:[#allocation55_spill] sm:$0xff] %v16584_v59  ;;  %v13621_v59 = vld [vmem:[%s15049_s16 + $0x194] sm:$0xf] }
 0x4a2   : > { %v12446_v2 = vld [vmem:[%s15049_s16 + $0x1950] sm:$0xf]  ;;  %v13247_v55 = vor.u32 %v14585_v18, %v13246_v7  ;;  %7654 = vmatpush.bf16.msrb.mxu2 %v12991_v24  ;;  %v7354_v7 = vpop.f32.mrf.mxu0 }
 0x4a3   : > { %v14385_v8 = vld [vmem:[%s15049_s16 + $0x196c] sm:$0xf0]  ;;  %v7355_v25 = vadd.f32 %v7354_v7, %v16526_v60  ;;  %v7382_v7 = vpop.f32.mrf.mxu2 }
 0x4a4   : > { %v12702_v63 = vld [vmem:[%s15049_s16 + $0x1b50] sm:$0xf]  ;;  %v12447_v22 = vor.u32 %v14385_v8, %v12446_v2  ;;  %7668 = vmatpush.bf16.msrb.mxu3 %v13247_v55  ;;  %v7368_v2 = vpop.f32.mrf.mxu1 }
 0x4a5   : > { %v14449_v4 = vld [vmem:[%s15049_s16 + $0x1b6c] sm:$0xf0] }
 0x4a6   : > { %v12958_v45 = vld [vmem:[%s15049_s16 + $0x1d50] sm:$0xf]  ;;  %v12703_v34 = vor.u32 %v14449_v4, %v12702_v63  ;;  %7627 = vmatpush.bf16.msrb.mxu0 %v12447_v22 }
 0x4a7   : > { %v14513_v29 = vld [vmem:[%s15049_s16 + $0x1d6c] sm:$0xf0] }
 0x4a8   : > { %v13214_v33 = vld [vmem:[%s15049_s16 + $0x1f50] sm:$0xf]  ;;  %v12959_v26 = vor.u32 %v14513_v29, %v12958_v45  ;;  %7641 = vmatpush.bf16.msrb.mxu1 %v12703_v34 }
 0x4a9   : > { %v14577_v0 = vld [vmem:[%s15049_s16 + $0x1f6c] sm:$0xf0] }
 0x4aa   : > { %v12414_v21 = vld [vmem:[%s15049_s16 + $0x1910] sm:$0xf]  ;;  %v13215_v16 = vor.u32 %v14577_v0, %v13214_v33  ;;  %7655 = vmatpush.bf16.msrb.mxu2 %v12959_v26  ;;  %v7369_v33 = vadd.f32 %v7368_v2, %v7355_v25  ;;  %v7396_v2 = vpop.f32.mrf.mxu3 }
 0x4ab   : > { %v14377_v53 = vld [vmem:[%s15049_s16 + $0x192c] sm:$0xf0] }
 0x4ac   : > { %v12670_v14 = vld [vmem:[%s15049_s16 + $0x1b10] sm:$0xf]  ;;  %v12415_v24 = vor.u32 %v14377_v53, %v12414_v21  ;;  %7669 = vmatpush.bf16.msrb.mxu3 %v13215_v16 }
 0x4ad   : > { %v14441_v48 = vld [vmem:[%s15049_s16 + $0x1b2c] sm:$0xf0] }
 0x4ae   : > { %v12926_v23 = vld [vmem:[%s15049_s16 + $0x1d10] sm:$0xf]  ;;  %v12671_v8 = vor.u32 %v14441_v48, %v12670_v14  ;;  %7628 = vmatpush.bf16.msrb.mxu0 %v12415_v24  ;;  %v7383_v24 = vadd.f32 %v7382_v7, %v7369_v33 }
 0x4af   : > { %v14505_v12 = vld [vmem:[%s15049_s16 + $0x1d2c] sm:$0xf0] }
 0x4b0   : > { %v13182_v18 = vld [vmem:[%s15049_s16 + $0x1f10] sm:$0xf]  ;;  %v12927_v63 = vor.u32 %v14505_v12, %v12926_v23  ;;  %7642 = vmatpush.bf16.msrb.mxu1 %v12671_v8 }
 0x4b1   : > { %v14569_v37 = vld [vmem:[%s15049_s16 + $0x1f2c] sm:$0xf0] }
 0x4b2   : > { %v12382_v55 = vld [vmem:[%s15049_s16 + $0x18d0] sm:$0xf]  ;;  %v13183_v29 = vor.u32 %v14569_v37, %v13182_v18  ;;  %7656 = vmatpush.bf16.msrb.mxu2 %v12927_v63 }
 0x4b3   : > { %v14369_v4 = vld [vmem:[%s15049_s16 + $0x18ec] sm:$0xf0] }
 0x4b4   : > { %v12638_v45 = vld [vmem:[%s15049_s16 + $0x1ad0] sm:$0xf]  ;;  %v12383_v26 = vor.u32 %v14369_v4, %v12382_v55  ;;  %7670 = vmatpush.bf16.msrb.mxu3 %v13183_v29  ;;  %v16605_v4 = vadd.f32 %v7396_v2, %v7383_v24 }
 0x4b5   : > { %v14433_v0 = vld [vmem:[%s15049_s16 + $0x1aec] sm:$0xf0] }
 0x4b6   : > { %v12894_v22 = vld [vmem:[%s15049_s16 + $0x1cd0] sm:$0xf]  ;;  %v12639_v53 = vor.u32 %v14433_v0, %v12638_v45  ;;  %7629 = vmatpush.bf16.msrb.mxu0 %v12383_v26 }
 0x4b7   : > { %v14497_v60 = vld [vmem:[%s15049_s16 + $0x1cec] sm:$0xf0] }
 0x4b8   : > { %v13150_v21 = vld [vmem:[%s15049_s16 + $0x1ed0] sm:$0xf]  ;;  %v12895_v14 = vor.u32 %v14497_v60, %v12894_v22  ;;  %7643 = vmatpush.bf16.msrb.mxu1 %v12639_v53 }
 0x4b9   : > { %v14561_v34 = vld [vmem:[%s15049_s16 + $0x1eec] sm:$0xf0] }
 0x4ba   : > { %v12350_v16 = vld [vmem:[%s15049_s16 + $0x1890] sm:$0xf]  ;;  %v13151_v12 = vor.u32 %v14561_v34, %v13150_v21  ;;  %7657 = vmatpush.bf16.msrb.mxu2 %v12895_v14 }
 0x4bb   : > { %v14361_v48 = vld [vmem:[%s15049_s16 + $0x18ac] sm:$0xf0] }
 0x4bc   : > { %v12606_v23 = vld [vmem:[%s15049_s16 + $0x1a90] sm:$0xf]  ;;  %v12351_v55 = vor.u32 %v14361_v48, %v12350_v16  ;;  %7671 = vmatpush.bf16.msrb.mxu3 %v13151_v12 }
 0x4bd   : > { %v14425_v18 = vld [vmem:[%s15049_s16 + $0x1aac] sm:$0xf0] }
 0x4be   : > { %v12862_v37 = vld [vmem:[%s15049_s16 + $0x1c90] sm:$0xf]  ;;  %v12607_v45 = vor.u32 %v14425_v18, %v12606_v23  ;;  %7630 = vmatpush.bf16.msrb.mxu0 %v12351_v55  ;;  %v13629_v55 = vld [vmem:[%s15049_s16 + $0x1d4] sm:$0xf] }
 0x4bf   : > { %v14489_v25 = vld [vmem:[%s15049_s16 + $0x1cac] sm:$0xf0] }
 0x4c0   : > { %v13118_v8 = vld [vmem:[%s15049_s16 + $0x1e90] sm:$0xf]  ;;  %v12863_v29 = vor.u32 %v14489_v25, %v12862_v37  ;;  %7644 = vmatpush.bf16.msrb.mxu1 %v12607_v45 }
 0x4c1   : > { %v14553_v63 = vld [vmem:[%s15049_s16 + $0x1eac] sm:$0xf0] }
 0x4c2   : > { %v12318_v0 = vld [vmem:[%s15049_s16 + $0x1850] sm:$0xf]  ;;  %v13119_v60 = vor.u32 %v14553_v63, %v13118_v8  ;;  %7658 = vmatpush.bf16.msrb.mxu2 %v12863_v29  ;;  %v9696_v29 = vld [vmem:[%s15049_s16 + $0x3f0] sm:$0xf0] }
 0x4c3   : > { %v14353_v33 = vld [vmem:[%s15049_s16 + $0x186c] sm:$0xf0] }
 0x4c4   : > { %v12574_v22 = vld [vmem:[%s15049_s16 + $0x1a50] sm:$0xf]  ;;  %v12319_v16 = vor.u32 %v14353_v33, %v12318_v0  ;;  %7672 = vmatpush.bf16.msrb.mxu3 %v13119_v60  ;;  %v9440_v0 = vld [vmem:[%s15049_s16 + $0x1f0] sm:$0xf0] }
 0x4c5   : > { %v14417_v21 = vld [vmem:[%s15049_s16 + $0x1a6c] sm:$0xf0]  ;;  %v13693_v33 = vld [vmem:[%s15049_s16 + $0x3d4] sm:$0xf] }
 0x4c6   : > { %v12830_v34 = vld [vmem:[%s15049_s16 + $0x1c50] sm:$0xf]  ;;  %v12575_v12 = vor.u32 %v14417_v21, %v12574_v22  ;;  %7631 = vmatpush.bf16.msrb.mxu0 %v12319_v16  ;;  %v13757_v22 = vld [vmem:[%s15049_s16 + $0x5d4] sm:$0xf]  ;;  %v9443_v16 = vor.u32 %v13629_v55, %v9440_v0 }
 0x4c7   : > { %v14481_v26 = vld [vmem:[%s15049_s16 + $0x1c6c] sm:$0xf0]  ;;  %v9952_v21 = vld [vmem:[%s15049_s16 + $0x5f0] sm:$0xf0] }
 0x4c8   : > { %v13086_v53 = vld [vmem:[%s15049_s16 + $0x1e50] sm:$0xf]  ;;  %v12831_v7 = vor.u32 %v14481_v26, %v12830_v34  ;;  %7645 = vmatpush.bf16.msrb.mxu1 %v12575_v12  ;;  %v13821_v26 = vld [vmem:[%s15049_s16 + $0x7d4] sm:$0xf] }
 0x4c9   : > { %v14545_v14 = vld [vmem:[%s15049_s16 + $0x1e6c] sm:$0xf0]  ;;  %v13613_v0 = vld [vmem:[%s15049_s16 + $0x154] sm:$0xf] }
 0x4ca   : > { %v12286_v48 = vld [vmem:[%s15049_s16 + $0x1810] sm:$0xf]  ;;  %v13087_v24 = vor.u32 %v14545_v14, %v13086_v53  ;;  %7659 = vmatpush.bf16.msrb.mxu2 %v12831_v7  ;;  %v10208_v53 = vld [vmem:[%s15049_s16 + $0x7f0] sm:$0xf0] }
 0x4cb   : > { %v14345_v23 = vld [vmem:[%s15049_s16 + $0x182c] sm:$0xf0]  ;;  %v10211_v12 = vor.u32 %v13821_v26, %v10208_v53  ;;  %v13749_v7 = vld [vmem:[%s15049_s16 + $0x594] sm:$0xf] }
 0x4cc   : > { %v12542_v18 = vld [vmem:[%s15049_s16 + $0x1a10] sm:$0xf]  ;;  %v12287_v45 = vor.u32 %v14345_v23, %v12286_v48  ;;  %7673 = vmatpush.bf16.msrb.mxu3 %v13087_v24  ;;  %v9699_v48 = vor.u32 %v13693_v33, %v9696_v29  ;;  %v9955_v23 = vor.u32 %v13757_v22, %v9952_v21  ;;  %v10176_v24 = vld [vmem:[%s15049_s16 + $0x7b0] sm:$0xf0] }
 0x4cd   : > { %v14409_v37 = vld [vmem:[%s15049_s16 + $0x1a2c] sm:$0xf0]  ;;  %v9376_v33 = vld [vmem:[%s15049_s16 + $0x170] sm:$0xf0] }
 0x4ce   : > { %v12798_v25 = vld [vmem:[%s15049_s16 + $0x1c10] sm:$0xf]  ;;  %v12543_v60 = vor.u32 %v14409_v37, %v12542_v18  ;;  %7632 = vmatpush.bf16.msrb.mxu0 %v12287_v45  ;;  %v9920_v18 = vld [vmem:[%s15049_s16 + $0x5b0] sm:$0xf0]  ;;  %v16637_v37 = vpop.f32.mrf.mxu0 }
 0x4cf   : > { %v14473_v2 = vld [vmem:[%s15049_s16 + $0x1c2c] sm:$0xf0]  ;;  %17853 = vst [vmem:[#allocation56_spill] sm:$0xff] %v16637_v37  ;;  %v9923_v55 = vor.u32 %v13749_v7, %v9920_v18  ;;  %v13677_v45 = vld [vmem:[%s15049_s16 + $0x354] sm:$0xf]  ;;  %v16663_v18 = vpop.f32.mrf.mxu3 }
 0x4d0   : > { %v13054_v8 = vld [vmem:[%s15049_s16 + $0x1e10] sm:$0xf]  ;;  %v12799_v34 = vor.u32 %v14473_v2, %v12798_v25  ;;  %7646 = vmatpush.bf16.msrb.mxu1 %v12543_v60  ;;  %v13813_v25 = vld [vmem:[%s15049_s16 + $0x794] sm:$0xf]  ;;  %v16641_v2 = vpop.f32.mrf.mxu1  ;;  %17856 = vst [vmem:[#allocation59_spill] sm:$0xff] %v16663_v18 }
 0x4d1   : > { %v14537_v63 = vld [vmem:[%s15049_s16 + $0x1e2c] sm:$0xf0]  ;;  %17854 = vst [vmem:[#allocation57_spill] sm:$0xff] %v16641_v2  ;;  %7633 = vmatmul.bf16.vlgmr.msrb.gmra.mxu0 %v15366_v32  ;;  %v10179_v29 = vor.u32 %v13813_v25, %v10176_v24  ;;  %v9632_v22 = vld [vmem:[%s15049_s16 + $0x370] sm:$0xf0] }
 0x4d2   : > { %v13055_v14 = vor.u32 %v14537_v63, %v13054_v8  ;;  %7660 = vmatpush.bf16.msrb.mxu2 %v12799_v34  ;;  %7681 = vmatpush.bf16.msra.mxu0 %v9443_v16  ;;  %v9411_v8 = vor.u32 %v13621_v59, %v9408_v9  ;;  %v9667_v63 = vor.u32 %v13685_v49, %v9664_v61  ;;  %v13741_v21 = vld [vmem:[%s15049_s16 + $0x554] sm:$0xf]  ;;  %v16658_v16 = vpop.f32.mrf.mxu2 }
 0x4d3   : > { %v9888_v60 = vld [vmem:[%s15049_s16 + $0x570] sm:$0xf0]  ;;  %7647 = vmatmul.bf16.vlgmr.msrb.gmra.mxu1 %v15373_v41  ;;  %v9379_v9 = vor.u32 %v13613_v0, %v9376_v33  ;;  %v9635_v59 = vor.u32 %v13677_v45, %v9632_v22  ;;  %17855 = vst [vmem:[#allocation58_spill] sm:$0xff] %v16658_v16 }
 0x4d4   : > { %7674 = vmatpush.bf16.msrb.mxu3 %v13055_v14  ;;  %7695 = vmatpush.bf16.msra.mxu1 %v9699_v48  ;;  %v13805_v61 = vld [vmem:[%s15049_s16 + $0x754] sm:$0xf]  ;;  %v9891_v34 = vor.u32 %v13741_v21, %v9888_v60 }
 0x4d5   : > { %7661 = vmatmul.bf16.vlgmr.msrb.gmra.mxu2 %v15371_v38  ;;  %v10144_v49 = vld [vmem:[%s15049_s16 + $0x770] sm:$0xf0] }
 0x4d6   : > { %7709 = vmatpush.bf16.msra.mxu2 %v9955_v23  ;;  %7682 = vmatpush.bf16.msra.mxu0 %v9411_v8  ;;  %v13605_v26 = vld [vmem:[%s15049_s16 + $0x114] sm:$0xf]  ;;  %v10147_v48 = vor.u32 %v13805_v61, %v10144_v49  ;;  %v7410_v25 = vpop.f32.mrf.mxu0 }
 0x4d7   : > { %7675 = vmatmul.bf16.vlgmr.msrb.gmra.mxu3 %v15377_v46  ;;  %v9344_v53 = vld [vmem:[%s15049_s16 + $0x130] sm:$0xf0] }
 0x4d8   : > { %7723 = vmatpush.bf16.msra.mxu3 %v10211_v12  ;;  %7696 = vmatpush.bf16.msra.mxu1 %v9667_v63  ;;  %v13669_v14 = vld [vmem:[%s15049_s16 + $0x314] sm:$0xf]  ;;  %v7411_v63 = vadd.f32 %v7410_v25, %v16605_v4  ;;  %v7424_v0 = vpop.f32.mrf.mxu1 }
 0x4d9   : > { %v9600_v23 = vld [vmem:[%s15049_s16 + $0x330] sm:$0xf0] }
 0x4da   : > { %7710 = vmatpush.bf16.msra.mxu2 %v9923_v55  ;;  %v13733_v12 = vld [vmem:[%s15049_s16 + $0x514] sm:$0xf]  ;;  %7683 = vmatpush.bf16.msra.mxu0 %v9379_v9  ;;  %v9347_v55 = vor.u32 %v13605_v26, %v9344_v53  ;;  %v9603_v33 = vor.u32 %v13669_v14, %v9600_v23  ;;  %v7425_v61 = vadd.f32 %v7424_v0, %v7411_v63  ;;  %v7438_v25 = vpop.f32.mrf.mxu2  ;;  %v7452_v0 = vpop.f32.mrf.mxu3 }
 0x4db   : > { %v9856_v7 = vld [vmem:[%s15049_s16 + $0x530] sm:$0xf0] }
 0x4dc   : > { %7724 = vmatpush.bf16.msra.mxu3 %v10179_v29  ;;  %v13797_v24 = vld [vmem:[%s15049_s16 + $0x714] sm:$0xf]  ;;  %7697 = vmatpush.bf16.msra.mxu1 %v9635_v59  ;;  %v9859_v45 = vor.u32 %v13733_v12, %v9856_v7 }
 0x4dd   : > { %v10112_v8 = vld [vmem:[%s15049_s16 + $0x730] sm:$0xf0] }
 0x4de   : > { %7711 = vmatpush.bf16.msra.mxu2 %v9891_v34  ;;  %v13597_v29 = vld [vmem:[%s15049_s16 + $0xd4] sm:$0xf]  ;;  %v10115_v60 = vor.u32 %v13797_v24, %v10112_v8  ;;  %7684 = vmatpush.bf16.msra.mxu0 %v9347_v55  ;;  %v7439_v55 = vadd.f32 %v7438_v25, %v7425_v61 }
 0x4df   : > { %v9312_v22 = vld [vmem:[%s15049_s16 + $0xf0] sm:$0xf0] }
 0x4e0   : > { %v13661_v21 = vld [vmem:[%s15049_s16 + $0x2d4] sm:$0xf]  ;;  %7725 = vmatpush.bf16.msra.mxu3 %v10147_v48  ;;  %v9315_v34 = vor.u32 %v13597_v29, %v9312_v22  ;;  %7698 = vmatpush.bf16.msra.mxu1 %v9603_v33  ;;  %v16684_v22 = vadd.f32 %v7452_v0, %v7439_v55 }
 0x4e1   : > { %v9568_v49 = vld [vmem:[%s15049_s16 + $0x2f0] sm:$0xf0] }
 0x4e2   : > { %v13725_v9 = vld [vmem:[%s15049_s16 + $0x4d4] sm:$0xf]  ;;  %7712 = vmatpush.bf16.msra.mxu2 %v9859_v45  ;;  %v9571_v53 = vor.u32 %v13661_v21, %v9568_v49  ;;  %7685 = vmatpush.bf16.msra.mxu0 %v9315_v34  ;;  %17857 = vst [vmem:[#allocation60_spill] sm:$0xff] %v16684_v22 }
 0x4e3   : > { %v9824_v4 = vld [vmem:[%s15049_s16 + $0x4f0] sm:$0xf0] }
 0x4e4   : > { %v13789_v26 = vld [vmem:[%s15049_s16 + $0x6d4] sm:$0xf]  ;;  %v9827_v14 = vor.u32 %v13725_v9, %v9824_v4  ;;  %7726 = vmatpush.bf16.msra.mxu3 %v10115_v60  ;;  %7699 = vmatpush.bf16.msra.mxu1 %v9571_v53 }
 0x4e5   : > { %v10080_v59 = vld [vmem:[%s15049_s16 + $0x6f0] sm:$0xf0] }
 0x4e6   : > { %v13589_v48 = vld [vmem:[%s15049_s16 + $0x94] sm:$0xf]  ;;  %v10083_v7 = vor.u32 %v13789_v26, %v10080_v59  ;;  %7713 = vmatpush.bf16.msra.mxu2 %v9827_v14 }
 0x4e7   : > { %v9280_v23 = vld [vmem:[%s15049_s16 + $0xb0] sm:$0xf0] }
 0x4e8   : > { %v13653_v12 = vld [vmem:[%s15049_s16 + $0x294] sm:$0xf]  ;;  %v9283_v29 = vor.u32 %v13589_v48, %v9280_v23  ;;  %7727 = vmatpush.bf16.msra.mxu3 %v10083_v7 }
 0x4e9   : > { %v9536_v24 = vld [vmem:[%s15049_s16 + $0x2b0] sm:$0xf0] }
 0x4ea   : > { %v13717_v8 = vld [vmem:[%s15049_s16 + $0x494] sm:$0xf]  ;;  %v9539_v21 = vor.u32 %v13653_v12, %v9536_v24  ;;  %7686 = vmatpush.bf16.msra.mxu0 %v9283_v29 }
 0x4eb   : > { %v9792_v63 = vld [vmem:[%s15049_s16 + $0x4b0] sm:$0xf0] }
 0x4ec   : > { %v13781_v33 = vld [vmem:[%s15049_s16 + $0x694] sm:$0xf]  ;;  %v9795_v60 = vor.u32 %v13717_v8, %v9792_v63  ;;  %7700 = vmatpush.bf16.msra.mxu1 %v9539_v21 }
 0x4ed   : > { %v10048_v45 = vld [vmem:[%s15049_s16 + $0x6b0] sm:$0xf0] }
 0x4ee   : > { %v13581_v49 = vld [vmem:[%s15049_s16 + $0x54] sm:$0xf]  ;;  %v10051_v4 = vor.u32 %v13781_v33, %v10048_v45  ;;  %7714 = vmatpush.bf16.msra.mxu2 %v9795_v60 }
 0x4ef   : > { %v9248_v61 = vld [vmem:[%s15049_s16 + $0x70] sm:$0xf0] }
 0x4f0   : > { %v13645_v9 = vld [vmem:[%s15049_s16 + $0x254] sm:$0xf]  ;;  %v9251_v48 = vor.u32 %v13581_v49, %v9248_v61  ;;  %7728 = vmatpush.bf16.msra.mxu3 %v10051_v4 }
 0x4f1   : > { %v9504_v26 = vld [vmem:[%s15049_s16 + $0x270] sm:$0xf0] }
 0x4f2   : > { %v13709_v59 = vld [vmem:[%s15049_s16 + $0x454] sm:$0xf]  ;;  %v9507_v7 = vor.u32 %v13645_v9, %v9504_v26  ;;  %7687 = vmatpush.bf16.msra.mxu0 %v9251_v48 }
 0x4f3   : > { %v9760_v34 = vld [vmem:[%s15049_s16 + $0x470] sm:$0xf0] }
 0x4f4   : > { %v13773_v53 = vld [vmem:[%s15049_s16 + $0x654] sm:$0xf]  ;;  %v9763_v25 = vor.u32 %v13709_v59, %v9760_v34  ;;  %7701 = vmatpush.bf16.msra.mxu1 %v9507_v7 }
 0x4f5   : > { %v10016_v14 = vld [vmem:[%s15049_s16 + $0x670] sm:$0xf0] }
 0x4f6   : > { %v13573_v23 = vld [vmem:[%s15049_s16 + $0x14] sm:$0xf]  ;;  %v10019_v55 = vor.u32 %v13773_v53, %v10016_v14  ;;  %7715 = vmatpush.bf16.msra.mxu2 %v9763_v25 }
 0x4f7   : > { %v9216_v12 = vld [vmem:[%s15049_s16 + $0x30] sm:$0xf0] }
 0x4f8   : > { %v13637_v24 = vld [vmem:[%s15049_s16 + $0x214] sm:$0xf]  ;;  %v9219_v21 = vor.u32 %v13573_v23, %v9216_v12  ;;  %7729 = vmatpush.bf16.msra.mxu3 %v10019_v55 }
 0x4f9   : > { %v9472_v8 = vld [vmem:[%s15049_s16 + $0x230] sm:$0xf0] }
 0x4fa   : > { %v13701_v63 = vld [vmem:[%s15049_s16 + $0x414] sm:$0xf]  ;;  %v9475_v4 = vor.u32 %v13637_v24, %v9472_v8  ;;  %7688 = vmatpush.bf16.msra.mxu0 %v9219_v21  ;;  %v16716_v8 = vpop.f32.mrf.mxu0 }
 0x4fb   : > { %v9728_v0 = vld [vmem:[%s15049_s16 + $0x430] sm:$0xf0]  ;;  %17858 = vst [vmem:[#allocation61_spill] sm:$0xff] %v16716_v8 }
 0x4fc   : > { %v13765_v33 = vld [vmem:[%s15049_s16 + $0x614] sm:$0xf]  ;;  %v9731_v59 = vor.u32 %v13701_v63, %v9728_v0  ;;  %7702 = vmatpush.bf16.msra.mxu1 %v9475_v4 }
 0x4fd   : > { %v9984_v45 = vld [vmem:[%s15049_s16 + $0x630] sm:$0xf0]  ;;  %7689 = vmatmul.bf16.vlgmr.msra.gmra.mxu0 %v15145_v58 }
 0x4fe   : > { %v13885_v29 = vld [vmem:[%s15049_s16 + $0x9d4] sm:$0xf]  ;;  %v9987_v14 = vor.u32 %v13765_v33, %v9984_v45  ;;  %7716 = vmatpush.bf16.msra.mxu2 %v9731_v59  ;;  %v16720_v33 = vpop.f32.mrf.mxu1 }
 0x4ff   : > { %v10464_v49 = vld [vmem:[%s15049_s16 + $0x9f0] sm:$0xf0]  ;;  %17859 = vst [vmem:[#allocation62_spill] sm:$0xff] %v16720_v33  ;;  %7703 = vmatmul.bf16.vlgmr.msra.gmra.mxu1 %v15157_v10 }
 0x500   : > { %v13949_v61 = vld [vmem:[%s15049_s16 + $0xbd4] sm:$0xf]  ;;  %v10467_v48 = vor.u32 %v13885_v29, %v10464_v49  ;;  %7730 = vmatpush.bf16.msra.mxu3 %v9987_v14 }
 0x501   : > { %v10720_v60 = vld [vmem:[%s15049_s16 + $0xbf0] sm:$0xf0]  ;;  %7717 = vmatmul.bf16.vlgmr.msra.gmra.mxu2 %v15150_v1 }
 0x502   : > { %v14013_v9 = vld [vmem:[%s15049_s16 + $0xdd4] sm:$0xf]  ;;  %v10723_v23 = vor.u32 %v13949_v61, %v10720_v60  ;;  %7737 = vmatpush.bf16.msrb.mxu0 %v10467_v48 }
 0x503   : > { %v10976_v26 = vld [vmem:[%s15049_s16 + $0xdf0] sm:$0xf0]  ;;  %7731 = vmatmul.bf16.vlgmr.msra.gmra.mxu3 %v15162_v17 }
 0x504   : > { %v14077_v34 = vld [vmem:[%s15049_s16 + $0xfd4] sm:$0xf]  ;;  %v10979_v12 = vor.u32 %v14013_v9, %v10976_v26  ;;  %7751 = vmatpush.bf16.msrb.mxu1 %v10723_v23  ;;  %v16738_v23 = vpop.f32.mrf.mxu2 }
 0x505   : > { %v11232_v53 = vld [vmem:[%s15049_s16 + $0xff0] sm:$0xf0]  ;;  %17860 = vst [vmem:[#allocation63_spill] sm:$0xff] %v16738_v23 }
 0x506   : > { %v13877_v22 = vld [vmem:[%s15049_s16 + $0x994] sm:$0xf]  ;;  %v11235_v7 = vor.u32 %v14077_v34, %v11232_v53  ;;  %7765 = vmatpush.bf16.msrb.mxu2 %v10979_v12 }
 0x507   : > { %v10432_v18 = vld [vmem:[%s15049_s16 + $0x9b0] sm:$0xf0] }
 0x508   : > { %v13941_v16 = vld [vmem:[%s15049_s16 + $0xb94] sm:$0xf]  ;;  %v10435_v0 = vor.u32 %v13877_v22, %v10432_v18  ;;  %7779 = vmatpush.bf16.msrb.mxu3 %v11235_v7 }
 0x509   : > { %v10688_v2 = vld [vmem:[%s15049_s16 + $0xbb0] sm:$0xf0] }
 0x50a   : > { %v14005_v25 = vld [vmem:[%s15049_s16 + $0xd94] sm:$0xf]  ;;  %v10691_v45 = vor.u32 %v13941_v16, %v10688_v2  ;;  %7738 = vmatpush.bf16.msrb.mxu0 %v10435_v0  ;;  %v17801_v16 = vperm.slane %v15452_v51, 4  ;;  %v7466_v0 = vpop.f32.mrf.mxu0 }
 0x50b   : > { %v10944_v24 = vld [vmem:[%s15049_s16 + $0xdb0] sm:$0xf0] }
 0x50c   : > { %v14069_v63 = vld [vmem:[%s15049_s16 + $0xf94] sm:$0xf]  ;;  %v10947_v29 = vor.u32 %v14005_v25, %v10944_v24  ;;  %7752 = vmatpush.bf16.msrb.mxu1 %v10691_v45  ;;  %v16745_v45 = vpop.f32.mrf.mxu3 }
 0x50d   : > { %v11200_v55 = vld [vmem:[%s15049_s16 + $0xfb0] sm:$0xf0]  ;;  %17861 = vst [vmem:[#allocation64_spill] sm:$0xff] %v16745_v45 }
 0x50e   : > { %v13869_v49 = vld [vmem:[%s15049_s16 + $0x954] sm:$0xf]  ;;  %v11203_v60 = vor.u32 %v14069_v63, %v11200_v55  ;;  %7766 = vmatpush.bf16.msrb.mxu2 %v10947_v29 }
 0x50f   : > { %v10400_v61 = vld [vmem:[%s15049_s16 + $0x970] sm:$0xf0] }
 0x510   : > { %v13933_v21 = vld [vmem:[%s15049_s16 + $0xb54] sm:$0xf]  ;;  %v10403_v2 = vor.u32 %v13869_v49, %v10400_v61  ;;  %7780 = vmatpush.bf16.msrb.mxu3 %v11203_v60  ;;  %v7467_v49 = vadd.f32 %v7466_v0, %v17801_v16  ;;  %v7494_v16 = vpop.f32.mrf.mxu2 }
 0x511   : > { %v10656_v9 = vld [vmem:[%s15049_s16 + $0xb70] sm:$0xf0] }
 0x512   : > { %v13997_v26 = vld [vmem:[%s15049_s16 + $0xd54] sm:$0xf]  ;;  %v10659_v59 = vor.u32 %v13933_v21, %v10656_v9  ;;  %7739 = vmatpush.bf16.msrb.mxu0 %v10403_v2  ;;  %v16791_v23 = vpop.f32.mrf.mxu0 }
 0x513   : > { %v10912_v4 = vld [vmem:[%s15049_s16 + $0xd70] sm:$0xf0]  ;;  %17862 = vst [vmem:[#allocation65_spill] sm:$0xff] %v16791_v23 }
 0x514   : > { %v14061_v18 = vld [vmem:[%s15049_s16 + $0xf54] sm:$0xf]  ;;  %v10915_v34 = vor.u32 %v13997_v26, %v10912_v4  ;;  %7753 = vmatpush.bf16.msrb.mxu1 %v10659_v59  ;;  %v7480_v4 = vpop.f32.mrf.mxu1 }
 0x515   : > { %v11168_v22 = vld [vmem:[%s15049_s16 + $0xf70] sm:$0xf0] }
 0x516   : > { %v13861_v53 = vld [vmem:[%s15049_s16 + $0x914] sm:$0xf]  ;;  %v11171_v12 = vor.u32 %v14061_v18, %v11168_v22  ;;  %7767 = vmatpush.bf16.msrb.mxu2 %v10915_v34 }
 0x517   : > { %v10368_v14 = vld [vmem:[%s15049_s16 + $0x930] sm:$0xf0] }
 0x518   : > { %v13925_v48 = vld [vmem:[%s15049_s16 + $0xb14] sm:$0xf]  ;;  %v10371_v29 = vor.u32 %v13861_v53, %v10368_v14  ;;  %7781 = vmatpush.bf16.msrb.mxu3 %v11171_v12  ;;  %v7481_v14 = vadd.f32 %v7480_v4, %v7467_v49 }
 0x519   : > { %v10624_v7 = vld [vmem:[%s15049_s16 + $0xb30] sm:$0xf0] }
 0x51a   : > { %v13989_v25 = vld [vmem:[%s15049_s16 + $0xd14] sm:$0xf]  ;;  %v10627_v61 = vor.u32 %v13925_v48, %v10624_v7  ;;  %7740 = vmatpush.bf16.msrb.mxu0 %v10371_v29 }
 0x51b   : > { %v10880_v24 = vld [vmem:[%s15049_s16 + $0xd30] sm:$0xf0] }
 0x51c   : > { %v14053_v63 = vld [vmem:[%s15049_s16 + $0xf14] sm:$0xf]  ;;  %v10883_v21 = vor.u32 %v13989_v25, %v10880_v24  ;;  %7754 = vmatpush.bf16.msrb.mxu1 %v10627_v61  ;;  %v7495_v61 = vadd.f32 %v7494_v16, %v7481_v14 }
 0x51d   : > { %v11136_v55 = vld [vmem:[%s15049_s16 + $0xf30] sm:$0xf0] }
 0x51e   : > { %v13853_v60 = vld [vmem:[%s15049_s16 + $0x8d4] sm:$0xf]  ;;  %v11139_v18 = vor.u32 %v14053_v63, %v11136_v55  ;;  %7768 = vmatpush.bf16.msrb.mxu2 %v10883_v21 }
 0x51f   : > { %v10336_v9 = vld [vmem:[%s15049_s16 + $0x8f0] sm:$0xf0] }
 0x520   : > { %v13917_v26 = vld [vmem:[%s15049_s16 + $0xad4] sm:$0xf]  ;;  %v10339_v48 = vor.u32 %v13853_v60, %v10336_v9  ;;  %7782 = vmatpush.bf16.msrb.mxu3 %v11139_v18  ;;  %v7508_v60 = vpop.f32.mrf.mxu3 }
 0x521   : > { %v10592_v22 = vld [vmem:[%s15049_s16 + $0xaf0] sm:$0xf0] }
 0x522   : > { %v13981_v2 = vld [vmem:[%s15049_s16 + $0xcd4] sm:$0xf]  ;;  %v10595_v7 = vor.u32 %v13917_v26, %v10592_v22  ;;  %7741 = vmatpush.bf16.msrb.mxu0 %v10339_v48 }
 0x523   : > { %v10848_v53 = vld [vmem:[%s15049_s16 + $0xcf0] sm:$0xf0] }
 0x524   : > { %v14045_v59 = vld [vmem:[%s15049_s16 + $0xed4] sm:$0xf]  ;;  %v10851_v25 = vor.u32 %v13981_v2, %v10848_v53  ;;  %7755 = vmatpush.bf16.msrb.mxu1 %v10595_v7  ;;  %v16768_v53 = vadd.f32 %v7508_v60, %v7495_v61 }
 0x525   : > { %v11104_v34 = vld [vmem:[%s15049_s16 + $0xef0] sm:$0xf0] }
 0x526   : > { %v13845_v12 = vld [vmem:[%s15049_s16 + $0x894] sm:$0xf]  ;;  %v11107_v55 = vor.u32 %v14045_v59, %v11104_v34  ;;  %7769 = vmatpush.bf16.msrb.mxu2 %v10851_v25 }
 0x527   : > { %v10304_v24 = vld [vmem:[%s15049_s16 + $0x8b0] sm:$0xf0] }
 0x528   : > { %v13909_v63 = vld [vmem:[%s15049_s16 + $0xa94] sm:$0xf]  ;;  %v10307_v21 = vor.u32 %v13845_v12, %v10304_v24  ;;  %7783 = vmatpush.bf16.msrb.mxu3 %v11107_v55 }
 0x529   : > { %v10560_v0 = vld [vmem:[%s15049_s16 + $0xab0] sm:$0xf0] }
 0x52a   : > { %v13973_v49 = vld [vmem:[%s15049_s16 + $0xc94] sm:$0xf]  ;;  %v10563_v9 = vor.u32 %v13909_v63, %v10560_v0  ;;  %7742 = vmatpush.bf16.msrb.mxu0 %v10307_v21 }
 0x52b   : > { %v10816_v4 = vld [vmem:[%s15049_s16 + $0xcb0] sm:$0xf0] }
 0x52c   : > { %v14037_v45 = vld [vmem:[%s15049_s16 + $0xe94] sm:$0xf]  ;;  %v10819_v26 = vor.u32 %v13973_v49, %v10816_v4  ;;  %7756 = vmatpush.bf16.msrb.mxu1 %v10563_v9 }
 0x52d   : > { %v11072_v29 = vld [vmem:[%s15049_s16 + $0xeb0] sm:$0xf0] }
 0x52e   : > { %v13837_v18 = vld [vmem:[%s15049_s16 + $0x854] sm:$0xf]  ;;  %v11075_v16 = vor.u32 %v14037_v45, %v11072_v29  ;;  %7770 = vmatpush.bf16.msrb.mxu2 %v10819_v26 }
 0x52f   : > { %v10272_v22 = vld [vmem:[%s15049_s16 + $0x870] sm:$0xf0] }
 0x530   : > { %v13901_v2 = vld [vmem:[%s15049_s16 + $0xa54] sm:$0xf]  ;;  %v10275_v25 = vor.u32 %v13837_v18, %v10272_v22  ;;  %7784 = vmatpush.bf16.msrb.mxu3 %v11075_v16 }
 0x531   : > { %v10528_v14 = vld [vmem:[%s15049_s16 + $0xa70] sm:$0xf0] }
 0x532   : > { %v13965_v59 = vld [vmem:[%s15049_s16 + $0xc54] sm:$0xf]  ;;  %v10531_v45 = vor.u32 %v13901_v2, %v10528_v14  ;;  %7743 = vmatpush.bf16.msrb.mxu0 %v10275_v25 }
 0x533   : > { %v10784_v34 = vld [vmem:[%s15049_s16 + $0xc70] sm:$0xf0] }
 0x534   : > { %v14029_v48 = vld [vmem:[%s15049_s16 + $0xe54] sm:$0xf]  ;;  %v10787_v63 = vor.u32 %v13965_v59, %v10784_v34  ;;  %7757 = vmatpush.bf16.msrb.mxu1 %v10531_v45 }
 0x535   : > { %v11040_v7 = vld [vmem:[%s15049_s16 + $0xe70] sm:$0xf0] }
 0x536   : > { %v13829_v12 = vld [vmem:[%s15049_s16 + $0x814] sm:$0xf]  ;;  %v11043_v4 = vor.u32 %v14029_v48, %v11040_v7  ;;  %7771 = vmatpush.bf16.msrb.mxu2 %v10787_v63 }
 0x537   : > { %v10240_v24 = vld [vmem:[%s15049_s16 + $0x830] sm:$0xf0] }
 0x538   : > { %v13893_v55 = vld [vmem:[%s15049_s16 + $0xa14] sm:$0xf]  ;;  %v10243_v9 = vor.u32 %v13829_v12, %v10240_v24  ;;  %7785 = vmatpush.bf16.msrb.mxu3 %v11043_v4 }
 0x539   : > { %v10496_v0 = vld [vmem:[%s15049_s16 + $0xa30] sm:$0xf0] }
 0x53a   : > { %v13957_v49 = vld [vmem:[%s15049_s16 + $0xc14] sm:$0xf]  ;;  %v10499_v16 = vor.u32 %v13893_v55, %v10496_v0  ;;  %7744 = vmatpush.bf16.msrb.mxu0 %v10243_v9 }
 0x53b   : > { %v10752_v29 = vld [vmem:[%s15049_s16 + $0xc30] sm:$0xf0] }
 0x53c   : > { %v14021_v61 = vld [vmem:[%s15049_s16 + $0xe14] sm:$0xf]  ;;  %v10755_v59 = vor.u32 %v13957_v49, %v10752_v29  ;;  %7758 = vmatpush.bf16.msrb.mxu1 %v10499_v16 }
 0x53d   : > { %v11008_v21 = vld [vmem:[%s15049_s16 + $0xe30] sm:$0xf0]  ;;  %7745 = vmatmul.bf16.vlgmr.msrb.gmra.mxu0 %v15214_v39 }
 0x53e   : > { %v14141_v60 = vld [vmem:[%s15049_s16 + $0x11d4] sm:$0xf]  ;;  %v11011_v7 = vor.u32 %v14021_v61, %v11008_v21  ;;  %7772 = vmatpush.bf16.msrb.mxu2 %v10755_v59  ;;  %v16801_v61 = vpop.f32.mrf.mxu1 }
 0x53f   : > { %v11488_v18 = vld [vmem:[%s15049_s16 + $0x11f0] sm:$0xf0]  ;;  %17863 = vst [vmem:[#allocation66_spill] sm:$0xff] %v16801_v61  ;;  %7759 = vmatmul.bf16.vlgmr.msrb.gmra.mxu1 %v15221_v44 }
 0x540   : > { %v14205_v22 = vld [vmem:[%s15049_s16 + $0x13d4] sm:$0xf]  ;;  %v11491_v25 = vor.u32 %v14141_v60, %v11488_v18  ;;  %7786 = vmatpush.bf16.msrb.mxu3 %v11011_v7 }
 0x541   : > { %v11744_v26 = vld [vmem:[%s15049_s16 + $0x13f0] sm:$0xf0]  ;;  %7773 = vmatmul.bf16.vlgmr.msrb.gmra.mxu2 %v15219_v43 }
 0x542   : > { %v14269_v2 = vld [vmem:[%s15049_s16 + $0x15d4] sm:$0xf]  ;;  %v11747_v12 = vor.u32 %v14205_v22, %v11744_v26  ;;  %7793 = vmatpush.bf16.msra.mxu0 %v11491_v25 }
 0x543   : > { %v12000_v14 = vld [vmem:[%s15049_s16 + $0x15f0] sm:$0xf0]  ;;  %7787 = vmatmul.bf16.vlgmr.msrb.gmra.mxu3 %v15225_v47 }
 0x544   : > { %v14333_v34 = vld [vmem:[%s15049_s16 + $0x17d4] sm:$0xf]  ;;  %v12003_v24 = vor.u32 %v14269_v2, %v12000_v14  ;;  %7807 = vmatpush.bf16.msra.mxu1 %v11747_v12 }
 0x545   : > { %v12256_v48 = vld [vmem:[%s15049_s16 + $0x17f0] sm:$0xf0] }
 0x546   : > { %v14133_v33 = vld [vmem:[%s15049_s16 + $0x1194] sm:$0xf]  ;;  %v12259_v63 = vor.u32 %v14333_v34, %v12256_v48  ;;  %7821 = vmatpush.bf16.msra.mxu2 %v12003_v24  ;;  %v16815_v48 = vpop.f32.mrf.mxu2 }
 0x547   : > { %v11456_v8 = vld [vmem:[%s15049_s16 + $0x11b0] sm:$0xf0]  ;;  %17864 = vst [vmem:[#allocation67_spill] sm:$0xff] %v16815_v48 }
 0x548   : > { %v14197_v45 = vld [vmem:[%s15049_s16 + $0x1394] sm:$0xf]  ;;  %v11459_v21 = vor.u32 %v14133_v33, %v11456_v8  ;;  %7835 = vmatpush.bf16.msra.mxu3 %v12259_v63 }
 0x549   : > { %v11712_v55 = vld [vmem:[%s15049_s16 + $0x13b0] sm:$0xf0] }
 0x54a   : > { %v14261_v0 = vld [vmem:[%s15049_s16 + $0x1594] sm:$0xf]  ;;  %v11715_v60 = vor.u32 %v14197_v45, %v11712_v55  ;;  %7794 = vmatpush.bf16.msra.mxu0 %v11459_v21  ;;  %v16820_v55 = vpop.f32.mrf.mxu3 }
 0x54b   : > { %v11968_v49 = vld [vmem:[%s15049_s16 + $0x15b0] sm:$0xf0]  ;;  %17865 = vst [vmem:[#allocation68_spill] sm:$0xff] %v16820_v55 }
 0x54c   : > { %v14325_v4 = vld [vmem:[%s15049_s16 + $0x1794] sm:$0xf]  ;;  %v11971_v18 = vor.u32 %v14261_v0, %v11968_v49  ;;  %7808 = vmatpush.bf16.msra.mxu1 %v11715_v60 }
 0x54d   : > { %v12224_v29 = vld [vmem:[%s15049_s16 + $0x17b0] sm:$0xf0] }
 0x54e   : > { %v14125_v22 = vld [vmem:[%s15049_s16 + $0x1154] sm:$0xf]  ;;  %v12227_v2 = vor.u32 %v14325_v4, %v12224_v29  ;;  %7822 = vmatpush.bf16.msra.mxu2 %v11971_v18  ;;  %v7522_v29 = vpop.f32.mrf.mxu0 }
 0x54f   : > { %v11424_v9 = vld [vmem:[%s15049_s16 + $0x1170] sm:$0xf0]  ;;  %v7523_v18 = vadd.f32 %v7522_v29, %v16768_v53  ;;  %v7550_v29 = vpop.f32.mrf.mxu2 }
 0x550   : > { %v14189_v26 = vld [vmem:[%s15049_s16 + $0x1354] sm:$0xf]  ;;  %v11427_v34 = vor.u32 %v14125_v22, %v11424_v9  ;;  %7836 = vmatpush.bf16.msra.mxu3 %v12227_v2  ;;  %v7536_v2 = vpop.f32.mrf.mxu1 }
 0x551   : > { %v11680_v14 = vld [vmem:[%s15049_s16 + $0x1370] sm:$0xf0] }
 0x552   : > { %v14253_v16 = vld [vmem:[%s15049_s16 + $0x1554] sm:$0xf]  ;;  %v11683_v7 = vor.u32 %v14189_v26, %v11680_v14  ;;  %7795 = vmatpush.bf16.msra.mxu0 %v11427_v34 }
 0x553   : > { %v11936_v59 = vld [vmem:[%s15049_s16 + $0x1570] sm:$0xf0] }
 0x554   : > { %v14317_v8 = vld [vmem:[%s15049_s16 + $0x1754] sm:$0xf]  ;;  %v11939_v25 = vor.u32 %v14253_v16, %v11936_v59  ;;  %7809 = vmatpush.bf16.msra.mxu1 %v11683_v7 }
 0x555   : > { %v12192_v33 = vld [vmem:[%s15049_s16 + $0x1770] sm:$0xf0] }
 0x556   : > { %v14117_v12 = vld [vmem:[%s15049_s16 + $0x1114] sm:$0xf]  ;;  %v12195_v63 = vor.u32 %v14317_v8, %v12192_v33  ;;  %7823 = vmatpush.bf16.msra.mxu2 %v11939_v25  ;;  %v7537_v33 = vadd.f32 %v7536_v2, %v7523_v18 }
 0x557   : > { %v11392_v24 = vld [vmem:[%s15049_s16 + $0x1130] sm:$0xf0] }
 0x558   : > { %v14181_v45 = vld [vmem:[%s15049_s16 + $0x1314] sm:$0xf]  ;;  %v11395_v22 = vor.u32 %v14117_v12, %v11392_v24  ;;  %7837 = vmatpush.bf16.msra.mxu3 %v12195_v63 }
 0x559   : > { %v11648_v0 = vld [vmem:[%s15049_s16 + $0x1330] sm:$0xf0] }
 0x55a   : > { %v14245_v49 = vld [vmem:[%s15049_s16 + $0x1514] sm:$0xf]  ;;  %v11651_v9 = vor.u32 %v14181_v45, %v11648_v0  ;;  %7796 = vmatpush.bf16.msra.mxu0 %v11395_v22  ;;  %v7551_v22 = vadd.f32 %v7550_v29, %v7537_v33 }
 0x55b   : > { %v11904_v4 = vld [vmem:[%s15049_s16 + $0x1530] sm:$0xf0] }
 0x55c   : > { %v14309_v21 = vld [vmem:[%s15049_s16 + $0x1714] sm:$0xf]  ;;  %v11907_v26 = vor.u32 %v14245_v49, %v11904_v4  ;;  %7810 = vmatpush.bf16.msra.mxu1 %v11651_v9 }
 0x55d   : > { %v12160_v60 = vld [vmem:[%s15049_s16 + $0x1730] sm:$0xf0] }
 0x55e   : > { %v14109_v14 = vld [vmem:[%s15049_s16 + $0x10d4] sm:$0xf]  ;;  %v12163_v8 = vor.u32 %v14309_v21, %v12160_v60  ;;  %7824 = vmatpush.bf16.msra.mxu2 %v11907_v26 }
 0x55f   : > { %v11360_v16 = vld [vmem:[%s15049_s16 + $0x10f0] sm:$0xf0] }
 0x560   : > { %v14173_v59 = vld [vmem:[%s15049_s16 + $0x12d4] sm:$0xf]  ;;  %v11363_v25 = vor.u32 %v14109_v14, %v11360_v16  ;;  %7838 = vmatpush.bf16.msra.mxu3 %v12163_v8 }
 0x561   : > { %v11616_v34 = vld [vmem:[%s15049_s16 + $0x12f0] sm:$0xf0] }
 0x562   : > { %v14237_v55 = vld [vmem:[%s15049_s16 + $0x14d4] sm:$0xf]  ;;  %v11619_v24 = vor.u32 %v14173_v59, %v11616_v34  ;;  %7797 = vmatpush.bf16.msra.mxu0 %v11363_v25 }
 0x563   : > { %v11872_v53 = vld [vmem:[%s15049_s16 + $0x14f0] sm:$0xf0] }
 0x564   : > { %v14301_v12 = vld [vmem:[%s15049_s16 + $0x16d4] sm:$0xf]  ;;  %v11875_v45 = vor.u32 %v14237_v55, %v11872_v53  ;;  %v7564_v55 = vpop.f32.mrf.mxu3  ;;  %7811 = vmatpush.bf16.msra.mxu1 %v11619_v24 }
 0x565   : > { %v12128_v7 = vld [vmem:[%s15049_s16 + $0x16f0] sm:$0xf0]  ;;  %v16844_v14 = vadd.f32 %v7564_v55, %v7551_v22 }
 0x566   : > { %v14101_v63 = vld [vmem:[%s15049_s16 + $0x1094] sm:$0xf]  ;;  %v12131_v4 = vor.u32 %v14301_v12, %v12128_v7  ;;  %7825 = vmatpush.bf16.msra.mxu2 %v11875_v45 }
 0x567   : > { %v11328_v0 = vld [vmem:[%s15049_s16 + $0x10b0] sm:$0xf0] }
 0x568   : > { %v14165_v49 = vld [vmem:[%s15049_s16 + $0x1294] sm:$0xf]  ;;  %v11331_v26 = vor.u32 %v14101_v63, %v11328_v0  ;;  %7839 = vmatpush.bf16.msra.mxu3 %v12131_v4 }
 0x569   : > { %v11584_v21 = vld [vmem:[%s15049_s16 + $0x12b0] sm:$0xf0] }
 0x56a   : > { %v14229_v60 = vld [vmem:[%s15049_s16 + $0x1494] sm:$0xf]  ;;  %v11587_v16 = vor.u32 %v14165_v49, %v11584_v21  ;;  %7798 = vmatpush.bf16.msra.mxu0 %v11331_v26 }
 0x56b   : > { %v11840_v18 = vld [vmem:[%s15049_s16 + $0x14b0] sm:$0xf0] }
 0x56c   : > { %v14293_v2 = vld [vmem:[%s15049_s16 + $0x1694] sm:$0xf]  ;;  %v11843_v59 = vor.u32 %v14229_v60, %v11840_v18  ;;  %7812 = vmatpush.bf16.msra.mxu1 %v11587_v16 }
 0x56d   : > { %v12096_v9 = vld [vmem:[%s15049_s16 + $0x16b0] sm:$0xf0] }
 0x56e   : > { %v14093_v8 = vld [vmem:[%s15049_s16 + $0x1054] sm:$0xf]  ;;  %v12099_v53 = vor.u32 %v14293_v2, %v12096_v9  ;;  %7826 = vmatpush.bf16.msra.mxu2 %v11843_v59 }
 0x56f   : > { %v11296_v33 = vld [vmem:[%s15049_s16 + $0x1070] sm:$0xf0] }
 0x570   : > { %v14157_v34 = vld [vmem:[%s15049_s16 + $0x1254] sm:$0xf]  ;;  %v11299_v63 = vor.u32 %v14093_v8, %v11296_v33  ;;  %7840 = vmatpush.bf16.msra.mxu3 %v12099_v53 }
 0x571   : > { %v11552_v12 = vld [vmem:[%s15049_s16 + $0x1270] sm:$0xf0] }
 0x572   : > { %v14221_v7 = vld [vmem:[%s15049_s16 + $0x1454] sm:$0xf]  ;;  %v11555_v4 = vor.u32 %v14157_v34, %v11552_v12  ;;  %7799 = vmatpush.bf16.msra.mxu0 %v11299_v63 }
 0x573   : > { %v11808_v25 = vld [vmem:[%s15049_s16 + $0x1470] sm:$0xf0] }
 0x574   : > { %v14285_v24 = vld [vmem:[%s15049_s16 + $0x1654] sm:$0xf]  ;;  %v11811_v29 = vor.u32 %v14221_v7, %v11808_v25  ;;  %7813 = vmatpush.bf16.msra.mxu1 %v11555_v4 }
 0x575   : > { %v12064_v45 = vld [vmem:[%s15049_s16 + $0x1670] sm:$0xf0] }
 0x576   : > { %v14085_v0 = vld [vmem:[%s15049_s16 + $0x1014] sm:$0xf]  ;;  %v12067_v22 = vor.u32 %v14285_v24, %v12064_v45  ;;  %7827 = vmatpush.bf16.msra.mxu2 %v11811_v29 }
 0x577   : > { %v11264_v49 = vld [vmem:[%s15049_s16 + $0x1030] sm:$0xf0] }
 0x578   : > { %v14149_v21 = vld [vmem:[%s15049_s16 + $0x1214] sm:$0xf]  ;;  %v11267_v16 = vor.u32 %v14085_v0, %v11264_v49  ;;  %7841 = vmatpush.bf16.msra.mxu3 %v12067_v22 }
 0x579   : > { %v11520_v60 = vld [vmem:[%s15049_s16 + $0x1230] sm:$0xf0] }
 0x57a   : > { %v14213_v18 = vld [vmem:[%s15049_s16 + $0x1414] sm:$0xf]  ;;  %v11523_v53 = vor.u32 %v14149_v21, %v11520_v60  ;;  %7800 = vmatpush.bf16.msra.mxu0 %v11267_v16  ;;  %v16876_v60 = vpop.f32.mrf.mxu0 }
 0x57b   : > { %v11776_v2 = vld [vmem:[%s15049_s16 + $0x1430] sm:$0xf0]  ;;  %17866 = vst [vmem:[#allocation69_spill] sm:$0xff] %v16876_v60  ;;  %v13690_v60 = vld [vmem:[%s15049_s16 + $0x3b4] sm:$0xf0] }
 0x57c   : > { %v14277_v9 = vld [vmem:[%s15049_s16 + $0x1614] sm:$0xf]  ;;  %v11779_v7 = vor.u32 %v14213_v18, %v11776_v2  ;;  %7814 = vmatpush.bf16.msra.mxu1 %v11523_v53  ;;  %v16880_v2 = vpop.f32.mrf.mxu1 }
 0x57d   : > { %v12032_v55 = vld [vmem:[%s15049_s16 + $0x1630] sm:$0xf0]  ;;  %17867 = vst [vmem:[#allocation70_spill] sm:$0xff] %v16880_v2  ;;  %7801 = vmatmul.bf16.vlgmr.msra.gmra.mxu0 %v15290_v31  ;;  %v9670_v2 = vld [vmem:[%s15049_s16 + $0x398] sm:$0xf] }
 0x57e   : > { %v14397_v26 = vld [vmem:[%s15049_s16 + $0x19d4] sm:$0xf]  ;;  %v12035_v45 = vor.u32 %v14277_v9, %v12032_v55  ;;  %7828 = vmatpush.bf16.msra.mxu2 %v11779_v7 }
 0x57f   : > { %v12512_v8 = vld [vmem:[%s15049_s16 + $0x19f0] sm:$0xf0]  ;;  %7815 = vmatmul.bf16.vlgmr.msra.gmra.mxu1 %v15297_v36 }
 0x580   : > { %v14461_v33 = vld [vmem:[%s15049_s16 + $0x1bd4] sm:$0xf]  ;;  %v12515_v63 = vor.u32 %v14397_v26, %v12512_v8  ;;  %7842 = vmatpush.bf16.msra.mxu3 %v12035_v45 }
 0x581   : > { %v12768_v59 = vld [vmem:[%s15049_s16 + $0x1bf0] sm:$0xf0]  ;;  %7829 = vmatmul.bf16.vlgmr.msra.gmra.mxu2 %v15295_v35 }
 0x582   : > { %v14525_v34 = vld [vmem:[%s15049_s16 + $0x1dd4] sm:$0xf]  ;;  %v12771_v0 = vor.u32 %v14461_v33, %v12768_v59  ;;  %7849 = vmatpush.bf16.msrb.mxu0 %v12515_v63  ;;  %v16897_v63 = vpop.f32.mrf.mxu2 }
 0x583   : > { %v13024_v12 = vld [vmem:[%s15049_s16 + $0x1df0] sm:$0xf0]  ;;  %7843 = vmatmul.bf16.vlgmr.msra.gmra.mxu3 %v15301_v40  ;;  %17868 = vst [vmem:[#allocation71_spill] sm:$0xff] %v16897_v63  ;;  %v13626_v63 = vld [vmem:[%s15049_s16 + $0x1b4] sm:$0xf0] }
 0x584   : > { %v14589_v25 = vld [vmem:[%s15049_s16 + $0x1fd4] sm:$0xf]  ;;  %v13027_v49 = vor.u32 %v14525_v34, %v13024_v12  ;;  %7863 = vmatpush.bf16.msrb.mxu1 %v12771_v0 }
 0x585   : > { %v13280_v24 = vld [vmem:[%s15049_s16 + $0x1ff0] sm:$0xf0] }
 0x586   : > { %v14389_v48 = vld [vmem:[%s15049_s16 + $0x1994] sm:$0xf]  ;;  %v13283_v4 = vor.u32 %v14589_v25, %v13280_v24  ;;  %7877 = vmatpush.bf16.msrb.mxu2 %v13027_v49 }
 0x587   : > { %v12480_v61 = vld [vmem:[%s15049_s16 + $0x19b0] sm:$0xf0] }
 0x588   : > { %v14453_v23 = vld [vmem:[%s15049_s16 + $0x1b94] sm:$0xf]  ;;  %v12483_v9 = vor.u32 %v14389_v48, %v12480_v61  ;;  %7891 = vmatpush.bf16.msrb.mxu3 %v13283_v4 }
 0x589   : > { %v12736_v37 = vld [vmem:[%s15049_s16 + $0x1bb0] sm:$0xf0] }
 0x58a   : > { %v14517_v29 = vld [vmem:[%s15049_s16 + $0x1d94] sm:$0xf]  ;;  %v12739_v55 = vor.u32 %v14453_v23, %v12736_v37  ;;  %7850 = vmatpush.bf16.msrb.mxu0 %v12483_v9 }
 0x58b   : > { %v12992_v21 = vld [vmem:[%s15049_s16 + $0x1db0] sm:$0xf0] }
 0x58c   : > { %v14581_v18 = vld [vmem:[%s15049_s16 + $0x1f94] sm:$0xf]  ;;  %v12995_v26 = vor.u32 %v14517_v29, %v12992_v21  ;;  %7864 = vmatpush.bf16.msrb.mxu1 %v12739_v55  ;;  %v16902_v21 = vpop.f32.mrf.mxu3 }
 0x58d   : > { %v13248_v22 = vld [vmem:[%s15049_s16 + $0x1fb0] sm:$0xf0]  ;;  %17869 = vst [vmem:[#allocation72_spill] sm:$0xff] %v16902_v21  ;;  %v9414_v21 = vld [vmem:[%s15049_s16 + $0x198] sm:$0xf] }
 0x58e   : > { %v14381_v8 = vld [vmem:[%s15049_s16 + $0x1954] sm:$0xf]  ;;  %v13251_v59 = vor.u32 %v14581_v18, %v13248_v22  ;;  %7878 = vmatpush.bf16.msrb.mxu2 %v12995_v26  ;;  %v7578_v18 = vpop.f32.mrf.mxu0 }
 0x58f   : > { %v12448_v33 = vld [vmem:[%s15049_s16 + $0x1970] sm:$0xf0]  ;;  %v7579_v55 = vadd.f32 %v7578_v18, %v16844_v14  ;;  %v7606_v18 = vpop.f32.mrf.mxu2 }
 0x590   : > { %v14445_v16 = vld [vmem:[%s15049_s16 + $0x1b54] sm:$0xf]  ;;  %v12451_v61 = vor.u32 %v14381_v8, %v12448_v33  ;;  %7892 = vmatpush.bf16.msrb.mxu3 %v13251_v59  ;;  %v7592_v8 = vpop.f32.mrf.mxu1 }
 0x591   : > { %v12704_v34 = vld [vmem:[%s15049_s16 + $0x1b70] sm:$0xf0] }
 0x592   : > { %v14509_v12 = vld [vmem:[%s15049_s16 + $0x1d54] sm:$0xf]  ;;  %v12707_v48 = vor.u32 %v14445_v16, %v12704_v34  ;;  %7851 = vmatpush.bf16.msrb.mxu0 %v12451_v61 }
 0x593   : > { %v12960_v53 = vld [vmem:[%s15049_s16 + $0x1d70] sm:$0xf0] }
 0x594   : > { %v14573_v37 = vld [vmem:[%s15049_s16 + $0x1f54] sm:$0xf]  ;;  %v12963_v7 = vor.u32 %v14509_v12, %v12960_v53  ;;  %7865 = vmatpush.bf16.msrb.mxu1 %v12707_v48 }
 0x595   : > { %v13216_v23 = vld [vmem:[%s15049_s16 + $0x1f70] sm:$0xf0] }
 0x596   : > { %v14373_v25 = vld [vmem:[%s15049_s16 + $0x1914] sm:$0xf]  ;;  %v13219_v0 = vor.u32 %v14573_v37, %v13216_v23  ;;  %7879 = vmatpush.bf16.msrb.mxu2 %v12963_v7  ;;  %v7593_v37 = vadd.f32 %v7592_v8, %v7579_v55  ;;  %v7620_v8 = vpop.f32.mrf.mxu3 }
 0x597   : > { %v12416_v24 = vld [vmem:[%s15049_s16 + $0x1930] sm:$0xf0] }
 0x598   : > { %v14437_v45 = vld [vmem:[%s15049_s16 + $0x1b14] sm:$0xf]  ;;  %v12419_v26 = vor.u32 %v14373_v25, %v12416_v24  ;;  %7893 = vmatpush.bf16.msrb.mxu3 %v13219_v0 }
 0x599   : > { %v12672_v49 = vld [vmem:[%s15049_s16 + $0x1b30] sm:$0xf0] }
 0x59a   : > { %v14501_v4 = vld [vmem:[%s15049_s16 + $0x1d14] sm:$0xf]  ;;  %v12675_v33 = vor.u32 %v14437_v45, %v12672_v49  ;;  %7852 = vmatpush.bf16.msrb.mxu0 %v12419_v26  ;;  %v7607_v26 = vadd.f32 %v7606_v18, %v7593_v37 }
 0x59b   : > { %v12928_v29 = vld [vmem:[%s15049_s16 + $0x1d30] sm:$0xf0] }
 0x59c   : > { %v14565_v22 = vld [vmem:[%s15049_s16 + $0x1f14] sm:$0xf]  ;;  %v12931_v16 = vor.u32 %v14501_v4, %v12928_v29  ;;  %7866 = vmatpush.bf16.msrb.mxu1 %v12675_v33 }
 0x59d   : > { %v13184_v9 = vld [vmem:[%s15049_s16 + $0x1f30] sm:$0xf0] }
 0x59e   : > { %v14365_v59 = vld [vmem:[%s15049_s16 + $0x18d4] sm:$0xf]  ;;  %v13187_v53 = vor.u32 %v14565_v22, %v13184_v9  ;;  %7880 = vmatpush.bf16.msrb.mxu2 %v12931_v16 }
 0x59f   : > { %v12384_v34 = vld [vmem:[%s15049_s16 + $0x18f0] sm:$0xf0] }
 0x5a0   : > { %v14429_v12 = vld [vmem:[%s15049_s16 + $0x1ad4] sm:$0xf]  ;;  %v12387_v7 = vor.u32 %v14365_v59, %v12384_v34  ;;  %7894 = vmatpush.bf16.msrb.mxu3 %v13187_v53  ;;  %v16923_v34 = vadd.f32 %v7620_v8, %v7607_v26 }
 0x5a1   : > { %v12640_v23 = vld [vmem:[%s15049_s16 + $0x1af0] sm:$0xf0] }
 0x5a2   : > { %v14493_v61 = vld [vmem:[%s15049_s16 + $0x1cd4] sm:$0xf]  ;;  %v12643_v24 = vor.u32 %v14429_v12, %v12640_v23  ;;  %7853 = vmatpush.bf16.msrb.mxu0 %v12387_v7 }
 0x5a3   : > { %v12896_v14 = vld [vmem:[%s15049_s16 + $0x1cf0] sm:$0xf0] }
 0x5a4   : > { %v14557_v25 = vld [vmem:[%s15049_s16 + $0x1ed4] sm:$0xf]  ;;  %v12899_v45 = vor.u32 %v14493_v61, %v12896_v14  ;;  %7867 = vmatpush.bf16.msrb.mxu1 %v12643_v24 }
 0x5a5   : > { %v13152_v48 = vld [vmem:[%s15049_s16 + $0x1ef0] sm:$0xf0] }
 0x5a6   : > { %v14357_v0 = vld [vmem:[%s15049_s16 + $0x1894] sm:$0xf]  ;;  %v13155_v29 = vor.u32 %v14557_v25, %v13152_v48  ;;  %7881 = vmatpush.bf16.msrb.mxu2 %v12899_v45 }
 0x5a7   : > { %v12352_v49 = vld [vmem:[%s15049_s16 + $0x18b0] sm:$0xf0] }
 0x5a8   : > { %v14421_v4 = vld [vmem:[%s15049_s16 + $0x1a94] sm:$0xf]  ;;  %v12355_v59 = vor.u32 %v14357_v0, %v12352_v49  ;;  %7895 = vmatpush.bf16.msrb.mxu3 %v13155_v29 }
 0x5a9   : > { %v12608_v22 = vld [vmem:[%s15049_s16 + $0x1ab0] sm:$0xf0] }
 0x5aa   : > { %v14485_v9 = vld [vmem:[%s15049_s16 + $0x1c94] sm:$0xf]  ;;  %v12611_v12 = vor.u32 %v14421_v4, %v12608_v22  ;;  %7854 = vmatpush.bf16.msrb.mxu0 %v12355_v59  ;;  %v9446_v59 = vld [vmem:[%s15049_s16 + $0x1d8] sm:$0xf] }
 0x5ab   : > { %v12864_v55 = vld [vmem:[%s15049_s16 + $0x1cb0] sm:$0xf0] }
 0x5ac   : > { %v14549_v33 = vld [vmem:[%s15049_s16 + $0x1e94] sm:$0xf]  ;;  %v12867_v53 = vor.u32 %v14485_v9, %v12864_v55  ;;  %7868 = vmatpush.bf16.msrb.mxu1 %v12611_v12 }
 0x5ad   : > { %v13120_v16 = vld [vmem:[%s15049_s16 + $0x1eb0] sm:$0xf0] }
 0x5ae   : > { %v14349_v23 = vld [vmem:[%s15049_s16 + $0x1854] sm:$0xf]  ;;  %v13123_v14 = vor.u32 %v14549_v33, %v13120_v16  ;;  %7882 = vmatpush.bf16.msrb.mxu2 %v12867_v53  ;;  %v13698_v53 = vld [vmem:[%s15049_s16 + $0x3f4] sm:$0xf0] }
 0x5af   : > { %v12320_v37 = vld [vmem:[%s15049_s16 + $0x1870] sm:$0xf0] }
 0x5b0   : > { %v14413_v61 = vld [vmem:[%s15049_s16 + $0x1a54] sm:$0xf]  ;;  %v12323_v0 = vor.u32 %v14349_v23, %v12320_v37  ;;  %7896 = vmatpush.bf16.msrb.mxu3 %v13123_v14  ;;  %v13634_v23 = vld [vmem:[%s15049_s16 + $0x1f4] sm:$0xf0] }
 0x5b1   : > { %v12576_v25 = vld [vmem:[%s15049_s16 + $0x1a70] sm:$0xf0]  ;;  %v9702_v37 = vld [vmem:[%s15049_s16 + $0x3d8] sm:$0xf] }
 0x5b2   : > { %v14477_v48 = vld [vmem:[%s15049_s16 + $0x1c54] sm:$0xf]  ;;  %v12579_v29 = vor.u32 %v14413_v61, %v12576_v25  ;;  %7855 = vmatpush.bf16.msrb.mxu0 %v12323_v0  ;;  %v9958_v61 = vld [vmem:[%s15049_s16 + $0x5d8] sm:$0xf]  ;;  %v9447_v0 = vor.u32 %v13634_v23, %v9446_v59 }
 0x5b3   : > { %v12832_v7 = vld [vmem:[%s15049_s16 + $0x1c70] sm:$0xf0]  ;;  %v13762_v25 = vld [vmem:[%s15049_s16 + $0x5f4] sm:$0xf0] }
 0x5b4   : > { %v14541_v24 = vld [vmem:[%s15049_s16 + $0x1e54] sm:$0xf]  ;;  %v12835_v18 = vor.u32 %v14477_v48, %v12832_v7  ;;  %7869 = vmatpush.bf16.msrb.mxu1 %v12579_v29  ;;  %v10214_v7 = vld [vmem:[%s15049_s16 + $0x7d8] sm:$0xf] }
 0x5b5   : > { %v13088_v45 = vld [vmem:[%s15049_s16 + $0x1e70] sm:$0xf0]  ;;  %v9382_v23 = vld [vmem:[%s15049_s16 + $0x158] sm:$0xf] }
 0x5b6   : > { %v14341_v49 = vld [vmem:[%s15049_s16 + $0x1814] sm:$0xf]  ;;  %v13091_v26 = vor.u32 %v14541_v24, %v13088_v45  ;;  %7883 = vmatpush.bf16.msrb.mxu2 %v12835_v18  ;;  %v13826_v24 = vld [vmem:[%s15049_s16 + $0x7f4] sm:$0xf0] }
 0x5b7   : > { %v12288_v4 = vld [vmem:[%s15049_s16 + $0x1830] sm:$0xf0]  ;;  %v10215_v29 = vor.u32 %v13826_v24, %v10214_v7  ;;  %v9926_v18 = vld [vmem:[%s15049_s16 + $0x598] sm:$0xf] }
 0x5b8   : > { %v14405_v22 = vld [vmem:[%s15049_s16 + $0x1a14] sm:$0xf]  ;;  %v12291_v12 = vor.u32 %v14341_v49, %v12288_v4  ;;  %7897 = vmatpush.bf16.msrb.mxu3 %v13091_v26  ;;  %v9703_v49 = vor.u32 %v13698_v53, %v9702_v37  ;;  %v9959_v4 = vor.u32 %v13762_v25, %v9958_v61  ;;  %v13818_v26 = vld [vmem:[%s15049_s16 + $0x7b4] sm:$0xf0] }
 0x5b9   : > { %v12544_v9 = vld [vmem:[%s15049_s16 + $0x1a30] sm:$0xf0]  ;;  %v13618_v37 = vld [vmem:[%s15049_s16 + $0x174] sm:$0xf0] }
 0x5ba   : > { %v14469_v55 = vld [vmem:[%s15049_s16 + $0x1c14] sm:$0xf]  ;;  %v12547_v14 = vor.u32 %v14405_v22, %v12544_v9  ;;  %7856 = vmatpush.bf16.msrb.mxu0 %v12291_v12  ;;  %v13754_v22 = vld [vmem:[%s15049_s16 + $0x5b4] sm:$0xf0]  ;;  %v16955_v9 = vpop.f32.mrf.mxu0 }
 0x5bb   : > { %v12800_v8 = vld [vmem:[%s15049_s16 + $0x1c30] sm:$0xf0]  ;;  %17870 = vst [vmem:[#allocation73_spill] sm:$0xff] %v16955_v9  ;;  %v9927_v59 = vor.u32 %v13754_v22, %v9926_v18  ;;  %v9638_v12 = vld [vmem:[%s15049_s16 + $0x358] sm:$0xf]  ;;  %v16981_v22 = vpop.f32.mrf.mxu3 }
 0x5bc   : > { %v14533_v33 = vld [vmem:[%s15049_s16 + $0x1e14] sm:$0xf]  ;;  %v12803_v48 = vor.u32 %v14469_v55, %v12800_v8  ;;  %7870 = vmatpush.bf16.msrb.mxu1 %v12547_v14  ;;  %v10182_v55 = vld [vmem:[%s15049_s16 + $0x798] sm:$0xf]  ;;  %v16959_v8 = vpop.f32.mrf.mxu1  ;;  %17873 = vst [vmem:[#allocation76_spill] sm:$0xff] %v16981_v22 }
 0x5bd   : > { %v13056_v16 = vld [vmem:[%s15049_s16 + $0x1e30] sm:$0xf0]  ;;  %17871 = vst [vmem:[#allocation74_spill] sm:$0xff] %v16959_v8  ;;  %7857 = vmatmul.bf16.vlgmr.msrb.gmra.mxu0 %v15366_v32  ;;  %v10183_v53 = vor.u32 %v13818_v26, %v10182_v55  ;;  %v13682_v61 = vld [vmem:[%s15049_s16 + $0x374] sm:$0xf0] }
 0x5be   : > { %v13059_v45 = vor.u32 %v14533_v33, %v13056_v16  ;;  %7884 = vmatpush.bf16.msrb.mxu2 %v12803_v48  ;;  %7905 = vmatpush.bf16.msra.mxu0 %v9447_v0  ;;  %v9415_v33 = vor.u32 %v13626_v63, %v9414_v21  ;;  %v9671_v16 = vor.u32 %v13690_v60, %v9670_v2  ;;  %v9894_v25 = vld [vmem:[%s15049_s16 + $0x558] sm:$0xf]  ;;  %v16976_v0 = vpop.f32.mrf.mxu2 }
 0x5bf   : > { %v13746_v14 = vld [vmem:[%s15049_s16 + $0x574] sm:$0xf0]  ;;  %7871 = vmatmul.bf16.vlgmr.msrb.gmra.mxu1 %v15373_v41  ;;  %v9383_v63 = vor.u32 %v13618_v37, %v9382_v23  ;;  %v9639_v21 = vor.u32 %v13682_v61, %v9638_v12  ;;  %17872 = vst [vmem:[#allocation75_spill] sm:$0xff] %v16976_v0 }
 0x5c0   : > { %7898 = vmatpush.bf16.msrb.mxu3 %v13059_v45  ;;  %7919 = vmatpush.bf16.msra.mxu1 %v9703_v49  ;;  %v10150_v60 = vld [vmem:[%s15049_s16 + $0x758] sm:$0xf]  ;;  %v9895_v48 = vor.u32 %v13746_v14, %v9894_v25 }
 0x5c1   : > { %7885 = vmatmul.bf16.vlgmr.msrb.gmra.mxu2 %v15371_v38  ;;  %v13810_v2 = vld [vmem:[%s15049_s16 + $0x774] sm:$0xf0] }
 0x5c2   : > { %7933 = vmatpush.bf16.msra.mxu2 %v9959_v4  ;;  %7906 = vmatpush.bf16.msra.mxu0 %v9415_v33  ;;  %v9350_v7 = vld [vmem:[%s15049_s16 + $0x118] sm:$0xf]  ;;  %v10151_v49 = vor.u32 %v13810_v2, %v10150_v60  ;;  %v7634_v55 = vpop.f32.mrf.mxu0 }
 0x5c3   : > { %7899 = vmatmul.bf16.vlgmr.msrb.gmra.mxu3 %v15377_v46  ;;  %v13610_v24 = vld [vmem:[%s15049_s16 + $0x134] sm:$0xf0] }
 0x5c4   : > { %7947 = vmatpush.bf16.msra.mxu3 %v10215_v29  ;;  %7920 = vmatpush.bf16.msra.mxu1 %v9671_v16  ;;  %v9606_v45 = vld [vmem:[%s15049_s16 + $0x318] sm:$0xf]  ;;  %v7635_v16 = vadd.f32 %v7634_v55, %v16923_v34  ;;  %v7648_v23 = vpop.f32.mrf.mxu1 }
 0x5c5   : > { %v13674_v4 = vld [vmem:[%s15049_s16 + $0x334] sm:$0xf0] }
 0x5c6   : > { %7934 = vmatpush.bf16.msra.mxu2 %v9927_v59  ;;  %v9862_v29 = vld [vmem:[%s15049_s16 + $0x518] sm:$0xf]  ;;  %7907 = vmatpush.bf16.msra.mxu0 %v9383_v63  ;;  %v9351_v59 = vor.u32 %v13610_v24, %v9350_v7  ;;  %v9607_v37 = vor.u32 %v13674_v4, %v9606_v45  ;;  %v7649_v60 = vadd.f32 %v7648_v23, %v7635_v16  ;;  %v7662_v55 = vpop.f32.mrf.mxu2  ;;  %v7676_v23 = vpop.f32.mrf.mxu3 }
 0x5c7   : > { %v13738_v18 = vld [vmem:[%s15049_s16 + $0x534] sm:$0xf0] }
 0x5c8   : > { %7948 = vmatpush.bf16.msra.mxu3 %v10183_v53  ;;  %v10118_v26 = vld [vmem:[%s15049_s16 + $0x718] sm:$0xf]  ;;  %7921 = vmatpush.bf16.msra.mxu1 %v9639_v21  ;;  %v9863_v12 = vor.u32 %v13738_v18, %v9862_v29 }
 0x5c9   : > { %v13802_v33 = vld [vmem:[%s15049_s16 + $0x734] sm:$0xf0] }
 0x5ca   : > { %7935 = vmatpush.bf16.msra.mxu2 %v9895_v48  ;;  %v9318_v53 = vld [vmem:[%s15049_s16 + $0xd8] sm:$0xf]  ;;  %v10119_v14 = vor.u32 %v13802_v33, %v10118_v26  ;;  %7908 = vmatpush.bf16.msra.mxu0 %v9351_v59  ;;  %v7663_v59 = vadd.f32 %v7662_v55, %v7649_v60 }
 0x5cb   : > { %v13602_v61 = vld [vmem:[%s15049_s16 + $0xf4] sm:$0xf0] }
 0x5cc   : > { %v9574_v25 = vld [vmem:[%s15049_s16 + $0x2d8] sm:$0xf]  ;;  %7949 = vmatpush.bf16.msra.mxu3 %v10151_v49  ;;  %v9319_v48 = vor.u32 %v13602_v61, %v9318_v53  ;;  %7922 = vmatpush.bf16.msra.mxu1 %v9607_v37  ;;  %v17002_v61 = vadd.f32 %v7676_v23, %v7663_v59 }
 0x5cd   : > { %v13666_v2 = vld [vmem:[%s15049_s16 + $0x2f4] sm:$0xf0] }
 0x5ce   : > { %v9830_v63 = vld [vmem:[%s15049_s16 + $0x4d8] sm:$0xf]  ;;  %7936 = vmatpush.bf16.msra.mxu2 %v9863_v12  ;;  %v9575_v24 = vor.u32 %v13666_v2, %v9574_v25  ;;  %7909 = vmatpush.bf16.msra.mxu0 %v9319_v48  ;;  %17874 = vst [vmem:[#allocation77_spill] sm:$0xff] %v17002_v61 }
 0x5cf   : > { %v13730_v34 = vld [vmem:[%s15049_s16 + $0x4f4] sm:$0xf0] }
 0x5d0   : > { %v10086_v7 = vld [vmem:[%s15049_s16 + $0x6d8] sm:$0xf]  ;;  %v9831_v45 = vor.u32 %v13730_v34, %v9830_v63  ;;  %7950 = vmatpush.bf16.msra.mxu3 %v10119_v14  ;;  %7923 = vmatpush.bf16.msra.mxu1 %v9575_v24 }
 0x5d1   : > { %v13794_v21 = vld [vmem:[%s15049_s16 + $0x6f4] sm:$0xf0] }
 0x5d2   : > { %v9286_v49 = vld [vmem:[%s15049_s16 + $0x98] sm:$0xf]  ;;  %v10087_v18 = vor.u32 %v13794_v21, %v10086_v7  ;;  %7937 = vmatpush.bf16.msra.mxu2 %v9831_v45 }
 0x5d3   : > { %v13594_v4 = vld [vmem:[%s15049_s16 + $0xb4] sm:$0xf0] }
 0x5d4   : > { %v9542_v29 = vld [vmem:[%s15049_s16 + $0x298] sm:$0xf]  ;;  %v9287_v53 = vor.u32 %v13594_v4, %v9286_v49  ;;  %7951 = vmatpush.bf16.msra.mxu3 %v10087_v18 }
 0x5d5   : > { %v13658_v26 = vld [vmem:[%s15049_s16 + $0x2b4] sm:$0xf0] }
 0x5d6   : > { %v9798_v33 = vld [vmem:[%s15049_s16 + $0x498] sm:$0xf]  ;;  %v9543_v25 = vor.u32 %v13658_v26, %v9542_v29  ;;  %7910 = vmatpush.bf16.msra.mxu0 %v9287_v53 }
 0x5d7   : > { %v13722_v16 = vld [vmem:[%s15049_s16 + $0x4b4] sm:$0xf0] }
 0x5d8   : > { %v10054_v37 = vld [vmem:[%s15049_s16 + $0x698] sm:$0xf]  ;;  %v9799_v14 = vor.u32 %v13722_v16, %v9798_v33  ;;  %7924 = vmatpush.bf16.msra.mxu1 %v9543_v25 }
 0x5d9   : > { %v13786_v12 = vld [vmem:[%s15049_s16 + $0x6b4] sm:$0xf0] }
 0x5da   : > { %v9254_v2 = vld [vmem:[%s15049_s16 + $0x58] sm:$0xf]  ;;  %v10055_v34 = vor.u32 %v13786_v12, %v10054_v37  ;;  %7938 = vmatpush.bf16.msra.mxu2 %v9799_v14 }
 0x5db   : > { %v13586_v60 = vld [vmem:[%s15049_s16 + $0x74] sm:$0xf0] }
 0x5dc   : > { %v9510_v63 = vld [vmem:[%s15049_s16 + $0x258] sm:$0xf]  ;;  %v9255_v49 = vor.u32 %v13586_v60, %v9254_v2  ;;  %7952 = vmatpush.bf16.msra.mxu3 %v10055_v34 }
 0x5dd   : > { %v13650_v7 = vld [vmem:[%s15049_s16 + $0x274] sm:$0xf0] }
 0x5de   : > { %v9766_v21 = vld [vmem:[%s15049_s16 + $0x458] sm:$0xf]  ;;  %v9511_v18 = vor.u32 %v13650_v7, %v9510_v63  ;;  %7911 = vmatpush.bf16.msra.mxu0 %v9255_v49 }
 0x5df   : > { %v13714_v48 = vld [vmem:[%s15049_s16 + $0x474] sm:$0xf0] }
 0x5e0   : > { %v10022_v24 = vld [vmem:[%s15049_s16 + $0x658] sm:$0xf]  ;;  %v9767_v55 = vor.u32 %v13714_v48, %v9766_v21  ;;  %7925 = vmatpush.bf16.msra.mxu1 %v9511_v18 }
 0x5e1   : > { %v13778_v45 = vld [vmem:[%s15049_s16 + $0x674] sm:$0xf0] }
 0x5e2   : > { %v9222_v4 = vld [vmem:[%s15049_s16 + $0x18] sm:$0xf]  ;;  %v10023_v59 = vor.u32 %v13778_v45, %v10022_v24  ;;  %7939 = vmatpush.bf16.msra.mxu2 %v9767_v55 }
 0x5e3   : > { %v13578_v29 = vld [vmem:[%s15049_s16 + $0x34] sm:$0xf0] }
 0x5e4   : > { %v9478_v26 = vld [vmem:[%s15049_s16 + $0x218] sm:$0xf]  ;;  %v9223_v25 = vor.u32 %v13578_v29, %v9222_v4  ;;  %7953 = vmatpush.bf16.msra.mxu3 %v10023_v59 }
 0x5e5   : > { %v13642_v33 = vld [vmem:[%s15049_s16 + $0x234] sm:$0xf0] }
 0x5e6   : > { %v9734_v16 = vld [vmem:[%s15049_s16 + $0x418] sm:$0xf]  ;;  %v9479_v34 = vor.u32 %v13642_v33, %v9478_v26  ;;  %7912 = vmatpush.bf16.msra.mxu0 %v9223_v25  ;;  %v17034_v33 = vpop.f32.mrf.mxu0 }
 0x5e7   : > { %v13706_v23 = vld [vmem:[%s15049_s16 + $0x434] sm:$0xf0]  ;;  %17875 = vst [vmem:[#allocation78_spill] sm:$0xff] %v17034_v33 }
 0x5e8   : > { %v9990_v37 = vld [vmem:[%s15049_s16 + $0x618] sm:$0xf]  ;;  %v9735_v21 = vor.u32 %v13706_v23, %v9734_v16  ;;  %7926 = vmatpush.bf16.msra.mxu1 %v9479_v34 }
 0x5e9   : > { %v13770_v12 = vld [vmem:[%s15049_s16 + $0x634] sm:$0xf0]  ;;  %7913 = vmatmul.bf16.vlgmr.msra.gmra.mxu0 %v15145_v58 }
 0x5ea   : > { %v10470_v53 = vld [vmem:[%s15049_s16 + $0x9d8] sm:$0xf]  ;;  %v9991_v45 = vor.u32 %v13770_v12, %v9990_v37  ;;  %7940 = vmatpush.bf16.msra.mxu2 %v9735_v21  ;;  %v17038_v37 = vpop.f32.mrf.mxu1 }
 0x5eb   : > { %v13890_v2 = vld [vmem:[%s15049_s16 + $0x9f4] sm:$0xf0]  ;;  %17876 = vst [vmem:[#allocation79_spill] sm:$0xff] %v17038_v37  ;;  %7927 = vmatmul.bf16.vlgmr.msra.gmra.mxu1 %v15157_v10 }
 0x5ec   : > { %v10726_v60 = vld [vmem:[%s15049_s16 + $0xbd8] sm:$0xf]  ;;  %v10471_v49 = vor.u32 %v13890_v2, %v10470_v53  ;;  %7954 = vmatpush.bf16.msra.mxu3 %v9991_v45 }
 0x5ed   : > { %v13954_v14 = vld [vmem:[%s15049_s16 + $0xbf4] sm:$0xf0]  ;;  %7941 = vmatmul.bf16.vlgmr.msra.gmra.mxu2 %v15150_v1 }
 0x5ee   : > { %v10982_v63 = vld [vmem:[%s15049_s16 + $0xdd8] sm:$0xf]  ;;  %v10727_v4 = vor.u32 %v13954_v14, %v10726_v60  ;;  %7961 = vmatpush.bf16.msrb.mxu0 %v10471_v49 }
 0x5ef   : > { %v14018_v7 = vld [vmem:[%s15049_s16 + $0xdf4] sm:$0xf0]  ;;  %7955 = vmatmul.bf16.vlgmr.msra.gmra.mxu3 %v15162_v17 }
 0x5f0   : > { %v11238_v48 = vld [vmem:[%s15049_s16 + $0xfd8] sm:$0xf]  ;;  %v10983_v29 = vor.u32 %v14018_v7, %v10982_v63  ;;  %7975 = vmatpush.bf16.msrb.mxu1 %v10727_v4  ;;  %v17056_v4 = vpop.f32.mrf.mxu2 }
 0x5f1   : > { %v14082_v24 = vld [vmem:[%s15049_s16 + $0xff4] sm:$0xf0]  ;;  %17877 = vst [vmem:[#allocation80_spill] sm:$0xff] %v17056_v4 }
 0x5f2   : > { %v10438_v61 = vld [vmem:[%s15049_s16 + $0x998] sm:$0xf]  ;;  %v11239_v18 = vor.u32 %v14082_v24, %v11238_v48  ;;  %7989 = vmatpush.bf16.msrb.mxu2 %v10983_v29 }
 0x5f3   : > { %v13882_v22 = vld [vmem:[%s15049_s16 + $0x9b4] sm:$0xf0] }
 0x5f4   : > { %v10694_v0 = vld [vmem:[%s15049_s16 + $0xb98] sm:$0xf]  ;;  %v10439_v23 = vor.u32 %v13882_v22, %v10438_v61  ;;  %8003 = vmatpush.bf16.msrb.mxu3 %v11239_v18 }
 0x5f5   : > { %v13946_v8 = vld [vmem:[%s15049_s16 + $0xbb4] sm:$0xf0] }
 0x5f6   : > { %v10950_v55 = vld [vmem:[%s15049_s16 + $0xd98] sm:$0xf]  ;;  %v10695_v12 = vor.u32 %v13946_v8, %v10694_v0  ;;  %7962 = vmatpush.bf16.msrb.mxu0 %v10439_v23  ;;  %v17802_v0 = vperm.slane %v15452_v51, 5  ;;  %v7690_v23 = vpop.f32.mrf.mxu0 }
 0x5f7   : > { %v14010_v26 = vld [vmem:[%s15049_s16 + $0xdb4] sm:$0xf0] }
 0x5f8   : > { %v11206_v16 = vld [vmem:[%s15049_s16 + $0xf98] sm:$0xf]  ;;  %v10951_v53 = vor.u32 %v14010_v26, %v10950_v55  ;;  %7976 = vmatpush.bf16.msrb.mxu1 %v10695_v12  ;;  %v17063_v12 = vpop.f32.mrf.mxu3 }
 0x5f9   : > { %v14074_v59 = vld [vmem:[%s15049_s16 + $0xfb4] sm:$0xf0]  ;;  %17878 = vst [vmem:[#allocation81_spill] sm:$0xff] %v17063_v12 }
 0x5fa   : > { %v10406_v2 = vld [vmem:[%s15049_s16 + $0x958] sm:$0xf]  ;;  %v11207_v14 = vor.u32 %v14074_v59, %v11206_v16  ;;  %7990 = vmatpush.bf16.msrb.mxu2 %v10951_v53 }
 0x5fb   : > { %v13874_v60 = vld [vmem:[%s15049_s16 + $0x974] sm:$0xf0] }
 0x5fc   : > { %v10662_v25 = vld [vmem:[%s15049_s16 + $0xb58] sm:$0xf]  ;;  %v10407_v8 = vor.u32 %v13874_v60, %v10406_v2  ;;  %8004 = vmatpush.bf16.msrb.mxu3 %v11207_v14  ;;  %v7691_v2 = vadd.f32 %v7690_v23, %v17802_v0  ;;  %v7718_v0 = vpop.f32.mrf.mxu2 }
 0x5fd   : > { %v13938_v63 = vld [vmem:[%s15049_s16 + $0xb74] sm:$0xf0] }
 0x5fe   : > { %v10918_v7 = vld [vmem:[%s15049_s16 + $0xd58] sm:$0xf]  ;;  %v10663_v21 = vor.u32 %v13938_v63, %v10662_v25  ;;  %7963 = vmatpush.bf16.msrb.mxu0 %v10407_v8  ;;  %v17109_v4 = vpop.f32.mrf.mxu0 }
 0x5ff   : > { %v14002_v34 = vld [vmem:[%s15049_s16 + $0xd74] sm:$0xf0] }
 0x600   : > { %v11174_v22 = vld [vmem:[%s15049_s16 + $0xf58] sm:$0xf]  ;;  %v10919_v48 = vor.u32 %v14002_v34, %v10918_v7  ;;  %7977 = vmatpush.bf16.msrb.mxu1 %v10663_v21  ;;  %v7704_v34 = vpop.f32.mrf.mxu1 }
 0x601   : > { %v14066_v61 = vld [vmem:[%s15049_s16 + $0xf74] sm:$0xf0] }
 0x602   : > { %v10374_v24 = vld [vmem:[%s15049_s16 + $0x918] sm:$0xf]  ;;  %v11175_v29 = vor.u32 %v14066_v61, %v11174_v22  ;;  %7991 = vmatpush.bf16.msrb.mxu2 %v10919_v48 }
 0x603   : > { %v13866_v45 = vld [vmem:[%s15049_s16 + $0x934] sm:$0xf0] }
 0x604   : > { %v10630_v49 = vld [vmem:[%s15049_s16 + $0xb18] sm:$0xf]  ;;  %v10375_v53 = vor.u32 %v13866_v45, %v10374_v24  ;;  %8005 = vmatpush.bf16.msrb.mxu3 %v11175_v29  ;;  %v7705_v45 = vadd.f32 %v7704_v34, %v7691_v2 }
 0x605   : > { %v13930_v18 = vld [vmem:[%s15049_s16 + $0xb34] sm:$0xf0] }
 0x606   : > { %v10886_v55 = vld [vmem:[%s15049_s16 + $0xd18] sm:$0xf]  ;;  %v10631_v60 = vor.u32 %v13930_v18, %v10630_v49  ;;  %7964 = vmatpush.bf16.msrb.mxu0 %v10375_v53 }
 0x607   : > { %v13994_v26 = vld [vmem:[%s15049_s16 + $0xd34] sm:$0xf0] }
 0x608   : > { %v11142_v16 = vld [vmem:[%s15049_s16 + $0xf18] sm:$0xf]  ;;  %v10887_v25 = vor.u32 %v13994_v26, %v10886_v55  ;;  %7978 = vmatpush.bf16.msrb.mxu1 %v10631_v60  ;;  %v7719_v60 = vadd.f32 %v7718_v0, %v7705_v45 }
 0x609   : > { %v14058_v59 = vld [vmem:[%s15049_s16 + $0xf34] sm:$0xf0] }
 0x60a   : > { %v10342_v14 = vld [vmem:[%s15049_s16 + $0x8d8] sm:$0xf]  ;;  %v11143_v22 = vor.u32 %v14058_v59, %v11142_v16  ;;  %7992 = vmatpush.bf16.msrb.mxu2 %v10887_v25 }
 0x60b   : > { %v13858_v63 = vld [vmem:[%s15049_s16 + $0x8f4] sm:$0xf0] }
 0x60c   : > { %v10598_v7 = vld [vmem:[%s15049_s16 + $0xad8] sm:$0xf]  ;;  %v10343_v49 = vor.u32 %v13858_v63, %v10342_v14  ;;  %8006 = vmatpush.bf16.msrb.mxu3 %v11143_v22  ;;  %v7732_v14 = vpop.f32.mrf.mxu3 }
 0x60d   : > { %v13922_v61 = vld [vmem:[%s15049_s16 + $0xaf4] sm:$0xf0] }
 0x60e   : > { %v10854_v8 = vld [vmem:[%s15049_s16 + $0xcd8] sm:$0xf]  ;;  %v10599_v18 = vor.u32 %v13922_v61, %v10598_v7  ;;  %7965 = vmatpush.bf16.msrb.mxu0 %v10343_v49 }
 0x60f   : > { %v13986_v24 = vld [vmem:[%s15049_s16 + $0xcf4] sm:$0xf0] }
 0x610   : > { %v11110_v21 = vld [vmem:[%s15049_s16 + $0xed8] sm:$0xf]  ;;  %v10855_v55 = vor.u32 %v13986_v24, %v10854_v8  ;;  %7979 = vmatpush.bf16.msrb.mxu1 %v10599_v18  ;;  %v17086_v24 = vadd.f32 %v7732_v14, %v7719_v60 }
 0x611   : > { %v14050_v48 = vld [vmem:[%s15049_s16 + $0xef4] sm:$0xf0] }
 0x612   : > { %v10310_v29 = vld [vmem:[%s15049_s16 + $0x898] sm:$0xf]  ;;  %v11111_v59 = vor.u32 %v14050_v48, %v11110_v21  ;;  %7993 = vmatpush.bf16.msrb.mxu2 %v10855_v55 }
 0x613   : > { %v13850_v26 = vld [vmem:[%s15049_s16 + $0x8b4] sm:$0xf0] }
 0x614   : > { %v10566_v16 = vld [vmem:[%s15049_s16 + $0xa98] sm:$0xf]  ;;  %v10311_v25 = vor.u32 %v13850_v26, %v10310_v29  ;;  %8007 = vmatpush.bf16.msrb.mxu3 %v11111_v59 }
 0x615   : > { %v13914_v23 = vld [vmem:[%s15049_s16 + $0xab4] sm:$0xf0] }
 0x616   : > { %v10822_v2 = vld [vmem:[%s15049_s16 + $0xc98] sm:$0xf]  ;;  %v10567_v63 = vor.u32 %v13914_v23, %v10566_v16  ;;  %7966 = vmatpush.bf16.msrb.mxu0 %v10311_v25 }
 0x617   : > { %v13978_v34 = vld [vmem:[%s15049_s16 + $0xcb4] sm:$0xf0] }
 0x618   : > { %v11078_v12 = vld [vmem:[%s15049_s16 + $0xe98] sm:$0xf]  ;;  %v10823_v7 = vor.u32 %v13978_v34, %v10822_v2  ;;  %7980 = vmatpush.bf16.msrb.mxu1 %v10567_v63 }
 0x619   : > { %v14042_v53 = vld [vmem:[%s15049_s16 + $0xeb4] sm:$0xf0] }
 0x61a   : > { %v10278_v22 = vld [vmem:[%s15049_s16 + $0x858] sm:$0xf]  ;;  %v11079_v0 = vor.u32 %v14042_v53, %v11078_v12  ;;  %7994 = vmatpush.bf16.msrb.mxu2 %v10823_v7 }
 0x61b   : > { %v13842_v61 = vld [vmem:[%s15049_s16 + $0x874] sm:$0xf0] }
 0x61c   : > { %v10534_v8 = vld [vmem:[%s15049_s16 + $0xa58] sm:$0xf]  ;;  %v10279_v55 = vor.u32 %v13842_v61, %v10278_v22  ;;  %8008 = vmatpush.bf16.msrb.mxu3 %v11079_v0 }
 0x61d   : > { %v13906_v45 = vld [vmem:[%s15049_s16 + $0xa74] sm:$0xf0] }
 0x61e   : > { %v10790_v21 = vld [vmem:[%s15049_s16 + $0xc58] sm:$0xf]  ;;  %v10535_v12 = vor.u32 %v13906_v45, %v10534_v8  ;;  %7967 = vmatpush.bf16.msrb.mxu0 %v10279_v55 }
 0x61f   : > { %v13970_v48 = vld [vmem:[%s15049_s16 + $0xc74] sm:$0xf0] }
 0x620   : > { %v11046_v49 = vld [vmem:[%s15049_s16 + $0xe58] sm:$0xf]  ;;  %v10791_v16 = vor.u32 %v13970_v48, %v10790_v21  ;;  %7981 = vmatpush.bf16.msrb.mxu1 %v10535_v12 }
 0x621   : > { %v14034_v18 = vld [vmem:[%s15049_s16 + $0xe74] sm:$0xf0] }
 0x622   : > { %v10246_v29 = vld [vmem:[%s15049_s16 + $0x818] sm:$0xf]  ;;  %v11047_v34 = vor.u32 %v14034_v18, %v11046_v49  ;;  %7995 = vmatpush.bf16.msrb.mxu2 %v10791_v16 }
 0x623   : > { %v13834_v26 = vld [vmem:[%s15049_s16 + $0x834] sm:$0xf0] }
 0x624   : > { %v10502_v59 = vld [vmem:[%s15049_s16 + $0xa18] sm:$0xf]  ;;  %v10247_v63 = vor.u32 %v13834_v26, %v10246_v29  ;;  %8009 = vmatpush.bf16.msrb.mxu3 %v11047_v34 }
 0x625   : > { %v13898_v23 = vld [vmem:[%s15049_s16 + $0xa34] sm:$0xf0] }
 0x626   : > { %v10758_v2 = vld [vmem:[%s15049_s16 + $0xc18] sm:$0xf]  ;;  %v10503_v0 = vor.u32 %v13898_v23, %v10502_v59  ;;  %7968 = vmatpush.bf16.msrb.mxu0 %v10247_v63 }
 0x627   : > { %v13962_v53 = vld [vmem:[%s15049_s16 + $0xc34] sm:$0xf0] }
 0x628   : > { %v11014_v60 = vld [vmem:[%s15049_s16 + $0xe18] sm:$0xf]  ;;  %v10759_v21 = vor.u32 %v13962_v53, %v10758_v2  ;;  %7982 = vmatpush.bf16.msrb.mxu1 %v10503_v0 }
 0x629   : > { %v14026_v25 = vld [vmem:[%s15049_s16 + $0xe34] sm:$0xf0]  ;;  %7969 = vmatmul.bf16.vlgmr.msrb.gmra.mxu0 %v15214_v39 }
 0x62a   : > { %v11494_v14 = vld [vmem:[%s15049_s16 + $0x11d8] sm:$0xf]  ;;  %v11015_v18 = vor.u32 %v14026_v25, %v11014_v60  ;;  %7996 = vmatpush.bf16.msrb.mxu2 %v10759_v21  ;;  %v17119_v60 = vpop.f32.mrf.mxu1 }
 0x62b   : > { %v14146_v22 = vld [vmem:[%s15049_s16 + $0x11f4] sm:$0xf0]  ;;  %7983 = vmatmul.bf16.vlgmr.msrb.gmra.mxu1 %v15221_v44 }
 0x62c   : > { %v11750_v61 = vld [vmem:[%s15049_s16 + $0x13d8] sm:$0xf]  ;;  %v11495_v55 = vor.u32 %v14146_v22, %v11494_v14  ;;  %8010 = vmatpush.bf16.msrb.mxu3 %v11015_v18 }
 0x62d   : > { %v14210_v7 = vld [vmem:[%s15049_s16 + $0x13f4] sm:$0xf0]  ;;  %7997 = vmatmul.bf16.vlgmr.msrb.gmra.mxu2 %v15219_v43 }
 0x62e   : > { %v12006_v8 = vld [vmem:[%s15049_s16 + $0x15d8] sm:$0xf]  ;;  %v11751_v29 = vor.u32 %v14210_v7, %v11750_v61  ;;  %8017 = vmatpush.bf16.msra.mxu0 %v11495_v55 }
 0x62f   : > { %v14274_v45 = vld [vmem:[%s15049_s16 + $0x15f4] sm:$0xf0]  ;;  %8011 = vmatmul.bf16.vlgmr.msrb.gmra.mxu3 %v15225_v47 }
 0x630   : > { %v12262_v48 = vld [vmem:[%s15049_s16 + $0x17d8] sm:$0xf]  ;;  %v12007_v26 = vor.u32 %v14274_v45, %v12006_v8  ;;  %8031 = vmatpush.bf16.msra.mxu1 %v11751_v29 }
 0x631   : > { %v14338_v49 = vld [vmem:[%s15049_s16 + $0x17f4] sm:$0xf0] }
 0x632   : > { %v11462_v37 = vld [vmem:[%s15049_s16 + $0x1198] sm:$0xf]  ;;  %v12263_v16 = vor.u32 %v14338_v49, %v12262_v48  ;;  %8045 = vmatpush.bf16.msra.mxu2 %v12007_v26  ;;  %v17133_v49 = vpop.f32.mrf.mxu2 }
 0x633   : > { %v14138_v33 = vld [vmem:[%s15049_s16 + $0x11b4] sm:$0xf0] }
 0x634   : > { %v11718_v12 = vld [vmem:[%s15049_s16 + $0x1398] sm:$0xf]  ;;  %v11463_v25 = vor.u32 %v14138_v33, %v11462_v37  ;;  %8059 = vmatpush.bf16.msra.mxu3 %v12263_v16 }
 0x635   : > { %v14202_v59 = vld [vmem:[%s15049_s16 + $0x13b4] sm:$0xf0] }
 0x636   : > { %v11974_v23 = vld [vmem:[%s15049_s16 + $0x1598] sm:$0xf]  ;;  %v11719_v14 = vor.u32 %v14202_v59, %v11718_v12  ;;  %8018 = vmatpush.bf16.msra.mxu0 %v11463_v25  ;;  %v17138_v59 = vpop.f32.mrf.mxu3 }
 0x637   : > { %v14266_v2 = vld [vmem:[%s15049_s16 + $0x15b4] sm:$0xf0] }
 0x638   : > { %v12230_v34 = vld [vmem:[%s15049_s16 + $0x1798] sm:$0xf]  ;;  %v11975_v22 = vor.u32 %v14266_v2, %v11974_v23  ;;  %8032 = vmatpush.bf16.msra.mxu1 %v11719_v14 }
 0x639   : > { %v14330_v53 = vld [vmem:[%s15049_s16 + $0x17b4] sm:$0xf0] }
 0x63a   : > { %v11430_v61 = vld [vmem:[%s15049_s16 + $0x1158] sm:$0xf]  ;;  %v12231_v8 = vor.u32 %v14330_v53, %v12230_v34  ;;  %8046 = vmatpush.bf16.msra.mxu2 %v11975_v22  ;;  %v7746_v53 = vpop.f32.mrf.mxu0 }
 0x63b   : > { %v14130_v63 = vld [vmem:[%s15049_s16 + $0x1174] sm:$0xf0]  ;;  %v7747_v22 = vadd.f32 %v7746_v53, %v17086_v24  ;;  %v7774_v53 = vpop.f32.mrf.mxu2 }
 0x63c   : > { %v11686_v7 = vld [vmem:[%s15049_s16 + $0x1358] sm:$0xf]  ;;  %v11431_v48 = vor.u32 %v14130_v63, %v11430_v61  ;;  %8060 = vmatpush.bf16.msra.mxu3 %v12231_v8  ;;  %v7760_v8 = vpop.f32.mrf.mxu1 }
 0x63d   : > { %v14194_v45 = vld [vmem:[%s15049_s16 + $0x1374] sm:$0xf0] }
 0x63e   : > { %v11942_v0 = vld [vmem:[%s15049_s16 + $0x1558] sm:$0xf]  ;;  %v11687_v18 = vor.u32 %v14194_v45, %v11686_v7  ;;  %8019 = vmatpush.bf16.msra.mxu0 %v11431_v48 }
 0x63f   : > { %v14258_v21 = vld [vmem:[%s15049_s16 + $0x1574] sm:$0xf0] }
 0x640   : > { %v12198_v33 = vld [vmem:[%s15049_s16 + $0x1758] sm:$0xf]  ;;  %v11943_v55 = vor.u32 %v14258_v21, %v11942_v0  ;;  %8033 = vmatpush.bf16.msra.mxu1 %v11687_v18 }
 0x641   : > { %v14322_v37 = vld [vmem:[%s15049_s16 + $0x1774] sm:$0xf0] }
 0x642   : > { %v11398_v29 = vld [vmem:[%s15049_s16 + $0x1118] sm:$0xf]  ;;  %v12199_v16 = vor.u32 %v14322_v37, %v12198_v33  ;;  %8047 = vmatpush.bf16.msra.mxu2 %v11943_v55  ;;  %v7761_v37 = vadd.f32 %v7760_v8, %v7747_v22 }
 0x643   : > { %v14122_v26 = vld [vmem:[%s15049_s16 + $0x1134] sm:$0xf0] }
 0x644   : > { %v11654_v12 = vld [vmem:[%s15049_s16 + $0x1318] sm:$0xf]  ;;  %v11399_v61 = vor.u32 %v14122_v26, %v11398_v29  ;;  %8061 = vmatpush.bf16.msra.mxu3 %v12199_v16 }
 0x645   : > { %v14186_v23 = vld [vmem:[%s15049_s16 + $0x1334] sm:$0xf0] }
 0x646   : > { %v11910_v2 = vld [vmem:[%s15049_s16 + $0x1518] sm:$0xf]  ;;  %v11655_v63 = vor.u32 %v14186_v23, %v11654_v12  ;;  %8020 = vmatpush.bf16.msra.mxu0 %v11399_v61  ;;  %v7775_v61 = vadd.f32 %v7774_v53, %v7761_v37 }
 0x647   : > { %v14250_v34 = vld [vmem:[%s15049_s16 + $0x1534] sm:$0xf0] }
 0x648   : > { %v12166_v25 = vld [vmem:[%s15049_s16 + $0x1718] sm:$0xf]  ;;  %v11911_v7 = vor.u32 %v14250_v34, %v11910_v2  ;;  %8034 = vmatpush.bf16.msra.mxu1 %v11655_v63 }
 0x649   : > { %v14314_v14 = vld [vmem:[%s15049_s16 + $0x1734] sm:$0xf0] }
 0x64a   : > { %v11366_v45 = vld [vmem:[%s15049_s16 + $0x10d8] sm:$0xf]  ;;  %v12167_v33 = vor.u32 %v14314_v14, %v12166_v25  ;;  %8048 = vmatpush.bf16.msra.mxu2 %v11911_v7 }
 0x64b   : > { %v14114_v0 = vld [vmem:[%s15049_s16 + $0x10f4] sm:$0xf0] }
 0x64c   : > { %v11622_v21 = vld [vmem:[%s15049_s16 + $0x12d8] sm:$0xf]  ;;  %v11367_v55 = vor.u32 %v14114_v0, %v11366_v45  ;;  %8062 = vmatpush.bf16.msra.mxu3 %v12167_v33 }
 0x64d   : > { %v14178_v48 = vld [vmem:[%s15049_s16 + $0x12f4] sm:$0xf0] }
 0x64e   : > { %v11878_v9 = vld [vmem:[%s15049_s16 + $0x14d8] sm:$0xf]  ;;  %v11623_v26 = vor.u32 %v14178_v48, %v11622_v21  ;;  %8021 = vmatpush.bf16.msra.mxu0 %v11367_v55 }
 0x64f   : > { %v14242_v24 = vld [vmem:[%s15049_s16 + $0x14f4] sm:$0xf0] }
 0x650   : > { %v12134_v29 = vld [vmem:[%s15049_s16 + $0x16d8] sm:$0xf]  ;;  %v11879_v12 = vor.u32 %v14242_v24, %v11878_v9  ;;  %v7788_v9 = vpop.f32.mrf.mxu3  ;;  %8035 = vmatpush.bf16.msra.mxu1 %v11623_v26  ;;  %v17879_v24 = vperm.slane %v15452_v51, 5 }
 0x651   : > { %v14306_v18 = vld [vmem:[%s15049_s16 + $0x16f4] sm:$0xf0]  ;;  %v17162_v7 = vadd.f32 %v7788_v9, %v7775_v61 }
 0x652   : > { %v11334_v16 = vld [vmem:[%s15049_s16 + $0x1098] sm:$0xf]  ;;  %v12135_v34 = vor.u32 %v14306_v18, %v12134_v29  ;;  %8049 = vmatpush.bf16.msra.mxu2 %v11879_v12  ;;  %v7693_v29 = vadd.f32 %v17109_v4, %v17879_v24 }
 0x653   : > { %v14106_v23 = vld [vmem:[%s15049_s16 + $0x10b4] sm:$0xf0] }
 0x654   : > { %v11590_v2 = vld [vmem:[%s15049_s16 + $0x1298] sm:$0xf]  ;;  %v11335_v63 = vor.u32 %v14106_v23, %v11334_v16  ;;  %8063 = vmatpush.bf16.msra.mxu3 %v12135_v34 }
 0x655   : > { %v14170_v25 = vld [vmem:[%s15049_s16 + $0x12b4] sm:$0xf0] }
 0x656   : > { %v11846_v14 = vld [vmem:[%s15049_s16 + $0x1498] sm:$0xf]  ;;  %v11591_v0 = vor.u32 %v14170_v25, %v11590_v2  ;;  %8022 = vmatpush.bf16.msra.mxu0 %v11335_v63 }
 0x657   : > { %v14234_v22 = vld [vmem:[%s15049_s16 + $0x14b4] sm:$0xf0] }
 0x658   : > { %v12102_v8 = vld [vmem:[%s15049_s16 + $0x1698] sm:$0xf]  ;;  %v11847_v21 = vor.u32 %v14234_v22, %v11846_v14  ;;  %8036 = vmatpush.bf16.msra.mxu1 %v11591_v0 }
 0x659   : > { %v14298_v45 = vld [vmem:[%s15049_s16 + $0x16b4] sm:$0xf0] }
 0x65a   : > { %v11302_v33 = vld [vmem:[%s15049_s16 + $0x1058] sm:$0xf]  ;;  %v12103_v18 = vor.u32 %v14298_v45, %v12102_v8  ;;  %8050 = vmatpush.bf16.msra.mxu2 %v11847_v21  ;;  %v7707_v8 = vadd.f32 %v17119_v60, %v7693_v29 }
 0x65b   : > { %v14098_v37 = vld [vmem:[%s15049_s16 + $0x1074] sm:$0xf0] }
 0x65c   : > { %v11558_v48 = vld [vmem:[%s15049_s16 + $0x1258] sm:$0xf]  ;;  %v11303_v2 = vor.u32 %v14098_v37, %v11302_v33  ;;  %8064 = vmatpush.bf16.msra.mxu3 %v12103_v18 }
 0x65d   : > { %v14162_v55 = vld [vmem:[%s15049_s16 + $0x1274] sm:$0xf0] }
 0x65e   : > { %v11814_v26 = vld [vmem:[%s15049_s16 + $0x1458] sm:$0xf]  ;;  %v11559_v4 = vor.u32 %v14162_v55, %v11558_v48  ;;  %8023 = vmatpush.bf16.msra.mxu0 %v11303_v2 }
 0x65f   : > { %v14226_v12 = vld [vmem:[%s15049_s16 + $0x1474] sm:$0xf0] }
 0x660   : > { %v12070_v16 = vld [vmem:[%s15049_s16 + $0x1658] sm:$0xf]  ;;  %v11815_v34 = vor.u32 %v14226_v12, %v11814_v26  ;;  %8037 = vmatpush.bf16.msra.mxu1 %v11559_v4 }
 0x661   : > { %v14290_v23 = vld [vmem:[%s15049_s16 + $0x1674] sm:$0xf0] }
 0x662   : > { %v11270_v53 = vld [vmem:[%s15049_s16 + $0x1018] sm:$0xf]  ;;  %v12071_v45 = vor.u32 %v14290_v23, %v12070_v16  ;;  %8051 = vmatpush.bf16.msra.mxu2 %v11815_v34  ;;  %v7721_v16 = vadd.f32 %v17133_v49, %v7707_v8 }
 0x663   : > { %v14090_v25 = vld [vmem:[%s15049_s16 + $0x1034] sm:$0xf0] }
 0x664   : > { %v11526_v14 = vld [vmem:[%s15049_s16 + $0x1218] sm:$0xf]  ;;  %v11271_v48 = vor.u32 %v14090_v25, %v11270_v53  ;;  %8065 = vmatpush.bf16.msra.mxu3 %v12071_v45  ;;  %v7735_v45 = vadd.f32 %v17138_v59, %v7721_v16 }
 0x665   : > { %v14154_v22 = vld [vmem:[%s15049_s16 + $0x1234] sm:$0xf0] }
 0x666   : > { %v11782_v61 = vld [vmem:[%s15049_s16 + $0x1418] sm:$0xf]  ;;  %v11527_v60 = vor.u32 %v14154_v22, %v11526_v14  ;;  %8024 = vmatpush.bf16.msra.mxu0 %v11271_v48 }
 0x667   : > { %v14218_v9 = vld [vmem:[%s15049_s16 + $0x1434] sm:$0xf0] }
 0x668   : > { %v12038_v63 = vld [vmem:[%s15049_s16 + $0x1618] sm:$0xf]  ;;  %v11783_v29 = vor.u32 %v14218_v9, %v11782_v61  ;;  %v7748_v9 = vpop.f32.mrf.mxu0  ;;  %8038 = vmatpush.bf16.msra.mxu1 %v11527_v60 }
 0x669   : > { %v14282_v33 = vld [vmem:[%s15049_s16 + $0x1634] sm:$0xf0]  ;;  %8025 = vmatmul.bf16.vlgmr.msra.gmra.mxu0 %v15290_v31 }
 0x66a   : > { %v12518_v37 = vld [vmem:[%s15049_s16 + $0x19d8] sm:$0xf]  ;;  %v12039_v23 = vor.u32 %v14282_v33, %v12038_v63  ;;  %8052 = vmatpush.bf16.msra.mxu2 %v11783_v29  ;;  %v7762_v63 = vpop.f32.mrf.mxu1  ;;  %v12487_v33 = vor.u32 %v14394_v28, %v12486_v19  ;;  %v7749_v29 = vadd.f32 %v7748_v9, %v7735_v45 }
 0x66b   : > { %v14402_v0 = vld [vmem:[%s15049_s16 + $0x19f4] sm:$0xf0]  ;;  %8039 = vmatmul.bf16.vlgmr.msra.gmra.mxu1 %v15297_v36 }
 0x66c   : > { %v12774_v21 = vld [vmem:[%s15049_s16 + $0x1bd8] sm:$0xf]  ;;  %v12519_v2 = vor.u32 %v14402_v0, %v12518_v37  ;;  %8066 = vmatpush.bf16.msra.mxu3 %v12039_v23  ;;  %v7763_v45 = vadd.f32 %v7762_v63, %v7749_v29 }
 0x66d   : > { %v14466_v24 = vld [vmem:[%s15049_s16 + $0x1bf4] sm:$0xf0]  ;;  %8053 = vmatmul.bf16.vlgmr.msra.gmra.mxu2 %v15295_v35 }
 0x66e   : > { %v13030_v55 = vld [vmem:[%s15049_s16 + $0x1dd8] sm:$0xf]  ;;  %v12775_v53 = vor.u32 %v14466_v24, %v12774_v21  ;;  %8073 = vmatpush.bf16.msrb.mxu0 %v12519_v2 }
 0x66f   : > { %v14530_v26 = vld [vmem:[%s15049_s16 + $0x1df4] sm:$0xf0]  ;;  %8067 = vmatmul.bf16.vlgmr.msra.gmra.mxu3 %v15301_v40 }
 0x670   : > { %v13286_v18 = vld [vmem:[%s15049_s16 + $0x1fd8] sm:$0xf]  ;;  %v13031_v25 = vor.u32 %v14530_v26, %v13030_v55  ;;  %8087 = vmatpush.bf16.msrb.mxu1 %v12775_v53  ;;  %v7802_v9 = vpop.f32.mrf.mxu0 }
 0x671   : > { %v14594_v12 = vld [vmem:[%s15049_s16 + $0x1ff4] sm:$0xf0] }
 0x672   : > { %v12742_v4 = vld [vmem:[%s15049_s16 + $0x1b98] sm:$0xf]  ;;  %v13287_v34 = vor.u32 %v14594_v12, %v13286_v18  ;;  %8101 = vmatpush.bf16.msrb.mxu2 %v13031_v25  ;;  %8074 = vmatpush.bf16.msrb.mxu0 %v12487_v33  ;;  %v7776_v25 = vpop.f32.mrf.mxu2  ;;  %v7803_v33 = vadd.f32 %v7802_v9, %v17162_v7 }
 0x673   : > { %v14458_v14 = vld [vmem:[%s15049_s16 + $0x1bb4] sm:$0xf0] }
 0x674   : > { %v12998_v22 = vld [vmem:[%s15049_s16 + $0x1d98] sm:$0xf]  ;;  %v12743_v37 = vor.u32 %v14458_v14, %v12742_v4  ;;  %8115 = vmatpush.bf16.msrb.mxu3 %v13287_v34 }
 0x675   : > { %v14522_v61 = vld [vmem:[%s15049_s16 + $0x1db4] sm:$0xf0] }
 0x676   : > { %v13254_v49 = vld [vmem:[%s15049_s16 + $0x1f98] sm:$0xf]  ;;  %v12999_v0 = vor.u32 %v14522_v61, %v12998_v22  ;;  %8088 = vmatpush.bf16.msrb.mxu1 %v12743_v37  ;;  %v7790_v61 = vpop.f32.mrf.mxu3 }
 0x677   : > { %v14586_v8 = vld [vmem:[%s15049_s16 + $0x1fb4] sm:$0xf0] }
 0x678   : > { %v12454_v21 = vld [vmem:[%s15049_s16 + $0x1958] sm:$0xf]  ;;  %v13255_v55 = vor.u32 %v14586_v8, %v13254_v49  ;;  %8102 = vmatpush.bf16.msrb.mxu2 %v12999_v0  ;;  %v7816_v0 = vpop.f32.mrf.mxu1 }
 0x679   : > { %v14386_v48 = vld [vmem:[%s15049_s16 + $0x1974] sm:$0xf0] }
 0x67a   : > { %v12710_v24 = vld [vmem:[%s15049_s16 + $0x1b58] sm:$0xf]  ;;  %v12455_v18 = vor.u32 %v14386_v48, %v12454_v21  ;;  %8116 = vmatpush.bf16.msrb.mxu3 %v13255_v55 }
 0x67b   : > { %v14450_v59 = vld [vmem:[%s15049_s16 + $0x1b74] sm:$0xf0] }
 0x67c   : > { %v12966_v26 = vld [vmem:[%s15049_s16 + $0x1d58] sm:$0xf]  ;;  %v12711_v12 = vor.u32 %v14450_v59, %v12710_v24  ;;  %8075 = vmatpush.bf16.msrb.mxu0 %v12455_v18 }
 0x67d   : > { %v14514_v60 = vld [vmem:[%s15049_s16 + $0x1d74] sm:$0xf0] }
 0x67e   : > { %v13222_v28 = vld [vmem:[%s15049_s16 + $0x1f58] sm:$0xf]  ;;  %v12967_v16 = vor.u32 %v14514_v60, %v12966_v26  ;;  %8089 = vmatpush.bf16.msrb.mxu1 %v12711_v12  ;;  %v7777_v26 = vadd.f32 %v7776_v25, %v7763_v45  ;;  %v7817_v60 = vadd.f32 %v7816_v0, %v7803_v33  ;;  %v7804_v45 = vpop.f32.mrf.mxu0  ;;  %v7844_v33 = vpop.f32.mrf.mxu3 }
 0x67f   : > { %v14578_v19 = vld [vmem:[%s15049_s16 + $0x1f74] sm:$0xf0] }
 0x680   : > { %v12422_v23 = vld [vmem:[%s15049_s16 + $0x1918] sm:$0xf]  ;;  %v13223_v4 = vor.u32 %v14578_v19, %v13222_v28  ;;  %8103 = vmatpush.bf16.msrb.mxu2 %v12967_v16 }
 0x681   : > { %v14378_v2 = vld [vmem:[%s15049_s16 + $0x1934] sm:$0xf0] }
 0x682   : > { %v12678_v53 = vld [vmem:[%s15049_s16 + $0x1b18] sm:$0xf]  ;;  %v12423_v37 = vor.u32 %v14378_v2, %v12422_v23  ;;  %8117 = vmatpush.bf16.msrb.mxu3 %v13223_v4  ;;  %v7791_v4 = vadd.f32 %v7790_v61, %v7777_v26 }
 0x683   : > { %v14442_v34 = vld [vmem:[%s15049_s16 + $0x1b34] sm:$0xf0] }
 0x684   : > { %v12934_v14 = vld [vmem:[%s15049_s16 + $0x1d18] sm:$0xf]  ;;  %v12679_v21 = vor.u32 %v14442_v34, %v12678_v53  ;;  %8076 = vmatpush.bf16.msrb.mxu0 %v12423_v37 }
 0x685   : > { %v14506_v22 = vld [vmem:[%s15049_s16 + $0x1d34] sm:$0xf0] }
 0x686   : > { %v13190_v49 = vld [vmem:[%s15049_s16 + $0x1f18] sm:$0xf]  ;;  %v12935_v48 = vor.u32 %v14506_v22, %v12934_v14  ;;  %8090 = vmatpush.bf16.msrb.mxu1 %v12679_v21  ;;  %v7830_v14 = vpop.f32.mrf.mxu2  ;;  %v7805_v21 = vadd.f32 %v7804_v45, %v7791_v4 }
 0x687   : > { %v14570_v8 = vld [vmem:[%s15049_s16 + $0x1f34] sm:$0xf0] }
 0x688   : > { %v12390_v24 = vld [vmem:[%s15049_s16 + $0x18d8] sm:$0xf]  ;;  %v13191_v63 = vor.u32 %v14570_v8, %v13190_v49  ;;  %8104 = vmatpush.bf16.msrb.mxu2 %v12935_v48  ;;  %v7831_v8 = vadd.f32 %v7830_v14, %v7817_v60  ;;  %v7818_v48 = vpop.f32.mrf.mxu1 }
 0x689   : > { %v14370_v55 = vld [vmem:[%s15049_s16 + $0x18f4] sm:$0xf0] }
 0x68a   : > { %v12646_v59 = vld [vmem:[%s15049_s16 + $0x1ad8] sm:$0xf]  ;;  %v12391_v12 = vor.u32 %v14370_v55, %v12390_v24  ;;  %8118 = vmatpush.bf16.msrb.mxu3 %v13191_v63  ;;  %v17239_v24 = vadd.f32 %v7844_v33, %v7831_v8 }
 0x68b   : > { %v14434_v7 = vld [vmem:[%s15049_s16 + $0x1af4] sm:$0xf0] }
 0x68c   : > { %v12902_v28 = vld [vmem:[%s15049_s16 + $0x1cd8] sm:$0xf]  ;;  %v12647_v16 = vor.u32 %v14434_v7, %v12646_v59  ;;  %8077 = vmatpush.bf16.msrb.mxu0 %v12391_v12 }
 0x68d   : > { %v14498_v19 = vld [vmem:[%s15049_s16 + $0x1cf4] sm:$0xf0] }
 0x68e   : > { %v13158_v29 = vld [vmem:[%s15049_s16 + $0x1ed8] sm:$0xf]  ;;  %v12903_v23 = vor.u32 %v14498_v19, %v12902_v28  ;;  %8091 = vmatpush.bf16.msrb.mxu1 %v12647_v16  ;;  %v7819_v28 = vadd.f32 %v7818_v48, %v7805_v21  ;;  %v13630_v21 = vld [vmem:[%s15049_s16 + $0x1dc] sm:$0xf] }
 0x68f   : > { %v14562_v18 = vld [vmem:[%s15049_s16 + $0x1ef4] sm:$0xf0]  ;;  %v13694_v48 = vld [vmem:[%s15049_s16 + $0x3dc] sm:$0xf] }
 0x690   : > { %v12358_v2 = vld [vmem:[%s15049_s16 + $0x1898] sm:$0xf]  ;;  %v13159_v34 = vor.u32 %v14562_v18, %v13158_v29  ;;  %8105 = vmatpush.bf16.msrb.mxu2 %v12903_v23 }
 0x691   : > { %v14362_v53 = vld [vmem:[%s15049_s16 + $0x18b4] sm:$0xf0] }
 0x692   : > { %v12614_v25 = vld [vmem:[%s15049_s16 + $0x1a98] sm:$0xf]  ;;  %v12359_v61 = vor.u32 %v14362_v53, %v12358_v2  ;;  %8119 = vmatpush.bf16.msrb.mxu3 %v13159_v34 }
 0x693   : > { %v14426_v22 = vld [vmem:[%s15049_s16 + $0x1ab4] sm:$0xf0] }
 0x694   : > { %v12870_v9 = vld [vmem:[%s15049_s16 + $0x1c98] sm:$0xf]  ;;  %v12615_v55 = vor.u32 %v14426_v22, %v12614_v25  ;;  %8078 = vmatpush.bf16.msrb.mxu0 %v12359_v61  ;;  %v9448_v61 = vld [vmem:[%s15049_s16 + $0x1f8] sm:$0xf0] }
 0x695   : > { %v14490_v49 = vld [vmem:[%s15049_s16 + $0x1cb4] sm:$0xf0] }
 0x696   : > { %v13126_v37 = vld [vmem:[%s15049_s16 + $0x1e98] sm:$0xf]  ;;  %v12871_v59 = vor.u32 %v14490_v49, %v12870_v9  ;;  %8092 = vmatpush.bf16.msrb.mxu1 %v12615_v55  ;;  %v7832_v49 = vpop.f32.mrf.mxu2 }
 0x697   : > { %v14554_v0 = vld [vmem:[%s15049_s16 + $0x1eb4] sm:$0xf0] }
 0x698   : > { %v12326_v26 = vld [vmem:[%s15049_s16 + $0x1858] sm:$0xf]  ;;  %v13127_v7 = vor.u32 %v14554_v0, %v13126_v37  ;;  %8106 = vmatpush.bf16.msrb.mxu2 %v12871_v59  ;;  %v7833_v37 = vadd.f32 %v7832_v49, %v7819_v28  ;;  %v7846_v0 = vpop.f32.mrf.mxu3  ;;  %v9704_v59 = vld [vmem:[%s15049_s16 + $0x3f8] sm:$0xf0] }
 0x699   : > { %v14354_v63 = vld [vmem:[%s15049_s16 + $0x1874] sm:$0xf0]  ;;  %v9672_v49 = vld [vmem:[%s15049_s16 + $0x3b8] sm:$0xf0] }
 0x69a   : > { %v12582_v60 = vld [vmem:[%s15049_s16 + $0x1a58] sm:$0xf]  ;;  %v12327_v23 = vor.u32 %v14354_v63, %v12326_v26  ;;  %8120 = vmatpush.bf16.msrb.mxu3 %v13127_v7  ;;  %v13758_v26 = vld [vmem:[%s15049_s16 + $0x5dc] sm:$0xf] }
 0x69b   : > { %v14418_v19 = vld [vmem:[%s15049_s16 + $0x1a74] sm:$0xf0]  ;;  %v9960_v63 = vld [vmem:[%s15049_s16 + $0x5f8] sm:$0xf0] }
 0x69c   : > { %v12838_v29 = vld [vmem:[%s15049_s16 + $0x1c58] sm:$0xf]  ;;  %v12583_v25 = vor.u32 %v14418_v19, %v12582_v60  ;;  %8079 = vmatpush.bf16.msrb.mxu0 %v12327_v23  ;;  %v17263_v60 = vadd.f32 %v7846_v0, %v7833_v37  ;;  %v13822_v19 = vld [vmem:[%s15049_s16 + $0x7dc] sm:$0xf]  ;;  %v9963_v23 = vor.u32 %v13758_v26, %v9960_v63 }
 0x69d   : > { %v14482_v18 = vld [vmem:[%s15049_s16 + $0x1c74] sm:$0xf0]  ;;  %v13614_v37 = vld [vmem:[%s15049_s16 + $0x15c] sm:$0xf] }
 0x69e   : > { %v13094_v12 = vld [vmem:[%s15049_s16 + $0x1e58] sm:$0xf]  ;;  %v12839_v4 = vor.u32 %v14482_v18, %v12838_v29  ;;  %8093 = vmatpush.bf16.msrb.mxu1 %v12583_v25  ;;  %v10216_v29 = vld [vmem:[%s15049_s16 + $0x7f8] sm:$0xf0] }
 0x69f   : > { %v14546_v16 = vld [vmem:[%s15049_s16 + $0x1e74] sm:$0xf0]  ;;  %v13686_v25 = vld [vmem:[%s15049_s16 + $0x39c] sm:$0xf] }
 0x6a0   : > { %v12294_v2 = vld [vmem:[%s15049_s16 + $0x1818] sm:$0xf]  ;;  %v13095_v9 = vor.u32 %v14546_v16, %v13094_v12  ;;  %8107 = vmatpush.bf16.msrb.mxu2 %v12839_v4  ;;  %v9451_v12 = vor.u32 %v13630_v21, %v9448_v61  ;;  %v9707_v16 = vor.u32 %v13694_v48, %v9704_v59  ;;  %v10219_v4 = vor.u32 %v13822_v19, %v10216_v29  ;;  %v9384_v0 = vld [vmem:[%s15049_s16 + $0x178] sm:$0xf0] }
 0x6a1   : > { %v14346_v53 = vld [vmem:[%s15049_s16 + $0x1834] sm:$0xf0]  ;;  %v13678_v21 = vld [vmem:[%s15049_s16 + $0x35c] sm:$0xf] }
 0x6a2   : > { %v12550_v34 = vld [vmem:[%s15049_s16 + $0x1a18] sm:$0xf]  ;;  %v12295_v55 = vor.u32 %v14346_v53, %v12294_v2  ;;  %8121 = vmatpush.bf16.msrb.mxu3 %v13095_v9  ;;  %v13622_v2 = vld [vmem:[%s15049_s16 + $0x19c] sm:$0xf] }
 0x6a3   : > { %v14410_v14 = vld [vmem:[%s15049_s16 + $0x1a34] sm:$0xf0]  ;;  %v9416_v53 = vld [vmem:[%s15049_s16 + $0x1b8] sm:$0xf0] }
 0x6a4   : > { %v12806_v22 = vld [vmem:[%s15049_s16 + $0x1c18] sm:$0xf]  ;;  %v12551_v7 = vor.u32 %v14410_v14, %v12550_v34  ;;  %8080 = vmatpush.bf16.msrb.mxu0 %v12295_v55  ;;  %v13750_v34 = vld [vmem:[%s15049_s16 + $0x59c] sm:$0xf] }
 0x6a5   : > { %v14474_v8 = vld [vmem:[%s15049_s16 + $0x1c34] sm:$0xf0]  ;;  %v9928_v14 = vld [vmem:[%s15049_s16 + $0x5b8] sm:$0xf0] }
 0x6a6   : > { %v13062_v45 = vld [vmem:[%s15049_s16 + $0x1e18] sm:$0xf]  ;;  %v12807_v28 = vor.u32 %v14474_v8, %v12806_v22  ;;  %8094 = vmatpush.bf16.msrb.mxu1 %v12551_v7  ;;  %v13814_v22 = vld [vmem:[%s15049_s16 + $0x79c] sm:$0xf]  ;;  %v9419_v8 = vor.u32 %v13622_v2, %v9416_v53  ;;  %v9387_v7 = vor.u32 %v13614_v37, %v9384_v0 }
 0x6a7   : > { %v14538_v33 = vld [vmem:[%s15049_s16 + $0x1e34] sm:$0xf0]  ;;  %v10184_v9 = vld [vmem:[%s15049_s16 + $0x7b8] sm:$0xf0]  ;;  %8081 = vmatmul.bf16.vlgmr.msrb.gmra.mxu0 %v15366_v32 }
 0x6a8   : > { %v13063_v18 = vor.u32 %v14538_v33, %v13062_v45  ;;  %8108 = vmatpush.bf16.msrb.mxu2 %v12807_v28  ;;  %8129 = vmatpush.bf16.msra.mxu0 %v9451_v12  ;;  %v9675_v45 = vor.u32 %v13686_v25, %v9672_v49  ;;  %v9931_v33 = vor.u32 %v13750_v34, %v9928_v14  ;;  %v9640_v48 = vld [vmem:[%s15049_s16 + $0x378] sm:$0xf0]  ;;  %v7858_v25 = vpop.f32.mrf.mxu0 }
 0x6a9   : > { %v10187_v61 = vor.u32 %v13814_v22, %v10184_v9  ;;  %v13742_v55 = vld [vmem:[%s15049_s16 + $0x55c] sm:$0xf]  ;;  %8095 = vmatmul.bf16.vlgmr.msrb.gmra.mxu1 %v15373_v41  ;;  %v9643_v28 = vor.u32 %v13678_v21, %v9640_v48  ;;  %v7859_v34 = vadd.f32 %v7858_v25, %v17239_v24  ;;  %v7872_v22 = vpop.f32.mrf.mxu1 }
 0x6aa   : > { %8122 = vmatpush.bf16.msrb.mxu3 %v13063_v18  ;;  %8143 = vmatpush.bf16.msra.mxu1 %v9707_v16  ;;  %v9896_v59 = vld [vmem:[%s15049_s16 + $0x578] sm:$0xf0] }
 0x6ab   : > { %8109 = vmatmul.bf16.vlgmr.msrb.gmra.mxu2 %v15371_v38  ;;  %v13806_v26 = vld [vmem:[%s15049_s16 + $0x75c] sm:$0xf]  ;;  %v9899_v19 = vor.u32 %v13742_v55, %v9896_v59  ;;  %v7873_v21 = vadd.f32 %v7872_v22, %v7859_v34 }
 0x6ac   : > { %8157 = vmatpush.bf16.msra.mxu2 %v9963_v23  ;;  %v10152_v63 = vld [vmem:[%s15049_s16 + $0x778] sm:$0xf0]  ;;  %8130 = vmatpush.bf16.msra.mxu0 %v9419_v8 }
 0x6ad   : > { %8123 = vmatmul.bf16.vlgmr.msrb.gmra.mxu3 %v15377_v46  ;;  %v13606_v29 = vld [vmem:[%s15049_s16 + $0x11c] sm:$0xf]  ;;  %v10155_v16 = vor.u32 %v13806_v26, %v10152_v63 }
 0x6ae   : > { %8171 = vmatpush.bf16.msra.mxu3 %v10219_v4  ;;  %8144 = vmatpush.bf16.msra.mxu1 %v9675_v45  ;;  %v9352_v18 = vld [vmem:[%s15049_s16 + $0x138] sm:$0xf0] }
 0x6af   : > { %v13670_v12 = vld [vmem:[%s15049_s16 + $0x31c] sm:$0xf]  ;;  %v9355_v14 = vor.u32 %v13606_v29, %v9352_v18 }
 0x6b0   : > { %8158 = vmatpush.bf16.msra.mxu2 %v9931_v33  ;;  %v9608_v23 = vld [vmem:[%s15049_s16 + $0x338] sm:$0xf0]  ;;  %8131 = vmatpush.bf16.msra.mxu0 %v9387_v7  ;;  %v7860_v25 = vpop.f32.mrf.mxu0 }
 0x6b1   : > { %v13734_v2 = vld [vmem:[%s15049_s16 + $0x51c] sm:$0xf]  ;;  %v9611_v9 = vor.u32 %v13670_v12, %v9608_v23  ;;  %v7886_v12 = vpop.f32.mrf.mxu2 }
 0x6b2   : > { %8172 = vmatpush.bf16.msra.mxu3 %v10187_v61  ;;  %v9864_v53 = vld [vmem:[%s15049_s16 + $0x538] sm:$0xf0]  ;;  %8145 = vmatpush.bf16.msra.mxu1 %v9643_v28 }
 0x6b3   : > { %v13798_v4 = vld [vmem:[%s15049_s16 + $0x71c] sm:$0xf]  ;;  %v9867_v8 = vor.u32 %v13734_v2, %v9864_v53  ;;  %v7887_v53 = vadd.f32 %v7886_v12, %v7873_v21 }
 0x6b4   : > { %v10120_v49 = vld [vmem:[%s15049_s16 + $0x738] sm:$0xf0]  ;;  %8159 = vmatpush.bf16.msra.mxu2 %v9899_v19  ;;  %8132 = vmatpush.bf16.msra.mxu0 %v9355_v14  ;;  %v7861_v14 = vadd.f32 %v7860_v25, %v17263_v60 }
 0x6b5   : > { %v13598_v45 = vld [vmem:[%s15049_s16 + $0xdc] sm:$0xf]  ;;  %v10123_v0 = vor.u32 %v13798_v4, %v10120_v49  ;;  %v7900_v4 = vpop.f32.mrf.mxu3 }
 0x6b6   : > { %v9320_v33 = vld [vmem:[%s15049_s16 + $0xf8] sm:$0xf0]  ;;  %8173 = vmatpush.bf16.msra.mxu3 %v10155_v16  ;;  %8146 = vmatpush.bf16.msra.mxu1 %v9611_v9  ;;  %v7874_v9 = vpop.f32.mrf.mxu1 }
 0x6b7   : > { %v13662_v37 = vld [vmem:[%s15049_s16 + $0x2dc] sm:$0xf]  ;;  %v9323_v26 = vor.u32 %v13598_v45, %v9320_v33  ;;  %v7875_v60 = vadd.f32 %v7874_v9, %v7861_v14 }
 0x6b8   : > { %v9576_v61 = vld [vmem:[%s15049_s16 + $0x2f8] sm:$0xf0]  ;;  %8160 = vmatpush.bf16.msra.mxu2 %v9867_v8  ;;  %v17313_v8 = vadd.f32 %v7900_v4, %v7887_v53 }
 0x6b9   : > { %v13726_v48 = vld [vmem:[%s15049_s16 + $0x4dc] sm:$0xf]  ;;  %v9579_v63 = vor.u32 %v13662_v37, %v9576_v61  ;;  %8133 = vmatpush.bf16.msra.mxu0 %v9323_v26 }
 0x6ba   : > { %v9832_v24 = vld [vmem:[%s15049_s16 + $0x4f8] sm:$0xf0]  ;;  %8174 = vmatpush.bf16.msra.mxu3 %v10123_v0 }
 0x6bb   : > { %v13790_v55 = vld [vmem:[%s15049_s16 + $0x6dc] sm:$0xf]  ;;  %v9835_v7 = vor.u32 %v13726_v48, %v9832_v24  ;;  %8147 = vmatpush.bf16.msra.mxu1 %v9579_v63 }
 0x6bc   : > { %v10088_v59 = vld [vmem:[%s15049_s16 + $0x6f8] sm:$0xf0] }
 0x6bd   : > { %v13590_v28 = vld [vmem:[%s15049_s16 + $0x9c] sm:$0xf]  ;;  %v10091_v18 = vor.u32 %v13790_v55, %v10088_v59  ;;  %8161 = vmatpush.bf16.msra.mxu2 %v9835_v7 }
 0x6be   : > { %v9288_v19 = vld [vmem:[%s15049_s16 + $0xb8] sm:$0xf0] }
 0x6bf   : > { %v13654_v29 = vld [vmem:[%s15049_s16 + $0x29c] sm:$0xf]  ;;  %v9291_v22 = vor.u32 %v13590_v28, %v9288_v19  ;;  %8175 = vmatpush.bf16.msra.mxu3 %v10091_v18 }
 0x6c0   : > { %v9544_v16 = vld [vmem:[%s15049_s16 + $0x2b8] sm:$0xf0] }
 0x6c1   : > { %v13718_v23 = vld [vmem:[%s15049_s16 + $0x49c] sm:$0xf]  ;;  %v9547_v45 = vor.u32 %v13654_v29, %v9544_v16  ;;  %8134 = vmatpush.bf16.msra.mxu0 %v9291_v22 }
 0x6c2   : > { %v9800_v2 = vld [vmem:[%s15049_s16 + $0x4b8] sm:$0xf0] }
 0x6c3   : > { %v13782_v49 = vld [vmem:[%s15049_s16 + $0x69c] sm:$0xf]  ;;  %v9803_v33 = vor.u32 %v13718_v23, %v9800_v2  ;;  %8148 = vmatpush.bf16.msra.mxu1 %v9547_v45  ;;  %v7888_v2 = vpop.f32.mrf.mxu2 }
 0x6c4   : > { %v10056_v34 = vld [vmem:[%s15049_s16 + $0x6b8] sm:$0xf0] }
 0x6c5   : > { %v13582_v37 = vld [vmem:[%s15049_s16 + $0x5c] sm:$0xf]  ;;  %v10059_v61 = vor.u32 %v13782_v49, %v10056_v34  ;;  %8162 = vmatpush.bf16.msra.mxu2 %v9803_v33  ;;  %v7889_v49 = vadd.f32 %v7888_v2, %v7875_v60  ;;  %v7902_v34 = vpop.f32.mrf.mxu3 }
 0x6c6   : > { %v9256_v0 = vld [vmem:[%s15049_s16 + $0x78] sm:$0xf0] }
 0x6c7   : > { %v13646_v21 = vld [vmem:[%s15049_s16 + $0x25c] sm:$0xf]  ;;  %v9259_v63 = vor.u32 %v13582_v37, %v9256_v0  ;;  %8176 = vmatpush.bf16.msra.mxu3 %v10059_v61 }
 0x6c8   : > { %v9512_v48 = vld [vmem:[%s15049_s16 + $0x278] sm:$0xf0] }
 0x6c9   : > { %v13710_v24 = vld [vmem:[%s15049_s16 + $0x45c] sm:$0xf]  ;;  %v9515_v19 = vor.u32 %v13646_v21, %v9512_v48  ;;  %8135 = vmatpush.bf16.msra.mxu0 %v9259_v63  ;;  %v7903_v21 = vadd.f32 %v7902_v34, %v7889_v49  ;;  %v8358_v63 = vmax.f32 %v17313_v8, 0.0 }
 0x6ca   : > { %v9768_v55 = vld [vmem:[%s15049_s16 + $0x478] sm:$0xf0] }
 0x6cb   : > { %v13774_v59 = vld [vmem:[%s15049_s16 + $0x65c] sm:$0xf]  ;;  %v9771_v29 = vor.u32 %v13710_v24, %v9768_v55  ;;  %8149 = vmatpush.bf16.msra.mxu1 %v9515_v19 }
 0x6cc   : > { %v10024_v26 = vld [vmem:[%s15049_s16 + $0x678] sm:$0xf0] }
 0x6cd   : > { %v13574_v7 = vld [vmem:[%s15049_s16 + $0x1c] sm:$0xf]  ;;  %v10027_v23 = vor.u32 %v13774_v59, %v10024_v26  ;;  %8163 = vmatpush.bf16.msra.mxu2 %v9771_v29 }
 0x6ce   : > { %v9224_v28 = vld [vmem:[%s15049_s16 + $0x38] sm:$0xf0] }
 0x6cf   : > { %v13638_v18 = vld [vmem:[%s15049_s16 + $0x21c] sm:$0xf]  ;;  %v9227_v45 = vor.u32 %v13574_v7, %v9224_v28  ;;  %8177 = vmatpush.bf16.msra.mxu3 %v10027_v23  ;;  %v8366_v7 = vmax.f32 %v7903_v21, 0.0 }
 0x6d0   : > { %v9480_v12 = vld [vmem:[%s15049_s16 + $0x238] sm:$0xf0] }
 0x6d1   : > { %v13702_v16 = vld [vmem:[%s15049_s16 + $0x41c] sm:$0xf]  ;;  %v9483_v61 = vor.u32 %v13638_v18, %v9480_v12  ;;  %8136 = vmatpush.bf16.msra.mxu0 %v9227_v45 }
 0x6d2   : > { %v9736_v53 = vld [vmem:[%s15049_s16 + $0x438] sm:$0xf0] }
 0x6d3   : > { %v13766_v25 = vld [vmem:[%s15049_s16 + $0x61c] sm:$0xf]  ;;  %v9739_v48 = vor.u32 %v13702_v16, %v9736_v53  ;;  %v17346_v53 = vpack.c.bf16 %v8366_v7, %v8358_v63  ;;  %8150 = vmatpush.bf16.msra.mxu1 %v9483_v61 }
 0x6d4   : > { %v9992_v4 = vld [vmem:[%s15049_s16 + $0x638] sm:$0xf0]  ;;  %8137 = vmatmul.bf16.vlgmr.msra.gmra.mxu0 %v15145_v58 }
 0x6d5   : > { %v13886_v14 = vld [vmem:[%s15049_s16 + $0x9dc] sm:$0xf]  ;;  %v9995_v55 = vor.u32 %v13766_v25, %v9992_v4  ;;  %8164 = vmatpush.bf16.msra.mxu2 %v9739_v48 }
 0x6d6   : > { %v10472_v22 = vld [vmem:[%s15049_s16 + $0x9f8] sm:$0xf0]  ;;  %8151 = vmatmul.bf16.vlgmr.msra.gmra.mxu1 %v15157_v10 }
 0x6d7   : > { %v13950_v9 = vld [vmem:[%s15049_s16 + $0xbdc] sm:$0xf]  ;;  %v10475_v59 = vor.u32 %v13886_v14, %v10472_v22  ;;  %8178 = vmatpush.bf16.msra.mxu3 %v9995_v55 }
 0x6d8   : > { %v10728_v33 = vld [vmem:[%s15049_s16 + $0xbf8] sm:$0xf0]  ;;  %8165 = vmatmul.bf16.vlgmr.msra.gmra.mxu2 %v15150_v1 }
 0x6d9   : > { %v14014_v37 = vld [vmem:[%s15049_s16 + $0xddc] sm:$0xf]  ;;  %v10731_v28 = vor.u32 %v13950_v9, %v10728_v33  ;;  %8185 = vmatpush.bf16.msrb.mxu0 %v10475_v59 }
 0x6da   : > { %v10984_v0 = vld [vmem:[%s15049_s16 + $0xdf8] sm:$0xf0]  ;;  %8179 = vmatmul.bf16.vlgmr.msra.gmra.mxu3 %v15162_v17 }
 0x6db   : > { %v14078_v60 = vld [vmem:[%s15049_s16 + $0xfdc] sm:$0xf]  ;;  %v10987_v19 = vor.u32 %v14014_v37, %v10984_v0  ;;  %8199 = vmatpush.bf16.msrb.mxu1 %v10731_v28 }
 0x6dc   : > { %v11240_v24 = vld [vmem:[%s15049_s16 + $0xff8] sm:$0xf0] }
 0x6dd   : > { %v13878_v26 = vld [vmem:[%s15049_s16 + $0x99c] sm:$0xf]  ;;  %v11243_v18 = vor.u32 %v14078_v60, %v11240_v24  ;;  %8213 = vmatpush.bf16.msrb.mxu2 %v10987_v19 }
 0x6de   : > { %v10440_v29 = vld [vmem:[%s15049_s16 + $0x9b8] sm:$0xf0] }
 0x6df   : > { %v13942_v2 = vld [vmem:[%s15049_s16 + $0xb9c] sm:$0xf]  ;;  %v10443_v4 = vor.u32 %v13878_v26, %v10440_v29  ;;  %8227 = vmatpush.bf16.msrb.mxu3 %v11243_v18 }
 0x6e0   : > { %v10696_v12 = vld [vmem:[%s15049_s16 + $0xbb8] sm:$0xf0] }
 0x6e1   : > { %v14006_v16 = vld [vmem:[%s15049_s16 + $0xd9c] sm:$0xf]  ;;  %v10699_v49 = vor.u32 %v13942_v2, %v10696_v12  ;;  %8186 = vmatpush.bf16.msrb.mxu0 %v10443_v4 }
 0x6e2   : > { %v10952_v23 = vld [vmem:[%s15049_s16 + $0xdb8] sm:$0xf0] }
 0x6e3   : > { %v14070_v8 = vld [vmem:[%s15049_s16 + $0xf9c] sm:$0xf]  ;;  %v10955_v34 = vor.u32 %v14006_v16, %v10952_v23  ;;  %8200 = vmatpush.bf16.msrb.mxu1 %v10699_v49 }
 0x6e4   : > { %v11208_v25 = vld [vmem:[%s15049_s16 + $0xfb8] sm:$0xf0] }
 0x6e5   : > { %v13870_v14 = vld [vmem:[%s15049_s16 + $0x95c] sm:$0xf]  ;;  %v11211_v45 = vor.u32 %v14070_v8, %v11208_v25  ;;  %8214 = vmatpush.bf16.msrb.mxu2 %v10955_v34 }
 0x6e6   : > { %v10408_v22 = vld [vmem:[%s15049_s16 + $0x978] sm:$0xf0] }
 0x6e7   : > { %v13934_v9 = vld [vmem:[%s15049_s16 + $0xb5c] sm:$0xf]  ;;  %v10411_v48 = vor.u32 %v13870_v14, %v10408_v22  ;;  %8228 = vmatpush.bf16.msrb.mxu3 %v11211_v45 }
 0x6e8   : > { %v10664_v33 = vld [vmem:[%s15049_s16 + $0xb78] sm:$0xf0] }
 0x6e9   : > { %v13998_v37 = vld [vmem:[%s15049_s16 + $0xd5c] sm:$0xf]  ;;  %v10667_v60 = vor.u32 %v13934_v9, %v10664_v33  ;;  %8187 = vmatpush.bf16.msrb.mxu0 %v10411_v48 }
 0x6ea   : > { %v10920_v0 = vld [vmem:[%s15049_s16 + $0xd78] sm:$0xf0] }
 0x6eb   : > { %v14062_v21 = vld [vmem:[%s15049_s16 + $0xf5c] sm:$0xf]  ;;  %v10923_v24 = vor.u32 %v13998_v37, %v10920_v0  ;;  %8201 = vmatpush.bf16.msrb.mxu1 %v10667_v60 }
 0x6ec   : > { %v11176_v61 = vld [vmem:[%s15049_s16 + $0xf78] sm:$0xf0] }
 0x6ed   : > { %v13862_v58 = vld [vmem:[%s15049_s16 + $0x91c] sm:$0xf]  ;;  %v11179_v1 = vor.u32 %v14062_v21, %v11176_v61  ;;  %8215 = vmatpush.bf16.msrb.mxu2 %v10923_v24 }
 0x6ee   : > { %v10376_v55 = vld [vmem:[%s15049_s16 + $0x938] sm:$0xf0] }
 0x6ef   : > { %v13926_v59 = vld [vmem:[%s15049_s16 + $0xb1c] sm:$0xf]  ;;  %v10379_v28 = vor.u32 %v13862_v58, %v10376_v55  ;;  %8229 = vmatpush.bf16.msrb.mxu3 %v11179_v1 }
 0x6f0   : > { %v10632_v26 = vld [vmem:[%s15049_s16 + $0xb38] sm:$0xf0] }
 0x6f1   : > { %v13990_v10 = vld [vmem:[%s15049_s16 + $0xd1c] sm:$0xf]  ;;  %v10635_v19 = vor.u32 %v13926_v59, %v10632_v26  ;;  %8188 = vmatpush.bf16.msrb.mxu0 %v10379_v28 }
 0x6f2   : > { %v10888_v63 = vld [vmem:[%s15049_s16 + $0xd38] sm:$0xf0] }
 0x6f3   : > { %v14054_v7 = vld [vmem:[%s15049_s16 + $0xf1c] sm:$0xf]  ;;  %v10891_v29 = vor.u32 %v13990_v10, %v10888_v63  ;;  %8202 = vmatpush.bf16.msrb.mxu1 %v10635_v19 }
 0x6f4   : > { %v11144_v17 = vld [vmem:[%s15049_s16 + $0xf38] sm:$0xf0] }
 0x6f5   : > { %v13854_v2 = vld [vmem:[%s15049_s16 + $0x8dc] sm:$0xf]  ;;  %v11147_v16 = vor.u32 %v14054_v7, %v11144_v17  ;;  %8216 = vmatpush.bf16.msrb.mxu2 %v10891_v29 }
 0x6f6   : > { %v10344_v18 = vld [vmem:[%s15049_s16 + $0x8f8] sm:$0xf0] }
 0x6f7   : > { %v13918_v12 = vld [vmem:[%s15049_s16 + $0xadc] sm:$0xf]  ;;  %v10347_v34 = vor.u32 %v13854_v2, %v10344_v18  ;;  %8230 = vmatpush.bf16.msrb.mxu3 %v11147_v16 }
 0x6f8   : > { %v10600_v23 = vld [vmem:[%s15049_s16 + $0xaf8] sm:$0xf0] }
 0x6f9   : > { %v13982_v8 = vld [vmem:[%s15049_s16 + $0xcdc] sm:$0xf]  ;;  %v10603_v14 = vor.u32 %v13918_v12, %v10600_v23  ;;  %8189 = vmatpush.bf16.msrb.mxu0 %v10347_v34 }
 0x6fa   : > { %v10856_v25 = vld [vmem:[%s15049_s16 + $0xcf8] sm:$0xf0] }
 0x6fb   : > { %v14046_v4 = vld [vmem:[%s15049_s16 + $0xedc] sm:$0xf]  ;;  %v10859_v22 = vor.u32 %v13982_v8, %v10856_v25  ;;  %8203 = vmatpush.bf16.msrb.mxu1 %v10603_v14 }
 0x6fc   : > { %v11112_v49 = vld [vmem:[%s15049_s16 + $0xef8] sm:$0xf0] }
 0x6fd   : > { %v13846_v9 = vld [vmem:[%s15049_s16 + $0x89c] sm:$0xf]  ;;  %v11115_v37 = vor.u32 %v14046_v4, %v11112_v49  ;;  %8217 = vmatpush.bf16.msrb.mxu2 %v10859_v22 }
 0x6fe   : > { %v10312_v45 = vld [vmem:[%s15049_s16 + $0x8b8] sm:$0xf0] }
 0x6ff   : > { %v13910_v33 = vld [vmem:[%s15049_s16 + $0xa9c] sm:$0xf]  ;;  %v10315_v24 = vor.u32 %v13846_v9, %v10312_v45  ;;  %8231 = vmatpush.bf16.msrb.mxu3 %v11115_v37 }
 0x700   : > { %v10568_v0 = vld [vmem:[%s15049_s16 + $0xab8] sm:$0xf0] }
 0x701   : > { %v13974_v21 = vld [vmem:[%s15049_s16 + $0xc9c] sm:$0xf]  ;;  %v10571_v58 = vor.u32 %v13910_v33, %v10568_v0  ;;  %8190 = vmatpush.bf16.msrb.mxu0 %v10315_v24 }
 0x702   : > { %v10824_v61 = vld [vmem:[%s15049_s16 + $0xcb8] sm:$0xf0] }
 0x703   : > { %v14038_v48 = vld [vmem:[%s15049_s16 + $0xe9c] sm:$0xf]  ;;  %v10827_v55 = vor.u32 %v13974_v21, %v10824_v61  ;;  %8204 = vmatpush.bf16.msrb.mxu1 %v10571_v58 }
 0x704   : > { %v11080_v60 = vld [vmem:[%s15049_s16 + $0xeb8] sm:$0xf0] }
 0x705   : > { %v13838_v59 = vld [vmem:[%s15049_s16 + $0x85c] sm:$0xf]  ;;  %v11083_v10 = vor.u32 %v14038_v48, %v11080_v60  ;;  %8218 = vmatpush.bf16.msrb.mxu2 %v10827_v55 }
 0x706   : > { %v10280_v1 = vld [vmem:[%s15049_s16 + $0x878] sm:$0xf0] }
 0x707   : > { %v13902_v26 = vld [vmem:[%s15049_s16 + $0xa5c] sm:$0xf]  ;;  %v10283_v29 = vor.u32 %v13838_v59, %v10280_v1  ;;  %8232 = vmatpush.bf16.msrb.mxu3 %v11083_v10 }
 0x708   : > { %v10536_v63 = vld [vmem:[%s15049_s16 + $0xa78] sm:$0xf0] }
 0x709   : > { %v13966_v7 = vld [vmem:[%s15049_s16 + $0xc5c] sm:$0xf]  ;;  %v10539_v12 = vor.u32 %v13902_v26, %v10536_v63  ;;  %8191 = vmatpush.bf16.msrb.mxu0 %v10283_v29 }
 0x70a   : > { %v10792_v17 = vld [vmem:[%s15049_s16 + $0xc78] sm:$0xf0] }
 0x70b   : > { %v14030_v28 = vld [vmem:[%s15049_s16 + $0xe5c] sm:$0xf]  ;;  %v10795_v16 = vor.u32 %v13966_v7, %v10792_v17  ;;  %8205 = vmatpush.bf16.msrb.mxu1 %v10539_v12 }
 0x70c   : > { %v11048_v19 = vld [vmem:[%s15049_s16 + $0xe78] sm:$0xf0] }
 0x70d   : > { %v13830_v2 = vld [vmem:[%s15049_s16 + $0x81c] sm:$0xf]  ;;  %v11051_v4 = vor.u32 %v14030_v28, %v11048_v19  ;;  %8219 = vmatpush.bf16.msrb.mxu2 %v10795_v16 }
 0x70e   : > { %v10248_v18 = vld [vmem:[%s15049_s16 + $0x838] sm:$0xf0] }
 0x70f   : > { %v13894_v23 = vld [vmem:[%s15049_s16 + $0xa1c] sm:$0xf]  ;;  %v10251_v33 = vor.u32 %v13830_v2, %v10248_v18  ;;  %8233 = vmatpush.bf16.msrb.mxu3 %v11051_v4 }
 0x710   : > { %v10504_v8 = vld [vmem:[%s15049_s16 + $0xa38] sm:$0xf0] }
 0x711   : > { %v13958_v25 = vld [vmem:[%s15049_s16 + $0xc1c] sm:$0xf]  ;;  %v10507_v61 = vor.u32 %v13894_v23, %v10504_v8  ;;  %8192 = vmatpush.bf16.msrb.mxu0 %v10251_v33 }
 0x712   : > { %v10760_v49 = vld [vmem:[%s15049_s16 + $0xc38] sm:$0xf0] }
 0x713   : > { %v14022_v34 = vld [vmem:[%s15049_s16 + $0xe1c] sm:$0xf]  ;;  %v10763_v48 = vor.u32 %v13958_v25, %v10760_v49  ;;  %8206 = vmatpush.bf16.msrb.mxu1 %v10507_v61 }
 0x714   : > { %v11016_v14 = vld [vmem:[%s15049_s16 + $0xe38] sm:$0xf0]  ;;  %8193 = vmatmul.bf16.vlgmr.msrb.gmra.mxu0 %v15214_v39 }
 0x715   : > { %v14142_v22 = vld [vmem:[%s15049_s16 + $0x11dc] sm:$0xf]  ;;  %v11019_v58 = vor.u32 %v14022_v34, %v11016_v14  ;;  %8220 = vmatpush.bf16.msrb.mxu2 %v10763_v48 }
 0x716   : > { %v11496_v9 = vld [vmem:[%s15049_s16 + $0x11f8] sm:$0xf0]  ;;  %8207 = vmatmul.bf16.vlgmr.msrb.gmra.mxu1 %v15221_v44 }
 0x717   : > { %v14206_v45 = vld [vmem:[%s15049_s16 + $0x13dc] sm:$0xf]  ;;  %v11499_v55 = vor.u32 %v14142_v22, %v11496_v9  ;;  %8234 = vmatpush.bf16.msrb.mxu3 %v11019_v58 }
 0x718   : > { %v11752_v37 = vld [vmem:[%s15049_s16 + $0x13f8] sm:$0xf0]  ;;  %8221 = vmatmul.bf16.vlgmr.msrb.gmra.mxu2 %v15219_v43 }
 0x719   : > { %v14270_v0 = vld [vmem:[%s15049_s16 + $0x15dc] sm:$0xf]  ;;  %v11755_v59 = vor.u32 %v14206_v45, %v11752_v37  ;;  %8241 = vmatpush.bf16.msra.mxu0 %v11499_v55 }
 0x71a   : > { %v12008_v21 = vld [vmem:[%s15049_s16 + $0x15f8] sm:$0xf0]  ;;  %8235 = vmatmul.bf16.vlgmr.msrb.gmra.mxu3 %v15225_v47 }
 0x71b   : > { %v14334_v60 = vld [vmem:[%s15049_s16 + $0x17dc] sm:$0xf]  ;;  %v12011_v1 = vor.u32 %v14270_v0, %v12008_v21  ;;  %8255 = vmatpush.bf16.msra.mxu1 %v11755_v59 }
 0x71c   : > { %v12264_v24 = vld [vmem:[%s15049_s16 + $0x17f8] sm:$0xf0] }
 0x71d   : > { %v14134_v26 = vld [vmem:[%s15049_s16 + $0x119c] sm:$0xf]  ;;  %v12267_v7 = vor.u32 %v14334_v60, %v12264_v24  ;;  %8269 = vmatpush.bf16.msra.mxu2 %v12011_v1 }
 0x71e   : > { %v11464_v10 = vld [vmem:[%s15049_s16 + $0x11b8] sm:$0xf0] }
 0x71f   : > { %v14198_v63 = vld [vmem:[%s15049_s16 + $0x139c] sm:$0xf]  ;;  %v11467_v18 = vor.u32 %v14134_v26, %v11464_v10  ;;  %8283 = vmatpush.bf16.msra.mxu3 %v12267_v7 }
 0x720   : > { %v11720_v17 = vld [vmem:[%s15049_s16 + $0x13b8] sm:$0xf0] }
 0x721   : > { %v14262_v28 = vld [vmem:[%s15049_s16 + $0x159c] sm:$0xf]  ;;  %v11723_v12 = vor.u32 %v14198_v63, %v11720_v17  ;;  %8242 = vmatpush.bf16.msra.mxu0 %v11467_v18 }
 0x722   : > { %v11976_v19 = vld [vmem:[%s15049_s16 + $0x15b8] sm:$0xf0] }
 0x723   : > { %v14326_v29 = vld [vmem:[%s15049_s16 + $0x179c] sm:$0xf]  ;;  %v11979_v16 = vor.u32 %v14262_v28, %v11976_v19  ;;  %8256 = vmatpush.bf16.msra.mxu1 %v11723_v12 }
 0x724   : > { %v12232_v2 = vld [vmem:[%s15049_s16 + $0x17b8] sm:$0xf0] }
 0x725   : > { %v14126_v23 = vld [vmem:[%s15049_s16 + $0x115c] sm:$0xf]  ;;  %v12235_v4 = vor.u32 %v14326_v29, %v12232_v2  ;;  %8270 = vmatpush.bf16.msra.mxu2 %v11979_v16 }
 0x726   : > { %v11432_v8 = vld [vmem:[%s15049_s16 + $0x1178] sm:$0xf0] }
 0x727   : > { %v14190_v25 = vld [vmem:[%s15049_s16 + $0x135c] sm:$0xf]  ;;  %v11435_v39 = vor.u32 %v14126_v23, %v11432_v8  ;;  %8284 = vmatpush.bf16.msra.mxu3 %v12235_v4 }
 0x728   : > { %v11688_v49 = vld [vmem:[%s15049_s16 + $0x1378] sm:$0xf0] }
 0x729   : > { %v14254_v34 = vld [vmem:[%s15049_s16 + $0x155c] sm:$0xf]  ;;  %v11691_v45 = vor.u32 %v14190_v25, %v11688_v49  ;;  %8243 = vmatpush.bf16.msra.mxu0 %v11435_v39 }
 0x72a   : > { %v11944_v14 = vld [vmem:[%s15049_s16 + $0x1578] sm:$0xf0] }
 0x72b   : > { %v14318_v22 = vld [vmem:[%s15049_s16 + $0x175c] sm:$0xf]  ;;  %v11947_v33 = vor.u32 %v14254_v34, %v11944_v14  ;;  %8257 = vmatpush.bf16.msra.mxu1 %v11691_v45 }
 0x72c   : > { %v12200_v9 = vld [vmem:[%s15049_s16 + $0x1778] sm:$0xf0] }
 0x72d   : > { %v14118_v37 = vld [vmem:[%s15049_s16 + $0x111c] sm:$0xf]  ;;  %v12203_v44 = vor.u32 %v14318_v22, %v12200_v9  ;;  %8271 = vmatpush.bf16.msra.mxu2 %v11947_v33 }
 0x72e   : > { %v11400_v43 = vld [vmem:[%s15049_s16 + $0x1138] sm:$0xf0] }
 0x72f   : > { %v14182_v0 = vld [vmem:[%s15049_s16 + $0x131c] sm:$0xf]  ;;  %v11403_v24 = vor.u32 %v14118_v37, %v11400_v43  ;;  %8285 = vmatpush.bf16.msra.mxu3 %v12203_v44 }
 0x730   : > { %v11656_v21 = vld [vmem:[%s15049_s16 + $0x1338] sm:$0xf0] }
 0x731   : > { %v14246_v61 = vld [vmem:[%s15049_s16 + $0x151c] sm:$0xf]  ;;  %v11659_v58 = vor.u32 %v14182_v0, %v11656_v21  ;;  %8244 = vmatpush.bf16.msra.mxu0 %v11403_v24 }
 0x732   : > { %v11912_v47 = vld [vmem:[%s15049_s16 + $0x1538] sm:$0xf0] }
 0x733   : > { %v14310_v48 = vld [vmem:[%s15049_s16 + $0x171c] sm:$0xf]  ;;  %v11915_v55 = vor.u32 %v14246_v61, %v11912_v47  ;;  %8258 = vmatpush.bf16.msra.mxu1 %v11659_v58 }
 0x734   : > { %v12168_v60 = vld [vmem:[%s15049_s16 + $0x1738] sm:$0xf0] }
 0x735   : > { %v14110_v59 = vld [vmem:[%s15049_s16 + $0x10dc] sm:$0xf]  ;;  %v12171_v10 = vor.u32 %v14310_v48, %v12168_v60  ;;  %8272 = vmatpush.bf16.msra.mxu2 %v11915_v55 }
 0x736   : > { %v11368_v1 = vld [vmem:[%s15049_s16 + $0x10f8] sm:$0xf0] }
 0x737   : > { %v14174_v26 = vld [vmem:[%s15049_s16 + $0x12dc] sm:$0xf]  ;;  %v11371_v29 = vor.u32 %v14110_v59, %v11368_v1  ;;  %8286 = vmatpush.bf16.msra.mxu3 %v12171_v10 }
 0x738   : > { %v11624_v63 = vld [vmem:[%s15049_s16 + $0x12f8] sm:$0xf0] }
 0x739   : > { %v14238_v7 = vld [vmem:[%s15049_s16 + $0x14dc] sm:$0xf]  ;;  %v11627_v2 = vor.u32 %v14174_v26, %v11624_v63  ;;  %8245 = vmatpush.bf16.msra.mxu0 %v11371_v29 }
 0x73a   : > { %v11880_v17 = vld [vmem:[%s15049_s16 + $0x14f8] sm:$0xf0] }
 0x73b   : > { %v14302_v28 = vld [vmem:[%s15049_s16 + $0x16dc] sm:$0xf]  ;;  %v11883_v18 = vor.u32 %v14238_v7, %v11880_v17  ;;  %8259 = vmatpush.bf16.msra.mxu1 %v11627_v2 }
 0x73c   : > { %v12136_v19 = vld [vmem:[%s15049_s16 + $0x16f8] sm:$0xf0] }
 0x73d   : > { %v14102_v12 = vld [vmem:[%s15049_s16 + $0x109c] sm:$0xf]  ;;  %v12139_v8 = vor.u32 %v14302_v28, %v12136_v19  ;;  %8273 = vmatpush.bf16.msra.mxu2 %v11883_v18 }
 0x73e   : > { %v11336_v16 = vld [vmem:[%s15049_s16 + $0x10b8] sm:$0xf0] }
 0x73f   : > { %v14166_v23 = vld [vmem:[%s15049_s16 + $0x129c] sm:$0xf]  ;;  %v11339_v22 = vor.u32 %v14102_v12, %v11336_v16  ;;  %8287 = vmatpush.bf16.msra.mxu3 %v12139_v8 }
 0x740   : > { %v11592_v25 = vld [vmem:[%s15049_s16 + $0x12b8] sm:$0xf0] }
 0x741   : > { %v14230_v4 = vld [vmem:[%s15049_s16 + $0x149c] sm:$0xf]  ;;  %v11595_v9 = vor.u32 %v14166_v23, %v11592_v25  ;;  %8246 = vmatpush.bf16.msra.mxu0 %v11339_v22 }
 0x742   : > { %v11848_v49 = vld [vmem:[%s15049_s16 + $0x14b8] sm:$0xf0] }
 0x743   : > { %v14294_v34 = vld [vmem:[%s15049_s16 + $0x169c] sm:$0xf]  ;;  %v11851_v39 = vor.u32 %v14230_v4, %v11848_v49  ;;  %8260 = vmatpush.bf16.msra.mxu1 %v11595_v9 }
 0x744   : > { %v12104_v14 = vld [vmem:[%s15049_s16 + $0x16b8] sm:$0xf0] }
 0x745   : > { %v14094_v45 = vld [vmem:[%s15049_s16 + $0x105c] sm:$0xf]  ;;  %v12107_v43 = vor.u32 %v14294_v34, %v12104_v14  ;;  %8274 = vmatpush.bf16.msra.mxu2 %v11851_v39 }
 0x746   : > { %v11304_v33 = vld [vmem:[%s15049_s16 + $0x1078] sm:$0xf0] }
 0x747   : > { %v14158_v37 = vld [vmem:[%s15049_s16 + $0x125c] sm:$0xf]  ;;  %v11307_v48 = vor.u32 %v14094_v45, %v11304_v33  ;;  %8288 = vmatpush.bf16.msra.mxu3 %v12107_v43 }
 0x748   : > { %v11560_v0 = vld [vmem:[%s15049_s16 + $0x1278] sm:$0xf0] }
 0x749   : > { %v14222_v44 = vld [vmem:[%s15049_s16 + $0x145c] sm:$0xf]  ;;  %v11563_v58 = vor.u32 %v14158_v37, %v11560_v0  ;;  %8247 = vmatpush.bf16.msra.mxu0 %v11307_v48 }
 0x74a   : > { %v11816_v21 = vld [vmem:[%s15049_s16 + $0x1478] sm:$0xf0] }
 0x74b   : > { %v14286_v61 = vld [vmem:[%s15049_s16 + $0x165c] sm:$0xf]  ;;  %v11819_v55 = vor.u32 %v14222_v44, %v11816_v21  ;;  %8261 = vmatpush.bf16.msra.mxu1 %v11563_v58 }
 0x74c   : > { %v12072_v47 = vld [vmem:[%s15049_s16 + $0x1678] sm:$0xf0] }
 0x74d   : > { %v14086_v60 = vld [vmem:[%s15049_s16 + $0x101c] sm:$0xf]  ;;  %v12075_v10 = vor.u32 %v14286_v61, %v12072_v47  ;;  %8275 = vmatpush.bf16.msra.mxu2 %v11819_v55  ;;  %v17880_v61 = vperm.slane %v15452_v51, 0 }
 0x74e   : > { %v11272_v24 = vld [vmem:[%s15049_s16 + $0x1038] sm:$0xf0] }
 0x74f   : > { %v14150_v59 = vld [vmem:[%s15049_s16 + $0x121c] sm:$0xf]  ;;  %v11275_v2 = vor.u32 %v14086_v60, %v11272_v24  ;;  %8289 = vmatpush.bf16.msra.mxu3 %v12075_v10  ;;  %v6573_v47 = vadd.f32 %v15519_v54, %v17880_v61  ;;  %v17882_v54 = vperm.slane %v15452_v51, 2 }
 0x750   : > { %v11528_v1 = vld [vmem:[%s15049_s16 + $0x1238] sm:$0xf0] }
 0x751   : > { %v14214_v26 = vld [vmem:[%s15049_s16 + $0x141c] sm:$0xf]  ;;  %v11531_v23 = vor.u32 %v14150_v59, %v11528_v1  ;;  %8248 = vmatpush.bf16.msra.mxu0 %v11275_v2  ;;  %v17881_v1 = vperm.slane %v15452_v51, 1  ;;  %v7021_v10 = vadd.f32 %v16155_v13, %v17882_v54  ;;  %v17505_v2 = vpop.f32.mrf.mxu0 }
 0x752   : > { %v11784_v63 = vld [vmem:[%s15049_s16 + $0x1438] sm:$0xf0] }
 0x753   : > { %v14278_v7 = vld [vmem:[%s15049_s16 + $0x161c] sm:$0xf]  ;;  %v11787_v8 = vor.u32 %v14214_v26, %v11784_v63  ;;  %8262 = vmatpush.bf16.msra.mxu1 %v11531_v23  ;;  %v6797_v26 = vadd.f32 %v15837_v56, %v17881_v1 }
 0x754   : > { %v12040_v17 = vld [vmem:[%s15049_s16 + $0x1638] sm:$0xf0]  ;;  %8249 = vmatmul.bf16.vlgmr.msra.gmra.mxu0 %v15290_v31  ;;  %v6587_v31 = vadd.f32 %v15529_v3, %v6573_v47 }
 0x755   : > { %v14398_v28 = vld [vmem:[%s15049_s16 + $0x19dc] sm:$0xf]  ;;  %v12043_v49 = vor.u32 %v14278_v7, %v12040_v17  ;;  %8276 = vmatpush.bf16.msra.mxu2 %v11787_v8  ;;  %v6811_v23 = vadd.f32 %v15847_v15, %v6797_v26  ;;  %v7035_v8 = vadd.f32 %v16165_v57, %v7021_v10  ;;  %v17527_v57 = vpop.f32.mrf.mxu2 }
 0x756   : > { %v12520_v19 = vld [vmem:[%s15049_s16 + $0x19f8] sm:$0xf0]  ;;  %8263 = vmatmul.bf16.vlgmr.msra.gmra.mxu1 %v15297_v36 }
 0x757   : > { %v14462_v29 = vld [vmem:[%s15049_s16 + $0x1bdc] sm:$0xf]  ;;  %v12523_v34 = vor.u32 %v14398_v28, %v12520_v19  ;;  %8290 = vmatpush.bf16.msra.mxu3 %v12043_v49  ;;  %v17883_v19 = vperm.slane %v15452_v51, 3 }
 0x758   : > { %v12776_v18 = vld [vmem:[%s15049_s16 + $0x1bf8] sm:$0xf0]  ;;  %8277 = vmatmul.bf16.vlgmr.msra.gmra.mxu2 %v15295_v35 }
 0x759   : > { %v14526_v12 = vld [vmem:[%s15049_s16 + $0x1ddc] sm:$0xf]  ;;  %v12779_v14 = vor.u32 %v14462_v29, %v12776_v18  ;;  %8297 = vmatpush.bf16.msrb.mxu0 %v12523_v34  ;;  %v7245_v29 = vadd.f32 %v16473_v50, %v17883_v19  ;;  %v17522_v34 = vpop.f32.mrf.mxu1 }
 0x75a   : > { %v13032_v16 = vld [vmem:[%s15049_s16 + $0x1df8] sm:$0xf0]  ;;  %8291 = vmatmul.bf16.vlgmr.msra.gmra.mxu3 %v15301_v40 }
 0x75b   : > { %v14590_v25 = vld [vmem:[%s15049_s16 + $0x1fdc] sm:$0xf]  ;;  %v13035_v22 = vor.u32 %v14526_v12, %v13032_v16  ;;  %8311 = vmatpush.bf16.msrb.mxu1 %v12779_v14  ;;  %v7259_v49 = vadd.f32 %v16483_v5, %v7245_v29 }
 0x75c   : > { %v13288_v4 = vld [vmem:[%s15049_s16 + $0x1ff8] sm:$0xf0] }
 0x75d   : > { %v14390_v9 = vld [vmem:[%s15049_s16 + $0x199c] sm:$0xf]  ;;  %v13291_v33 = vor.u32 %v14590_v25, %v13288_v4  ;;  %8325 = vmatpush.bf16.msrb.mxu2 %v13035_v22  ;;  %v7273_v47 = vadd.f32 %v16497_v62, %v7259_v49 }
 0x75e   : > { %v12488_v39 = vld [vmem:[%s15049_s16 + $0x19b8] sm:$0xf0] }
 0x75f   : > { %v14454_v45 = vld [vmem:[%s15049_s16 + $0x1b9c] sm:$0xf]  ;;  %v12491_v48 = vor.u32 %v14390_v9, %v12488_v39  ;;  %8339 = vmatpush.bf16.msrb.mxu3 %v13291_v33  ;;  %v6601_v9 = vadd.f32 %v15543_v20, %v6587_v31 }
 0x760   : > { %v12744_v37 = vld [vmem:[%s15049_s16 + $0x1bb8] sm:$0xf0] }
 0x761   : > { %v14518_v43 = vld [vmem:[%s15049_s16 + $0x1d9c] sm:$0xf]  ;;  %v12747_v60 = vor.u32 %v14454_v45, %v12744_v37  ;;  %8298 = vmatpush.bf16.msrb.mxu0 %v12491_v48 }
 0x762   : > { %v13000_v0 = vld [vmem:[%s15049_s16 + $0x1db8] sm:$0xf0] }
 0x763   : > { %v14582_v44 = vld [vmem:[%s15049_s16 + $0x1f9c] sm:$0xf]  ;;  %v13003_v24 = vor.u32 %v14518_v43, %v13000_v0  ;;  %8312 = vmatpush.bf16.msrb.mxu1 %v12747_v60  ;;  %v6825_v43 = vadd.f32 %v15861_v52, %v6811_v23  ;;  %v7049_v0 = vadd.f32 %v16179_v11, %v7035_v8  ;;  %v17541_v11 = vpop.f32.mrf.mxu0 }
 0x764   : > { %v13256_v21 = vld [vmem:[%s15049_s16 + $0x1fb8] sm:$0xf0] }
 0x765   : > { %v14382_v58 = vld [vmem:[%s15049_s16 + $0x195c] sm:$0xf]  ;;  %v13259_v63 = vor.u32 %v14582_v44, %v13256_v21  ;;  %8326 = vmatpush.bf16.msrb.mxu2 %v13003_v24  ;;  %v6615_v24 = vadd.f32 %v15548_v27, %v6601_v9  ;;  %v6839_v27 = vadd.f32 %v15866_v6, %v6825_v43  ;;  %v7063_v54 = vadd.f32 %v16184_v42, %v7049_v0  ;;  %v17557_v42 = vpop.f32.mrf.mxu1 }
 0x766   : > { %v12456_v55 = vld [vmem:[%s15049_s16 + $0x1978] sm:$0xf0] }
 0x767   : > { %v14446_v59 = vld [vmem:[%s15049_s16 + $0x1b5c] sm:$0xf]  ;;  %v12459_v18 = vor.u32 %v14382_v58, %v12456_v55  ;;  %8340 = vmatpush.bf16.msrb.mxu3 %v13259_v63  ;;  %v17543_v58 = vpop.f32.mrf.mxu3 }
 0x768   : > { %v12712_v7 = vld [vmem:[%s15049_s16 + $0x1b78] sm:$0xf0] }
 0x769   : > { %v14510_v17 = vld [vmem:[%s15049_s16 + $0x1d5c] sm:$0xf]  ;;  %v12715_v50 = vor.u32 %v14446_v59, %v12712_v7  ;;  %8299 = vmatpush.bf16.msrb.mxu0 %v12459_v18 }
 0x76a   : > { %v12968_v28 = vld [vmem:[%s15049_s16 + $0x1d78] sm:$0xf0] }
 0x76b   : > { %v14574_v56 = vld [vmem:[%s15049_s16 + $0x1f5c] sm:$0xf]  ;;  %v12971_v12 = vor.u32 %v14510_v17, %v12968_v28  ;;  %8313 = vmatpush.bf16.msrb.mxu1 %v12715_v50  ;;  %v7287_v28 = vadd.f32 %v16502_v30, %v7273_v47  ;;  %v17891_v47 = vld [vmem:[#allocation40_spill] sm:$0xff] }
 0x76c   : > { %v13224_v13 = vld [vmem:[%s15049_s16 + $0x1f78] sm:$0xf0] }
 0x76d   : > { %v14374_v35 = vld [vmem:[%s15049_s16 + $0x191c] sm:$0xf]  ;;  %v13227_v3 = vor.u32 %v14574_v56, %v13224_v13  ;;  %8327 = vmatpush.bf16.msrb.mxu2 %v12971_v12  ;;  %v17884_v56 = vld [vmem:[#allocation13_spill] sm:$0xff] }
 0x76e   : > { %v12424_v16 = vld [vmem:[%s15049_s16 + $0x1938] sm:$0xf0]  ;;  %v6629_v13 = vadd.f32 %v17884_v56, %v6615_v24 }
 0x76f   : > { %v14438_v36 = vld [vmem:[%s15049_s16 + $0x1b1c] sm:$0xf]  ;;  %v12427_v15 = vor.u32 %v14374_v35, %v12424_v16  ;;  %8341 = vmatpush.bf16.msrb.mxu3 %v13227_v3  ;;  %v17885_v35 = vld [vmem:[#allocation26_spill] sm:$0xff] }
 0x770   : > { %v12680_v40 = vld [vmem:[%s15049_s16 + $0x1b38] sm:$0xf0]  ;;  %v6853_v16 = vadd.f32 %v17885_v35, %v6839_v27 }
 0x771   : > { %v14502_v25 = vld [vmem:[%s15049_s16 + $0x1d1c] sm:$0xf]  ;;  %v12683_v39 = vor.u32 %v14438_v36, %v12680_v40  ;;  %8300 = vmatpush.bf16.msrb.mxu0 %v12427_v15  ;;  %v17888_v15 = vld [vmem:[#allocation14_spill] sm:$0xff] }
 0x772   : > { %v12936_v4 = vld [vmem:[%s15049_s16 + $0x1d38] sm:$0xf0] }
 0x773   : > { %v14566_v14 = vld [vmem:[%s15049_s16 + $0x1f1c] sm:$0xf]  ;;  %v12939_v45 = vor.u32 %v14502_v25, %v12936_v4  ;;  %8314 = vmatpush.bf16.msrb.mxu1 %v12683_v39  ;;  %v17887_v4 = vld [vmem:[#allocation52_spill] sm:$0xff]  ;;  %v6643_v39 = vadd.f32 %v17888_v15, %v6629_v13  ;;  %v17901_v15 = vld [vmem:[#allocation30_spill] sm:$0xff] }
 0x774   : > { %v13192_v22 = vld [vmem:[%s15049_s16 + $0x1f38] sm:$0xf0]  ;;  %v7301_v49 = vadd.f32 %v17887_v4, %v7287_v28 }
 0x775   : > { %v14366_v5 = vld [vmem:[%s15049_s16 + $0x18dc] sm:$0xf]  ;;  %v13195_v20 = vor.u32 %v14566_v14, %v13192_v22  ;;  %8328 = vmatpush.bf16.msrb.mxu2 %v12939_v45  ;;  %v17568_v14 = vpop.f32.mrf.mxu2 }
 0x776   : > { %v12392_v33 = vld [vmem:[%s15049_s16 + $0x18f8] sm:$0xf0] }
 0x777   : > { %v14430_v37 = vld [vmem:[%s15049_s16 + $0x1adc] sm:$0xf]  ;;  %v12395_v52 = vor.u32 %v14366_v5, %v12392_v33  ;;  %8342 = vmatpush.bf16.msrb.mxu3 %v13195_v20 }
 0x778   : > { %v12648_v44 = vld [vmem:[%s15049_s16 + $0x1af8] sm:$0xf0] }
 0x779   : > { %v14494_v21 = vld [vmem:[%s15049_s16 + $0x1cdc] sm:$0xf]  ;;  %v12651_v55 = vor.u32 %v14430_v37, %v12648_v44  ;;  %8301 = vmatpush.bf16.msrb.mxu0 %v12395_v52 }
 0x77a   : > { %v12904_v61 = vld [vmem:[%s15049_s16 + $0x1cf8] sm:$0xf0] }
 0x77b   : > { %v14558_v48 = vld [vmem:[%s15049_s16 + $0x1edc] sm:$0xf]  ;;  %v12907_v59 = vor.u32 %v14494_v21, %v12904_v61  ;;  %8315 = vmatpush.bf16.msrb.mxu1 %v12651_v55 }
 0x77c   : > { %v13160_v60 = vld [vmem:[%s15049_s16 + $0x1ef8] sm:$0xf0] }
 0x77d   : > { %v14358_v62 = vld [vmem:[%s15049_s16 + $0x189c] sm:$0xf]  ;;  %v13163_v10 = vor.u32 %v14558_v48, %v13160_v60  ;;  %8329 = vmatpush.bf16.msrb.mxu2 %v12907_v59  ;;  %v17892_v59 = vld [vmem:[#allocation53_spill] sm:$0xff] }
 0x77e   : > { %v12360_v1 = vld [vmem:[%s15049_s16 + $0x18b8] sm:$0xf0] }
 0x77f   : > { %v14422_v26 = vld [vmem:[%s15049_s16 + $0x1a9c] sm:$0xf]  ;;  %v12363_v6 = vor.u32 %v14358_v62, %v12360_v1  ;;  %8343 = vmatpush.bf16.msrb.mxu3 %v13163_v10  ;;  %v7315_v62 = vadd.f32 %v17892_v59, %v7301_v49  ;;  %v17584_v1 = vpop.f32.mrf.mxu3  ;;  %v17893_v10 = vld [vmem:[#allocation28_spill] sm:$0xff] }
 0x780   : > { %v12616_v63 = vld [vmem:[%s15049_s16 + $0x1ab8] sm:$0xf0] }
 0x781   : > { %v14486_v7 = vld [vmem:[%s15049_s16 + $0x1c9c] sm:$0xf]  ;;  %v12619_v31 = vor.u32 %v14422_v26, %v12616_v63  ;;  %8302 = vmatpush.bf16.msrb.mxu0 %v12363_v6  ;;  %v17586_v26 = vpop.f32.mrf.mxu0  ;;  %v17896_v6 = vld [vmem:[#allocation16_spill] sm:$0xff] }
 0x782   : > { %v12872_v17 = vld [vmem:[%s15049_s16 + $0x1cb8] sm:$0xf0] }
 0x783   : > { %v14550_v19 = vld [vmem:[%s15049_s16 + $0x1e9c] sm:$0xf]  ;;  %v12875_v18 = vor.u32 %v14486_v7, %v12872_v17  ;;  %8316 = vmatpush.bf16.msrb.mxu1 %v12619_v31  ;;  %v17894_v7 = vld [vmem:[#allocation41_spill] sm:$0xff] }
 0x784   : > { %v13128_v29 = vld [vmem:[%s15049_s16 + $0x1eb8] sm:$0xf0] }
 0x785   : > { %v14350_v50 = vld [vmem:[%s15049_s16 + $0x185c] sm:$0xf]  ;;  %v13131_v8 = vor.u32 %v14550_v19, %v13128_v29  ;;  %8330 = vmatpush.bf16.msrb.mxu2 %v12875_v18  ;;  %v17895_v19 = vld [vmem:[#allocation54_spill] sm:$0xff] }
 0x786   : > { %v12328_v12 = vld [vmem:[%s15049_s16 + $0x1878] sm:$0xf0]  ;;  %v7329_v29 = vadd.f32 %v17895_v19, %v7315_v62  ;;  %v17912_v19 = vld [vmem:[#allocation32_spill] sm:$0xff] }
 0x787   : > { %v14414_v30 = vld [vmem:[%s15049_s16 + $0x1a5c] sm:$0xf]  ;;  %v12331_v45 = vor.u32 %v14350_v50, %v12328_v12  ;;  %8344 = vmatpush.bf16.msrb.mxu3 %v13131_v8  ;;  %v17600_v12 = vpop.f32.mrf.mxu1  ;;  %v17628_v59 = vpop.f32.mrf.mxu3 }
 0x788   : > { %v17886_v36 = vld [vmem:[#allocation39_spill] sm:$0xff] }
 0x789   : > { %v7077_v23 = vadd.f32 %v17886_v36, %v7063_v54  ;;  %v12584_v3 = vld [vmem:[%s15049_s16 + $0x1a78] sm:$0xf0]  ;;  %8303 = vmatpush.bf16.msrb.mxu0 %v12331_v45  ;;  %v14603_v45 = vld [vmem:[%s17593_s10 + $0x30] sm:$0xff] }
 0x78a   : > { %v14478_v40 = vld [vmem:[%s15049_s16 + $0x1c5c] sm:$0xf]  ;;  %v12587_v5 = vor.u32 %v14414_v30, %v12584_v3  ;;  %v1351_v3 = vperm.slane %v15452_v51, 6 }
 0x78b   : > { %v12840_v25 = vld [vmem:[%s15049_s16 + $0x1c78] sm:$0xf0]  ;;  %v7091_v48 = vadd.f32 %v17891_v47, %v7077_v23  ;;  %v17898_v23 = vld [vmem:[#allocation29_spill] sm:$0xff]  ;;  %v17906_v47 = vld [vmem:[#allocation18_spill] sm:$0xff] }
 0x78c   : > { %v14542_v22 = vld [vmem:[%s15049_s16 + $0x1e5c] sm:$0xf]  ;;  %v12843_v33 = vor.u32 %v14478_v40, %v12840_v25  ;;  %8317 = vmatpush.bf16.msrb.mxu1 %v12587_v5  ;;  %v17899_v25 = vld [vmem:[#allocation42_spill] sm:$0xff] }
 0x78d   : > { %v13096_v9 = vld [vmem:[%s15049_s16 + $0x1e78] sm:$0xf0]  ;;  %v7105_v17 = vadd.f32 %v17894_v7, %v7091_v48 }
 0x78e   : > { %v14342_v37 = vld [vmem:[%s15049_s16 + $0x181c] sm:$0xf]  ;;  %v13099_v60 = vor.u32 %v14542_v22, %v13096_v9  ;;  %8331 = vmatpush.bf16.msrb.mxu2 %v12843_v33  ;;  %v17610_v9 = vpop.f32.mrf.mxu2 }
 0x78f   : > { %v12296_v43 = vld [vmem:[%s15049_s16 + $0x1838] sm:$0xf0]  ;;  %v7119_v4 = vadd.f32 %v17899_v25, %v7105_v17  ;;  %v17911_v17 = vld [vmem:[#allocation66_spill] sm:$0xff] }
 0x790   : > { %v14406_v0 = vld [vmem:[%s15049_s16 + $0x1a1c] sm:$0xf]  ;;  %v12299_v28 = vor.u32 %v14342_v37, %v12296_v43  ;;  %8345 = vmatpush.bf16.msrb.mxu3 %v13099_v60  ;;  %v17903_v37 = vld [vmem:[#allocation56_spill] sm:$0xff]  ;;  %v7915_v60 = vadd.f32 %v17505_v2, %v1351_v3 }
 0x791   : > { %v17889_v20 = vld [vmem:[#allocation15_spill] sm:$0xff] }
 0x792   : > { %v6657_v44 = vadd.f32 %v17889_v20, %v6643_v39  ;;  %v17890_v21 = vld [vmem:[#allocation27_spill] sm:$0xff]  ;;  %8304 = vmatpush.bf16.msrb.mxu0 %v12299_v28  ;;  %v17905_v20 = vld [vmem:[#allocation65_spill] sm:$0xff] }
 0x793   : > { %v6867_v61 = vadd.f32 %v17890_v21, %v6853_v16  ;;  %v12552_v24 = vld [vmem:[%s15049_s16 + $0x1a38] sm:$0xf0]  ;;  %v17897_v16 = vld [vmem:[#allocation17_spill] sm:$0xff]  ;;  %v14611_v21 = vld [vmem:[%s17593_s10 + $0x70] sm:$0xff] }
 0x794   : > { %v14470_v52 = vld [vmem:[%s15049_s16 + $0x1c1c] sm:$0xf]  ;;  %v12555_v56 = vor.u32 %v14406_v0, %v12552_v24  ;;  %v6671_v31 = vadd.f32 %v17896_v6, %v6657_v44  ;;  %v17904_v0 = vperm.slane %v15452_v51, 4  ;;  %v7917_v24 = vadd.f32 %v17541_v11, %v1351_v3  ;;  %v17909_v11 = vld [vmem:[#allocation44_spill] sm:$0xff]  ;;  %v17913_v6 = vld [vmem:[#allocation45_spill] sm:$0xff] }
 0x795   : > { %v12808_v55 = vld [vmem:[%s15049_s16 + $0x1c38] sm:$0xf0]  ;;  %v6881_v63 = vadd.f32 %v17893_v10, %v6867_v61  ;;  %v14619_v61 = vld [vmem:[%s17593_s10 + $0xb0] sm:$0xff]  ;;  %8305 = vmatmul.bf16.vlgmr.msrb.gmra.mxu0 %v15366_v32  ;;  %v14602_v32 = vld [vmem:[%s17593_s10 + $0x28] sm:$0xff] }
 0x796   : > { %v14534_v27 = vld [vmem:[%s15049_s16 + $0x1e1c] sm:$0xf]  ;;  %v12811_v13 = vor.u32 %v14470_v52, %v12808_v55  ;;  %v6685_v36 = vadd.f32 %v17897_v16, %v6671_v31  ;;  %8318 = vmatpush.bf16.msrb.mxu1 %v12555_v56  ;;  %v7469_v44 = vadd.f32 %v17905_v20, %v17904_v0  ;;  %v14627_v52 = vld [vmem:[%s17593_s10 + $0xf0] sm:$0xff]  ;;  %v17626_v55 = vpop.f32.mrf.mxu0  ;;  %v7929_v56 = vadd.f32 %v17522_v34, %v7915_v60  ;;  %v17652_v3 = vpop.f32.mrf.mxu2  ;;  %v14609_v34 = vld [vmem:[%s17593_s10 + $0x60] sm:$0xff] }
 0x797   : > { %v13064_v54 = vld [vmem:[%s15049_s16 + $0x1e38] sm:$0xf0]  ;;  %v6895_v8 = vadd.f32 %v17898_v23, %v6881_v63  ;;  %v17910_v63 = vld [vmem:[#allocation57_spill] sm:$0xff]  ;;  %v17670_v60 = vpop.f32.mrf.mxu3 }
 0x798   : > { %v13067_v18 = vor.u32 %v14534_v27, %v13064_v54  ;;  %v14604_v50 = vld [vmem:[%s17593_s10 + $0x38] sm:$0xff]  ;;  %8332 = vmatpush.bf16.msrb.mxu2 %v12811_v13  ;;  %v6699_v48 = vadd.f32 %v17906_v47, %v6685_v36  ;;  %v7483_v28 = vadd.f32 %v17911_v17, %v7469_v44  ;;  %v14626_v13 = vld [vmem:[%s17593_s10 + $0xe8] sm:$0xff]  ;;  %v14601_v36 = vld [vmem:[%s17593_s10 + $0x20] sm:$0xff] }
 0x799   : > { %v14612_v30 = vld [vmem:[%s17593_s10 + $0x78] sm:$0xff]  ;;  %v6909_v39 = vadd.f32 %v17901_v15, %v6895_v8  ;;  %8895 = vmatpush.bf16.msra.mxu0 %v14604_v50  ;;  %8319 = vmatmul.bf16.vlgmr.msrb.gmra.mxu1 %v15373_v41  ;;  %v14610_v41 = vld [vmem:[%s17593_s10 + $0x68] sm:$0xff] }
 0x79a   : > { %v14620_v35 = vld [vmem:[%s17593_s10 + $0xb8] sm:$0xff]  ;;  %8346 = vmatpush.bf16.msrb.mxu3 %v13067_v18  ;;  %8909 = vmatpush.bf16.msra.mxu1 %v14612_v30  ;;  %v17914_v18 = vld [vmem:[#allocation58_spill] sm:$0xff]  ;;  %v17647_v30 = vpop.f32.mrf.mxu1 }
 0x79b   : > { %v14628_v40 = vld [vmem:[%s17593_s10 + $0xf8] sm:$0xff]  ;;  %8333 = vmatmul.bf16.vlgmr.msrb.gmra.mxu2 %v15371_v38  ;;  %v14618_v38 = vld [vmem:[%s17593_s10 + $0xa8] sm:$0xff] }
 0x79c   : > { %v17900_v49 = vld [vmem:[#allocation55_spill] sm:$0xff]  ;;  %8923 = vmatpush.bf16.msra.mxu2 %v14620_v35  ;;  %v17915_v35 = vld [vmem:[#allocation20_spill] sm:$0xff] }
 0x79d   : > { %v7343_v22 = vadd.f32 %v17900_v49, %v7329_v29  ;;  %v17902_v5 = vld [vmem:[#allocation43_spill] sm:$0xff]  ;;  %8347 = vmatmul.bf16.vlgmr.msrb.gmra.mxu3 %v15377_v46  ;;  %8896 = vmatpush.bf16.msra.mxu0 %v14603_v45  ;;  %v7931_v46 = vadd.f32 %v17557_v42, %v7917_v24  ;;  %v14617_v42 = vld [vmem:[%s17593_s10 + $0xa0] sm:$0xff]  ;;  %v17919_v45 = vld [vmem:[#allocation46_spill] sm:$0xff] }
 0x79e   : > { %v7133_v33 = vadd.f32 %v17902_v5, %v7119_v4  ;;  %8937 = vmatpush.bf16.msra.mxu3 %v14628_v40  ;;  %v17907_v62 = vld [vmem:[#allocation19_spill] sm:$0xff]  ;;  %8910 = vmatpush.bf16.msra.mxu1 %v14611_v21  ;;  %v17917_v40 = vld [vmem:[#allocation22_spill] sm:$0xff]  ;;  %v17918_v4 = vld [vmem:[#allocation33_spill] sm:$0xff] }
 0x79f   : > { %v7357_v43 = vadd.f32 %v17903_v37, %v7343_v22  ;;  %v6713_v27 = vadd.f32 %v17907_v62, %v6699_v48  ;;  %v17908_v54 = vld [vmem:[#allocation31_spill] sm:$0xff]  ;;  %v7943_v22 = vadd.f32 %v17527_v57, %v7929_v56  ;;  %v7945_v15 = vadd.f32 %v17568_v14, %v7931_v46  ;;  %v17922_v21 = vld [vmem:[#allocation48_spill] sm:$0xff]  ;;  %v17923_v57 = vld [vmem:[#allocation61_spill] sm:$0xff]  ;;  %v17686_v46 = vpop.f32.mrf.mxu2 }
 0x7a0   : > { %v6923_v2 = vadd.f32 %v17908_v54, %v6909_v39  ;;  %v7147_v10 = vadd.f32 %v17909_v11, %v7133_v33  ;;  %8924 = vmatpush.bf16.msra.mxu2 %v14619_v61  ;;  %v17916_v23 = vld [vmem:[#allocation67_spill] sm:$0xff]  ;;  %v14625_v39 = vld [vmem:[%s17593_s10 + $0xe0] sm:$0xff] }
 0x7a1   : > { %v7371_v7 = vadd.f32 %v17910_v63, %v7357_v43  ;;  %v6727_v16 = vadd.f32 %v17915_v35, %v6713_v27  ;;  %8897 = vmatpush.bf16.msra.mxu0 %v14602_v32  ;;  %v7497_v8 = vadd.f32 %v17916_v23, %v7483_v28  ;;  %v17920_v33 = vld [vmem:[#allocation59_spill] sm:$0xff]  ;;  %v17663_v43 = vpop.f32.mrf.mxu0  ;;  %v17924_v48 = vld [vmem:[#allocation68_spill] sm:$0xff]  ;;  %v7957_v54 = vadd.f32 %v17543_v58, %v7943_v22  ;;  %v14599_v28 = vld [vmem:[%s17593_s10 + $0x10] sm:$0xff]  ;;  %v17699_v22 = vpop.f32.mrf.mxu3 }
 0x7a2   : > { %v6937_v29 = vadd.f32 %v17912_v19, %v6923_v2  ;;  %8938 = vmatpush.bf16.msra.mxu3 %v14627_v52  ;;  %v7161_v31 = vadd.f32 %v17913_v6, %v7147_v10  ;;  %8911 = vmatpush.bf16.msra.mxu1 %v14610_v41  ;;  %v17921_v0 = vld [vmem:[#allocation35_spill] sm:$0xff]  ;;  %v7959_v2 = vadd.f32 %v17584_v1, %v7945_v15  ;;  %v17678_v11 = vpop.f32.mrf.mxu1  ;;  %v17926_v10 = vld [vmem:[#allocation24_spill] sm:$0xff]  ;;  %v17928_v41 = vld [vmem:[#allocation49_spill] sm:$0xff] }
 0x7a3   : > { %v7385_v50 = vadd.f32 %v17914_v18, %v7371_v7  ;;  %v6741_v25 = vadd.f32 %v17917_v40, %v6727_v16  ;;  %v14600_v44 = vld [vmem:[%s17593_s10 + $0x18] sm:$0xff]  ;;  %v7511_v14 = vadd.f32 %v17924_v48, %v7497_v8  ;;  %v17927_v7 = vld [vmem:[#allocation36_spill] sm:$0xff]  ;;  %v17929_v19 = vld [vmem:[#allocation62_spill] sm:$0xff]  ;;  %v7971_v18 = vadd.f32 %v17586_v26, %v7957_v54 }
 0x7a4   : > { %8925 = vmatpush.bf16.msra.mxu2 %v14618_v38  ;;  %v6951_v49 = vadd.f32 %v17918_v4, %v6937_v29  ;;  %v7175_v5 = vadd.f32 %v17919_v45, %v7161_v31  ;;  %v14608_v24 = vld [vmem:[%s17593_s10 + $0x58] sm:$0xff]  ;;  %v17930_v58 = vld [vmem:[#allocation69_spill] sm:$0xff]  ;;  %v14607_v1 = vld [vmem:[%s17593_s10 + $0x50] sm:$0xff] }
 0x7a5   : > { %v7399_v37 = vadd.f32 %v17920_v33, %v7385_v50  ;;  %8898 = vmatpush.bf16.msra.mxu0 %v14601_v36  ;;  %v14616_v52 = vld [vmem:[%s17593_s10 + $0x98] sm:$0xff]  ;;  %v7525_v56 = vadd.f32 %v17930_v58, %v7511_v14  ;;  %v17931_v6 = vld [vmem:[#allocation37_spill] sm:$0xff]  ;;  %v7973_v50 = vadd.f32 %v17626_v55, %v7959_v2  ;;  %v14623_v35 = vld [vmem:[%s17593_s10 + $0xd0] sm:$0xff]  ;;  %v7985_v45 = vadd.f32 %v17600_v12, %v7971_v18 }
 0x7a6   : > { %8939 = vmatpush.bf16.msra.mxu3 %v14626_v13  ;;  %v6965_v20 = vadd.f32 %v17921_v0, %v6951_v49  ;;  %v7189_v61 = vadd.f32 %v17922_v21, %v7175_v5  ;;  %8912 = vmatpush.bf16.msra.mxu1 %v14609_v34  ;;  %v17925_v62 = vld [vmem:[#allocation23_spill] sm:$0xff]  ;;  %v14615_v13 = vld [vmem:[%s17593_s10 + $0x90] sm:$0xff]  ;;  %v14598_v34 = vld [vmem:[%s17593_s10 + $0x8] sm:$0xff] }
 0x7a7   : > { %v7413_v47 = vadd.f32 %v17923_v57, %v7399_v37  ;;  %v6755_v27 = vadd.f32 %v17925_v62, %v6741_v25  ;;  %v14624_v32 = vld [vmem:[%s17593_s10 + $0xd8] sm:$0xff]  ;;  %v17932_v16 = vld [vmem:[#allocation50_spill] sm:$0xff]  ;;  %v14606_v26 = vld [vmem:[%s17593_s10 + $0x48] sm:$0xff]  ;;  %v7987_v5 = vadd.f32 %v17647_v30, %v7973_v50 }
 0x7a8   : > { %8926 = vmatpush.bf16.msra.mxu2 %v14617_v42  ;;  %v6979_v17 = vadd.f32 %v17927_v7, %v6965_v20  ;;  %v7203_v38 = vadd.f32 %v17928_v41, %v7189_v61  ;;  %v17933_v23 = vld [vmem:[#allocation63_spill] sm:$0xff]  ;;  %v17934_v42 = vld [vmem:[#allocation25_spill] sm:$0xff]  ;;  %v17935_v25 = vld [vmem:[#allocation70_spill] sm:$0xff]  ;;  %v8056_v7 = vpop.f32.mrf.mxu2 }
 0x7a9   : > { %v6769_v63 = vadd.f32 %v17926_v10, %v6755_v27  ;;  %8899 = vmatpush.bf16.msra.mxu0 %v14600_v44  ;;  %v7427_v29 = vadd.f32 %v17929_v19, %v7413_v47  ;;  %v7539_v4 = vadd.f32 %v17935_v25, %v7525_v56  ;;  %v8028_v49 = vpop.f32.mrf.mxu0  ;;  %v14614_v55 = vld [vmem:[%s17593_s10 + $0x88] sm:$0xff]  ;;  %v17936_v15 = vld [vmem:[#allocation38_spill] sm:$0xff]  ;;  %v17937_v37 = vld [vmem:[#allocation51_spill] sm:$0xff]  ;;  %v8001_v57 = vadd.f32 %v17652_v3, %v7987_v5 }
 0x7aa   : > { %8940 = vmatpush.bf16.msra.mxu3 %v14625_v39  ;;  %8913 = vmatpush.bf16.msra.mxu1 %v14608_v24  ;;  %v6993_v31 = vadd.f32 %v17931_v6, %v6979_v17  ;;  %v7217_v36 = vadd.f32 %v17932_v16, %v7203_v38  ;;  %v14622_v33 = vld [vmem:[%s17593_s10 + $0xc8] sm:$0xff]  ;;  %v17938_v20 = vld [vmem:[#allocation64_spill] sm:$0xff]  ;;  %v17939_v21 = vld [vmem:[#allocation71_spill] sm:$0xff]  ;;  %v8042_v12 = vpop.f32.mrf.mxu1 }
 0x7ab   : > { %v7441_v8 = vadd.f32 %v17933_v23, %v7427_v29  ;;  %v6783_v40 = vadd.f32 %v17934_v42, %v6769_v63  ;;  %v7553_v61 = vadd.f32 %v17939_v21, %v7539_v4  ;;  %v14597_v47 = vld [vmem:[%s17593_s10] sm:$0xff]  ;;  %v14636_v27 = vld [vmem:[%s17593_s10 + $0x138] sm:$0xff]  ;;  %v17940_v54 = vld [vmem:[#allocation21_spill] sm:$0xff]  ;;  %v8015_v19 = vadd.f32 %v17670_v60, %v8001_v57  ;;  %v8070_v23 = vpop.f32.mrf.mxu3 }
 0x7ac   : > { %8927 = vmatpush.bf16.msra.mxu2 %v14616_v52  ;;  %v7007_v39 = vadd.f32 %v17936_v15, %v6993_v31  ;;  %v7231_v0 = vadd.f32 %v17937_v37, %v7217_v36  ;;  %v14605_v30 = vld [vmem:[%s17593_s10 + $0x40] sm:$0xff]  ;;  %v7999_v52 = vadd.f32 %v17610_v9, %v7985_v45  ;;  %v8353_v2 = vmax.f32 %v17940_v54, 0.0  ;;  %v14644_v17 = vld [vmem:[%s17593_s10 + $0x178] sm:$0xff]  ;;  %v17942_v41 = vld [vmem:[#allocation34_spill] sm:$0xff] }
 0x7ad   : > { %8900 = vmatpush.bf16.msra.mxu0 %v14599_v28  ;;  %v7455_v44 = vadd.f32 %v17938_v20, %v7441_v8  ;;  %v8361_v48 = vmax.f32 %v6783_v40, 0.0  ;;  %v14613_v14 = vld [vmem:[%s17593_s10 + $0x80] sm:$0xff]  ;;  %v14652_v28 = vld [vmem:[%s17593_s10 + $0x1b8] sm:$0xff]  ;;  %v8354_v38 = vmax.f32 %v17942_v41, 0.0  ;;  %v14635_v60 = vld [vmem:[%s17593_s10 + $0x130] sm:$0xff] }
 0x7ae   : > { %8941 = vmatpush.bf16.msra.mxu3 %v14624_v32  ;;  %8914 = vmatpush.bf16.msra.mxu1 %v14607_v1  ;;  %v8362_v24 = vmax.f32 %v7007_v39, 0.0  ;;  %v14621_v62 = vld [vmem:[%s17593_s10 + $0xc0] sm:$0xff]  ;;  %v8363_v3 = vmax.f32 %v7231_v0, 0.0  ;;  %v17943_v9 = vld [vmem:[#allocation47_spill] sm:$0xff]  ;;  %v8013_v50 = vadd.f32 %v17628_v59, %v7999_v52  ;;  %v14643_v8 = vld [vmem:[%s17593_s10 + $0x170] sm:$0xff] }
 0x7af   : > { %v8364_v32 = vmax.f32 %v7455_v44, 0.0  ;;  %v17941_v10 = vld [vmem:[#allocation72_spill] sm:$0xff]  ;;  %v8369_v29 = vpack.c.bf16 %v8361_v48, %v8353_v2  ;;  %v8355_v58 = vmax.f32 %v17943_v9, 0.0  ;;  %v17946_v40 = vld [vmem:[#allocation74_spill] sm:$0xff]  ;;  %v14642_v39 = vld [vmem:[%s17593_s10 + $0x168] sm:$0xff] }
 0x7b0   : > { %8928 = vmatpush.bf16.msra.mxu2 %v14615_v13  ;;  %v7567_v63 = vadd.f32 %v17941_v10, %v7553_v61  ;;  %v17944_v56 = vld [vmem:[#allocation60_spill] sm:$0xff]  ;;  %v17945_v13 = vld [vmem:[#allocation73_spill] sm:$0xff]  ;;  %v8370_v18 = vpack.c.bf16 %v8362_v24, %v8354_v38  ;;  %v8027_v42 = vadd.f32 %v17663_v43, %v8013_v50  ;;  %v8110_v15 = vpop.f32.mrf.mxu2  ;;  %v17949_v48 = vld [vmem:[#allocation78_spill] sm:$0xff] }
 0x7b1   : > { %8901 = vmatpush.bf16.msra.mxu0 %v14598_v34  ;;  %v8356_v1 = vmax.f32 %v17944_v56, 0.0  ;;  %v8082_v31 = vpop.f32.mrf.mxu0  ;;  %v8371_v16 = vpack.c.bf16 %v8363_v3, %v8355_v58  ;;  %v14651_v34 = vld [vmem:[%s17593_s10 + $0x1b0] sm:$0xff]  ;;  %v14650_v43 = vld [vmem:[%s17593_s10 + $0x1a8] sm:$0xff]  ;;  %v14633_v37 = vld [vmem:[%s17593_s10 + $0x120] sm:$0xff] }
 0x7b2   : > { %8942 = vmatpush.bf16.msra.mxu3 %v14623_v35  ;;  %8915 = vmatpush.bf16.msra.mxu1 %v14606_v26  ;;  %v7581_v6 = vadd.f32 %v17945_v13, %v7567_v63  ;;  %v8029_v35 = vadd.f32 %v8028_v49, %v8015_v19  ;;  %v8096_v25 = vpop.f32.mrf.mxu1  ;;  %v14634_v49 = vld [vmem:[%s17593_s10 + $0x128] sm:$0xff]  ;;  %v17947_v26 = vld [vmem:[#allocation75_spill] sm:$0xff]  ;;  %v8041_v45 = vadd.f32 %v17678_v11, %v8027_v42  ;;  %v17948_v0 = vld [vmem:[#allocation76_spill] sm:$0xff] }
 0x7b3   : > { %v8372_v36 = vpack.c.bf16 %v8364_v32, %v8356_v1  ;;  %v8124_v21 = vpop.f32.mrf.mxu3  ;;  %v14641_v61 = vld [vmem:[%s17593_s10 + $0x160] sm:$0xff]  ;;  %v14640_v24 = vld [vmem:[%s17593_s10 + $0x158] sm:$0xff]  ;;  %v14631_v32 = vld [vmem:[%s17593_s10 + $0x110] sm:$0xff] }
 0x7b4   : > { %8929 = vmatpush.bf16.msra.mxu2 %v14614_v55  ;;  %v7595_v59 = vadd.f32 %v17946_v40, %v7581_v6  ;;  %v8043_v4 = vadd.f32 %v8042_v12, %v8029_v35  ;;  %v14649_v57 = vld [vmem:[%s17593_s10 + $0x1a0] sm:$0xff]  ;;  %v14648_v52 = vld [vmem:[%s17593_s10 + $0x198] sm:$0xff]  ;;  %v14639_v63 = vld [vmem:[%s17593_s10 + $0x150] sm:$0xff] }
 0x7b5   : > { %8902 = vmatpush.bf16.msra.mxu0 %v14597_v47  ;;  %v14630_v19 = vld [vmem:[%s17593_s10 + $0x108] sm:$0xff]  ;;  %v14629_v6 = vld [vmem:[%s17593_s10 + $0x100] sm:$0xff] }
 0x7b6   : > { %8943 = vmatpush.bf16.msra.mxu3 %v14622_v33  ;;  %8916 = vmatpush.bf16.msra.mxu1 %v14605_v30  ;;  %v7609_v55 = vadd.f32 %v17947_v26, %v7595_v59  ;;  %v8057_v5 = vadd.f32 %v8056_v7, %v8043_v4  ;;  %v8055_v33 = vadd.f32 %v17686_v46, %v8041_v45  ;;  %v14632_v46 = vld [vmem:[%s17593_s10 + $0x118] sm:$0xff]  ;;  %v14647_v7 = vld [vmem:[%s17593_s10 + $0x190] sm:$0xff]  ;;  %v14638_v58 = vld [vmem:[%s17593_s10 + $0x148] sm:$0xff] }
 0x7b7   : > { %v14646_v56 = vld [vmem:[%s17593_s10 + $0x188] sm:$0xff]  ;;  %v14645_v50 = vld [vmem:[%s17593_s10 + $0x180] sm:$0xff]  ;;  %v14660_v4 = vld [vmem:[%s17593_s10 + $0x1f8] sm:$0xff] }
 0x7b8   : > { %8930 = vmatpush.bf16.msra.mxu2 %v14613_v14  ;;  %8903 = vmatmul.bf16.vlgmr.msra.gmra.mxu0 %v8369_v29  ;;  %v7623_v20 = vadd.f32 %v17948_v0, %v7609_v55  ;;  %v8071_v47 = vadd.f32 %v8070_v23, %v8057_v5  ;;  %v8069_v12 = vadd.f32 %v17699_v22, %v8055_v33  ;;  %v8112_v2 = vpop.f32.mrf.mxu2  ;;  %v17951_v22 = vld [vmem:[#allocation80_spill] sm:$0xff]  ;;  %v17952_v29 = vld [vmem:[#allocation81_spill] sm:$0xff]  ;;  %v14659_v26 = vld [vmem:[%s17593_s10 + $0x1f0] sm:$0xff]  ;;  %v1352_v55 = vperm.slane %v15452_v51, 7 }
 0x7b9   : > { %8951 = vmatpush.bf16.msrb.mxu0 %v14636_v27  ;;  %8917 = vmatmul.bf16.vlgmr.msra.gmra.mxu1 %v8370_v18  ;;  %v8084_v44 = vpop.f32.mrf.mxu0  ;;  %v17950_v27 = vld [vmem:[#allocation79_spill] sm:$0xff]  ;;  %v14637_v18 = vld [vmem:[%s17593_s10 + $0x140] sm:$0xff]  ;;  %v14658_v33 = vld [vmem:[%s17593_s10 + $0x1e8] sm:$0xff] }
 0x7ba   : > { %8944 = vmatpush.bf16.msra.mxu3 %v14621_v62  ;;  %8965 = vmatpush.bf16.msrb.mxu1 %v14644_v17  ;;  %v7637_v11 = vadd.f32 %v17949_v48, %v7623_v20  ;;  %v8085_v30 = vadd.f32 %v8084_v44, %v8071_v47  ;;  %v8098_v14 = vpop.f32.mrf.mxu1  ;;  %v8083_v62 = vadd.f32 %v8082_v31, %v8069_v12  ;;  %v14657_v20 = vld [vmem:[%s17593_s10 + $0x1e0] sm:$0xff]  ;;  %v14656_v47 = vld [vmem:[%s17593_s10 + $0x1d8] sm:$0xff] }
 0x7bb   : > { %8931 = vmatmul.bf16.vlgmr.msra.gmra.mxu2 %v8371_v16  ;;  %v8126_v41 = vpop.f32.mrf.mxu3 }
 0x7bc   : > { %8979 = vmatpush.bf16.msrb.mxu2 %v14652_v28  ;;  %v7651_v54 = vadd.f32 %v17950_v27, %v7637_v11  ;;  %v8099_v3 = vadd.f32 %v8098_v14, %v8085_v30  ;;  %v8097_v17 = vadd.f32 %v8096_v25, %v8083_v62  ;;  %v14655_v30 = vld [vmem:[%s17593_s10 + $0x1d0] sm:$0xff]  ;;  %v14654_v27 = vld [vmem:[%s17593_s10 + $0x1c8] sm:$0xff] }
 0x7bd   : > { %8945 = vmatmul.bf16.vlgmr.msra.gmra.mxu3 %v8372_v36  ;;  %8952 = vmatpush.bf16.msrb.mxu0 %v14635_v60  ;;  %v17953_v60 = vld [vmem:[#allocation77_spill] sm:$0xff] }
 0x7be   : > { %8966 = vmatpush.bf16.msrb.mxu1 %v14643_v8  ;;  %v7665_v10 = vadd.f32 %v17951_v22, %v7651_v54  ;;  %v8113_v28 = vadd.f32 %v8112_v2, %v8099_v3  ;;  %v8111_v38 = vadd.f32 %v8110_v15, %v8097_v17  ;;  %v8357_v16 = vmax.f32 %v17953_v60, 0.0  ;;  %8993 = vmatpush.bf16.msrb.mxu3 %v14660_v4 }
 0x7c0   : > { %8980 = vmatpush.bf16.msrb.mxu2 %v14651_v34  ;;  %v7679_v9 = vadd.f32 %v17952_v29, %v7665_v10  ;;  %v8127_v1 = vadd.f32 %v8126_v41, %v8113_v28  ;;  %v8125_v13 = vadd.f32 %v8124_v21, %v8111_v38  ;;  %v8166_v40 = vpop.f32.mrf.mxu2 }
 0x7c1   : > { %8953 = vmatpush.bf16.msrb.mxu0 %v14634_v49  ;;  %v8138_v34 = vpop.f32.mrf.mxu0 }
 0x7c2   : > { %8967 = vmatpush.bf16.msrb.mxu1 %v14642_v39  ;;  %v8365_v31 = vmax.f32 %v7679_v9, 0.0  ;;  %v8367_v35 = vmax.f32 %v8127_v1, 0.0  ;;  %v8359_v36 = vmax.f32 %v8125_v13, 0.0  ;;  %v8152_v42 = vpop.f32.mrf.mxu1  ;;  %8994 = vmatpush.bf16.msrb.mxu3 %v14659_v26 }
 0x7c3   : > { %v8180_v59 = vpop.f32.mrf.mxu3 }
 0x7c4   : > { %8981 = vmatpush.bf16.msrb.mxu2 %v14650_v43  ;;  %v8373_v23 = vpack.c.bf16 %v8365_v31, %v8357_v16  ;;  %v8375_v8 = vpack.c.bf16 %v8367_v35, %v8359_v36  ;;  %v8139_v43 = vadd.f32 %v8138_v34, %v1352_v55 }
 0x7c5   : > { %8954 = vmatpush.bf16.msrb.mxu0 %v14633_v37 }
 0x7c6   : > { %8968 = vmatpush.bf16.msrb.mxu1 %v14641_v61  ;;  %v8153_v5 = vadd.f32 %v8152_v42, %v8139_v43  ;;  %8995 = vmatpush.bf16.msrb.mxu3 %v14658_v33  ;;  %v14738_v33 = vld [vmem:[%s14661_s27 - $0x1] ss:$0 sm:$0xff] }
 0x7c8   : > { %8982 = vmatpush.bf16.msrb.mxu2 %v14649_v57  ;;  %v8168_v15 = vpop.f32.mrf.mxu2  ;;  %v8167_v44 = vadd.f32 %v8166_v40, %v8153_v5 }
 0x7c9   : > { %8955 = vmatpush.bf16.msrb.mxu0 %v14632_v46  ;;  %v8140_v25 = vpop.f32.mrf.mxu0 }
 0x7ca   : > { %8969 = vmatpush.bf16.msrb.mxu1 %v14640_v24  ;;  %v8154_v49 = vpop.f32.mrf.mxu1  ;;  %v8141_v37 = vadd.f32 %v8140_v25, %v1352_v55  ;;  %8996 = vmatpush.bf16.msrb.mxu3 %v14657_v20  ;;  %v8181_v51 = vadd.f32 %v8180_v59, %v8167_v44 }
 0x7cb   : > { %v8182_v39 = vpop.f32.mrf.mxu3 }
 0x7cc   : > { %8983 = vmatpush.bf16.msrb.mxu2 %v14648_v52  ;;  %v8155_v61 = vadd.f32 %v8154_v49, %v8141_v37 }
 0x7cd   : > { %8956 = vmatpush.bf16.msrb.mxu0 %v14631_v32  ;;  %v14653_v32 = vld [vmem:[%s17593_s10 + $0x1c0] sm:$0xff] }
 0x7ce   : > { %8970 = vmatpush.bf16.msrb.mxu1 %v14639_v63  ;;  %v8169_v11 = vadd.f32 %v8168_v15, %v8155_v61  ;;  %8997 = vmatpush.bf16.msrb.mxu3 %v14656_v47 }
 0x7d0   : > { %8984 = vmatpush.bf16.msrb.mxu2 %v14647_v7  ;;  %v8222_v0 = vpop.f32.mrf.mxu2  ;;  %v8183_v14 = vadd.f32 %v8182_v39, %v8169_v11 }
 0x7d1   : > { %8957 = vmatpush.bf16.msrb.mxu0 %v14630_v19 }
 0x7d2   : > { %8971 = vmatpush.bf16.msrb.mxu1 %v14638_v58  ;;  %v8208_v45 = vpop.f32.mrf.mxu1  ;;  %8998 = vmatpush.bf16.msrb.mxu3 %v14655_v30 }
 0x7d3   : > { %v8236_v21 = vpop.f32.mrf.mxu3 }
 0x7d4   : > { %8985 = vmatpush.bf16.msrb.mxu2 %v14646_v56 }
 0x7d5   : > { %8958 = vmatpush.bf16.msrb.mxu0 %v14629_v6 }
 0x7d6   : > { %8972 = vmatpush.bf16.msrb.mxu1 %v14637_v18  ;;  %8999 = vmatpush.bf16.msrb.mxu3 %v14654_v27 }
 0x7d8   : > { %8986 = vmatpush.bf16.msrb.mxu2 %v14645_v50  ;;  %8959 = vmatmul.bf16.vlgmr.msrb.gmra.mxu0 %v8373_v23  ;;  %v8224_v46 = vpop.f32.mrf.mxu2 }
 0x7d9   : > { %8973 = vmatmul.bf16.vlgmr.msrb.gmra.mxu1 %v17346_v53  ;;  %v8194_v53 = vpop.f32.mrf.mxu0 }
 0x7da   : > { %v8210_v48 = vpop.f32.mrf.mxu1  ;;  %v8195_v12 = vadd.f32 %v8194_v53, %v8181_v51  ;;  %9000 = vmatpush.bf16.msrb.mxu3 %v14653_v32 }
 0x7db   : > { %8987 = vmatmul.bf16.vlgmr.msrb.gmra.mxu2 %v8375_v8  ;;  %v8238_v24 = vpop.f32.mrf.mxu3 }
 0x7dc   : > { %v8209_v62 = vadd.f32 %v8208_v45, %v8195_v12 }
 0x7de   : > { %v8223_v3 = vadd.f32 %v8222_v0, %v8209_v62 }
 0x7e0   : > { %v8278_v22 = vpop.f32.mrf.mxu2  ;;  %v8237_v7 = vadd.f32 %v8236_v21, %v8223_v3 }
 0x7e1   : > { %v8196_v57 = vpop.f32.mrf.mxu0 }
 0x7e2   : > { %v8264_v54 = vpop.f32.mrf.mxu1  ;;  %v8197_v2 = vadd.f32 %v8196_v57, %v8183_v14 }
 0x7e3   : > { %v8292_v63 = vpop.f32.mrf.mxu3 }
 0x7e4   : > { %v8211_v10 = vadd.f32 %v8210_v48, %v8197_v2 }
 0x7e6   : > { %v8225_v17 = vadd.f32 %v8224_v46, %v8211_v10 }
 0x7e8   : > { %v8239_v19 = vadd.f32 %v8238_v24, %v8225_v17  ;;  %v8280_v58 = vpop.f32.mrf.mxu2 }
 0x7e9   : > { %v8250_v52 = vpop.f32.mrf.mxu0 }
 0x7ea   : > { %v8251_v41 = vadd.f32 %v8250_v52, %v8237_v7  ;;  %v8266_v38 = vpop.f32.mrf.mxu1 }
 0x7eb   : > { %v8294_v1 = vpop.f32.mrf.mxu3 }
 0x7ec   : > { %v8265_v29 = vadd.f32 %v8264_v54, %v8251_v41 }
 0x7ee   : > { %v8279_v56 = vadd.f32 %v8278_v22, %v8265_v29 }
 0x7f0   : > { %v8293_v18 = vadd.f32 %v8292_v63, %v8279_v56 }
 0x7f1   : > { %v8252_v28 = vpop.f32.mrf.mxu0 }
 0x7f2   : > { %v8253_v9 = vadd.f32 %v8252_v28, %v8239_v19 }
 0x7f4   : > { %v8267_v6 = vadd.f32 %v8266_v38, %v8253_v9 }
 0x7f6   : > { %v8281_v50 = vadd.f32 %v8280_v58, %v8267_v6 }
 0x7f8   : > { %v8295_v16 = vadd.f32 %v8294_v1, %v8281_v50 }
 0x812   : > { %v8306_v13 = vpop.f32.mrf.mxu0 }
 0x813   : > { %v8307_v35 = vadd.f32 %v8306_v13, %v8293_v18 }
 0x816   : > { %v8320_v31 = vpop.f32.mrf.mxu1 }
 0x817   : > { %v8321_v8 = vadd.f32 %v8320_v31, %v8307_v35 }
 0x81a   : > { %v8308_v23 = vpop.f32.mrf.mxu0 }
 0x81b   : > { %v8309_v34 = vadd.f32 %v8308_v23, %v8295_v16 }
 0x81e   : > { %v8334_v60 = vpop.f32.mrf.mxu2  ;;  %v8322_v40 = vpop.f32.mrf.mxu1 }
 0x81f   : > { %v8335_v42 = vadd.f32 %v8334_v60, %v8321_v8  ;;  %v8323_v59 = vadd.f32 %v8322_v40, %v8309_v34 }
 0x820   : > { %v8348_v36 = vpop.f32.mrf.mxu3 }
 0x821   : > { %v8349_v4 = vadd.f32 %v8348_v36, %v8335_v42 }
 0x823   : > { %v8360_v15 = vmax.f32 %v8349_v4, 0.0 }
 0x826   : > { %v8336_v25 = vpop.f32.mrf.mxu2 }
 0x827   : > { %v8337_v49 = vadd.f32 %v8336_v25, %v8323_v59 }
 0x828   : > { %v8350_v26 = vpop.f32.mrf.mxu3 }
 0x829   : > { %v8351_v55 = vadd.f32 %v8350_v26, %v8337_v49 }
 0x82b   : > { %v8368_v39 = vmax.f32 %v8351_v55, 0.0 }
 0x82d   : > { %v8376_v43 = vpack.c.bf16 %v8368_v39, %v8360_v15 }
 0x82f   : > { %9001 = vmatmul.bf16.vlgmr.msrb.gmra.mxu3 %v8376_v43 }
 0x835   : > { %v8904_v53 = vpop.f32.mrf.mxu0 }
 0x836   : > { %v8918_v45 = vpop.f32.mrf.mxu1  ;;  %v8905_v0 = vadd.f32 %v14738_v33, %v8904_v53 }
 0x838   : > { %v8919_v44 = vadd.f32 %v8918_v45, %v8905_v0 }
 0x83d   : > { %v8906_v37 = vpop.f32.mrf.mxu0 }
 0x83e   : > { %v8932_v5 = vpop.f32.mrf.mxu2  ;;  %v8920_v21 = vpop.f32.mrf.mxu1  ;;  %v8907_v47 = vadd.f32 %v14738_v33, %v8906_v37 }
 0x83f   : > { %v8933_v57 = vadd.f32 %v8932_v5, %v8919_v44 }
 0x840   : > { %v8946_v20 = vpop.f32.mrf.mxu3  ;;  %v8921_v12 = vadd.f32 %v8920_v21, %v8907_v47 }
 0x841   : > { %v8947_v48 = vadd.f32 %v8946_v20, %v8933_v57 }
 0x846   : > { %v8934_v61 = vpop.f32.mrf.mxu2 }
 0x847   : > { %v8935_v24 = vadd.f32 %v8934_v61, %v8921_v12 }
 0x848   : > { %v8948_v11 = vpop.f32.mrf.mxu3 }
 0x849   : > { %v8949_v27 = vadd.f32 %v8948_v11, %v8935_v24 }
 0x855   : > { %v8960_v51 = vpop.f32.mrf.mxu0 }
 0x856   : > { %v8961_v30 = vadd.f32 %v8960_v51, %v8947_v48  ;;  %v8974_v46 = vpop.f32.mrf.mxu1 }
 0x858   : > { %v8975_v52 = vadd.f32 %v8974_v46, %v8961_v30 }
 0x85d   : > { %v8962_v62 = vpop.f32.mrf.mxu0 }
 0x85e   : > { %v8988_v14 = vpop.f32.mrf.mxu2  ;;  %v8963_v3 = vadd.f32 %v8962_v62, %v8949_v27  ;;  %v8976_v22 = vpop.f32.mrf.mxu1 }
 0x85f   : > { %v8989_v54 = vadd.f32 %v8988_v14, %v8975_v52 }
 0x860   : > { %v8977_v63 = vadd.f32 %v8976_v22, %v8963_v3 }
 0x866   : > { %v8990_v10 = vpop.f32.mrf.mxu2 }
 0x867   : > { %v8991_v7 = vadd.f32 %v8990_v10, %v8977_v63 }
 0x8b2   : > { %v9002_v2 = vpop.f32.mrf.mxu3 }
 0x8b3   : > { %v9003_v32 = vadd.f32 %v9002_v2, %v8989_v54 }
 0x8b5   : > { %9008 = vst.msk [vmem:[%s292_s7] sm:$0xff] %vm9007_vm0, %v9003_v32 }
 0x8ba   : > { %v9004_v17 = vpop.f32.mrf.mxu3 }
 0x8bb   : > { %v9005_v28 = vadd.f32 %v9004_v17, %v8991_v7 }
 0x8bd   : > { %9009 = vst.msk [vmem:[%s292_s7 + $0x8] sm:$0xff] %vm9007_vm0, %v9005_v28 }
 0x8be PF: > { %p17_p8 = scmp.ge.s32.totalorder %s14966_s23, 8   ;;  %s17954_s18 = smov %s14897_s19 }
 0x8bf   : > { %s17955_s19 = smov %s14901_s20  ;;  %s17956_s20 = smov %s14976_s26 }
 0x8c0   : > { %s17957_s21 = smov %s14966_s23  ;;  %19 = sbr.rel (!%p17_p8) target bundleno = 7 (0x7), region = 96 }
 0x8c5   :  { %9031 = vsyncpa [#allocation3], 1 }
 0x8c6   :  { %9033 = vsyncpa [#allocation3 + $0x1], 1 }
 0x8c7   :  { %9034 = vsyncpa [#allocation5], 1 }
 0x8c8   :  { %9036 = vsyncpa [#allocation5 + $0x1], 1 }
 0x8c9   :  { %9037 = vsyncpa [#allocation8], 1 }

</bundles_post_ra>
